<compile_context>
chip_gen: v6e
topology: v6e:2x2x1
jax: 0.10.0
libtpu: 0.0.40
codegen_flags: <defaults>
</compile_context>

<pallas_src>
import functools
import math

import numpy as np
import jax
import jax.numpy as jnp
from jax import lax
from jax.experimental import pallas as pl
from jax.experimental.pallas import tpu as pltpu

N_HEAD = 8
LN_EPS = 1e-5
LANE = 128
SUBLANE = 8


# ------------------------- in-kernel helper functions -------------------------

def _layernorm(x, g, b, eps):
    mean = jnp.mean(x, axis=-1, keepdims=True)
    var = jnp.mean(jnp.square(x - mean), axis=-1, keepdims=True)   # biased, like torch
    return (x - mean) * lax.rsqrt(var + eps) * g + b


def _mm(x, w):
    """MXU matmul, f32 accumulation; activation cast to the weight dtype (bf16)."""
    return jnp.dot(x.astype(w.dtype), w, preferred_element_type=jnp.float32)


def _attention(q, k, v, mask_add, scores_ref, ctx_ref, n_head):
    """q/k/v: (S, E) f32; q is pre-scaled (1/sqrt(Dh) folded into wq).
    mask_add: additive (H*S, S) mask (0 / -1e20) or None.
    scores_ref: (H*S, S) f32 scratch, ctx_ref: (S, E) f32 scratch.
    Heads are static lane slices; per-head tiles go into scratch slices so no
    concatenates are materialised and one softmax covers every head."""
    S, E = q.shape
    Dh = E // n_head

    for h in range(n_head):
        sl = slice(h * Dh, (h + 1) * Dh)
        scores_ref[h * S:(h + 1) * S, :] = lax.dot_general(
            q[:, sl], k[:, sl], (((1,), (1,)), ((), ())),
            preferred_element_type=jnp.float32)                      # (S, S)

    s = scores_ref[...]
    if mask_add is not None:
        s = s + mask_add
    s = s - jnp.max(s, axis=-1, keepdims=True)
    p = jnp.exp(s)
    p = p / jnp.sum(p, axis=-1, keepdims=True)
    scores_ref[...] = p

    for h in range(n_head):
        sl = slice(h * Dh, (h + 1) * Dh)
        ctx_ref[:, sl] = jnp.dot(scores_ref[h * S:(h + 1) * S, :], v[:, sl],
                                 preferred_element_type=jnp.float32)  # (S, Dh)
    return ctx_ref[...]


def _transformer_block(kx, qx, vx, wq, wk, wv, wo_t, bo,
                       ln1_g, ln1_b, ff1_t, ff1_b, ff2_t, ff2_b, ln2_g, ln2_b,
                       mask_add, scores_ref, ctx_ref, n_head, eps):
    """Reference TransformerBlock: MHA + add&LN + ReLU-FFN + add&LN (one batch row)."""
    q = _mm(qx, wq)
    k = _mm(kx, wk)
    v = _mm(vx, wv)
    ctx = _attention(q, k, v, mask_add, scores_ref, ctx_ref, n_head)
    attn = _mm(ctx, wo_t) + bo
    x1 = _layernorm(attn + vx, ln1_g, ln1_b, eps)
    h = jnp.maximum(_mm(x1, ff1_t) + ff1_b, 0.0)
    ff = _mm(h, ff2_t) + ff2_b
    return _layernorm(ff + x1, ln2_g, ln2_b, eps)


def _embed(ids, embed_tbl, pe, scale):
    """Exact embedding row-gather as a one-hot f32 matmul (tiny, 8-padded vocab)."""
    S = ids.shape[0]
    V = embed_tbl.shape[0]
    onehot = (ids == lax.broadcasted_iota(jnp.int32, (S, V), 1)).astype(jnp.float32)
    x = jnp.dot(onehot, embed_tbl, preferred_element_type=jnp.float32)
    return x * scale + pe


# --------------------------------- kernels ---------------------------------

def _encoder_kernel(ids_ref, emb_ref, pe_ref,
                    wq_ref, wk_ref, wv_ref, wo_ref, bo_ref,
                    ln1g_ref, ln1b_ref, ff1_ref, ff1b_ref, ff2_ref, ff2b_ref,
                    ln2g_ref, ln2b_ref,
                    o_ref, scores_ref, ctx_ref,
                    *, n_layers, n_head, eps, emb_scale):
    """Embedding + PE + all encoder layers for one batch element."""
    x = _embed(ids_ref[0], emb_ref[...], pe_ref[...], emb_scale)     # (S, E) f32
    for l in range(n_layers):
        x = _transformer_block(
            x, x, x,
            wq_ref[l], wk_ref[l], wv_ref[l], wo_ref[l], bo_ref[l],
            ln1g_ref[l], ln1b_ref[l], ff1_ref[l], ff1b_ref[l],
            ff2_ref[l], ff2b_ref[l], ln2g_ref[l], ln2b_ref[l],
            None, scores_ref, ctx_ref, n_head, eps)
    o_ref[0] = x.astype(o_ref.dtype)


def _decoder_kernel(ids_ref, enc_ref, emb_ref, pe_ref, mask_ref,
                    swq_ref, swk_ref, swv_ref, swo_ref, sbo_ref, slng_ref, slnb_ref,
                    wq_ref, wk_ref, wv_ref, wo_ref, bo_ref,
                    ln1g_ref, ln1b_ref, ff1_ref, ff1b_ref, ff2_ref, ff2b_ref,
                    ln2g_ref, ln2b_ref,
                    fcw_ref, fcb_ref,
                    o_ref, scores_ref, ctx_ref,
                    *, n_layers, n_head, eps, emb_scale):
    """Embedding + PE + all decoder layers + fc/softmax for one batch element."""
    x = _embed(ids_ref[0], emb_ref[...], pe_ref[...], emb_scale)     # (S, E)
    enc = enc_ref[0]                                                 # (S, E)
    mask_add = mask_ref[...]                                         # (H*S, S)

    for l in range(n_layers):
        # masked self-attention + add & LayerNorm (over enc_out, per the
        # reference call pattern layer(enc_out, x, enc_out, mask))
        q = _mm(enc, swq_ref[l])
        k = _mm(enc, swk_ref[l])
        v = _mm(enc, swv_ref[l])
        ctx = _attention(q, k, v, mask_add, scores_ref, ctx_ref, n_head)
        attn = _mm(ctx, swo_ref[l]) + sbo_ref[l]
        value = _layernorm(attn + enc, slng_ref[l], slnb_ref[l], eps)

        # cross TransformerBlock: key=enc_out, query=x, value=value (no mask)
        x = _transformer_block(
            enc, x, value,
            wq_ref[l], wk_ref[l], wv_ref[l], wo_ref[l], bo_ref[l],
            ln1g_ref[l], ln1b_ref[l], ff1_ref[l], ff1b_ref[l],
            ff2_ref[l], ff2b_ref[l], ln2g_ref[l], ln2b_ref[l],
            None, scores_ref, ctx_ref, n_head, eps)

    # output projection + softmax over the lane-dense padded vocab
    logits = _mm(x, fcw_ref[...]) + fcb_ref[...]
    logits = logits - jnp.max(logits, axis=-1, keepdims=True)
    e = jnp.exp(logits)
    o_ref[0] = (e / jnp.sum(e, axis=-1, keepdims=True)).astype(o_ref.dtype)


# --------------------------------- wrappers ---------------------------------

def _const_spec(shape):
    return pl.BlockSpec(shape, lambda b: (0,) * len(shape))


def encoder_forward(p, src_ids, *, n_head=N_HEAD, eps=LN_EPS):
    B, S = src_ids.shape
    E = p["pe"].shape[1]
    L = int(p["wq"].shape[0])
    F = p["ff1_t"].shape[-1]
    Vp = p["embed"].shape[0]
    kern = functools.partial(_encoder_kernel, n_layers=L, n_head=n_head,
                             eps=eps, emb_scale=math.sqrt(E))
    return pl.pallas_call(
        kern,
        grid=(B,),
        in_specs=[
            pl.BlockSpec((1, S, 1), lambda b: (b, 0, 0)),
            _const_spec((Vp, E)), _const_spec((S, E)),
            _const_spec((L, E, E)), _const_spec((L, E, E)), _const_spec((L, E, E)),
            _const_spec((L, E, E)), _const_spec((L, 1, E)),
            _const_spec((L, 1, E)), _const_spec((L, 1, E)),
            _const_spec((L, E, F)), _const_spec((L, 1, F)),
            _const_spec((L, F, E)), _const_spec((L, 1, E)),
            _const_spec((L, 1, E)), _const_spec((L, 1, E)),
        ],
        out_specs=pl.BlockSpec((1, S, E), lambda b: (b, 0, 0)),
        out_shape=jax.ShapeDtypeStruct((B, S, E), jnp.float32),
        scratch_shapes=[pltpu.VMEM((n_head * S, S), jnp.float32),
                        pltpu.VMEM((S, E), jnp.float32)],
        compiler_params=pltpu.CompilerParams(dimension_semantics=("parallel",)),
    )(src_ids[..., None].astype(jnp.int32), p["embed"], p["pe"],
      p["wq"], p["wk"], p["wv"], p["wo_t"], p["bo"],
      p["ln1_g"], p["ln1_b"], p["ff1_t"], p["ff1_b"], p["ff2_t"], p["ff2_b"],
      p["ln2_g"], p["ln2_b"])


def decoder_forward(p, tgt_ids, enc_out, mask_add, tgt_vocab,
                    *, n_head=N_HEAD, eps=LN_EPS):
    B, S = tgt_ids.shape
    E = p["pe"].shape[1]
    L = int(p["b_wq"].shape[0])
    F = p["b_ff1_t"].shape[-1]
    Vp = p["embed"].shape[0]
    Vpad = p["fc_wt"].shape[1]
    kern = functools.partial(_decoder_kernel, n_layers=L, n_head=n_head,
                             eps=eps, emb_scale=math.sqrt(E))
    out_pad = pl.pallas_call(
        kern,
        grid=(B,),
        in_specs=[
            pl.BlockSpec((1, S, 1), lambda b: (b, 0, 0)),
            pl.BlockSpec((1, S, E), lambda b: (b, 0, 0)),
            _const_spec((Vp, E)), _const_spec((S, E)), _const_spec((n_head * S, S)),
            # decoder self-attention stack (per-layer, stacked on axis 0)
            _const_spec((L, E, E)), _const_spec((L, E, E)), _const_spec((L, E, E)),
            _const_spec((L, E, E)), _const_spec((L, 1, E)),
            _const_spec((L, 1, E)), _const_spec((L, 1, E)),
            # cross transformer-block stack
            _const_spec((L, E, E)), _const_spec((L, E, E)), _const_spec((L, E, E)),
            _const_spec((L, E, E)), _const_spec((L, 1, E)),
            _const_spec((L, 1, E)), _const_spec((L, 1, E)),
            _const_spec((L, E, F)), _const_spec((L, 1, F)),
            _const_spec((L, F, E)), _const_spec((L, 1, E)),
            _const_spec((L, 1, E)), _const_spec((L, 1, E)),
            # output projection (lane-padded vocab)
            _const_spec((E, Vpad)), _const_spec((1, Vpad)),
        ],
        out_specs=pl.BlockSpec((1, S, Vpad), lambda b: (b, 0, 0)),
        out_shape=jax.ShapeDtypeStruct((B, S, Vpad), jnp.float32),
        scratch_shapes=[pltpu.VMEM((n_head * S, S), jnp.float32),
                        pltpu.VMEM((S, E), jnp.float32)],
        compiler_params=pltpu.CompilerParams(dimension_semantics=("parallel",)),
    )(tgt_ids[..., None].astype(jnp.int32), enc_out, p["embed"], p["pe"], mask_add,
      p["s_wq"], p["s_wk"], p["s_wv"], p["s_wo_t"], p["s_bo"], p["s_ln_g"], p["s_ln_b"],
      p["b_wq"], p["b_wk"], p["b_wv"], p["b_wo_t"], p["b_bo"],
      p["b_ln1_g"], p["b_ln1_b"], p["b_ff1_t"], p["b_ff1_b"],
      p["b_ff2_t"], p["b_ff2_b"], p["b_ln2_g"], p["b_ln2_b"],
      p["fc_wt"], p["fc_b"])
    return out_pad[:, :, :tgt_vocab]


def transformer_forward(params, src, target, tgt_vocab):
    S = target.shape[1]
    tril = jnp.tril(jnp.ones((S, S), jnp.float32))
    # additive mask, pre-tiled over heads -> one VPU add inside the kernel
    mask_add = jnp.where(tril == 0.0, jnp.float32(-1e20), jnp.float32(0.0))
    mask_add = jnp.tile(mask_add, (N_HEAD, 1))                        # (H*S, S)
    enc = encoder_forward(params["encoder"], src)
    return decoder_forward(params["decoder"], target, enc, mask_add, tgt_vocab)


# ----------------------------- model parameters -----------------------------

def positional_encoding(seq_len, E):
    pe = np.zeros((seq_len, E), dtype=np.float32)
    for pos in range(seq_len):
        for i in range(0, E, 2):
            pe[pos, i] = math.sin(pos / (10000 ** ((2 * i) / E)))
            if i + 1 < E:
                pe[pos, i + 1] = math.cos(pos / (10000 ** ((2 * (i + 1)) / E)))
    return jnp.asarray(pe)


def init_params(key, E, src_vocab, tgt_vocab, seq_len, num_layers, expansion, n_head):
    Dh = E // n_head
    F = expansion * E

    def nrm(k, shape):
        return 0.02 * jax.random.normal(k, shape, jnp.float32)

    def init_mha(k):
        ks = jax.random.split(k, 4)
        return dict(
            wq=nrm(ks[0], (Dh, Dh)), wk=nrm(ks[1], (Dh, Dh)), wv=nrm(ks[2], (Dh, Dh)),
            wo=nrm(ks[3], (E, E)), bo=jnp.zeros((E,), jnp.float32),
        )

    def init_block(k):
        ks = jax.random.split(k, 3)
        return dict(
            mha=init_mha(ks[0]),
            ln1_g=jnp.ones((E,), jnp.float32), ln1_b=jnp.zeros((E,), jnp.float32),
            ff1_w=nrm(ks[1], (F, E)), ff1_b=jnp.zeros((F,), jnp.float32),
            ff2_w=nrm(ks[2], (E, F)), ff2_b=jnp.zeros((E,), jnp.float32),
            ln2_g=jnp.ones((E,), jnp.float32), ln2_b=jnp.zeros((E,), jnp.float32),
        )

    def init_dec_block(k):
        ks = jax.random.split(k, 2)
        return dict(
            self_mha=init_mha(ks[0]),
            ln_g=jnp.ones((E,), jnp.float32), ln_b=jnp.zeros((E,), jnp.float32),
            block=init_block(ks[1]),
        )

    keys = jax.random.split(key, 2 * num_layers + 4)
    pe = positional_encoding(seq_len, E)
    enc = dict(
        embed=nrm(keys[0], (src_vocab, E)),
        pe=pe,
        layers=[init_block(keys[1 + l]) for l in range(num_layers)],
    )
    dec = dict(
        embed=nrm(keys[1 + num_layers], (tgt_vocab, E)),
        pe=pe,
        layers=[init_dec_block(keys[2 + num_layers + l]) for l in range(num_layers)],
        fc_w=nrm(keys[2 + 2 * num_layers], (tgt_vocab, E)),
        fc_b=jnp.zeros((tgt_vocab,), jnp.float32),
    )
    return dict(encoder=enc, decoder=dec)


# ------------- parameter preparation (done ONCE, outside the jit) -------------

def _prep_mha(p, n_head, scale):
    """Per-head (Dh,Dh) weights -> block-diagonal (E,E) bf16 matrices; the 1/sqrt(Dh)
    scale is folded into wq (safe: the mask fill still underflows to 0 after exp)."""
    eye = jnp.eye(n_head, dtype=jnp.float32)
    blk = lambda w: jnp.kron(eye, w.T)
    return dict(
        wq=(blk(p["wq"]) * scale).astype(jnp.bfloat16),
        wk=blk(p["wk"]).astype(jnp.bfloat16),
        wv=blk(p["wv"]).astype(jnp.bfloat16),
        wo_t=p["wo"].T.astype(jnp.bfloat16),
        bo=p["bo"].reshape(1, -1),
    )


def _prep_block(p, n_head, scale):
    d = _prep_mha(p["mha"], n_head, scale)
    d.update(
        ln1_g=p["ln1_g"].reshape(1, -1), ln1_b=p["ln1_b"].reshape(1, -1),
        ff1_t=p["ff1_w"].T.astype(jnp.bfloat16), ff1_b=p["ff1_b"].reshape(1, -1),
        ff2_t=p["ff2_w"].T.astype(jnp.bfloat16), ff2_b=p["ff2_b"].reshape(1, -1),
        ln2_g=p["ln2_g"].reshape(1, -1), ln2_b=p["ln2_b"].reshape(1, -1),
    )
    return d


def _stack(dicts, prefix=""):
    """Stack per-layer param dicts on a leading layer axis (VMEM-resident in-kernel)."""
    return {prefix + k: jnp.stack([d[k] for d in dicts], axis=0) for k in dicts[0]}


def _pad_rows(a, mult=SUBLANE):
    r = a.shape[0]
    rpad = ((r + mult - 1) // mult) * mult
    if rpad == r:
        return a
    return jnp.zeros((rpad,) + a.shape[1:], a.dtype).at[:r].set(a)


def prepare_params(params, n_head=N_HEAD, lane=LANE):
    enc_p, dec_p = params["encoder"], params["decoder"]
    E = enc_p["embed"].shape[1]
    scale = 1.0 / math.sqrt(E // n_head)

    enc = dict(embed=_pad_rows(enc_p["embed"]), pe=enc_p["pe"])
    enc.update(_stack([_prep_block(lp, n_head, scale) for lp in enc_p["layers"]]))

    V = dec_p["fc_w"].shape[0]
    vpad = ((V + lane - 1) // lane) * lane
    # lane-dense padded fc: zero weight columns + -1e30 bias -> prob exactly 0
    fc_wt = (jnp.zeros((E, vpad), jnp.float32)
             .at[:, :V].set(dec_p["fc_w"].T).astype(jnp.bfloat16))
    fc_b = jnp.full((1, vpad), -1e30, jnp.float32).at[0, :V].set(dec_p["fc_b"])

    self_layers, block_layers = [], []
    for lp in dec_p["layers"]:
        d = _prep_mha(lp["self_mha"], n_head, scale)
        d.update(ln_g=lp["ln_g"].reshape(1, -1), ln_b=lp["ln_b"].reshape(1, -1))
        self_layers.append(d)
        block_layers.append(_prep_block(lp["block"], n_head, scale))

    dec = dict(embed=_pad_rows(dec_p["embed"]), pe=dec_p["pe"],
               fc_wt=fc_wt, fc_b=fc_b)
    dec.update(_stack(self_layers, prefix="s_"))
    dec.update(_stack(block_layers, prefix="b_"))
    return dict(encoder=enc, decoder=dec)


# ----------------------------------- main -----------------------------------

if __name__ == "__main__":
    EMBED_DIM = 32
    SEQ_LEN = 8
    BATCH = 2
    SRC_VOCAB = 13
    TGT_VOCAB = 11
    NUM_LAYERS = 2
    EXPANSION = 4

    root = jax.random.PRNGKey(0)
    kp, ksrc, ktgt = jax.random.split(root, 3)
    raw_params = init_params(kp, EMBED_DIM, SRC_VOCAB, TGT_VOCAB, SEQ_LEN,
                             NUM_LAYERS, EXPANSION, N_HEAD)
    params = prepare_params(raw_params)   # kron/transpose/pad/stack hoisted out of fwd

    src = jax.random.randint(ksrc, (BATCH, SEQ_LEN), 0, SRC_VOCAB, dtype=jnp.int32)
    tgt = jax.random.randint(ktgt, (BATCH, SEQ_LEN), 0, TGT_VOCAB, dtype=jnp.int32)

    fwd = jax.jit(functools.partial(transformer_forward, tgt_vocab=TGT_VOCAB))
    out = jax.block_until_ready(fwd(params, src, tgt))

    assert out.shape == (BATCH, SEQ_LEN, TGT_VOCAB), out.shape
    assert bool(jnp.all(jnp.isfinite(out)))
    assert bool(jnp.all(jnp.abs(jnp.sum(out, axis=-1) - 1.0) < 1e-3))
    print("KERNEL_OK")
</pallas_src>

<mosaic_0001>
module attributes {stable_mosaic.version = 11 : i64} {
  func.func @_encoder_kernel(%arg0: i32, %arg1: memref<1x8x1xi32, #tpu.memory_space<vmem>>, %arg2: memref<16x32xf32, #tpu.memory_space<vmem>>, %arg3: memref<8x32xf32, #tpu.memory_space<vmem>>, %arg4: memref<2x32x32xbf16, #tpu.memory_space<vmem>>, %arg5: memref<2x32x32xbf16, #tpu.memory_space<vmem>>, %arg6: memref<2x32x32xbf16, #tpu.memory_space<vmem>>, %arg7: memref<2x32x32xbf16, #tpu.memory_space<vmem>>, %arg8: memref<2x1x32xf32, #tpu.memory_space<vmem>>, %arg9: memref<2x1x32xf32, #tpu.memory_space<vmem>>, %arg10: memref<2x1x32xf32, #tpu.memory_space<vmem>>, %arg11: memref<2x32x128xbf16, #tpu.memory_space<vmem>>, %arg12: memref<2x1x128xf32, #tpu.memory_space<vmem>>, %arg13: memref<2x128x32xbf16, #tpu.memory_space<vmem>>, %arg14: memref<2x1x32xf32, #tpu.memory_space<vmem>>, %arg15: memref<2x1x32xf32, #tpu.memory_space<vmem>>, %arg16: memref<2x1x32xf32, #tpu.memory_space<vmem>>, %arg17: memref<1x8x32xf32, #tpu.memory_space<vmem>>, %arg18: memref<64x8xf32, #tpu.memory_space<vmem>>, %arg19: memref<8x32xf32, #tpu.memory_space<vmem>>) attributes {dimension_semantics = [#tpu.dimension_semantics<parallel>], iteration_bounds = array<i64: 2>, scalar_prefetch = 0 : i64, scratch_operands = 2 : i64, tpu.core_type = #tpu.core_type<tc>, window_params = [{transform_indices = @transform_0, window_bounds = array<i64: 1, 8, 1>}, {pipeline_mode = #tpu.pipeline_mode<synchronous>, transform_indices = @transform_1, window_bounds = array<i64: 16, 32>}, {pipeline_mode = #tpu.pipeline_mode<synchronous>, transform_indices = @transform_2, window_bounds = array<i64: 8, 32>}, {pipeline_mode = #tpu.pipeline_mode<synchronous>, transform_indices = @transform_3, window_bounds = array<i64: 2, 32, 32>}, {pipeline_mode = #tpu.pipeline_mode<synchronous>, transform_indices = @transform_4, window_bounds = array<i64: 2, 32, 32>}, {pipeline_mode = #tpu.pipeline_mode<synchronous>, transform_indices = @transform_5, window_bounds = array<i64: 2, 32, 32>}, {pipeline_mode = #tpu.pipeline_mode<synchronous>, transform_indices = @transform_6, window_bounds = array<i64: 2, 32, 32>}, {pipeline_mode = #tpu.pipeline_mode<synchronous>, transform_indices = @transform_7, window_bounds = array<i64: 2, 1, 32>}, {pipeline_mode = #tpu.pipeline_mode<synchronous>, transform_indices = @transform_8, window_bounds = array<i64: 2, 1, 32>}, {pipeline_mode = #tpu.pipeline_mode<synchronous>, transform_indices = @transform_9, window_bounds = array<i64: 2, 1, 32>}, {pipeline_mode = #tpu.pipeline_mode<synchronous>, transform_indices = @transform_10, window_bounds = array<i64: 2, 32, 128>}, {pipeline_mode = #tpu.pipeline_mode<synchronous>, transform_indices = @transform_11, window_bounds = array<i64: 2, 1, 128>}, {pipeline_mode = #tpu.pipeline_mode<synchronous>, transform_indices = @transform_12, window_bounds = array<i64: 2, 128, 32>}, {pipeline_mode = #tpu.pipeline_mode<synchronous>, transform_indices = @transform_13, window_bounds = array<i64: 2, 1, 32>}, {pipeline_mode = #tpu.pipeline_mode<synchronous>, transform_indices = @transform_14, window_bounds = array<i64: 2, 1, 32>}, {pipeline_mode = #tpu.pipeline_mode<synchronous>, transform_indices = @transform_15, window_bounds = array<i64: 2, 1, 32>}, {transform_indices = @transform_16, window_bounds = array<i64: 1, 8, 32>}]} {
    %c0 = arith.constant 0 : index
    %c0_0 = arith.constant 0 : index
    %c0_1 = arith.constant 0 : index
    %0 = vector.load %arg1[%c0, %c0_0, %c0_1] : memref<1x8x1xi32, #tpu.memory_space<vmem>>, vector<1x8x1xi32>
    %1 = vector.shape_cast %0 : vector<1x8x1xi32> to vector<8x1xi32>
    %c0_2 = arith.constant 0 : index
    %c0_3 = arith.constant 0 : index
    %2 = vector.load %arg2[%c0_2, %c0_3] : memref<16x32xf32, #tpu.memory_space<vmem>>, vector<16x32xf32>
    %c0_4 = arith.constant 0 : index
    %c0_5 = arith.constant 0 : index
    %3 = vector.load %arg3[%c0_4, %c0_5] : memref<8x32xf32, #tpu.memory_space<vmem>>, vector<8x32xf32>
    %4 = tpu.iota {dimensions = array<i32: 1>} : vector<8x16xi32>
    %5 = vector.broadcast %1 : vector<8x1xi32> to vector<8x16xi32>
    %6 = arith.cmpi eq, %5, %4 : vector<8x16xi32>
    %7 = arith.extui %6 : vector<8x16xi1> to vector<8x16xi32>
    %8 = arith.sitofp %7 : vector<8x16xi32> to vector<8x16xf32>
    %cst = arith.constant dense<0.000000e+00> : vector<8x32xf32>
    %9 = tpu.matmul %8, %2, %cst {dimension_numbers = #tpu.dot_dimension_numbers<[1], [0], [0], [1], [0, 0, 1, 1], [], []>} : vector<8x16xf32>, vector<16x32xf32>, vector<8x32xf32> -> vector<8x32xf32>
    %cst_6 = arith.constant 5.65685415 : f32
    %10 = vector.broadcast %cst_6 : f32 to vector<8x32xf32>
    %11 = arith.mulf %9, %10 : vector<8x32xf32>
    %12 = arith.addf %11, %3 : vector<8x32xf32>
    %c0_7 = arith.constant 0 : index
    %c0_8 = arith.constant 0 : index
    %c0_9 = arith.constant 0 : index
    %13 = vector.load %arg4[%c0_7, %c0_8, %c0_9] : memref<2x32x32xbf16, #tpu.memory_space<vmem>>, vector<1x32x32xbf16>
    %14 = vector.shape_cast %13 : vector<1x32x32xbf16> to vector<32x32xbf16>
    %c0_10 = arith.constant 0 : index
    %c0_11 = arith.constant 0 : index
    %c0_12 = arith.constant 0 : index
    %15 = vector.load %arg5[%c0_10, %c0_11, %c0_12] : memref<2x32x32xbf16, #tpu.memory_space<vmem>>, vector<1x32x32xbf16>
    %16 = vector.shape_cast %15 : vector<1x32x32xbf16> to vector<32x32xbf16>
    %c0_13 = arith.constant 0 : index
    %c0_14 = arith.constant 0 : index
    %c0_15 = arith.constant 0 : index
    %17 = vector.load %arg6[%c0_13, %c0_14, %c0_15] : memref<2x32x32xbf16, #tpu.memory_space<vmem>>, vector<1x32x32xbf16>
    %18 = vector.shape_cast %17 : vector<1x32x32xbf16> to vector<32x32xbf16>
    %c0_16 = arith.constant 0 : index
    %c0_17 = arith.constant 0 : index
    %c0_18 = arith.constant 0 : index
    %19 = vector.load %arg7[%c0_16, %c0_17, %c0_18] : memref<2x32x32xbf16, #tpu.memory_space<vmem>>, vector<1x32x32xbf16>
    %20 = vector.shape_cast %19 : vector<1x32x32xbf16> to vector<32x32xbf16>
    %c0_19 = arith.constant 0 : index
    %c0_20 = arith.constant 0 : index
    %c0_21 = arith.constant 0 : index
    %21 = vector.load %arg8[%c0_19, %c0_20, %c0_21] : memref<2x1x32xf32, #tpu.memory_space<vmem>>, vector<1x1x32xf32>
    %22 = vector.shape_cast %21 : vector<1x1x32xf32> to vector<1x32xf32>
    %c0_22 = arith.constant 0 : index
    %c0_23 = arith.constant 0 : index
    %c0_24 = arith.constant 0 : index
    %23 = vector.load %arg9[%c0_22, %c0_23, %c0_24] : memref<2x1x32xf32, #tpu.memory_space<vmem>>, vector<1x1x32xf32>
    %24 = vector.shape_cast %23 : vector<1x1x32xf32> to vector<1x32xf32>
    %c0_25 = arith.constant 0 : index
    %c0_26 = arith.constant 0 : index
    %c0_27 = arith.constant 0 : index
    %25 = vector.load %arg10[%c0_25, %c0_26, %c0_27] : memref<2x1x32xf32, #tpu.memory_space<vmem>>, vector<1x1x32xf32>
    %26 = vector.shape_cast %25 : vector<1x1x32xf32> to vector<1x32xf32>
    %c0_28 = arith.constant 0 : index
    %c0_29 = arith.constant 0 : index
    %c0_30 = arith.constant 0 : index
    %27 = vector.load %arg11[%c0_28, %c0_29, %c0_30] : memref<2x32x128xbf16, #tpu.memory_space<vmem>>, vector<1x32x128xbf16>
    %28 = vector.shape_cast %27 : vector<1x32x128xbf16> to vector<32x128xbf16>
    %c0_31 = arith.constant 0 : index
    %c0_32 = arith.constant 0 : index
    %c0_33 = arith.constant 0 : index
    %29 = vector.load %arg12[%c0_31, %c0_32, %c0_33] : memref<2x1x128xf32, #tpu.memory_space<vmem>>, vector<1x1x128xf32>
    %30 = vector.shape_cast %29 : vector<1x1x128xf32> to vector<1x128xf32>
    %c0_34 = arith.constant 0 : index
    %c0_35 = arith.constant 0 : index
    %c0_36 = arith.constant 0 : index
    %31 = vector.load %arg13[%c0_34, %c0_35, %c0_36] : memref<2x128x32xbf16, #tpu.memory_space<vmem>>, vector<1x128x32xbf16>
    %32 = vector.shape_cast %31 : vector<1x128x32xbf16> to vector<128x32xbf16>
    %c0_37 = arith.constant 0 : index
    %c0_38 = arith.constant 0 : index
    %c0_39 = arith.constant 0 : index
    %33 = vector.load %arg14[%c0_37, %c0_38, %c0_39] : memref<2x1x32xf32, #tpu.memory_space<vmem>>, vector<1x1x32xf32>
    %34 = vector.shape_cast %33 : vector<1x1x32xf32> to vector<1x32xf32>
    %c0_40 = arith.constant 0 : index
    %c0_41 = arith.constant 0 : index
    %c0_42 = arith.constant 0 : index
    %35 = vector.load %arg15[%c0_40, %c0_41, %c0_42] : memref<2x1x32xf32, #tpu.memory_space<vmem>>, vector<1x1x32xf32>
    %36 = vector.shape_cast %35 : vector<1x1x32xf32> to vector<1x32xf32>
    %c0_43 = arith.constant 0 : index
    %c0_44 = arith.constant 0 : index
    %c0_45 = arith.constant 0 : index
    %37 = vector.load %arg16[%c0_43, %c0_44, %c0_45] : memref<2x1x32xf32, #tpu.memory_space<vmem>>, vector<1x1x32xf32>
    %38 = vector.shape_cast %37 : vector<1x1x32xf32> to vector<1x32xf32>
    %39 = arith.truncf %12 : vector<8x32xf32> to vector<8x32xbf16>
    %cst_46 = arith.constant dense<0.000000e+00> : vector<8x32xf32>
    %40 = tpu.matmul %39, %14, %cst_46 {dimension_numbers = #tpu.dot_dimension_numbers<[1], [0], [0], [1], [0, 0, 1, 1], [], []>} : vector<8x32xbf16>, vector<32x32xbf16>, vector<8x32xf32> -> vector<8x32xf32>
    %41 = arith.truncf %12 : vector<8x32xf32> to vector<8x32xbf16>
    %cst_47 = arith.constant dense<0.000000e+00> : vector<8x32xf32>
    %42 = tpu.matmul %41, %16, %cst_47 {dimension_numbers = #tpu.dot_dimension_numbers<[1], [0], [0], [1], [0, 0, 1, 1], [], []>} : vector<8x32xbf16>, vector<32x32xbf16>, vector<8x32xf32> -> vector<8x32xf32>
    %43 = arith.truncf %12 : vector<8x32xf32> to vector<8x32xbf16>
    %cst_48 = arith.constant dense<0.000000e+00> : vector<8x32xf32>
    %44 = tpu.matmul %43, %18, %cst_48 {dimension_numbers = #tpu.dot_dimension_numbers<[1], [0], [0], [1], [0, 0, 1, 1], [], []>} : vector<8x32xbf16>, vector<32x32xbf16>, vector<8x32xf32> -> vector<8x32xf32>
    %45 = vector.extract_strided_slice %40 {offsets = [0, 0], sizes = [8, 4], strides = [1, 1]} : vector<8x32xf32> to vector<8x4xf32>
    %46 = vector.extract_strided_slice %42 {offsets = [0, 0], sizes = [8, 4], strides = [1, 1]} : vector<8x32xf32> to vector<8x4xf32>
    %cst_49 = arith.constant dense<0.000000e+00> : vector<8x8xf32>
    %47 = tpu.matmul %45, %46, %cst_49 {dimension_numbers = #tpu.dot_dimension_numbers<[1], [1], [0], [0], [0, 0, 1, 0], [], []>} : vector<8x4xf32>, vector<8x4xf32>, vector<8x8xf32> -> vector<8x8xf32>
    %c0_50 = arith.constant 0 : index
    %c0_51 = arith.constant 0 : index
    %48 = vector.load %arg18[%c0_50, %c0_51] : memref<64x8xf32, #tpu.memory_space<vmem>>, vector<8x8xf32>
    tpu.vector_store %arg18[%c0_50, %c0_51], %47 {strides = array<i32>} : memref<64x8xf32, #tpu.memory_space<vmem>>, vector<8x8xf32>,
    %49 = vector.extract_strided_slice %40 {offsets = [0, 4], sizes = [8, 4], strides = [1, 1]} : vector<8x32xf32> to vector<8x4xf32>
    %50 = vector.extract_strided_slice %42 {offsets = [0, 4], sizes = [8, 4], strides = [1, 1]} : vector<8x32xf32> to vector<8x4xf32>
    %cst_52 = arith.constant dense<0.000000e+00> : vector<8x8xf32>
    %51 = tpu.matmul %49, %50, %cst_52 {dimension_numbers = #tpu.dot_dimension_numbers<[1], [1], [0], [0], [0, 0, 1, 0], [], []>} : vector<8x4xf32>, vector<8x4xf32>, vector<8x8xf32> -> vector<8x8xf32>
    %c8 = arith.constant 8 : index
    %c0_53 = arith.constant 0 : index
    %52 = vector.load %arg18[%c8, %c0_53] : memref<64x8xf32, #tpu.memory_space<vmem>>, vector<8x8xf32>
    tpu.vector_store %arg18[%c8, %c0_53], %51 {strides = array<i32>} : memref<64x8xf32, #tpu.memory_space<vmem>>, vector<8x8xf32>,
    %53 = vector.extract_strided_slice %40 {offsets = [0, 8], sizes = [8, 4], strides = [1, 1]} : vector<8x32xf32> to vector<8x4xf32>
    %54 = vector.extract_strided_slice %42 {offsets = [0, 8], sizes = [8, 4], strides = [1, 1]} : vector<8x32xf32> to vector<8x4xf32>
    %cst_54 = arith.constant dense<0.000000e+00> : vector<8x8xf32>
    %55 = tpu.matmul %53, %54, %cst_54 {dimension_numbers = #tpu.dot_dimension_numbers<[1], [1], [0], [0], [0, 0, 1, 0], [], []>} : vector<8x4xf32>, vector<8x4xf32>, vector<8x8xf32> -> vector<8x8xf32>
    %c16 = arith.constant 16 : index
    %c0_55 = arith.constant 0 : index
    %56 = vector.load %arg18[%c16, %c0_55] : memref<64x8xf32, #tpu.memory_space<vmem>>, vector<8x8xf32>
    tpu.vector_store %arg18[%c16, %c0_55], %55 {strides = array<i32>} : memref<64x8xf32, #tpu.memory_space<vmem>>, vector<8x8xf32>,
    %57 = vector.extract_strided_slice %40 {offsets = [0, 12], sizes = [8, 4], strides = [1, 1]} : vector<8x32xf32> to vector<8x4xf32>
    %58 = vector.extract_strided_slice %42 {offsets = [0, 12], sizes = [8, 4], strides = [1, 1]} : vector<8x32xf32> to vector<8x4xf32>
    %cst_56 = arith.constant dense<0.000000e+00> : vector<8x8xf32>
    %59 = tpu.matmul %57, %58, %cst_56 {dimension_numbers = #tpu.dot_dimension_numbers<[1], [1], [0], [0], [0, 0, 1, 0], [], []>} : vector<8x4xf32>, vector<8x4xf32>, vector<8x8xf32> -> vector<8x8xf32>
    %c24 = arith.constant 24 : index
    %c0_57 = arith.constant 0 : index
    %60 = vector.load %arg18[%c24, %c0_57] : memref<64x8xf32, #tpu.memory_space<vmem>>, vector<8x8xf32>
    tpu.vector_store %arg18[%c24, %c0_57], %59 {strides = array<i32>} : memref<64x8xf32, #tpu.memory_space<vmem>>, vector<8x8xf32>,
    %61 = vector.extract_strided_slice %40 {offsets = [0, 16], sizes = [8, 4], strides = [1, 1]} : vector<8x32xf32> to vector<8x4xf32>
    %62 = vector.extract_strided_slice %42 {offsets = [0, 16], sizes = [8, 4], strides = [1, 1]} : vector<8x32xf32> to vector<8x4xf32>
    %cst_58 = arith.constant dense<0.000000e+00> : vector<8x8xf32>
    %63 = tpu.matmul %61, %62, %cst_58 {dimension_numbers = #tpu.dot_dimension_numbers<[1], [1], [0], [0], [0, 0, 1, 0], [], []>} : vector<8x4xf32>, vector<8x4xf32>, vector<8x8xf32> -> vector<8x8xf32>
    %c32 = arith.constant 32 : index
    %c0_59 = arith.constant 0 : index
    %64 = vector.load %arg18[%c32, %c0_59] : memref<64x8xf32, #tpu.memory_space<vmem>>, vector<8x8xf32>
    tpu.vector_store %arg18[%c32, %c0_59], %63 {strides = array<i32>} : memref<64x8xf32, #tpu.memory_space<vmem>>, vector<8x8xf32>,
    %65 = vector.extract_strided_slice %40 {offsets = [0, 20], sizes = [8, 4], strides = [1, 1]} : vector<8x32xf32> to vector<8x4xf32>
    %66 = vector.extract_strided_slice %42 {offsets = [0, 20], sizes = [8, 4], strides = [1, 1]} : vector<8x32xf32> to vector<8x4xf32>
    %cst_60 = arith.constant dense<0.000000e+00> : vector<8x8xf32>
    %67 = tpu.matmul %65, %66, %cst_60 {dimension_numbers = #tpu.dot_dimension_numbers<[1], [1], [0], [0], [0, 0, 1, 0], [], []>} : vector<8x4xf32>, vector<8x4xf32>, vector<8x8xf32> -> vector<8x8xf32>
    %c40 = arith.constant 40 : index
    %c0_61 = arith.constant 0 : index
    %68 = vector.load %arg18[%c40, %c0_61] : memref<64x8xf32, #tpu.memory_space<vmem>>, vector<8x8xf32>
    tpu.vector_store %arg18[%c40, %c0_61], %67 {strides = array<i32>} : memref<64x8xf32, #tpu.memory_space<vmem>>, vector<8x8xf32>,
    %69 = vector.extract_strided_slice %40 {offsets = [0, 24], sizes = [8, 4], strides = [1, 1]} : vector<8x32xf32> to vector<8x4xf32>
    %70 = vector.extract_strided_slice %42 {offsets = [0, 24], sizes = [8, 4], strides = [1, 1]} : vector<8x32xf32> to vector<8x4xf32>
    %cst_62 = arith.constant dense<0.000000e+00> : vector<8x8xf32>
    %71 = tpu.matmul %69, %70, %cst_62 {dimension_numbers = #tpu.dot_dimension_numbers<[1], [1], [0], [0], [0, 0, 1, 0], [], []>} : vector<8x4xf32>, vector<8x4xf32>, vector<8x8xf32> -> vector<8x8xf32>
    %c48 = arith.constant 48 : index
    %c0_63 = arith.constant 0 : index
    %72 = vector.load %arg18[%c48, %c0_63] : memref<64x8xf32, #tpu.memory_space<vmem>>, vector<8x8xf32>
    tpu.vector_store %arg18[%c48, %c0_63], %71 {strides = array<i32>} : memref<64x8xf32, #tpu.memory_space<vmem>>, vector<8x8xf32>,
    %73 = vector.extract_strided_slice %40 {offsets = [0, 28], sizes = [8, 4], strides = [1, 1]} : vector<8x32xf32> to vector<8x4xf32>
    %74 = vector.extract_strided_slice %42 {offsets = [0, 28], sizes = [8, 4], strides = [1, 1]} : vector<8x32xf32> to vector<8x4xf32>
    %cst_64 = arith.constant dense<0.000000e+00> : vector<8x8xf32>
    %75 = tpu.matmul %73, %74, %cst_64 {dimension_numbers = #tpu.dot_dimension_numbers<[1], [1], [0], [0], [0, 0, 1, 0], [], []>} : vector<8x4xf32>, vector<8x4xf32>, vector<8x8xf32> -> vector<8x8xf32>
    %c56 = arith.constant 56 : index
    %c0_65 = arith.constant 0 : index
    %76 = vector.load %arg18[%c56, %c0_65] : memref<64x8xf32, #tpu.memory_space<vmem>>, vector<8x8xf32>
    tpu.vector_store %arg18[%c56, %c0_65], %75 {strides = array<i32>} : memref<64x8xf32, #tpu.memory_space<vmem>>, vector<8x8xf32>,
    %c0_66 = arith.constant 0 : index
    %c0_67 = arith.constant 0 : index
    %77 = vector.load %arg18[%c0_66, %c0_67] : memref<64x8xf32, #tpu.memory_space<vmem>>, vector<64x8xf32>
    %cst_68 = arith.constant dense<0xFF800000> : vector<64xf32>
    %78 = vector.multi_reduction <maximumf>, %77, %cst_68 [1] : vector<64x8xf32> to vector<64xf32>
    %79 = vector.shape_cast %78 : vector<64xf32> to vector<64x1xf32>
    %80 = vector.broadcast %79 : vector<64x1xf32> to vector<64x8xf32>
    %81 = arith.subf %77, %80 : vector<64x8xf32>
    %82 = math.exp %81 : vector<64x8xf32>
    %cst_69 = arith.constant dense<0.000000e+00> : vector<64xf32>
    %83 = vector.multi_reduction <add>, %82, %cst_69 [1] : vector<64x8xf32> to vector<64xf32>
    %84 = vector.shape_cast %83 : vector<64xf32> to vector<64x1xf32>
    %85 = vector.broadcast %84 : vector<64x1xf32> to vector<64x8xf32>
    %86 = arith.divf %82, %85 : vector<64x8xf32>
    %c0_70 = arith.constant 0 : index
    %c0_71 = arith.constant 0 : index
    %87 = vector.load %arg18[%c0_70, %c0_71] : memref<64x8xf32, #tpu.memory_space<vmem>>, vector<64x8xf32>
    tpu.vector_store %arg18[%c0_70, %c0_71], %86 {strides = array<i32>} : memref<64x8xf32, #tpu.memory_space<vmem>>, vector<64x8xf32>,
    %c0_72 = arith.constant 0 : index
    %c0_73 = arith.constant 0 : index
    %88 = vector.load %arg18[%c0_72, %c0_73] : memref<64x8xf32, #tpu.memory_space<vmem>>, vector<8x8xf32>
    %89 = vector.extract_strided_slice %44 {offsets = [0, 0], sizes = [8, 4], strides = [1, 1]} : vector<8x32xf32> to vector<8x4xf32>
    %cst_74 = arith.constant dense<0.000000e+00> : vector<8x4xf32>
    %90 = tpu.matmul %88, %89, %cst_74 {dimension_numbers = #tpu.dot_dimension_numbers<[1], [0], [0], [1], [0, 0, 1, 1], [], []>} : vector<8x8xf32>, vector<8x4xf32>, vector<8x4xf32> -> vector<8x4xf32>
    %c0_75 = arith.constant 0 : index
    %c0_76 = arith.constant 0 : index
    %91 = vector.load %arg19[%c0_75, %c0_76] : memref<8x32xf32, #tpu.memory_space<vmem>>, vector<8x4xf32>
    tpu.vector_store %arg19[%c0_75, %c0_76], %90 {strides = array<i32>} : memref<8x32xf32, #tpu.memory_space<vmem>>, vector<8x4xf32>,
    %c8_77 = arith.constant 8 : index
    %c0_78 = arith.constant 0 : index
    %92 = vector.load %arg18[%c8_77, %c0_78] : memref<64x8xf32, #tpu.memory_space<vmem>>, vector<8x8xf32>
    %93 = vector.extract_strided_slice %44 {offsets = [0, 4], sizes = [8, 4], strides = [1, 1]} : vector<8x32xf32> to vector<8x4xf32>
    %cst_79 = arith.constant dense<0.000000e+00> : vector<8x4xf32>
    %94 = tpu.matmul %92, %93, %cst_79 {dimension_numbers = #tpu.dot_dimension_numbers<[1], [0], [0], [1], [0, 0, 1, 1], [], []>} : vector<8x8xf32>, vector<8x4xf32>, vector<8x4xf32> -> vector<8x4xf32>
    %c0_80 = arith.constant 0 : index
    %c4 = arith.constant 4 : index
    %95 = vector.load %arg19[%c0_80, %c4] : memref<8x32xf32, #tpu.memory_space<vmem>>, vector<8x4xf32>
    tpu.vector_store %arg19[%c0_80, %c4], %94 {strides = array<i32>} : memref<8x32xf32, #tpu.memory_space<vmem>>, vector<8x4xf32>,
    %c16_81 = arith.constant 16 : index
    %c0_82 = arith.constant 0 : index
    %96 = vector.load %arg18[%c16_81, %c0_82] : memref<64x8xf32, #tpu.memory_space<vmem>>, vector<8x8xf32>
    %97 = vector.extract_strided_slice %44 {offsets = [0, 8], sizes = [8, 4], strides = [1, 1]} : vector<8x32xf32> to vector<8x4xf32>
    %cst_83 = arith.constant dense<0.000000e+00> : vector<8x4xf32>
    %98 = tpu.matmul %96, %97, %cst_83 {dimension_numbers = #tpu.dot_dimension_numbers<[1], [0], [0], [1], [0, 0, 1, 1], [], []>} : vector<8x8xf32>, vector<8x4xf32>, vector<8x4xf32> -> vector<8x4xf32>
    %c0_84 = arith.constant 0 : index
    %c8_85 = arith.constant 8 : index
    %99 = vector.load %arg19[%c0_84, %c8_85] : memref<8x32xf32, #tpu.memory_space<vmem>>, vector<8x4xf32>
    tpu.vector_store %arg19[%c0_84, %c8_85], %98 {strides = array<i32>} : memref<8x32xf32, #tpu.memory_space<vmem>>, vector<8x4xf32>,
    %c24_86 = arith.constant 24 : index
    %c0_87 = arith.constant 0 : index
    %100 = vector.load %arg18[%c24_86, %c0_87] : memref<64x8xf32, #tpu.memory_space<vmem>>, vector<8x8xf32>
    %101 = vector.extract_strided_slice %44 {offsets = [0, 12], sizes = [8, 4], strides = [1, 1]} : vector<8x32xf32> to vector<8x4xf32>
    %cst_88 = arith.constant dense<0.000000e+00> : vector<8x4xf32>
    %102 = tpu.matmul %100, %101, %cst_88 {dimension_numbers = #tpu.dot_dimension_numbers<[1], [0], [0], [1], [0, 0, 1, 1], [], []>} : vector<8x8xf32>, vector<8x4xf32>, vector<8x4xf32> -> vector<8x4xf32>
    %c0_89 = arith.constant 0 : index
    %c12 = arith.constant 12 : index
    %103 = vector.load %arg19[%c0_89, %c12] : memref<8x32xf32, #tpu.memory_space<vmem>>, vector<8x4xf32>
    tpu.vector_store %arg19[%c0_89, %c12], %102 {strides = array<i32>} : memref<8x32xf32, #tpu.memory_space<vmem>>, vector<8x4xf32>,
    %c32_90 = arith.constant 32 : index
    %c0_91 = arith.constant 0 : index
    %104 = vector.load %arg18[%c32_90, %c0_91] : memref<64x8xf32, #tpu.memory_space<vmem>>, vector<8x8xf32>
    %105 = vector.extract_strided_slice %44 {offsets = [0, 16], sizes = [8, 4], strides = [1, 1]} : vector<8x32xf32> to vector<8x4xf32>
    %cst_92 = arith.constant dense<0.000000e+00> : vector<8x4xf32>
    %106 = tpu.matmul %104, %105, %cst_92 {dimension_numbers = #tpu.dot_dimension_numbers<[1], [0], [0], [1], [0, 0, 1, 1], [], []>} : vector<8x8xf32>, vector<8x4xf32>, vector<8x4xf32> -> vector<8x4xf32>
    %c0_93 = arith.constant 0 : index
    %c16_94 = arith.constant 16 : index
    %107 = vector.load %arg19[%c0_93, %c16_94] : memref<8x32xf32, #tpu.memory_space<vmem>>, vector<8x4xf32>
    tpu.vector_store %arg19[%c0_93, %c16_94], %106 {strides = array<i32>} : memref<8x32xf32, #tpu.memory_space<vmem>>, vector<8x4xf32>,
    %c40_95 = arith.constant 40 : index
    %c0_96 = arith.constant 0 : index
    %108 = vector.load %arg18[%c40_95, %c0_96] : memref<64x8xf32, #tpu.memory_space<vmem>>, vector<8x8xf32>
    %109 = vector.extract_strided_slice %44 {offsets = [0, 20], sizes = [8, 4], strides = [1, 1]} : vector<8x32xf32> to vector<8x4xf32>
    %cst_97 = arith.constant dense<0.000000e+00> : vector<8x4xf32>
    %110 = tpu.matmul %108, %109, %cst_97 {dimension_numbers = #tpu.dot_dimension_numbers<[1], [0], [0], [1], [0, 0, 1, 1], [], []>} : vector<8x8xf32>, vector<8x4xf32>, vector<8x4xf32> -> vector<8x4xf32>
    %c0_98 = arith.constant 0 : index
    %c20 = arith.constant 20 : index
    %111 = vector.load %arg19[%c0_98, %c20] : memref<8x32xf32, #tpu.memory_space<vmem>>, vector<8x4xf32>
    tpu.vector_store %arg19[%c0_98, %c20], %110 {strides = array<i32>} : memref<8x32xf32, #tpu.memory_space<vmem>>, vector<8x4xf32>,
    %c48_99 = arith.constant 48 : index
    %c0_100 = arith.constant 0 : index
    %112 = vector.load %arg18[%c48_99, %c0_100] : memref<64x8xf32, #tpu.memory_space<vmem>>, vector<8x8xf32>
    %113 = vector.extract_strided_slice %44 {offsets = [0, 24], sizes = [8, 4], strides = [1, 1]} : vector<8x32xf32> to vector<8x4xf32>
    %cst_101 = arith.constant dense<0.000000e+00> : vector<8x4xf32>
    %114 = tpu.matmul %112, %113, %cst_101 {dimension_numbers = #tpu.dot_dimension_numbers<[1], [0], [0], [1], [0, 0, 1, 1], [], []>} : vector<8x8xf32>, vector<8x4xf32>, vector<8x4xf32> -> vector<8x4xf32>
    %c0_102 = arith.constant 0 : index
    %c24_103 = arith.constant 24 : index
    %115 = vector.load %arg19[%c0_102, %c24_103] : memref<8x32xf32, #tpu.memory_space<vmem>>, vector<8x4xf32>
    tpu.vector_store %arg19[%c0_102, %c24_103], %114 {strides = array<i32>} : memref<8x32xf32, #tpu.memory_space<vmem>>, vector<8x4xf32>,
    %c56_104 = arith.constant 56 : index
    %c0_105 = arith.constant 0 : index
    %116 = vector.load %arg18[%c56_104, %c0_105] : memref<64x8xf32, #tpu.memory_space<vmem>>, vector<8x8xf32>
    %117 = vector.extract_strided_slice %44 {offsets = [0, 28], sizes = [8, 4], strides = [1, 1]} : vector<8x32xf32> to vector<8x4xf32>
    %cst_106 = arith.constant dense<0.000000e+00> : vector<8x4xf32>
    %118 = tpu.matmul %116, %117, %cst_106 {dimension_numbers = #tpu.dot_dimension_numbers<[1], [0], [0], [1], [0, 0, 1, 1], [], []>} : vector<8x8xf32>, vector<8x4xf32>, vector<8x4xf32> -> vector<8x4xf32>
    %c0_107 = arith.constant 0 : index
    %c28 = arith.constant 28 : index
    %119 = vector.load %arg19[%c0_107, %c28] : memref<8x32xf32, #tpu.memory_space<vmem>>, vector<8x4xf32>
    tpu.vector_store %arg19[%c0_107, %c28], %118 {strides = array<i32>} : memref<8x32xf32, #tpu.memory_space<vmem>>, vector<8x4xf32>,
    %c0_108 = arith.constant 0 : index
    %c0_109 = arith.constant 0 : index
    %120 = vector.load %arg19[%c0_108, %c0_109] : memref<8x32xf32, #tpu.memory_space<vmem>>, vector<8x32xf32>
    %121 = arith.truncf %120 : vector<8x32xf32> to vector<8x32xbf16>
    %cst_110 = arith.constant dense<0.000000e+00> : vector<8x32xf32>
    %122 = tpu.matmul %121, %20, %cst_110 {dimension_numbers = #tpu.dot_dimension_numbers<[1], [0], [0], [1], [0, 0, 1, 1], [], []>} : vector<8x32xbf16>, vector<32x32xbf16>, vector<8x32xf32> -> vector<8x32xf32>
    %123 = vector.broadcast %22 : vector<1x32xf32> to vector<8x32xf32>
    %124 = arith.addf %122, %123 : vector<8x32xf32>
    %125 = arith.addf %124, %12 : vector<8x32xf32>
    %cst_111 = arith.constant dense<0.000000e+00> : vector<8xf32>
    %126 = vector.multi_reduction <add>, %125, %cst_111 [1] : vector<8x32xf32> to vector<8xf32>
    %127 = vector.shape_cast %126 : vector<8xf32> to vector<8x1xf32>
    %cst_112 = arith.constant 3.200000e+01 : f32
    %128 = vector.broadcast %cst_112 : f32 to vector<8x1xf32>
    %129 = arith.divf %127, %128 : vector<8x1xf32>
    %130 = vector.broadcast %129 : vector<8x1xf32> to vector<8x32xf32>
    %131 = arith.subf %125, %130 : vector<8x32xf32>
    %132 = arith.mulf %131, %131 : vector<8x32xf32>
    %cst_113 = arith.constant dense<0.000000e+00> : vector<8xf32>
    %133 = vector.multi_reduction <add>, %132, %cst_113 [1] : vector<8x32xf32> to vector<8xf32>
    %134 = vector.shape_cast %133 : vector<8xf32> to vector<8x1xf32>
    %cst_114 = arith.constant 3.200000e+01 : f32
    %135 = vector.broadcast %cst_114 : f32 to vector<8x1xf32>
    %136 = arith.divf %134, %135 : vector<8x1xf32>
    %137 = vector.broadcast %129 : vector<8x1xf32> to vector<8x32xf32>
    %138 = arith.subf %125, %137 : vector<8x32xf32>
    %cst_115 = arith.constant 9.99999974E-6 : f32
    %139 = vector.broadcast %cst_115 : f32 to vector<8x1xf32>
    %140 = arith.addf %136, %139 : vector<8x1xf32>
    %141 = math.rsqrt %140 : vector<8x1xf32>
    %142 = vector.broadcast %141 : vector<8x1xf32> to vector<8x32xf32>
    %143 = arith.mulf %138, %142 : vector<8x32xf32>
    %144 = vector.broadcast %24 : vector<1x32xf32> to vector<8x32xf32>
    %145 = arith.mulf %143, %144 : vector<8x32xf32>
    %146 = vector.broadcast %26 : vector<1x32xf32> to vector<8x32xf32>
    %147 = arith.addf %145, %146 : vector<8x32xf32>
    %148 = arith.truncf %147 : vector<8x32xf32> to vector<8x32xbf16>
    %cst_116 = arith.constant dense<0.000000e+00> : vector<8x128xf32>
    %149 = tpu.matmul %148, %28, %cst_116 {dimension_numbers = #tpu.dot_dimension_numbers<[1], [0], [0], [1], [0, 0, 1, 1], [], []>} : vector<8x32xbf16>, vector<32x128xbf16>, vector<8x128xf32> -> vector<8x128xf32>
    %150 = vector.broadcast %30 : vector<1x128xf32> to vector<8x128xf32>
    %151 = arith.addf %149, %150 : vector<8x128xf32>
    %cst_117 = arith.constant 0.000000e+00 : f32
    %152 = vector.broadcast %cst_117 : f32 to vector<8x128xf32>
    %153 = arith.maximumf %151, %152 : vector<8x128xf32>
    %154 = arith.truncf %153 : vector<8x128xf32> to vector<8x128xbf16>
    %cst_118 = arith.constant dense<0.000000e+00> : vector<8x32xf32>
    %155 = tpu.matmul %154, %32, %cst_118 {dimension_numbers = #tpu.dot_dimension_numbers<[1], [0], [0], [1], [0, 0, 1, 1], [], []>} : vector<8x128xbf16>, vector<128x32xbf16>, vector<8x32xf32> -> vector<8x32xf32>
    %156 = vector.broadcast %34 : vector<1x32xf32> to vector<8x32xf32>
    %157 = arith.addf %155, %156 : vector<8x32xf32>
    %158 = arith.addf %157, %147 : vector<8x32xf32>
    %cst_119 = arith.constant dense<0.000000e+00> : vector<8xf32>
    %159 = vector.multi_reduction <add>, %158, %cst_119 [1] : vector<8x32xf32> to vector<8xf32>
    %160 = vector.shape_cast %159 : vector<8xf32> to vector<8x1xf32>
    %cst_120 = arith.constant 3.200000e+01 : f32
    %161 = vector.broadcast %cst_120 : f32 to vector<8x1xf32>
    %162 = arith.divf %160, %161 : vector<8x1xf32>
    %163 = vector.broadcast %162 : vector<8x1xf32> to vector<8x32xf32>
    %164 = arith.subf %158, %163 : vector<8x32xf32>
    %165 = arith.mulf %164, %164 : vector<8x32xf32>
    %cst_121 = arith.constant dense<0.000000e+00> : vector<8xf32>
    %166 = vector.multi_reduction <add>, %165, %cst_121 [1] : vector<8x32xf32> to vector<8xf32>
    %167 = vector.shape_cast %166 : vector<8xf32> to vector<8x1xf32>
    %cst_122 = arith.constant 3.200000e+01 : f32
    %168 = vector.broadcast %cst_122 : f32 to vector<8x1xf32>
    %169 = arith.divf %167, %168 : vector<8x1xf32>
    %170 = vector.broadcast %162 : vector<8x1xf32> to vector<8x32xf32>
    %171 = arith.subf %158, %170 : vector<8x32xf32>
    %cst_123 = arith.constant 9.99999974E-6 : f32
    %172 = vector.broadcast %cst_123 : f32 to vector<8x1xf32>
    %173 = arith.addf %169, %172 : vector<8x1xf32>
    %174 = math.rsqrt %173 : vector<8x1xf32>
    %175 = vector.broadcast %174 : vector<8x1xf32> to vector<8x32xf32>
    %176 = arith.mulf %171, %175 : vector<8x32xf32>
    %177 = vector.broadcast %36 : vector<1x32xf32> to vector<8x32xf32>
    %178 = arith.mulf %176, %177 : vector<8x32xf32>
    %179 = vector.broadcast %38 : vector<1x32xf32> to vector<8x32xf32>
    %180 = arith.addf %178, %179 : vector<8x32xf32>
    %c1 = arith.constant 1 : index
    %c0_124 = arith.constant 0 : index
    %c0_125 = arith.constant 0 : index
    %181 = vector.load %arg4[%c1, %c0_124, %c0_125] : memref<2x32x32xbf16, #tpu.memory_space<vmem>>, vector<1x32x32xbf16>
    %182 = vector.shape_cast %181 : vector<1x32x32xbf16> to vector<32x32xbf16>
    %c1_126 = arith.constant 1 : index
    %c0_127 = arith.constant 0 : index
    %c0_128 = arith.constant 0 : index
    %183 = vector.load %arg5[%c1_126, %c0_127, %c0_128] : memref<2x32x32xbf16, #tpu.memory_space<vmem>>, vector<1x32x32xbf16>
    %184 = vector.shape_cast %183 : vector<1x32x32xbf16> to vector<32x32xbf16>
    %c1_129 = arith.constant 1 : index
    %c0_130 = arith.constant 0 : index
    %c0_131 = arith.constant 0 : index
    %185 = vector.load %arg6[%c1_129, %c0_130, %c0_131] : memref<2x32x32xbf16, #tpu.memory_space<vmem>>, vector<1x32x32xbf16>
    %186 = vector.shape_cast %185 : vector<1x32x32xbf16> to vector<32x32xbf16>
    %c1_132 = arith.constant 1 : index
    %c0_133 = arith.constant 0 : index
    %c0_134 = arith.constant 0 : index
    %187 = vector.load %arg7[%c1_132, %c0_133, %c0_134] : memref<2x32x32xbf16, #tpu.memory_space<vmem>>, vector<1x32x32xbf16>
    %188 = vector.shape_cast %187 : vector<1x32x32xbf16> to vector<32x32xbf16>
    %c1_135 = arith.constant 1 : index
    %c0_136 = arith.constant 0 : index
    %c0_137 = arith.constant 0 : index
    %189 = vector.load %arg8[%c1_135, %c0_136, %c0_137] : memref<2x1x32xf32, #tpu.memory_space<vmem>>, vector<1x1x32xf32>
    %190 = vector.shape_cast %189 : vector<1x1x32xf32> to vector<1x32xf32>
    %c1_138 = arith.constant 1 : index
    %c0_139 = arith.constant 0 : index
    %c0_140 = arith.constant 0 : index
    %191 = vector.load %arg9[%c1_138, %c0_139, %c0_140] : memref<2x1x32xf32, #tpu.memory_space<vmem>>, vector<1x1x32xf32>
    %192 = vector.shape_cast %191 : vector<1x1x32xf32> to vector<1x32xf32>
    %c1_141 = arith.constant 1 : index
    %c0_142 = arith.constant 0 : index
    %c0_143 = arith.constant 0 : index
    %193 = vector.load %arg10[%c1_141, %c0_142, %c0_143] : memref<2x1x32xf32, #tpu.memory_space<vmem>>, vector<1x1x32xf32>
    %194 = vector.shape_cast %193 : vector<1x1x32xf32> to vector<1x32xf32>
    %c1_144 = arith.constant 1 : index
    %c0_145 = arith.constant 0 : index
    %c0_146 = arith.constant 0 : index
    %195 = vector.load %arg11[%c1_144, %c0_145, %c0_146] : memref<2x32x128xbf16, #tpu.memory_space<vmem>>, vector<1x32x128xbf16>
    %196 = vector.shape_cast %195 : vector<1x32x128xbf16> to vector<32x128xbf16>
    %c1_147 = arith.constant 1 : index
    %c0_148 = arith.constant 0 : index
    %c0_149 = arith.constant 0 : index
    %197 = vector.load %arg12[%c1_147, %c0_148, %c0_149] : memref<2x1x128xf32, #tpu.memory_space<vmem>>, vector<1x1x128xf32>
    %198 = vector.shape_cast %197 : vector<1x1x128xf32> to vector<1x128xf32>
    %c1_150 = arith.constant 1 : index
    %c0_151 = arith.constant 0 : index
    %c0_152 = arith.constant 0 : index
    %199 = vector.load %arg13[%c1_150, %c0_151, %c0_152] : memref<2x128x32xbf16, #tpu.memory_space<vmem>>, vector<1x128x32xbf16>
    %200 = vector.shape_cast %199 : vector<1x128x32xbf16> to vector<128x32xbf16>
    %c1_153 = arith.constant 1 : index
    %c0_154 = arith.constant 0 : index
    %c0_155 = arith.constant 0 : index
    %201 = vector.load %arg14[%c1_153, %c0_154, %c0_155] : memref<2x1x32xf32, #tpu.memory_space<vmem>>, vector<1x1x32xf32>
    %202 = vector.shape_cast %201 : vector<1x1x32xf32> to vector<1x32xf32>
    %c1_156 = arith.constant 1 : index
    %c0_157 = arith.constant 0 : index
    %c0_158 = arith.constant 0 : index
    %203 = vector.load %arg15[%c1_156, %c0_157, %c0_158] : memref<2x1x32xf32, #tpu.memory_space<vmem>>, vector<1x1x32xf32>
    %204 = vector.shape_cast %203 : vector<1x1x32xf32> to vector<1x32xf32>
    %c1_159 = arith.constant 1 : index
    %c0_160 = arith.constant 0 : index
    %c0_161 = arith.constant 0 : index
    %205 = vector.load %arg16[%c1_159, %c0_160, %c0_161] : memref<2x1x32xf32, #tpu.memory_space<vmem>>, vector<1x1x32xf32>
    %206 = vector.shape_cast %205 : vector<1x1x32xf32> to vector<1x32xf32>
    %207 = arith.truncf %180 : vector<8x32xf32> to vector<8x32xbf16>
    %cst_162 = arith.constant dense<0.000000e+00> : vector<8x32xf32>
    %208 = tpu.matmul %207, %182, %cst_162 {dimension_numbers = #tpu.dot_dimension_numbers<[1], [0], [0], [1], [0, 0, 1, 1], [], []>} : vector<8x32xbf16>, vector<32x32xbf16>, vector<8x32xf32> -> vector<8x32xf32>
    %209 = arith.truncf %180 : vector<8x32xf32> to vector<8x32xbf16>
    %cst_163 = arith.constant dense<0.000000e+00> : vector<8x32xf32>
    %210 = tpu.matmul %209, %184, %cst_163 {dimension_numbers = #tpu.dot_dimension_numbers<[1], [0], [0], [1], [0, 0, 1, 1], [], []>} : vector<8x32xbf16>, vector<32x32xbf16>, vector<8x32xf32> -> vector<8x32xf32>
    %211 = arith.truncf %180 : vector<8x32xf32> to vector<8x32xbf16>
    %cst_164 = arith.constant dense<0.000000e+00> : vector<8x32xf32>
    %212 = tpu.matmul %211, %186, %cst_164 {dimension_numbers = #tpu.dot_dimension_numbers<[1], [0], [0], [1], [0, 0, 1, 1], [], []>} : vector<8x32xbf16>, vector<32x32xbf16>, vector<8x32xf32> -> vector<8x32xf32>
    %213 = vector.extract_strided_slice %208 {offsets = [0, 0], sizes = [8, 4], strides = [1, 1]} : vector<8x32xf32> to vector<8x4xf32>
    %214 = vector.extract_strided_slice %210 {offsets = [0, 0], sizes = [8, 4], strides = [1, 1]} : vector<8x32xf32> to vector<8x4xf32>
    %cst_165 = arith.constant dense<0.000000e+00> : vector<8x8xf32>
    %215 = tpu.matmul %213, %214, %cst_165 {dimension_numbers = #tpu.dot_dimension_numbers<[1], [1], [0], [0], [0, 0, 1, 0], [], []>} : vector<8x4xf32>, vector<8x4xf32>, vector<8x8xf32> -> vector<8x8xf32>
    %c0_166 = arith.constant 0 : index
    %c0_167 = arith.constant 0 : index
    %216 = vector.load %arg18[%c0_166, %c0_167] : memref<64x8xf32, #tpu.memory_space<vmem>>, vector<8x8xf32>
    tpu.vector_store %arg18[%c0_166, %c0_167], %215 {strides = array<i32>} : memref<64x8xf32, #tpu.memory_space<vmem>>, vector<8x8xf32>,
    %217 = vector.extract_strided_slice %208 {offsets = [0, 4], sizes = [8, 4], strides = [1, 1]} : vector<8x32xf32> to vector<8x4xf32>
    %218 = vector.extract_strided_slice %210 {offsets = [0, 4], sizes = [8, 4], strides = [1, 1]} : vector<8x32xf32> to vector<8x4xf32>
    %cst_168 = arith.constant dense<0.000000e+00> : vector<8x8xf32>
    %219 = tpu.matmul %217, %218, %cst_168 {dimension_numbers = #tpu.dot_dimension_numbers<[1], [1], [0], [0], [0, 0, 1, 0], [], []>} : vector<8x4xf32>, vector<8x4xf32>, vector<8x8xf32> -> vector<8x8xf32>
    %c8_169 = arith.constant 8 : index
    %c0_170 = arith.constant 0 : index
    %220 = vector.load %arg18[%c8_169, %c0_170] : memref<64x8xf32, #tpu.memory_space<vmem>>, vector<8x8xf32>
    tpu.vector_store %arg18[%c8_169, %c0_170], %219 {strides = array<i32>} : memref<64x8xf32, #tpu.memory_space<vmem>>, vector<8x8xf32>,
    %221 = vector.extract_strided_slice %208 {offsets = [0, 8], sizes = [8, 4], strides = [1, 1]} : vector<8x32xf32> to vector<8x4xf32>
    %222 = vector.extract_strided_slice %210 {offsets = [0, 8], sizes = [8, 4], strides = [1, 1]} : vector<8x32xf32> to vector<8x4xf32>
    %cst_171 = arith.constant dense<0.000000e+00> : vector<8x8xf32>
    %223 = tpu.matmul %221, %222, %cst_171 {dimension_numbers = #tpu.dot_dimension_numbers<[1], [1], [0], [0], [0, 0, 1, 0], [], []>} : vector<8x4xf32>, vector<8x4xf32>, vector<8x8xf32> -> vector<8x8xf32>
    %c16_172 = arith.constant 16 : index
    %c0_173 = arith.constant 0 : index
    %224 = vector.load %arg18[%c16_172, %c0_173] : memref<64x8xf32, #tpu.memory_space<vmem>>, vector<8x8xf32>
    tpu.vector_store %arg18[%c16_172, %c0_173], %223 {strides = array<i32>} : memref<64x8xf32, #tpu.memory_space<vmem>>, vector<8x8xf32>,
    %225 = vector.extract_strided_slice %208 {offsets = [0, 12], sizes = [8, 4], strides = [1, 1]} : vector<8x32xf32> to vector<8x4xf32>
    %226 = vector.extract_strided_slice %210 {offsets = [0, 12], sizes = [8, 4], strides = [1, 1]} : vector<8x32xf32> to vector<8x4xf32>
    %cst_174 = arith.constant dense<0.000000e+00> : vector<8x8xf32>
    %227 = tpu.matmul %225, %226, %cst_174 {dimension_numbers = #tpu.dot_dimension_numbers<[1], [1], [0], [0], [0, 0, 1, 0], [], []>} : vector<8x4xf32>, vector<8x4xf32>, vector<8x8xf32> -> vector<8x8xf32>
    %c24_175 = arith.constant 24 : index
    %c0_176 = arith.constant 0 : index
    %228 = vector.load %arg18[%c24_175, %c0_176] : memref<64x8xf32, #tpu.memory_space<vmem>>, vector<8x8xf32>
    tpu.vector_store %arg18[%c24_175, %c0_176], %227 {strides = array<i32>} : memref<64x8xf32, #tpu.memory_space<vmem>>, vector<8x8xf32>,
    %229 = vector.extract_strided_slice %208 {offsets = [0, 16], sizes = [8, 4], strides = [1, 1]} : vector<8x32xf32> to vector<8x4xf32>
    %230 = vector.extract_strided_slice %210 {offsets = [0, 16], sizes = [8, 4], strides = [1, 1]} : vector<8x32xf32> to vector<8x4xf32>
    %cst_177 = arith.constant dense<0.000000e+00> : vector<8x8xf32>
    %231 = tpu.matmul %229, %230, %cst_177 {dimension_numbers = #tpu.dot_dimension_numbers<[1], [1], [0], [0], [0, 0, 1, 0], [], []>} : vector<8x4xf32>, vector<8x4xf32>, vector<8x8xf32> -> vector<8x8xf32>
    %c32_178 = arith.constant 32 : index
    %c0_179 = arith.constant 0 : index
    %232 = vector.load %arg18[%c32_178, %c0_179] : memref<64x8xf32, #tpu.memory_space<vmem>>, vector<8x8xf32>
    tpu.vector_store %arg18[%c32_178, %c0_179], %231 {strides = array<i32>} : memref<64x8xf32, #tpu.memory_space<vmem>>, vector<8x8xf32>,
    %233 = vector.extract_strided_slice %208 {offsets = [0, 20], sizes = [8, 4], strides = [1, 1]} : vector<8x32xf32> to vector<8x4xf32>
    %234 = vector.extract_strided_slice %210 {offsets = [0, 20], sizes = [8, 4], strides = [1, 1]} : vector<8x32xf32> to vector<8x4xf32>
    %cst_180 = arith.constant dense<0.000000e+00> : vector<8x8xf32>
    %235 = tpu.matmul %233, %234, %cst_180 {dimension_numbers = #tpu.dot_dimension_numbers<[1], [1], [0], [0], [0, 0, 1, 0], [], []>} : vector<8x4xf32>, vector<8x4xf32>, vector<8x8xf32> -> vector<8x8xf32>
    %c40_181 = arith.constant 40 : index
    %c0_182 = arith.constant 0 : index
    %236 = vector.load %arg18[%c40_181, %c0_182] : memref<64x8xf32, #tpu.memory_space<vmem>>, vector<8x8xf32>
    tpu.vector_store %arg18[%c40_181, %c0_182], %235 {strides = array<i32>} : memref<64x8xf32, #tpu.memory_space<vmem>>, vector<8x8xf32>,
    %237 = vector.extract_strided_slice %208 {offsets = [0, 24], sizes = [8, 4], strides = [1, 1]} : vector<8x32xf32> to vector<8x4xf32>
    %238 = vector.extract_strided_slice %210 {offsets = [0, 24], sizes = [8, 4], strides = [1, 1]} : vector<8x32xf32> to vector<8x4xf32>
    %cst_183 = arith.constant dense<0.000000e+00> : vector<8x8xf32>
    %239 = tpu.matmul %237, %238, %cst_183 {dimension_numbers = #tpu.dot_dimension_numbers<[1], [1], [0], [0], [0, 0, 1, 0], [], []>} : vector<8x4xf32>, vector<8x4xf32>, vector<8x8xf32> -> vector<8x8xf32>
    %c48_184 = arith.constant 48 : index
    %c0_185 = arith.constant 0 : index
    %240 = vector.load %arg18[%c48_184, %c0_185] : memref<64x8xf32, #tpu.memory_space<vmem>>, vector<8x8xf32>
    tpu.vector_store %arg18[%c48_184, %c0_185], %239 {strides = array<i32>} : memref<64x8xf32, #tpu.memory_space<vmem>>, vector<8x8xf32>,
    %241 = vector.extract_strided_slice %208 {offsets = [0, 28], sizes = [8, 4], strides = [1, 1]} : vector<8x32xf32> to vector<8x4xf32>
    %242 = vector.extract_strided_slice %210 {offsets = [0, 28], sizes = [8, 4], strides = [1, 1]} : vector<8x32xf32> to vector<8x4xf32>
    %cst_186 = arith.constant dense<0.000000e+00> : vector<8x8xf32>
    %243 = tpu.matmul %241, %242, %cst_186 {dimension_numbers = #tpu.dot_dimension_numbers<[1], [1], [0], [0], [0, 0, 1, 0], [], []>} : vector<8x4xf32>, vector<8x4xf32>, vector<8x8xf32> -> vector<8x8xf32>
    %c56_187 = arith.constant 56 : index
    %c0_188 = arith.constant 0 : index
    %244 = vector.load %arg18[%c56_187, %c0_188] : memref<64x8xf32, #tpu.memory_space<vmem>>, vector<8x8xf32>
    tpu.vector_store %arg18[%c56_187, %c0_188], %243 {strides = array<i32>} : memref<64x8xf32, #tpu.memory_space<vmem>>, vector<8x8xf32>,
    %c0_189 = arith.constant 0 : index
    %c0_190 = arith.constant 0 : index
    %245 = vector.load %arg18[%c0_189, %c0_190] : memref<64x8xf32, #tpu.memory_space<vmem>>, vector<64x8xf32>
    %cst_191 = arith.constant dense<0xFF800000> : vector<64xf32>
    %246 = vector.multi_reduction <maximumf>, %245, %cst_191 [1] : vector<64x8xf32> to vector<64xf32>
    %247 = vector.shape_cast %246 : vector<64xf32> to vector<64x1xf32>
    %248 = vector.broadcast %247 : vector<64x1xf32> to vector<64x8xf32>
    %249 = arith.subf %245, %248 : vector<64x8xf32>
    %250 = math.exp %249 : vector<64x8xf32>
    %cst_192 = arith.constant dense<0.000000e+00> : vector<64xf32>
    %251 = vector.multi_reduction <add>, %250, %cst_192 [1] : vector<64x8xf32> to vector<64xf32>
    %252 = vector.shape_cast %251 : vector<64xf32> to vector<64x1xf32>
    %253 = vector.broadcast %252 : vector<64x1xf32> to vector<64x8xf32>
    %254 = arith.divf %250, %253 : vector<64x8xf32>
    %c0_193 = arith.constant 0 : index
    %c0_194 = arith.constant 0 : index
    %255 = vector.load %arg18[%c0_193, %c0_194] : memref<64x8xf32, #tpu.memory_space<vmem>>, vector<64x8xf32>
    tpu.vector_store %arg18[%c0_193, %c0_194], %254 {strides = array<i32>} : memref<64x8xf32, #tpu.memory_space<vmem>>, vector<64x8xf32>,
    %c0_195 = arith.constant 0 : index
    %c0_196 = arith.constant 0 : index
    %256 = vector.load %arg18[%c0_195, %c0_196] : memref<64x8xf32, #tpu.memory_space<vmem>>, vector<8x8xf32>
    %257 = vector.extract_strided_slice %212 {offsets = [0, 0], sizes = [8, 4], strides = [1, 1]} : vector<8x32xf32> to vector<8x4xf32>
    %cst_197 = arith.constant dense<0.000000e+00> : vector<8x4xf32>
    %258 = tpu.matmul %256, %257, %cst_197 {dimension_numbers = #tpu.dot_dimension_numbers<[1], [0], [0], [1], [0, 0, 1, 1], [], []>} : vector<8x8xf32>, vector<8x4xf32>, vector<8x4xf32> -> vector<8x4xf32>
    %c0_198 = arith.constant 0 : index
    %c0_199 = arith.constant 0 : index
    %259 = vector.load %arg19[%c0_198, %c0_199] : memref<8x32xf32, #tpu.memory_space<vmem>>, vector<8x4xf32>
    tpu.vector_store %arg19[%c0_198, %c0_199], %258 {strides = array<i32>} : memref<8x32xf32, #tpu.memory_space<vmem>>, vector<8x4xf32>,
    %c8_200 = arith.constant 8 : index
    %c0_201 = arith.constant 0 : index
    %260 = vector.load %arg18[%c8_200, %c0_201] : memref<64x8xf32, #tpu.memory_space<vmem>>, vector<8x8xf32>
    %261 = vector.extract_strided_slice %212 {offsets = [0, 4], sizes = [8, 4], strides = [1, 1]} : vector<8x32xf32> to vector<8x4xf32>
    %cst_202 = arith.constant dense<0.000000e+00> : vector<8x4xf32>
    %262 = tpu.matmul %260, %261, %cst_202 {dimension_numbers = #tpu.dot_dimension_numbers<[1], [0], [0], [1], [0, 0, 1, 1], [], []>} : vector<8x8xf32>, vector<8x4xf32>, vector<8x4xf32> -> vector<8x4xf32>
    %c0_203 = arith.constant 0 : index
    %c4_204 = arith.constant 4 : index
    %263 = vector.load %arg19[%c0_203, %c4_204] : memref<8x32xf32, #tpu.memory_space<vmem>>, vector<8x4xf32>
    tpu.vector_store %arg19[%c0_203, %c4_204], %262 {strides = array<i32>} : memref<8x32xf32, #tpu.memory_space<vmem>>, vector<8x4xf32>,
    %c16_205 = arith.constant 16 : index
    %c0_206 = arith.constant 0 : index
    %264 = vector.load %arg18[%c16_205, %c0_206] : memref<64x8xf32, #tpu.memory_space<vmem>>, vector<8x8xf32>
    %265 = vector.extract_strided_slice %212 {offsets = [0, 8], sizes = [8, 4], strides = [1, 1]} : vector<8x32xf32> to vector<8x4xf32>
    %cst_207 = arith.constant dense<0.000000e+00> : vector<8x4xf32>
    %266 = tpu.matmul %264, %265, %cst_207 {dimension_numbers = #tpu.dot_dimension_numbers<[1], [0], [0], [1], [0, 0, 1, 1], [], []>} : vector<8x8xf32>, vector<8x4xf32>, vector<8x4xf32> -> vector<8x4xf32>
    %c0_208 = arith.constant 0 : index
    %c8_209 = arith.constant 8 : index
    %267 = vector.load %arg19[%c0_208, %c8_209] : memref<8x32xf32, #tpu.memory_space<vmem>>, vector<8x4xf32>
    tpu.vector_store %arg19[%c0_208, %c8_209], %266 {strides = array<i32>} : memref<8x32xf32, #tpu.memory_space<vmem>>, vector<8x4xf32>,
    %c24_210 = arith.constant 24 : index
    %c0_211 = arith.constant 0 : index
    %268 = vector.load %arg18[%c24_210, %c0_211] : memref<64x8xf32, #tpu.memory_space<vmem>>, vector<8x8xf32>
    %269 = vector.extract_strided_slice %212 {offsets = [0, 12], sizes = [8, 4], strides = [1, 1]} : vector<8x32xf32> to vector<8x4xf32>
    %cst_212 = arith.constant dense<0.000000e+00> : vector<8x4xf32>
    %270 = tpu.matmul %268, %269, %cst_212 {dimension_numbers = #tpu.dot_dimension_numbers<[1], [0], [0], [1], [0, 0, 1, 1], [], []>} : vector<8x8xf32>, vector<8x4xf32>, vector<8x4xf32> -> vector<8x4xf32>
    %c0_213 = arith.constant 0 : index
    %c12_214 = arith.constant 12 : index
    %271 = vector.load %arg19[%c0_213, %c12_214] : memref<8x32xf32, #tpu.memory_space<vmem>>, vector<8x4xf32>
    tpu.vector_store %arg19[%c0_213, %c12_214], %270 {strides = array<i32>} : memref<8x32xf32, #tpu.memory_space<vmem>>, vector<8x4xf32>,
    %c32_215 = arith.constant 32 : index
    %c0_216 = arith.constant 0 : index
    %272 = vector.load %arg18[%c32_215, %c0_216] : memref<64x8xf32, #tpu.memory_space<vmem>>, vector<8x8xf32>
    %273 = vector.extract_strided_slice %212 {offsets = [0, 16], sizes = [8, 4], strides = [1, 1]} : vector<8x32xf32> to vector<8x4xf32>
    %cst_217 = arith.constant dense<0.000000e+00> : vector<8x4xf32>
    %274 = tpu.matmul %272, %273, %cst_217 {dimension_numbers = #tpu.dot_dimension_numbers<[1], [0], [0], [1], [0, 0, 1, 1], [], []>} : vector<8x8xf32>, vector<8x4xf32>, vector<8x4xf32> -> vector<8x4xf32>
    %c0_218 = arith.constant 0 : index
    %c16_219 = arith.constant 16 : index
    %275 = vector.load %arg19[%c0_218, %c16_219] : memref<8x32xf32, #tpu.memory_space<vmem>>, vector<8x4xf32>
    tpu.vector_store %arg19[%c0_218, %c16_219], %274 {strides = array<i32>} : memref<8x32xf32, #tpu.memory_space<vmem>>, vector<8x4xf32>,
    %c40_220 = arith.constant 40 : index
    %c0_221 = arith.constant 0 : index
    %276 = vector.load %arg18[%c40_220, %c0_221] : memref<64x8xf32, #tpu.memory_space<vmem>>, vector<8x8xf32>
    %277 = vector.extract_strided_slice %212 {offsets = [0, 20], sizes = [8, 4], strides = [1, 1]} : vector<8x32xf32> to vector<8x4xf32>
    %cst_222 = arith.constant dense<0.000000e+00> : vector<8x4xf32>
    %278 = tpu.matmul %276, %277, %cst_222 {dimension_numbers = #tpu.dot_dimension_numbers<[1], [0], [0], [1], [0, 0, 1, 1], [], []>} : vector<8x8xf32>, vector<8x4xf32>, vector<8x4xf32> -> vector<8x4xf32>
    %c0_223 = arith.constant 0 : index
    %c20_224 = arith.constant 20 : index
    %279 = vector.load %arg19[%c0_223, %c20_224] : memref<8x32xf32, #tpu.memory_space<vmem>>, vector<8x4xf32>
    tpu.vector_store %arg19[%c0_223, %c20_224], %278 {strides = array<i32>} : memref<8x32xf32, #tpu.memory_space<vmem>>, vector<8x4xf32>,
    %c48_225 = arith.constant 48 : index
    %c0_226 = arith.constant 0 : index
    %280 = vector.load %arg18[%c48_225, %c0_226] : memref<64x8xf32, #tpu.memory_space<vmem>>, vector<8x8xf32>
    %281 = vector.extract_strided_slice %212 {offsets = [0, 24], sizes = [8, 4], strides = [1, 1]} : vector<8x32xf32> to vector<8x4xf32>
    %cst_227 = arith.constant dense<0.000000e+00> : vector<8x4xf32>
    %282 = tpu.matmul %280, %281, %cst_227 {dimension_numbers = #tpu.dot_dimension_numbers<[1], [0], [0], [1], [0, 0, 1, 1], [], []>} : vector<8x8xf32>, vector<8x4xf32>, vector<8x4xf32> -> vector<8x4xf32>
    %c0_228 = arith.constant 0 : index
    %c24_229 = arith.constant 24 : index
    %283 = vector.load %arg19[%c0_228, %c24_229] : memref<8x32xf32, #tpu.memory_space<vmem>>, vector<8x4xf32>
    tpu.vector_store %arg19[%c0_228, %c24_229], %282 {strides = array<i32>} : memref<8x32xf32, #tpu.memory_space<vmem>>, vector<8x4xf32>,
    %c56_230 = arith.constant 56 : index
    %c0_231 = arith.constant 0 : index
    %284 = vector.load %arg18[%c56_230, %c0_231] : memref<64x8xf32, #tpu.memory_space<vmem>>, vector<8x8xf32>
    %285 = vector.extract_strided_slice %212 {offsets = [0, 28], sizes = [8, 4], strides = [1, 1]} : vector<8x32xf32> to vector<8x4xf32>
    %cst_232 = arith.constant dense<0.000000e+00> : vector<8x4xf32>
    %286 = tpu.matmul %284, %285, %cst_232 {dimension_numbers = #tpu.dot_dimension_numbers<[1], [0], [0], [1], [0, 0, 1, 1], [], []>} : vector<8x8xf32>, vector<8x4xf32>, vector<8x4xf32> -> vector<8x4xf32>
    %c0_233 = arith.constant 0 : index
    %c28_234 = arith.constant 28 : index
    %287 = vector.load %arg19[%c0_233, %c28_234] : memref<8x32xf32, #tpu.memory_space<vmem>>, vector<8x4xf32>
    tpu.vector_store %arg19[%c0_233, %c28_234], %286 {strides = array<i32>} : memref<8x32xf32, #tpu.memory_space<vmem>>, vector<8x4xf32>,
    %c0_235 = arith.constant 0 : index
    %c0_236 = arith.constant 0 : index
    %288 = vector.load %arg19[%c0_235, %c0_236] : memref<8x32xf32, #tpu.memory_space<vmem>>, vector<8x32xf32>
    %289 = arith.truncf %288 : vector<8x32xf32> to vector<8x32xbf16>
    %cst_237 = arith.constant dense<0.000000e+00> : vector<8x32xf32>
    %290 = tpu.matmul %289, %188, %cst_237 {dimension_numbers = #tpu.dot_dimension_numbers<[1], [0], [0], [1], [0, 0, 1, 1], [], []>} : vector<8x32xbf16>, vector<32x32xbf16>, vector<8x32xf32> -> vector<8x32xf32>
    %291 = vector.broadcast %190 : vector<1x32xf32> to vector<8x32xf32>
    %292 = arith.addf %290, %291 : vector<8x32xf32>
    %293 = arith.addf %292, %180 : vector<8x32xf32>
    %cst_238 = arith.constant dense<0.000000e+00> : vector<8xf32>
    %294 = vector.multi_reduction <add>, %293, %cst_238 [1] : vector<8x32xf32> to vector<8xf32>
    %295 = vector.shape_cast %294 : vector<8xf32> to vector<8x1xf32>
    %cst_239 = arith.constant 3.200000e+01 : f32
    %296 = vector.broadcast %cst_239 : f32 to vector<8x1xf32>
    %297 = arith.divf %295, %296 : vector<8x1xf32>
    %298 = vector.broadcast %297 : vector<8x1xf32> to vector<8x32xf32>
    %299 = arith.subf %293, %298 : vector<8x32xf32>
    %300 = arith.mulf %299, %299 : vector<8x32xf32>
    %cst_240 = arith.constant dense<0.000000e+00> : vector<8xf32>
    %301 = vector.multi_reduction <add>, %300, %cst_240 [1] : vector<8x32xf32> to vector<8xf32>
    %302 = vector.shape_cast %301 : vector<8xf32> to vector<8x1xf32>
    %cst_241 = arith.constant 3.200000e+01 : f32
    %303 = vector.broadcast %cst_241 : f32 to vector<8x1xf32>
    %304 = arith.divf %302, %303 : vector<8x1xf32>
    %305 = vector.broadcast %297 : vector<8x1xf32> to vector<8x32xf32>
    %306 = arith.subf %293, %305 : vector<8x32xf32>
    %cst_242 = arith.constant 9.99999974E-6 : f32
    %307 = vector.broadcast %cst_242 : f32 to vector<8x1xf32>
    %308 = arith.addf %304, %307 : vector<8x1xf32>
    %309 = math.rsqrt %308 : vector<8x1xf32>
    %310 = vector.broadcast %309 : vector<8x1xf32> to vector<8x32xf32>
    %311 = arith.mulf %306, %310 : vector<8x32xf32>
    %312 = vector.broadcast %192 : vector<1x32xf32> to vector<8x32xf32>
    %313 = arith.mulf %311, %312 : vector<8x32xf32>
    %314 = vector.broadcast %194 : vector<1x32xf32> to vector<8x32xf32>
    %315 = arith.addf %313, %314 : vector<8x32xf32>
    %316 = arith.truncf %315 : vector<8x32xf32> to vector<8x32xbf16>
    %cst_243 = arith.constant dense<0.000000e+00> : vector<8x128xf32>
    %317 = tpu.matmul %316, %196, %cst_243 {dimension_numbers = #tpu.dot_dimension_numbers<[1], [0], [0], [1], [0, 0, 1, 1], [], []>} : vector<8x32xbf16>, vector<32x128xbf16>, vector<8x128xf32> -> vector<8x128xf32>
    %318 = vector.broadcast %198 : vector<1x128xf32> to vector<8x128xf32>
    %319 = arith.addf %317, %318 : vector<8x128xf32>
    %cst_244 = arith.constant 0.000000e+00 : f32
    %320 = vector.broadcast %cst_244 : f32 to vector<8x128xf32>
    %321 = arith.maximumf %319, %320 : vector<8x128xf32>
    %322 = arith.truncf %321 : vector<8x128xf32> to vector<8x128xbf16>
    %cst_245 = arith.constant dense<0.000000e+00> : vector<8x32xf32>
    %323 = tpu.matmul %322, %200, %cst_245 {dimension_numbers = #tpu.dot_dimension_numbers<[1], [0], [0], [1], [0, 0, 1, 1], [], []>} : vector<8x128xbf16>, vector<128x32xbf16>, vector<8x32xf32> -> vector<8x32xf32>
    %324 = vector.broadcast %202 : vector<1x32xf32> to vector<8x32xf32>
    %325 = arith.addf %323, %324 : vector<8x32xf32>
    %326 = arith.addf %325, %315 : vector<8x32xf32>
    %cst_246 = arith.constant dense<0.000000e+00> : vector<8xf32>
    %327 = vector.multi_reduction <add>, %326, %cst_246 [1] : vector<8x32xf32> to vector<8xf32>
    %328 = vector.shape_cast %327 : vector<8xf32> to vector<8x1xf32>
    %cst_247 = arith.constant 3.200000e+01 : f32
    %329 = vector.broadcast %cst_247 : f32 to vector<8x1xf32>
    %330 = arith.divf %328, %329 : vector<8x1xf32>
    %331 = vector.broadcast %330 : vector<8x1xf32> to vector<8x32xf32>
    %332 = arith.subf %326, %331 : vector<8x32xf32>
    %333 = arith.mulf %332, %332 : vector<8x32xf32>
    %cst_248 = arith.constant dense<0.000000e+00> : vector<8xf32>
    %334 = vector.multi_reduction <add>, %333, %cst_248 [1] : vector<8x32xf32> to vector<8xf32>
    %335 = vector.shape_cast %334 : vector<8xf32> to vector<8x1xf32>
    %cst_249 = arith.constant 3.200000e+01 : f32
    %336 = vector.broadcast %cst_249 : f32 to vector<8x1xf32>
    %337 = arith.divf %335, %336 : vector<8x1xf32>
    %338 = vector.broadcast %330 : vector<8x1xf32> to vector<8x32xf32>
    %339 = arith.subf %326, %338 : vector<8x32xf32>
    %cst_250 = arith.constant 9.99999974E-6 : f32
    %340 = vector.broadcast %cst_250 : f32 to vector<8x1xf32>
    %341 = arith.addf %337, %340 : vector<8x1xf32>
    %342 = math.rsqrt %341 : vector<8x1xf32>
    %343 = vector.broadcast %342 : vector<8x1xf32> to vector<8x32xf32>
    %344 = arith.mulf %339, %343 : vector<8x32xf32>
    %345 = vector.broadcast %204 : vector<1x32xf32> to vector<8x32xf32>
    %346 = arith.mulf %344, %345 : vector<8x32xf32>
    %347 = vector.broadcast %206 : vector<1x32xf32> to vector<8x32xf32>
    %348 = arith.addf %346, %347 : vector<8x32xf32>
    %c0_251 = arith.constant 0 : index
    %c0_252 = arith.constant 0 : index
    %c0_253 = arith.constant 0 : index
    %349 = vector.load %arg17[%c0_251, %c0_252, %c0_253] : memref<1x8x32xf32, #tpu.memory_space<vmem>>, vector<1x8x32xf32>
    %350 = vector.shape_cast %349 : vector<1x8x32xf32> to vector<8x32xf32>
    %351 = vector.shape_cast %348 : vector<8x32xf32> to vector<1x8x32xf32>
    tpu.vector_store %arg17[%c0_251, %c0_252, %c0_253], %351 {strides = array<i32>} : memref<1x8x32xf32, #tpu.memory_space<vmem>>, vector<1x8x32xf32>,
    return
  }
  func.func @transform_0(%arg0: i32) -> (i32, i32, i32) {
    %c0_i32 = arith.constant 0 : i32
    %c0_i32_0 = arith.constant 0 : i32
    %c0_i32_1 = arith.constant 0 : i32
    return %arg0, %c0_i32, %c0_i32_0 : i32, i32, i32
  }
  func.func @transform_1(%arg0: i32) -> (i32, i32) {
    %c0_i32 = arith.constant 0 : i32
    %c0_i32_0 = arith.constant 0 : i32
    %c0_i32_1 = arith.constant 0 : i32
    return %c0_i32, %c0_i32_0 : i32, i32
  }
  func.func @transform_2(%arg0: i32) -> (i32, i32) {
    %c0_i32 = arith.constant 0 : i32
    %c0_i32_0 = arith.constant 0 : i32
    %c0_i32_1 = arith.constant 0 : i32
    return %c0_i32, %c0_i32_0 : i32, i32
  }
  func.func @transform_3(%arg0: i32) -> (i32, i32, i32) {
    %c0_i32 = arith.constant 0 : i32
    %c0_i32_0 = arith.constant 0 : i32
    %c0_i32_1 = arith.constant 0 : i32
    %c0_i32_2 = arith.constant 0 : i32
    return %c0_i32, %c0_i32_0, %c0_i32_1 : i32, i32, i32
  }
  func.func @transform_4(%arg0: i32) -> (i32, i32, i32) {
    %c0_i32 = arith.constant 0 : i32
    %c0_i32_0 = arith.constant 0 : i32
    %c0_i32_1 = arith.constant 0 : i32
    %c0_i32_2 = arith.constant 0 : i32
    return %c0_i32, %c0_i32_0, %c0_i32_1 : i32, i32, i32
  }
  func.func @transform_5(%arg0: i32) -> (i32, i32, i32) {
    %c0_i32 = arith.constant 0 : i32
    %c0_i32_0 = arith.constant 0 : i32
    %c0_i32_1 = arith.constant 0 : i32
    %c0_i32_2 = arith.constant 0 : i32
    return %c0_i32, %c0_i32_0, %c0_i32_1 : i32, i32, i32
  }
  func.func @transform_6(%arg0: i32) -> (i32, i32, i32) {
    %c0_i32 = arith.constant 0 : i32
    %c0_i32_0 = arith.constant 0 : i32
    %c0_i32_1 = arith.constant 0 : i32
    %c0_i32_2 = arith.constant 0 : i32
    return %c0_i32, %c0_i32_0, %c0_i32_1 : i32, i32, i32
  }
  func.func @transform_7(%arg0: i32) -> (i32, i32, i32) {
    %c0_i32 = arith.constant 0 : i32
    %c0_i32_0 = arith.constant 0 : i32
    %c0_i32_1 = arith.constant 0 : i32
    %c0_i32_2 = arith.constant 0 : i32
    return %c0_i32, %c0_i32_0, %c0_i32_1 : i32, i32, i32
  }
  func.func @transform_8(%arg0: i32) -> (i32, i32, i32) {
    %c0_i32 = arith.constant 0 : i32
    %c0_i32_0 = arith.constant 0 : i32
    %c0_i32_1 = arith.constant 0 : i32
    %c0_i32_2 = arith.constant 0 : i32
    return %c0_i32, %c0_i32_0, %c0_i32_1 : i32, i32, i32
  }
  func.func @transform_9(%arg0: i32) -> (i32, i32, i32) {
    %c0_i32 = arith.constant 0 : i32
    %c0_i32_0 = arith.constant 0 : i32
    %c0_i32_1 = arith.constant 0 : i32
    %c0_i32_2 = arith.constant 0 : i32
    return %c0_i32, %c0_i32_0, %c0_i32_1 : i32, i32, i32
  }
  func.func @transform_10(%arg0: i32) -> (i32, i32, i32) {
    %c0_i32 = arith.constant 0 : i32
    %c0_i32_0 = arith.constant 0 : i32
    %c0_i32_1 = arith.constant 0 : i32
    %c0_i32_2 = arith.constant 0 : i32
    return %c0_i32, %c0_i32_0, %c0_i32_1 : i32, i32, i32
  }
  func.func @transform_11(%arg0: i32) -> (i32, i32, i32) {
    %c0_i32 = arith.constant 0 : i32
    %c0_i32_0 = arith.constant 0 : i32
    %c0_i32_1 = arith.constant 0 : i32
    %c0_i32_2 = arith.constant 0 : i32
    return %c0_i32, %c0_i32_0, %c0_i32_1 : i32, i32, i32
  }
  func.func @transform_12(%arg0: i32) -> (i32, i32, i32) {
    %c0_i32 = arith.constant 0 : i32
    %c0_i32_0 = arith.constant 0 : i32
    %c0_i32_1 = arith.constant 0 : i32
    %c0_i32_2 = arith.constant 0 : i32
    return %c0_i32, %c0_i32_0, %c0_i32_1 : i32, i32, i32
  }
  func.func @transform_13(%arg0: i32) -> (i32, i32, i32) {
    %c0_i32 = arith.constant 0 : i32
    %c0_i32_0 = arith.constant 0 : i32
    %c0_i32_1 = arith.constant 0 : i32
    %c0_i32_2 = arith.constant 0 : i32
    return %c0_i32, %c0_i32_0, %c0_i32_1 : i32, i32, i32
  }
  func.func @transform_14(%arg0: i32) -> (i32, i32, i32) {
    %c0_i32 = arith.constant 0 : i32
    %c0_i32_0 = arith.constant 0 : i32
    %c0_i32_1 = arith.constant 0 : i32
    %c0_i32_2 = arith.constant 0 : i32
    return %c0_i32, %c0_i32_0, %c0_i32_1 : i32, i32, i32
  }
  func.func @transform_15(%arg0: i32) -> (i32, i32, i32) {
    %c0_i32 = arith.constant 0 : i32
    %c0_i32_0 = arith.constant 0 : i32
    %c0_i32_1 = arith.constant 0 : i32
    %c0_i32_2 = arith.constant 0 : i32
    return %c0_i32, %c0_i32_0, %c0_i32_1 : i32, i32, i32
  }
  func.func @transform_16(%arg0: i32) -> (i32, i32, i32) {
    %c0_i32 = arith.constant 0 : i32
    %c0_i32_0 = arith.constant 0 : i32
    %c0_i32_1 = arith.constant 0 : i32
    return %arg0, %c0_i32, %c0_i32_0 : i32, i32, i32
  }
}

module attributes {stable_mosaic.version = 11 : i64} {
  func.func @_decoder_kernel(%arg0: i32, %arg1: memref<1x8x1xi32, #tpu.memory_space<vmem>>, %arg2: memref<1x8x32xf32, #tpu.memory_space<vmem>>, %arg3: memref<16x32xf32, #tpu.memory_space<vmem>>, %arg4: memref<8x32xf32, #tpu.memory_space<vmem>>, %arg5: memref<64x8xf32, #tpu.memory_space<vmem>>, %arg6: memref<2x32x32xbf16, #tpu.memory_space<vmem>>, %arg7: memref<2x32x32xbf16, #tpu.memory_space<vmem>>, %arg8: memref<2x32x32xbf16, #tpu.memory_space<vmem>>, %arg9: memref<2x32x32xbf16, #tpu.memory_space<vmem>>, %arg10: memref<2x1x32xf32, #tpu.memory_space<vmem>>, %arg11: memref<2x1x32xf32, #tpu.memory_space<vmem>>, %arg12: memref<2x1x32xf32, #tpu.memory_space<vmem>>, %arg13: memref<2x32x32xbf16, #tpu.memory_space<vmem>>, %arg14: memref<2x32x32xbf16, #tpu.memory_space<vmem>>, %arg15: memref<2x32x32xbf16, #tpu.memory_space<vmem>>, %arg16: memref<2x32x32xbf16, #tpu.memory_space<vmem>>, %arg17: memref<2x1x32xf32, #tpu.memory_space<vmem>>, %arg18: memref<2x1x32xf32, #tpu.memory_space<vmem>>, %arg19: memref<2x1x32xf32, #tpu.memory_space<vmem>>, %arg20: memref<2x32x128xbf16, #tpu.memory_space<vmem>>, %arg21: memref<2x1x128xf32, #tpu.memory_space<vmem>>, %arg22: memref<2x128x32xbf16, #tpu.memory_space<vmem>>, %arg23: memref<2x1x32xf32, #tpu.memory_space<vmem>>, %arg24: memref<2x1x32xf32, #tpu.memory_space<vmem>>, %arg25: memref<2x1x32xf32, #tpu.memory_space<vmem>>, %arg26: memref<32x128xbf16, #tpu.memory_space<vmem>>, %arg27: memref<1x128xf32, #tpu.memory_space<vmem>>, %arg28: memref<1x8x128xf32, #tpu.memory_space<vmem>>, %arg29: memref<64x8xf32, #tpu.memory_space<vmem>>, %arg30: memref<8x32xf32, #tpu.memory_space<vmem>>) attributes {dimension_semantics = [#tpu.dimension_semantics<parallel>], iteration_bounds = array<i64: 2>, scalar_prefetch = 0 : i64, scratch_operands = 2 : i64, tpu.core_type = #tpu.core_type<tc>, window_params = [{transform_indices = @transform_0, window_bounds = array<i64: 1, 8, 1>}, {transform_indices = @transform_1, window_bounds = array<i64: 1, 8, 32>}, {pipeline_mode = #tpu.pipeline_mode<synchronous>, transform_indices = @transform_2, window_bounds = array<i64: 16, 32>}, {pipeline_mode = #tpu.pipeline_mode<synchronous>, transform_indices = @transform_3, window_bounds = array<i64: 8, 32>}, {pipeline_mode = #tpu.pipeline_mode<synchronous>, transform_indices = @transform_4, window_bounds = array<i64: 64, 8>}, {pipeline_mode = #tpu.pipeline_mode<synchronous>, transform_indices = @transform_5, window_bounds = array<i64: 2, 32, 32>}, {pipeline_mode = #tpu.pipeline_mode<synchronous>, transform_indices = @transform_6, window_bounds = array<i64: 2, 32, 32>}, {pipeline_mode = #tpu.pipeline_mode<synchronous>, transform_indices = @transform_7, window_bounds = array<i64: 2, 32, 32>}, {pipeline_mode = #tpu.pipeline_mode<synchronous>, transform_indices = @transform_8, window_bounds = array<i64: 2, 32, 32>}, {pipeline_mode = #tpu.pipeline_mode<synchronous>, transform_indices = @transform_9, window_bounds = array<i64: 2, 1, 32>}, {pipeline_mode = #tpu.pipeline_mode<synchronous>, transform_indices = @transform_10, window_bounds = array<i64: 2, 1, 32>}, {pipeline_mode = #tpu.pipeline_mode<synchronous>, transform_indices = @transform_11, window_bounds = array<i64: 2, 1, 32>}, {pipeline_mode = #tpu.pipeline_mode<synchronous>, transform_indices = @transform_12, window_bounds = array<i64: 2, 32, 32>}, {pipeline_mode = #tpu.pipeline_mode<synchronous>, transform_indices = @transform_13, window_bounds = array<i64: 2, 32, 32>}, {pipeline_mode = #tpu.pipeline_mode<synchronous>, transform_indices = @transform_14, window_bounds = array<i64: 2, 32, 32>}, {pipeline_mode = #tpu.pipeline_mode<synchronous>, transform_indices = @transform_15, window_bounds = array<i64: 2, 32, 32>}, {pipeline_mode = #tpu.pipeline_mode<synchronous>, transform_indices = @transform_16, window_bounds = array<i64: 2, 1, 32>}, {pipeline_mode = #tpu.pipeline_mode<synchronous>, transform_indices = @transform_17, window_bounds = array<i64: 2, 1, 32>}, {pipeline_mode = #tpu.pipeline_mode<synchronous>, transform_indices = @transform_18, window_bounds = array<i64: 2, 1, 32>}, {pipeline_mode = #tpu.pipeline_mode<synchronous>, transform_indices = @transform_19, window_bounds = array<i64: 2, 32, 128>}, {pipeline_mode = #tpu.pipeline_mode<synchronous>, transform_indices = @transform_20, window_bounds = array<i64: 2, 1, 128>}, {pipeline_mode = #tpu.pipeline_mode<synchronous>, transform_indices = @transform_21, window_bounds = array<i64: 2, 128, 32>}, {pipeline_mode = #tpu.pipeline_mode<synchronous>, transform_indices = @transform_22, window_bounds = array<i64: 2, 1, 32>}, {pipeline_mode = #tpu.pipeline_mode<synchronous>, transform_indices = @transform_23, window_bounds = array<i64: 2, 1, 32>}, {pipeline_mode = #tpu.pipeline_mode<synchronous>, transform_indices = @transform_24, window_bounds = array<i64: 2, 1, 32>}, {pipeline_mode = #tpu.pipeline_mode<synchronous>, transform_indices = @transform_25, window_bounds = array<i64: 32, 128>}, {pipeline_mode = #tpu.pipeline_mode<synchronous>, transform_indices = @transform_26, window_bounds = array<i64: 1, 128>}, {transform_indices = @transform_27, window_bounds = array<i64: 1, 8, 128>}]} {
    %c0 = arith.constant 0 : index
    %c0_0 = arith.constant 0 : index
    %c0_1 = arith.constant 0 : index
    %0 = vector.load %arg1[%c0, %c0_0, %c0_1] : memref<1x8x1xi32, #tpu.memory_space<vmem>>, vector<1x8x1xi32>
    %1 = vector.shape_cast %0 : vector<1x8x1xi32> to vector<8x1xi32>
    %c0_2 = arith.constant 0 : index
    %c0_3 = arith.constant 0 : index
    %2 = vector.load %arg3[%c0_2, %c0_3] : memref<16x32xf32, #tpu.memory_space<vmem>>, vector<16x32xf32>
    %c0_4 = arith.constant 0 : index
    %c0_5 = arith.constant 0 : index
    %3 = vector.load %arg4[%c0_4, %c0_5] : memref<8x32xf32, #tpu.memory_space<vmem>>, vector<8x32xf32>
    %4 = tpu.iota {dimensions = array<i32: 1>} : vector<8x16xi32>
    %5 = vector.broadcast %1 : vector<8x1xi32> to vector<8x16xi32>
    %6 = arith.cmpi eq, %5, %4 : vector<8x16xi32>
    %7 = arith.extui %6 : vector<8x16xi1> to vector<8x16xi32>
    %8 = arith.sitofp %7 : vector<8x16xi32> to vector<8x16xf32>
    %cst = arith.constant dense<0.000000e+00> : vector<8x32xf32>
    %9 = tpu.matmul %8, %2, %cst {dimension_numbers = #tpu.dot_dimension_numbers<[1], [0], [0], [1], [0, 0, 1, 1], [], []>} : vector<8x16xf32>, vector<16x32xf32>, vector<8x32xf32> -> vector<8x32xf32>
    %cst_6 = arith.constant 5.65685415 : f32
    %10 = vector.broadcast %cst_6 : f32 to vector<8x32xf32>
    %11 = arith.mulf %9, %10 : vector<8x32xf32>
    %12 = arith.addf %11, %3 : vector<8x32xf32>
    %c0_7 = arith.constant 0 : index
    %c0_8 = arith.constant 0 : index
    %c0_9 = arith.constant 0 : index
    %13 = vector.load %arg2[%c0_7, %c0_8, %c0_9] : memref<1x8x32xf32, #tpu.memory_space<vmem>>, vector<1x8x32xf32>
    %14 = vector.shape_cast %13 : vector<1x8x32xf32> to vector<8x32xf32>
    %c0_10 = arith.constant 0 : index
    %c0_11 = arith.constant 0 : index
    %15 = vector.load %arg5[%c0_10, %c0_11] : memref<64x8xf32, #tpu.memory_space<vmem>>, vector<64x8xf32>
    %c0_12 = arith.constant 0 : index
    %c0_13 = arith.constant 0 : index
    %c0_14 = arith.constant 0 : index
    %16 = vector.load %arg6[%c0_12, %c0_13, %c0_14] : memref<2x32x32xbf16, #tpu.memory_space<vmem>>, vector<1x32x32xbf16>
    %17 = vector.shape_cast %16 : vector<1x32x32xbf16> to vector<32x32xbf16>
    %18 = arith.truncf %14 : vector<8x32xf32> to vector<8x32xbf16>
    %cst_15 = arith.constant dense<0.000000e+00> : vector<8x32xf32>
    %19 = tpu.matmul %18, %17, %cst_15 {dimension_numbers = #tpu.dot_dimension_numbers<[1], [0], [0], [1], [0, 0, 1, 1], [], []>} : vector<8x32xbf16>, vector<32x32xbf16>, vector<8x32xf32> -> vector<8x32xf32>
    %c0_16 = arith.constant 0 : index
    %c0_17 = arith.constant 0 : index
    %c0_18 = arith.constant 0 : index
    %20 = vector.load %arg7[%c0_16, %c0_17, %c0_18] : memref<2x32x32xbf16, #tpu.memory_space<vmem>>, vector<1x32x32xbf16>
    %21 = vector.shape_cast %20 : vector<1x32x32xbf16> to vector<32x32xbf16>
    %22 = arith.truncf %14 : vector<8x32xf32> to vector<8x32xbf16>
    %cst_19 = arith.constant dense<0.000000e+00> : vector<8x32xf32>
    %23 = tpu.matmul %22, %21, %cst_19 {dimension_numbers = #tpu.dot_dimension_numbers<[1], [0], [0], [1], [0, 0, 1, 1], [], []>} : vector<8x32xbf16>, vector<32x32xbf16>, vector<8x32xf32> -> vector<8x32xf32>
    %c0_20 = arith.constant 0 : index
    %c0_21 = arith.constant 0 : index
    %c0_22 = arith.constant 0 : index
    %24 = vector.load %arg8[%c0_20, %c0_21, %c0_22] : memref<2x32x32xbf16, #tpu.memory_space<vmem>>, vector<1x32x32xbf16>
    %25 = vector.shape_cast %24 : vector<1x32x32xbf16> to vector<32x32xbf16>
    %26 = arith.truncf %14 : vector<8x32xf32> to vector<8x32xbf16>
    %cst_23 = arith.constant dense<0.000000e+00> : vector<8x32xf32>
    %27 = tpu.matmul %26, %25, %cst_23 {dimension_numbers = #tpu.dot_dimension_numbers<[1], [0], [0], [1], [0, 0, 1, 1], [], []>} : vector<8x32xbf16>, vector<32x32xbf16>, vector<8x32xf32> -> vector<8x32xf32>
    %28 = vector.extract_strided_slice %19 {offsets = [0, 0], sizes = [8, 4], strides = [1, 1]} : vector<8x32xf32> to vector<8x4xf32>
    %29 = vector.extract_strided_slice %23 {offsets = [0, 0], sizes = [8, 4], strides = [1, 1]} : vector<8x32xf32> to vector<8x4xf32>
    %cst_24 = arith.constant dense<0.000000e+00> : vector<8x8xf32>
    %30 = tpu.matmul %28, %29, %cst_24 {dimension_numbers = #tpu.dot_dimension_numbers<[1], [1], [0], [0], [0, 0, 1, 0], [], []>} : vector<8x4xf32>, vector<8x4xf32>, vector<8x8xf32> -> vector<8x8xf32>
    %c0_25 = arith.constant 0 : index
    %c0_26 = arith.constant 0 : index
    %31 = vector.load %arg29[%c0_25, %c0_26] : memref<64x8xf32, #tpu.memory_space<vmem>>, vector<8x8xf32>
    tpu.vector_store %arg29[%c0_25, %c0_26], %30 {strides = array<i32>} : memref<64x8xf32, #tpu.memory_space<vmem>>, vector<8x8xf32>,
    %32 = vector.extract_strided_slice %19 {offsets = [0, 4], sizes = [8, 4], strides = [1, 1]} : vector<8x32xf32> to vector<8x4xf32>
    %33 = vector.extract_strided_slice %23 {offsets = [0, 4], sizes = [8, 4], strides = [1, 1]} : vector<8x32xf32> to vector<8x4xf32>
    %cst_27 = arith.constant dense<0.000000e+00> : vector<8x8xf32>
    %34 = tpu.matmul %32, %33, %cst_27 {dimension_numbers = #tpu.dot_dimension_numbers<[1], [1], [0], [0], [0, 0, 1, 0], [], []>} : vector<8x4xf32>, vector<8x4xf32>, vector<8x8xf32> -> vector<8x8xf32>
    %c8 = arith.constant 8 : index
    %c0_28 = arith.constant 0 : index
    %35 = vector.load %arg29[%c8, %c0_28] : memref<64x8xf32, #tpu.memory_space<vmem>>, vector<8x8xf32>
    tpu.vector_store %arg29[%c8, %c0_28], %34 {strides = array<i32>} : memref<64x8xf32, #tpu.memory_space<vmem>>, vector<8x8xf32>,
    %36 = vector.extract_strided_slice %19 {offsets = [0, 8], sizes = [8, 4], strides = [1, 1]} : vector<8x32xf32> to vector<8x4xf32>
    %37 = vector.extract_strided_slice %23 {offsets = [0, 8], sizes = [8, 4], strides = [1, 1]} : vector<8x32xf32> to vector<8x4xf32>
    %cst_29 = arith.constant dense<0.000000e+00> : vector<8x8xf32>
    %38 = tpu.matmul %36, %37, %cst_29 {dimension_numbers = #tpu.dot_dimension_numbers<[1], [1], [0], [0], [0, 0, 1, 0], [], []>} : vector<8x4xf32>, vector<8x4xf32>, vector<8x8xf32> -> vector<8x8xf32>
    %c16 = arith.constant 16 : index
    %c0_30 = arith.constant 0 : index
    %39 = vector.load %arg29[%c16, %c0_30] : memref<64x8xf32, #tpu.memory_space<vmem>>, vector<8x8xf32>
    tpu.vector_store %arg29[%c16, %c0_30], %38 {strides = array<i32>} : memref<64x8xf32, #tpu.memory_space<vmem>>, vector<8x8xf32>,
    %40 = vector.extract_strided_slice %19 {offsets = [0, 12], sizes = [8, 4], strides = [1, 1]} : vector<8x32xf32> to vector<8x4xf32>
    %41 = vector.extract_strided_slice %23 {offsets = [0, 12], sizes = [8, 4], strides = [1, 1]} : vector<8x32xf32> to vector<8x4xf32>
    %cst_31 = arith.constant dense<0.000000e+00> : vector<8x8xf32>
    %42 = tpu.matmul %40, %41, %cst_31 {dimension_numbers = #tpu.dot_dimension_numbers<[1], [1], [0], [0], [0, 0, 1, 0], [], []>} : vector<8x4xf32>, vector<8x4xf32>, vector<8x8xf32> -> vector<8x8xf32>
    %c24 = arith.constant 24 : index
    %c0_32 = arith.constant 0 : index
    %43 = vector.load %arg29[%c24, %c0_32] : memref<64x8xf32, #tpu.memory_space<vmem>>, vector<8x8xf32>
    tpu.vector_store %arg29[%c24, %c0_32], %42 {strides = array<i32>} : memref<64x8xf32, #tpu.memory_space<vmem>>, vector<8x8xf32>,
    %44 = vector.extract_strided_slice %19 {offsets = [0, 16], sizes = [8, 4], strides = [1, 1]} : vector<8x32xf32> to vector<8x4xf32>
    %45 = vector.extract_strided_slice %23 {offsets = [0, 16], sizes = [8, 4], strides = [1, 1]} : vector<8x32xf32> to vector<8x4xf32>
    %cst_33 = arith.constant dense<0.000000e+00> : vector<8x8xf32>
    %46 = tpu.matmul %44, %45, %cst_33 {dimension_numbers = #tpu.dot_dimension_numbers<[1], [1], [0], [0], [0, 0, 1, 0], [], []>} : vector<8x4xf32>, vector<8x4xf32>, vector<8x8xf32> -> vector<8x8xf32>
    %c32 = arith.constant 32 : index
    %c0_34 = arith.constant 0 : index
    %47 = vector.load %arg29[%c32, %c0_34] : memref<64x8xf32, #tpu.memory_space<vmem>>, vector<8x8xf32>
    tpu.vector_store %arg29[%c32, %c0_34], %46 {strides = array<i32>} : memref<64x8xf32, #tpu.memory_space<vmem>>, vector<8x8xf32>,
    %48 = vector.extract_strided_slice %19 {offsets = [0, 20], sizes = [8, 4], strides = [1, 1]} : vector<8x32xf32> to vector<8x4xf32>
    %49 = vector.extract_strided_slice %23 {offsets = [0, 20], sizes = [8, 4], strides = [1, 1]} : vector<8x32xf32> to vector<8x4xf32>
    %cst_35 = arith.constant dense<0.000000e+00> : vector<8x8xf32>
    %50 = tpu.matmul %48, %49, %cst_35 {dimension_numbers = #tpu.dot_dimension_numbers<[1], [1], [0], [0], [0, 0, 1, 0], [], []>} : vector<8x4xf32>, vector<8x4xf32>, vector<8x8xf32> -> vector<8x8xf32>
    %c40 = arith.constant 40 : index
    %c0_36 = arith.constant 0 : index
    %51 = vector.load %arg29[%c40, %c0_36] : memref<64x8xf32, #tpu.memory_space<vmem>>, vector<8x8xf32>
    tpu.vector_store %arg29[%c40, %c0_36], %50 {strides = array<i32>} : memref<64x8xf32, #tpu.memory_space<vmem>>, vector<8x8xf32>,
    %52 = vector.extract_strided_slice %19 {offsets = [0, 24], sizes = [8, 4], strides = [1, 1]} : vector<8x32xf32> to vector<8x4xf32>
    %53 = vector.extract_strided_slice %23 {offsets = [0, 24], sizes = [8, 4], strides = [1, 1]} : vector<8x32xf32> to vector<8x4xf32>
    %cst_37 = arith.constant dense<0.000000e+00> : vector<8x8xf32>
    %54 = tpu.matmul %52, %53, %cst_37 {dimension_numbers = #tpu.dot_dimension_numbers<[1], [1], [0], [0], [0, 0, 1, 0], [], []>} : vector<8x4xf32>, vector<8x4xf32>, vector<8x8xf32> -> vector<8x8xf32>
    %c48 = arith.constant 48 : index
    %c0_38 = arith.constant 0 : index
    %55 = vector.load %arg29[%c48, %c0_38] : memref<64x8xf32, #tpu.memory_space<vmem>>, vector<8x8xf32>
    tpu.vector_store %arg29[%c48, %c0_38], %54 {strides = array<i32>} : memref<64x8xf32, #tpu.memory_space<vmem>>, vector<8x8xf32>,
    %56 = vector.extract_strided_slice %19 {offsets = [0, 28], sizes = [8, 4], strides = [1, 1]} : vector<8x32xf32> to vector<8x4xf32>
    %57 = vector.extract_strided_slice %23 {offsets = [0, 28], sizes = [8, 4], strides = [1, 1]} : vector<8x32xf32> to vector<8x4xf32>
    %cst_39 = arith.constant dense<0.000000e+00> : vector<8x8xf32>
    %58 = tpu.matmul %56, %57, %cst_39 {dimension_numbers = #tpu.dot_dimension_numbers<[1], [1], [0], [0], [0, 0, 1, 0], [], []>} : vector<8x4xf32>, vector<8x4xf32>, vector<8x8xf32> -> vector<8x8xf32>
    %c56 = arith.constant 56 : index
    %c0_40 = arith.constant 0 : index
    %59 = vector.load %arg29[%c56, %c0_40] : memref<64x8xf32, #tpu.memory_space<vmem>>, vector<8x8xf32>
    tpu.vector_store %arg29[%c56, %c0_40], %58 {strides = array<i32>} : memref<64x8xf32, #tpu.memory_space<vmem>>, vector<8x8xf32>,
    %c0_41 = arith.constant 0 : index
    %c0_42 = arith.constant 0 : index
    %60 = vector.load %arg29[%c0_41, %c0_42] : memref<64x8xf32, #tpu.memory_space<vmem>>, vector<64x8xf32>
    %61 = arith.addf %60, %15 : vector<64x8xf32>
    %cst_43 = arith.constant dense<0xFF800000> : vector<64xf32>
    %62 = vector.multi_reduction <maximumf>, %61, %cst_43 [1] : vector<64x8xf32> to vector<64xf32>
    %63 = vector.shape_cast %62 : vector<64xf32> to vector<64x1xf32>
    %64 = vector.broadcast %63 : vector<64x1xf32> to vector<64x8xf32>
    %65 = arith.subf %61, %64 : vector<64x8xf32>
    %66 = math.exp %65 : vector<64x8xf32>
    %cst_44 = arith.constant dense<0.000000e+00> : vector<64xf32>
    %67 = vector.multi_reduction <add>, %66, %cst_44 [1] : vector<64x8xf32> to vector<64xf32>
    %68 = vector.shape_cast %67 : vector<64xf32> to vector<64x1xf32>
    %69 = vector.broadcast %68 : vector<64x1xf32> to vector<64x8xf32>
    %70 = arith.divf %66, %69 : vector<64x8xf32>
    %c0_45 = arith.constant 0 : index
    %c0_46 = arith.constant 0 : index
    %71 = vector.load %arg29[%c0_45, %c0_46] : memref<64x8xf32, #tpu.memory_space<vmem>>, vector<64x8xf32>
    tpu.vector_store %arg29[%c0_45, %c0_46], %70 {strides = array<i32>} : memref<64x8xf32, #tpu.memory_space<vmem>>, vector<64x8xf32>,
    %c0_47 = arith.constant 0 : index
    %c0_48 = arith.constant 0 : index
    %72 = vector.load %arg29[%c0_47, %c0_48] : memref<64x8xf32, #tpu.memory_space<vmem>>, vector<8x8xf32>
    %73 = vector.extract_strided_slice %27 {offsets = [0, 0], sizes = [8, 4], strides = [1, 1]} : vector<8x32xf32> to vector<8x4xf32>
    %cst_49 = arith.constant dense<0.000000e+00> : vector<8x4xf32>
    %74 = tpu.matmul %72, %73, %cst_49 {dimension_numbers = #tpu.dot_dimension_numbers<[1], [0], [0], [1], [0, 0, 1, 1], [], []>} : vector<8x8xf32>, vector<8x4xf32>, vector<8x4xf32> -> vector<8x4xf32>
    %c0_50 = arith.constant 0 : index
    %c0_51 = arith.constant 0 : index
    %75 = vector.load %arg30[%c0_50, %c0_51] : memref<8x32xf32, #tpu.memory_space<vmem>>, vector<8x4xf32>
    tpu.vector_store %arg30[%c0_50, %c0_51], %74 {strides = array<i32>} : memref<8x32xf32, #tpu.memory_space<vmem>>, vector<8x4xf32>,
    %c8_52 = arith.constant 8 : index
    %c0_53 = arith.constant 0 : index
    %76 = vector.load %arg29[%c8_52, %c0_53] : memref<64x8xf32, #tpu.memory_space<vmem>>, vector<8x8xf32>
    %77 = vector.extract_strided_slice %27 {offsets = [0, 4], sizes = [8, 4], strides = [1, 1]} : vector<8x32xf32> to vector<8x4xf32>
    %cst_54 = arith.constant dense<0.000000e+00> : vector<8x4xf32>
    %78 = tpu.matmul %76, %77, %cst_54 {dimension_numbers = #tpu.dot_dimension_numbers<[1], [0], [0], [1], [0, 0, 1, 1], [], []>} : vector<8x8xf32>, vector<8x4xf32>, vector<8x4xf32> -> vector<8x4xf32>
    %c0_55 = arith.constant 0 : index
    %c4 = arith.constant 4 : index
    %79 = vector.load %arg30[%c0_55, %c4] : memref<8x32xf32, #tpu.memory_space<vmem>>, vector<8x4xf32>
    tpu.vector_store %arg30[%c0_55, %c4], %78 {strides = array<i32>} : memref<8x32xf32, #tpu.memory_space<vmem>>, vector<8x4xf32>,
    %c16_56 = arith.constant 16 : index
    %c0_57 = arith.constant 0 : index
    %80 = vector.load %arg29[%c16_56, %c0_57] : memref<64x8xf32, #tpu.memory_space<vmem>>, vector<8x8xf32>
    %81 = vector.extract_strided_slice %27 {offsets = [0, 8], sizes = [8, 4], strides = [1, 1]} : vector<8x32xf32> to vector<8x4xf32>
    %cst_58 = arith.constant dense<0.000000e+00> : vector<8x4xf32>
    %82 = tpu.matmul %80, %81, %cst_58 {dimension_numbers = #tpu.dot_dimension_numbers<[1], [0], [0], [1], [0, 0, 1, 1], [], []>} : vector<8x8xf32>, vector<8x4xf32>, vector<8x4xf32> -> vector<8x4xf32>
    %c0_59 = arith.constant 0 : index
    %c8_60 = arith.constant 8 : index
    %83 = vector.load %arg30[%c0_59, %c8_60] : memref<8x32xf32, #tpu.memory_space<vmem>>, vector<8x4xf32>
    tpu.vector_store %arg30[%c0_59, %c8_60], %82 {strides = array<i32>} : memref<8x32xf32, #tpu.memory_space<vmem>>, vector<8x4xf32>,
    %c24_61 = arith.constant 24 : index
    %c0_62 = arith.constant 0 : index
    %84 = vector.load %arg29[%c24_61, %c0_62] : memref<64x8xf32, #tpu.memory_space<vmem>>, vector<8x8xf32>
    %85 = vector.extract_strided_slice %27 {offsets = [0, 12], sizes = [8, 4], strides = [1, 1]} : vector<8x32xf32> to vector<8x4xf32>
    %cst_63 = arith.constant dense<0.000000e+00> : vector<8x4xf32>
    %86 = tpu.matmul %84, %85, %cst_63 {dimension_numbers = #tpu.dot_dimension_numbers<[1], [0], [0], [1], [0, 0, 1, 1], [], []>} : vector<8x8xf32>, vector<8x4xf32>, vector<8x4xf32> -> vector<8x4xf32>
    %c0_64 = arith.constant 0 : index
    %c12 = arith.constant 12 : index
    %87 = vector.load %arg30[%c0_64, %c12] : memref<8x32xf32, #tpu.memory_space<vmem>>, vector<8x4xf32>
    tpu.vector_store %arg30[%c0_64, %c12], %86 {strides = array<i32>} : memref<8x32xf32, #tpu.memory_space<vmem>>, vector<8x4xf32>,
    %c32_65 = arith.constant 32 : index
    %c0_66 = arith.constant 0 : index
    %88 = vector.load %arg29[%c32_65, %c0_66] : memref<64x8xf32, #tpu.memory_space<vmem>>, vector<8x8xf32>
    %89 = vector.extract_strided_slice %27 {offsets = [0, 16], sizes = [8, 4], strides = [1, 1]} : vector<8x32xf32> to vector<8x4xf32>
    %cst_67 = arith.constant dense<0.000000e+00> : vector<8x4xf32>
    %90 = tpu.matmul %88, %89, %cst_67 {dimension_numbers = #tpu.dot_dimension_numbers<[1], [0], [0], [1], [0, 0, 1, 1], [], []>} : vector<8x8xf32>, vector<8x4xf32>, vector<8x4xf32> -> vector<8x4xf32>
    %c0_68 = arith.constant 0 : index
    %c16_69 = arith.constant 16 : index
    %91 = vector.load %arg30[%c0_68, %c16_69] : memref<8x32xf32, #tpu.memory_space<vmem>>, vector<8x4xf32>
    tpu.vector_store %arg30[%c0_68, %c16_69], %90 {strides = array<i32>} : memref<8x32xf32, #tpu.memory_space<vmem>>, vector<8x4xf32>,
    %c40_70 = arith.constant 40 : index
    %c0_71 = arith.constant 0 : index
    %92 = vector.load %arg29[%c40_70, %c0_71] : memref<64x8xf32, #tpu.memory_space<vmem>>, vector<8x8xf32>
    %93 = vector.extract_strided_slice %27 {offsets = [0, 20], sizes = [8, 4], strides = [1, 1]} : vector<8x32xf32> to vector<8x4xf32>
    %cst_72 = arith.constant dense<0.000000e+00> : vector<8x4xf32>
    %94 = tpu.matmul %92, %93, %cst_72 {dimension_numbers = #tpu.dot_dimension_numbers<[1], [0], [0], [1], [0, 0, 1, 1], [], []>} : vector<8x8xf32>, vector<8x4xf32>, vector<8x4xf32> -> vector<8x4xf32>
    %c0_73 = arith.constant 0 : index
    %c20 = arith.constant 20 : index
    %95 = vector.load %arg30[%c0_73, %c20] : memref<8x32xf32, #tpu.memory_space<vmem>>, vector<8x4xf32>
    tpu.vector_store %arg30[%c0_73, %c20], %94 {strides = array<i32>} : memref<8x32xf32, #tpu.memory_space<vmem>>, vector<8x4xf32>,
    %c48_74 = arith.constant 48 : index
    %c0_75 = arith.constant 0 : index
    %96 = vector.load %arg29[%c48_74, %c0_75] : memref<64x8xf32, #tpu.memory_space<vmem>>, vector<8x8xf32>
    %97 = vector.extract_strided_slice %27 {offsets = [0, 24], sizes = [8, 4], strides = [1, 1]} : vector<8x32xf32> to vector<8x4xf32>
    %cst_76 = arith.constant dense<0.000000e+00> : vector<8x4xf32>
    %98 = tpu.matmul %96, %97, %cst_76 {dimension_numbers = #tpu.dot_dimension_numbers<[1], [0], [0], [1], [0, 0, 1, 1], [], []>} : vector<8x8xf32>, vector<8x4xf32>, vector<8x4xf32> -> vector<8x4xf32>
    %c0_77 = arith.constant 0 : index
    %c24_78 = arith.constant 24 : index
    %99 = vector.load %arg30[%c0_77, %c24_78] : memref<8x32xf32, #tpu.memory_space<vmem>>, vector<8x4xf32>
    tpu.vector_store %arg30[%c0_77, %c24_78], %98 {strides = array<i32>} : memref<8x32xf32, #tpu.memory_space<vmem>>, vector<8x4xf32>,
    %c56_79 = arith.constant 56 : index
    %c0_80 = arith.constant 0 : index
    %100 = vector.load %arg29[%c56_79, %c0_80] : memref<64x8xf32, #tpu.memory_space<vmem>>, vector<8x8xf32>
    %101 = vector.extract_strided_slice %27 {offsets = [0, 28], sizes = [8, 4], strides = [1, 1]} : vector<8x32xf32> to vector<8x4xf32>
    %cst_81 = arith.constant dense<0.000000e+00> : vector<8x4xf32>
    %102 = tpu.matmul %100, %101, %cst_81 {dimension_numbers = #tpu.dot_dimension_numbers<[1], [0], [0], [1], [0, 0, 1, 1], [], []>} : vector<8x8xf32>, vector<8x4xf32>, vector<8x4xf32> -> vector<8x4xf32>
    %c0_82 = arith.constant 0 : index
    %c28 = arith.constant 28 : index
    %103 = vector.load %arg30[%c0_82, %c28] : memref<8x32xf32, #tpu.memory_space<vmem>>, vector<8x4xf32>
    tpu.vector_store %arg30[%c0_82, %c28], %102 {strides = array<i32>} : memref<8x32xf32, #tpu.memory_space<vmem>>, vector<8x4xf32>,
    %c0_83 = arith.constant 0 : index
    %c0_84 = arith.constant 0 : index
    %104 = vector.load %arg30[%c0_83, %c0_84] : memref<8x32xf32, #tpu.memory_space<vmem>>, vector<8x32xf32>
    %c0_85 = arith.constant 0 : index
    %c0_86 = arith.constant 0 : index
    %c0_87 = arith.constant 0 : index
    %105 = vector.load %arg9[%c0_85, %c0_86, %c0_87] : memref<2x32x32xbf16, #tpu.memory_space<vmem>>, vector<1x32x32xbf16>
    %106 = vector.shape_cast %105 : vector<1x32x32xbf16> to vector<32x32xbf16>
    %107 = arith.truncf %104 : vector<8x32xf32> to vector<8x32xbf16>
    %cst_88 = arith.constant dense<0.000000e+00> : vector<8x32xf32>
    %108 = tpu.matmul %107, %106, %cst_88 {dimension_numbers = #tpu.dot_dimension_numbers<[1], [0], [0], [1], [0, 0, 1, 1], [], []>} : vector<8x32xbf16>, vector<32x32xbf16>, vector<8x32xf32> -> vector<8x32xf32>
    %c0_89 = arith.constant 0 : index
    %c0_90 = arith.constant 0 : index
    %c0_91 = arith.constant 0 : index
    %109 = vector.load %arg10[%c0_89, %c0_90, %c0_91] : memref<2x1x32xf32, #tpu.memory_space<vmem>>, vector<1x1x32xf32>
    %110 = vector.shape_cast %109 : vector<1x1x32xf32> to vector<1x32xf32>
    %111 = vector.broadcast %110 : vector<1x32xf32> to vector<8x32xf32>
    %112 = arith.addf %108, %111 : vector<8x32xf32>
    %113 = arith.addf %112, %14 : vector<8x32xf32>
    %c0_92 = arith.constant 0 : index
    %c0_93 = arith.constant 0 : index
    %c0_94 = arith.constant 0 : index
    %114 = vector.load %arg11[%c0_92, %c0_93, %c0_94] : memref<2x1x32xf32, #tpu.memory_space<vmem>>, vector<1x1x32xf32>
    %115 = vector.shape_cast %114 : vector<1x1x32xf32> to vector<1x32xf32>
    %c0_95 = arith.constant 0 : index
    %c0_96 = arith.constant 0 : index
    %c0_97 = arith.constant 0 : index
    %116 = vector.load %arg12[%c0_95, %c0_96, %c0_97] : memref<2x1x32xf32, #tpu.memory_space<vmem>>, vector<1x1x32xf32>
    %117 = vector.shape_cast %116 : vector<1x1x32xf32> to vector<1x32xf32>
    %cst_98 = arith.constant dense<0.000000e+00> : vector<8xf32>
    %118 = vector.multi_reduction <add>, %113, %cst_98 [1] : vector<8x32xf32> to vector<8xf32>
    %119 = vector.shape_cast %118 : vector<8xf32> to vector<8x1xf32>
    %cst_99 = arith.constant 3.200000e+01 : f32
    %120 = vector.broadcast %cst_99 : f32 to vector<8x1xf32>
    %121 = arith.divf %119, %120 : vector<8x1xf32>
    %122 = vector.broadcast %121 : vector<8x1xf32> to vector<8x32xf32>
    %123 = arith.subf %113, %122 : vector<8x32xf32>
    %124 = arith.mulf %123, %123 : vector<8x32xf32>
    %cst_100 = arith.constant dense<0.000000e+00> : vector<8xf32>
    %125 = vector.multi_reduction <add>, %124, %cst_100 [1] : vector<8x32xf32> to vector<8xf32>
    %126 = vector.shape_cast %125 : vector<8xf32> to vector<8x1xf32>
    %cst_101 = arith.constant 3.200000e+01 : f32
    %127 = vector.broadcast %cst_101 : f32 to vector<8x1xf32>
    %128 = arith.divf %126, %127 : vector<8x1xf32>
    %129 = vector.broadcast %121 : vector<8x1xf32> to vector<8x32xf32>
    %130 = arith.subf %113, %129 : vector<8x32xf32>
    %cst_102 = arith.constant 9.99999974E-6 : f32
    %131 = vector.broadcast %cst_102 : f32 to vector<8x1xf32>
    %132 = arith.addf %128, %131 : vector<8x1xf32>
    %133 = math.rsqrt %132 : vector<8x1xf32>
    %134 = vector.broadcast %133 : vector<8x1xf32> to vector<8x32xf32>
    %135 = arith.mulf %130, %134 : vector<8x32xf32>
    %136 = vector.broadcast %115 : vector<1x32xf32> to vector<8x32xf32>
    %137 = arith.mulf %135, %136 : vector<8x32xf32>
    %138 = vector.broadcast %117 : vector<1x32xf32> to vector<8x32xf32>
    %139 = arith.addf %137, %138 : vector<8x32xf32>
    %c0_103 = arith.constant 0 : index
    %c0_104 = arith.constant 0 : index
    %c0_105 = arith.constant 0 : index
    %140 = vector.load %arg13[%c0_103, %c0_104, %c0_105] : memref<2x32x32xbf16, #tpu.memory_space<vmem>>, vector<1x32x32xbf16>
    %141 = vector.shape_cast %140 : vector<1x32x32xbf16> to vector<32x32xbf16>
    %c0_106 = arith.constant 0 : index
    %c0_107 = arith.constant 0 : index
    %c0_108 = arith.constant 0 : index
    %142 = vector.load %arg14[%c0_106, %c0_107, %c0_108] : memref<2x32x32xbf16, #tpu.memory_space<vmem>>, vector<1x32x32xbf16>
    %143 = vector.shape_cast %142 : vector<1x32x32xbf16> to vector<32x32xbf16>
    %c0_109 = arith.constant 0 : index
    %c0_110 = arith.constant 0 : index
    %c0_111 = arith.constant 0 : index
    %144 = vector.load %arg15[%c0_109, %c0_110, %c0_111] : memref<2x32x32xbf16, #tpu.memory_space<vmem>>, vector<1x32x32xbf16>
    %145 = vector.shape_cast %144 : vector<1x32x32xbf16> to vector<32x32xbf16>
    %c0_112 = arith.constant 0 : index
    %c0_113 = arith.constant 0 : index
    %c0_114 = arith.constant 0 : index
    %146 = vector.load %arg16[%c0_112, %c0_113, %c0_114] : memref<2x32x32xbf16, #tpu.memory_space<vmem>>, vector<1x32x32xbf16>
    %147 = vector.shape_cast %146 : vector<1x32x32xbf16> to vector<32x32xbf16>
    %c0_115 = arith.constant 0 : index
    %c0_116 = arith.constant 0 : index
    %c0_117 = arith.constant 0 : index
    %148 = vector.load %arg17[%c0_115, %c0_116, %c0_117] : memref<2x1x32xf32, #tpu.memory_space<vmem>>, vector<1x1x32xf32>
    %149 = vector.shape_cast %148 : vector<1x1x32xf32> to vector<1x32xf32>
    %c0_118 = arith.constant 0 : index
    %c0_119 = arith.constant 0 : index
    %c0_120 = arith.constant 0 : index
    %150 = vector.load %arg18[%c0_118, %c0_119, %c0_120] : memref<2x1x32xf32, #tpu.memory_space<vmem>>, vector<1x1x32xf32>
    %151 = vector.shape_cast %150 : vector<1x1x32xf32> to vector<1x32xf32>
    %c0_121 = arith.constant 0 : index
    %c0_122 = arith.constant 0 : index
    %c0_123 = arith.constant 0 : index
    %152 = vector.load %arg19[%c0_121, %c0_122, %c0_123] : memref<2x1x32xf32, #tpu.memory_space<vmem>>, vector<1x1x32xf32>
    %153 = vector.shape_cast %152 : vector<1x1x32xf32> to vector<1x32xf32>
    %c0_124 = arith.constant 0 : index
    %c0_125 = arith.constant 0 : index
    %c0_126 = arith.constant 0 : index
    %154 = vector.load %arg20[%c0_124, %c0_125, %c0_126] : memref<2x32x128xbf16, #tpu.memory_space<vmem>>, vector<1x32x128xbf16>
    %155 = vector.shape_cast %154 : vector<1x32x128xbf16> to vector<32x128xbf16>
    %c0_127 = arith.constant 0 : index
    %c0_128 = arith.constant 0 : index
    %c0_129 = arith.constant 0 : index
    %156 = vector.load %arg21[%c0_127, %c0_128, %c0_129] : memref<2x1x128xf32, #tpu.memory_space<vmem>>, vector<1x1x128xf32>
    %157 = vector.shape_cast %156 : vector<1x1x128xf32> to vector<1x128xf32>
    %c0_130 = arith.constant 0 : index
    %c0_131 = arith.constant 0 : index
    %c0_132 = arith.constant 0 : index
    %158 = vector.load %arg22[%c0_130, %c0_131, %c0_132] : memref<2x128x32xbf16, #tpu.memory_space<vmem>>, vector<1x128x32xbf16>
    %159 = vector.shape_cast %158 : vector<1x128x32xbf16> to vector<128x32xbf16>
    %c0_133 = arith.constant 0 : index
    %c0_134 = arith.constant 0 : index
    %c0_135 = arith.constant 0 : index
    %160 = vector.load %arg23[%c0_133, %c0_134, %c0_135] : memref<2x1x32xf32, #tpu.memory_space<vmem>>, vector<1x1x32xf32>
    %161 = vector.shape_cast %160 : vector<1x1x32xf32> to vector<1x32xf32>
    %c0_136 = arith.constant 0 : index
    %c0_137 = arith.constant 0 : index
    %c0_138 = arith.constant 0 : index
    %162 = vector.load %arg24[%c0_136, %c0_137, %c0_138] : memref<2x1x32xf32, #tpu.memory_space<vmem>>, vector<1x1x32xf32>
    %163 = vector.shape_cast %162 : vector<1x1x32xf32> to vector<1x32xf32>
    %c0_139 = arith.constant 0 : index
    %c0_140 = arith.constant 0 : index
    %c0_141 = arith.constant 0 : index
    %164 = vector.load %arg25[%c0_139, %c0_140, %c0_141] : memref<2x1x32xf32, #tpu.memory_space<vmem>>, vector<1x1x32xf32>
    %165 = vector.shape_cast %164 : vector<1x1x32xf32> to vector<1x32xf32>
    %166 = arith.truncf %12 : vector<8x32xf32> to vector<8x32xbf16>
    %cst_142 = arith.constant dense<0.000000e+00> : vector<8x32xf32>
    %167 = tpu.matmul %166, %141, %cst_142 {dimension_numbers = #tpu.dot_dimension_numbers<[1], [0], [0], [1], [0, 0, 1, 1], [], []>} : vector<8x32xbf16>, vector<32x32xbf16>, vector<8x32xf32> -> vector<8x32xf32>
    %168 = arith.truncf %14 : vector<8x32xf32> to vector<8x32xbf16>
    %cst_143 = arith.constant dense<0.000000e+00> : vector<8x32xf32>
    %169 = tpu.matmul %168, %143, %cst_143 {dimension_numbers = #tpu.dot_dimension_numbers<[1], [0], [0], [1], [0, 0, 1, 1], [], []>} : vector<8x32xbf16>, vector<32x32xbf16>, vector<8x32xf32> -> vector<8x32xf32>
    %170 = arith.truncf %139 : vector<8x32xf32> to vector<8x32xbf16>
    %cst_144 = arith.constant dense<0.000000e+00> : vector<8x32xf32>
    %171 = tpu.matmul %170, %145, %cst_144 {dimension_numbers = #tpu.dot_dimension_numbers<[1], [0], [0], [1], [0, 0, 1, 1], [], []>} : vector<8x32xbf16>, vector<32x32xbf16>, vector<8x32xf32> -> vector<8x32xf32>
    %172 = vector.extract_strided_slice %167 {offsets = [0, 0], sizes = [8, 4], strides = [1, 1]} : vector<8x32xf32> to vector<8x4xf32>
    %173 = vector.extract_strided_slice %169 {offsets = [0, 0], sizes = [8, 4], strides = [1, 1]} : vector<8x32xf32> to vector<8x4xf32>
    %cst_145 = arith.constant dense<0.000000e+00> : vector<8x8xf32>
    %174 = tpu.matmul %172, %173, %cst_145 {dimension_numbers = #tpu.dot_dimension_numbers<[1], [1], [0], [0], [0, 0, 1, 0], [], []>} : vector<8x4xf32>, vector<8x4xf32>, vector<8x8xf32> -> vector<8x8xf32>
    %c0_146 = arith.constant 0 : index
    %c0_147 = arith.constant 0 : index
    %175 = vector.load %arg29[%c0_146, %c0_147] : memref<64x8xf32, #tpu.memory_space<vmem>>, vector<8x8xf32>
    tpu.vector_store %arg29[%c0_146, %c0_147], %174 {strides = array<i32>} : memref<64x8xf32, #tpu.memory_space<vmem>>, vector<8x8xf32>,
    %176 = vector.extract_strided_slice %167 {offsets = [0, 4], sizes = [8, 4], strides = [1, 1]} : vector<8x32xf32> to vector<8x4xf32>
    %177 = vector.extract_strided_slice %169 {offsets = [0, 4], sizes = [8, 4], strides = [1, 1]} : vector<8x32xf32> to vector<8x4xf32>
    %cst_148 = arith.constant dense<0.000000e+00> : vector<8x8xf32>
    %178 = tpu.matmul %176, %177, %cst_148 {dimension_numbers = #tpu.dot_dimension_numbers<[1], [1], [0], [0], [0, 0, 1, 0], [], []>} : vector<8x4xf32>, vector<8x4xf32>, vector<8x8xf32> -> vector<8x8xf32>
    %c8_149 = arith.constant 8 : index
    %c0_150 = arith.constant 0 : index
    %179 = vector.load %arg29[%c8_149, %c0_150] : memref<64x8xf32, #tpu.memory_space<vmem>>, vector<8x8xf32>
    tpu.vector_store %arg29[%c8_149, %c0_150], %178 {strides = array<i32>} : memref<64x8xf32, #tpu.memory_space<vmem>>, vector<8x8xf32>,
    %180 = vector.extract_strided_slice %167 {offsets = [0, 8], sizes = [8, 4], strides = [1, 1]} : vector<8x32xf32> to vector<8x4xf32>
    %181 = vector.extract_strided_slice %169 {offsets = [0, 8], sizes = [8, 4], strides = [1, 1]} : vector<8x32xf32> to vector<8x4xf32>
    %cst_151 = arith.constant dense<0.000000e+00> : vector<8x8xf32>
    %182 = tpu.matmul %180, %181, %cst_151 {dimension_numbers = #tpu.dot_dimension_numbers<[1], [1], [0], [0], [0, 0, 1, 0], [], []>} : vector<8x4xf32>, vector<8x4xf32>, vector<8x8xf32> -> vector<8x8xf32>
    %c16_152 = arith.constant 16 : index
    %c0_153 = arith.constant 0 : index
    %183 = vector.load %arg29[%c16_152, %c0_153] : memref<64x8xf32, #tpu.memory_space<vmem>>, vector<8x8xf32>
    tpu.vector_store %arg29[%c16_152, %c0_153], %182 {strides = array<i32>} : memref<64x8xf32, #tpu.memory_space<vmem>>, vector<8x8xf32>,
    %184 = vector.extract_strided_slice %167 {offsets = [0, 12], sizes = [8, 4], strides = [1, 1]} : vector<8x32xf32> to vector<8x4xf32>
    %185 = vector.extract_strided_slice %169 {offsets = [0, 12], sizes = [8, 4], strides = [1, 1]} : vector<8x32xf32> to vector<8x4xf32>
    %cst_154 = arith.constant dense<0.000000e+00> : vector<8x8xf32>
    %186 = tpu.matmul %184, %185, %cst_154 {dimension_numbers = #tpu.dot_dimension_numbers<[1], [1], [0], [0], [0, 0, 1, 0], [], []>} : vector<8x4xf32>, vector<8x4xf32>, vector<8x8xf32> -> vector<8x8xf32>
    %c24_155 = arith.constant 24 : index
    %c0_156 = arith.constant 0 : index
    %187 = vector.load %arg29[%c24_155, %c0_156] : memref<64x8xf32, #tpu.memory_space<vmem>>, vector<8x8xf32>
    tpu.vector_store %arg29[%c24_155, %c0_156], %186 {strides = array<i32>} : memref<64x8xf32, #tpu.memory_space<vmem>>, vector<8x8xf32>,
    %188 = vector.extract_strided_slice %167 {offsets = [0, 16], sizes = [8, 4], strides = [1, 1]} : vector<8x32xf32> to vector<8x4xf32>
    %189 = vector.extract_strided_slice %169 {offsets = [0, 16], sizes = [8, 4], strides = [1, 1]} : vector<8x32xf32> to vector<8x4xf32>
    %cst_157 = arith.constant dense<0.000000e+00> : vector<8x8xf32>
    %190 = tpu.matmul %188, %189, %cst_157 {dimension_numbers = #tpu.dot_dimension_numbers<[1], [1], [0], [0], [0, 0, 1, 0], [], []>} : vector<8x4xf32>, vector<8x4xf32>, vector<8x8xf32> -> vector<8x8xf32>
    %c32_158 = arith.constant 32 : index
    %c0_159 = arith.constant 0 : index
    %191 = vector.load %arg29[%c32_158, %c0_159] : memref<64x8xf32, #tpu.memory_space<vmem>>, vector<8x8xf32>
    tpu.vector_store %arg29[%c32_158, %c0_159], %190 {strides = array<i32>} : memref<64x8xf32, #tpu.memory_space<vmem>>, vector<8x8xf32>,
    %192 = vector.extract_strided_slice %167 {offsets = [0, 20], sizes = [8, 4], strides = [1, 1]} : vector<8x32xf32> to vector<8x4xf32>
    %193 = vector.extract_strided_slice %169 {offsets = [0, 20], sizes = [8, 4], strides = [1, 1]} : vector<8x32xf32> to vector<8x4xf32>
    %cst_160 = arith.constant dense<0.000000e+00> : vector<8x8xf32>
    %194 = tpu.matmul %192, %193, %cst_160 {dimension_numbers = #tpu.dot_dimension_numbers<[1], [1], [0], [0], [0, 0, 1, 0], [], []>} : vector<8x4xf32>, vector<8x4xf32>, vector<8x8xf32> -> vector<8x8xf32>
    %c40_161 = arith.constant 40 : index
    %c0_162 = arith.constant 0 : index
    %195 = vector.load %arg29[%c40_161, %c0_162] : memref<64x8xf32, #tpu.memory_space<vmem>>, vector<8x8xf32>
    tpu.vector_store %arg29[%c40_161, %c0_162], %194 {strides = array<i32>} : memref<64x8xf32, #tpu.memory_space<vmem>>, vector<8x8xf32>,
    %196 = vector.extract_strided_slice %167 {offsets = [0, 24], sizes = [8, 4], strides = [1, 1]} : vector<8x32xf32> to vector<8x4xf32>
    %197 = vector.extract_strided_slice %169 {offsets = [0, 24], sizes = [8, 4], strides = [1, 1]} : vector<8x32xf32> to vector<8x4xf32>
    %cst_163 = arith.constant dense<0.000000e+00> : vector<8x8xf32>
    %198 = tpu.matmul %196, %197, %cst_163 {dimension_numbers = #tpu.dot_dimension_numbers<[1], [1], [0], [0], [0, 0, 1, 0], [], []>} : vector<8x4xf32>, vector<8x4xf32>, vector<8x8xf32> -> vector<8x8xf32>
    %c48_164 = arith.constant 48 : index
    %c0_165 = arith.constant 0 : index
    %199 = vector.load %arg29[%c48_164, %c0_165] : memref<64x8xf32, #tpu.memory_space<vmem>>, vector<8x8xf32>
    tpu.vector_store %arg29[%c48_164, %c0_165], %198 {strides = array<i32>} : memref<64x8xf32, #tpu.memory_space<vmem>>, vector<8x8xf32>,
    %200 = vector.extract_strided_slice %167 {offsets = [0, 28], sizes = [8, 4], strides = [1, 1]} : vector<8x32xf32> to vector<8x4xf32>
    %201 = vector.extract_strided_slice %169 {offsets = [0, 28], sizes = [8, 4], strides = [1, 1]} : vector<8x32xf32> to vector<8x4xf32>
    %cst_166 = arith.constant dense<0.000000e+00> : vector<8x8xf32>
    %202 = tpu.matmul %200, %201, %cst_166 {dimension_numbers = #tpu.dot_dimension_numbers<[1], [1], [0], [0], [0, 0, 1, 0], [], []>} : vector<8x4xf32>, vector<8x4xf32>, vector<8x8xf32> -> vector<8x8xf32>
    %c56_167 = arith.constant 56 : index
    %c0_168 = arith.constant 0 : index
    %203 = vector.load %arg29[%c56_167, %c0_168] : memref<64x8xf32, #tpu.memory_space<vmem>>, vector<8x8xf32>
    tpu.vector_store %arg29[%c56_167, %c0_168], %202 {strides = array<i32>} : memref<64x8xf32, #tpu.memory_space<vmem>>, vector<8x8xf32>,
    %c0_169 = arith.constant 0 : index
    %c0_170 = arith.constant 0 : index
    %204 = vector.load %arg29[%c0_169, %c0_170] : memref<64x8xf32, #tpu.memory_space<vmem>>, vector<64x8xf32>
    %cst_171 = arith.constant dense<0xFF800000> : vector<64xf32>
    %205 = vector.multi_reduction <maximumf>, %204, %cst_171 [1] : vector<64x8xf32> to vector<64xf32>
    %206 = vector.shape_cast %205 : vector<64xf32> to vector<64x1xf32>
    %207 = vector.broadcast %206 : vector<64x1xf32> to vector<64x8xf32>
    %208 = arith.subf %204, %207 : vector<64x8xf32>
    %209 = math.exp %208 : vector<64x8xf32>
    %cst_172 = arith.constant dense<0.000000e+00> : vector<64xf32>
    %210 = vector.multi_reduction <add>, %209, %cst_172 [1] : vector<64x8xf32> to vector<64xf32>
    %211 = vector.shape_cast %210 : vector<64xf32> to vector<64x1xf32>
    %212 = vector.broadcast %211 : vector<64x1xf32> to vector<64x8xf32>
    %213 = arith.divf %209, %212 : vector<64x8xf32>
    %c0_173 = arith.constant 0 : index
    %c0_174 = arith.constant 0 : index
    %214 = vector.load %arg29[%c0_173, %c0_174] : memref<64x8xf32, #tpu.memory_space<vmem>>, vector<64x8xf32>
    tpu.vector_store %arg29[%c0_173, %c0_174], %213 {strides = array<i32>} : memref<64x8xf32, #tpu.memory_space<vmem>>, vector<64x8xf32>,
    %c0_175 = arith.constant 0 : index
    %c0_176 = arith.constant 0 : index
    %215 = vector.load %arg29[%c0_175, %c0_176] : memref<64x8xf32, #tpu.memory_space<vmem>>, vector<8x8xf32>
    %216 = vector.extract_strided_slice %171 {offsets = [0, 0], sizes = [8, 4], strides = [1, 1]} : vector<8x32xf32> to vector<8x4xf32>
    %cst_177 = arith.constant dense<0.000000e+00> : vector<8x4xf32>
    %217 = tpu.matmul %215, %216, %cst_177 {dimension_numbers = #tpu.dot_dimension_numbers<[1], [0], [0], [1], [0, 0, 1, 1], [], []>} : vector<8x8xf32>, vector<8x4xf32>, vector<8x4xf32> -> vector<8x4xf32>
    %c0_178 = arith.constant 0 : index
    %c0_179 = arith.constant 0 : index
    %218 = vector.load %arg30[%c0_178, %c0_179] : memref<8x32xf32, #tpu.memory_space<vmem>>, vector<8x4xf32>
    tpu.vector_store %arg30[%c0_178, %c0_179], %217 {strides = array<i32>} : memref<8x32xf32, #tpu.memory_space<vmem>>, vector<8x4xf32>,
    %c8_180 = arith.constant 8 : index
    %c0_181 = arith.constant 0 : index
    %219 = vector.load %arg29[%c8_180, %c0_181] : memref<64x8xf32, #tpu.memory_space<vmem>>, vector<8x8xf32>
    %220 = vector.extract_strided_slice %171 {offsets = [0, 4], sizes = [8, 4], strides = [1, 1]} : vector<8x32xf32> to vector<8x4xf32>
    %cst_182 = arith.constant dense<0.000000e+00> : vector<8x4xf32>
    %221 = tpu.matmul %219, %220, %cst_182 {dimension_numbers = #tpu.dot_dimension_numbers<[1], [0], [0], [1], [0, 0, 1, 1], [], []>} : vector<8x8xf32>, vector<8x4xf32>, vector<8x4xf32> -> vector<8x4xf32>
    %c0_183 = arith.constant 0 : index
    %c4_184 = arith.constant 4 : index
    %222 = vector.load %arg30[%c0_183, %c4_184] : memref<8x32xf32, #tpu.memory_space<vmem>>, vector<8x4xf32>
    tpu.vector_store %arg30[%c0_183, %c4_184], %221 {strides = array<i32>} : memref<8x32xf32, #tpu.memory_space<vmem>>, vector<8x4xf32>,
    %c16_185 = arith.constant 16 : index
    %c0_186 = arith.constant 0 : index
    %223 = vector.load %arg29[%c16_185, %c0_186] : memref<64x8xf32, #tpu.memory_space<vmem>>, vector<8x8xf32>
    %224 = vector.extract_strided_slice %171 {offsets = [0, 8], sizes = [8, 4], strides = [1, 1]} : vector<8x32xf32> to vector<8x4xf32>
    %cst_187 = arith.constant dense<0.000000e+00> : vector<8x4xf32>
    %225 = tpu.matmul %223, %224, %cst_187 {dimension_numbers = #tpu.dot_dimension_numbers<[1], [0], [0], [1], [0, 0, 1, 1], [], []>} : vector<8x8xf32>, vector<8x4xf32>, vector<8x4xf32> -> vector<8x4xf32>
    %c0_188 = arith.constant 0 : index
    %c8_189 = arith.constant 8 : index
    %226 = vector.load %arg30[%c0_188, %c8_189] : memref<8x32xf32, #tpu.memory_space<vmem>>, vector<8x4xf32>
    tpu.vector_store %arg30[%c0_188, %c8_189], %225 {strides = array<i32>} : memref<8x32xf32, #tpu.memory_space<vmem>>, vector<8x4xf32>,
    %c24_190 = arith.constant 24 : index
    %c0_191 = arith.constant 0 : index
    %227 = vector.load %arg29[%c24_190, %c0_191] : memref<64x8xf32, #tpu.memory_space<vmem>>, vector<8x8xf32>
    %228 = vector.extract_strided_slice %171 {offsets = [0, 12], sizes = [8, 4], strides = [1, 1]} : vector<8x32xf32> to vector<8x4xf32>
    %cst_192 = arith.constant dense<0.000000e+00> : vector<8x4xf32>
    %229 = tpu.matmul %227, %228, %cst_192 {dimension_numbers = #tpu.dot_dimension_numbers<[1], [0], [0], [1], [0, 0, 1, 1], [], []>} : vector<8x8xf32>, vector<8x4xf32>, vector<8x4xf32> -> vector<8x4xf32>
    %c0_193 = arith.constant 0 : index
    %c12_194 = arith.constant 12 : index
    %230 = vector.load %arg30[%c0_193, %c12_194] : memref<8x32xf32, #tpu.memory_space<vmem>>, vector<8x4xf32>
    tpu.vector_store %arg30[%c0_193, %c12_194], %229 {strides = array<i32>} : memref<8x32xf32, #tpu.memory_space<vmem>>, vector<8x4xf32>,
    %c32_195 = arith.constant 32 : index
    %c0_196 = arith.constant 0 : index
    %231 = vector.load %arg29[%c32_195, %c0_196] : memref<64x8xf32, #tpu.memory_space<vmem>>, vector<8x8xf32>
    %232 = vector.extract_strided_slice %171 {offsets = [0, 16], sizes = [8, 4], strides = [1, 1]} : vector<8x32xf32> to vector<8x4xf32>
    %cst_197 = arith.constant dense<0.000000e+00> : vector<8x4xf32>
    %233 = tpu.matmul %231, %232, %cst_197 {dimension_numbers = #tpu.dot_dimension_numbers<[1], [0], [0], [1], [0, 0, 1, 1], [], []>} : vector<8x8xf32>, vector<8x4xf32>, vector<8x4xf32> -> vector<8x4xf32>
    %c0_198 = arith.constant 0 : index
    %c16_199 = arith.constant 16 : index
    %234 = vector.load %arg30[%c0_198, %c16_199] : memref<8x32xf32, #tpu.memory_space<vmem>>, vector<8x4xf32>
    tpu.vector_store %arg30[%c0_198, %c16_199], %233 {strides = array<i32>} : memref<8x32xf32, #tpu.memory_space<vmem>>, vector<8x4xf32>,
    %c40_200 = arith.constant 40 : index
    %c0_201 = arith.constant 0 : index
    %235 = vector.load %arg29[%c40_200, %c0_201] : memref<64x8xf32, #tpu.memory_space<vmem>>, vector<8x8xf32>
    %236 = vector.extract_strided_slice %171 {offsets = [0, 20], sizes = [8, 4], strides = [1, 1]} : vector<8x32xf32> to vector<8x4xf32>
    %cst_202 = arith.constant dense<0.000000e+00> : vector<8x4xf32>
    %237 = tpu.matmul %235, %236, %cst_202 {dimension_numbers = #tpu.dot_dimension_numbers<[1], [0], [0], [1], [0, 0, 1, 1], [], []>} : vector<8x8xf32>, vector<8x4xf32>, vector<8x4xf32> -> vector<8x4xf32>
    %c0_203 = arith.constant 0 : index
    %c20_204 = arith.constant 20 : index
    %238 = vector.load %arg30[%c0_203, %c20_204] : memref<8x32xf32, #tpu.memory_space<vmem>>, vector<8x4xf32>
    tpu.vector_store %arg30[%c0_203, %c20_204], %237 {strides = array<i32>} : memref<8x32xf32, #tpu.memory_space<vmem>>, vector<8x4xf32>,
    %c48_205 = arith.constant 48 : index
    %c0_206 = arith.constant 0 : index
    %239 = vector.load %arg29[%c48_205, %c0_206] : memref<64x8xf32, #tpu.memory_space<vmem>>, vector<8x8xf32>
    %240 = vector.extract_strided_slice %171 {offsets = [0, 24], sizes = [8, 4], strides = [1, 1]} : vector<8x32xf32> to vector<8x4xf32>
    %cst_207 = arith.constant dense<0.000000e+00> : vector<8x4xf32>
    %241 = tpu.matmul %239, %240, %cst_207 {dimension_numbers = #tpu.dot_dimension_numbers<[1], [0], [0], [1], [0, 0, 1, 1], [], []>} : vector<8x8xf32>, vector<8x4xf32>, vector<8x4xf32> -> vector<8x4xf32>
    %c0_208 = arith.constant 0 : index
    %c24_209 = arith.constant 24 : index
    %242 = vector.load %arg30[%c0_208, %c24_209] : memref<8x32xf32, #tpu.memory_space<vmem>>, vector<8x4xf32>
    tpu.vector_store %arg30[%c0_208, %c24_209], %241 {strides = array<i32>} : memref<8x32xf32, #tpu.memory_space<vmem>>, vector<8x4xf32>,
    %c56_210 = arith.constant 56 : index
    %c0_211 = arith.constant 0 : index
    %243 = vector.load %arg29[%c56_210, %c0_211] : memref<64x8xf32, #tpu.memory_space<vmem>>, vector<8x8xf32>
    %244 = vector.extract_strided_slice %171 {offsets = [0, 28], sizes = [8, 4], strides = [1, 1]} : vector<8x32xf32> to vector<8x4xf32>
    %cst_212 = arith.constant dense<0.000000e+00> : vector<8x4xf32>
    %245 = tpu.matmul %243, %244, %cst_212 {dimension_numbers = #tpu.dot_dimension_numbers<[1], [0], [0], [1], [0, 0, 1, 1], [], []>} : vector<8x8xf32>, vector<8x4xf32>, vector<8x4xf32> -> vector<8x4xf32>
    %c0_213 = arith.constant 0 : index
    %c28_214 = arith.constant 28 : index
    %246 = vector.load %arg30[%c0_213, %c28_214] : memref<8x32xf32, #tpu.memory_space<vmem>>, vector<8x4xf32>
    tpu.vector_store %arg30[%c0_213, %c28_214], %245 {strides = array<i32>} : memref<8x32xf32, #tpu.memory_space<vmem>>, vector<8x4xf32>,
    %c0_215 = arith.constant 0 : index
    %c0_216 = arith.constant 0 : index
    %247 = vector.load %arg30[%c0_215, %c0_216] : memref<8x32xf32, #tpu.memory_space<vmem>>, vector<8x32xf32>
    %248 = arith.truncf %247 : vector<8x32xf32> to vector<8x32xbf16>
    %cst_217 = arith.constant dense<0.000000e+00> : vector<8x32xf32>
    %249 = tpu.matmul %248, %147, %cst_217 {dimension_numbers = #tpu.dot_dimension_numbers<[1], [0], [0], [1], [0, 0, 1, 1], [], []>} : vector<8x32xbf16>, vector<32x32xbf16>, vector<8x32xf32> -> vector<8x32xf32>
    %250 = vector.broadcast %149 : vector<1x32xf32> to vector<8x32xf32>
    %251 = arith.addf %249, %250 : vector<8x32xf32>
    %252 = arith.addf %251, %139 : vector<8x32xf32>
    %cst_218 = arith.constant dense<0.000000e+00> : vector<8xf32>
    %253 = vector.multi_reduction <add>, %252, %cst_218 [1] : vector<8x32xf32> to vector<8xf32>
    %254 = vector.shape_cast %253 : vector<8xf32> to vector<8x1xf32>
    %cst_219 = arith.constant 3.200000e+01 : f32
    %255 = vector.broadcast %cst_219 : f32 to vector<8x1xf32>
    %256 = arith.divf %254, %255 : vector<8x1xf32>
    %257 = vector.broadcast %256 : vector<8x1xf32> to vector<8x32xf32>
    %258 = arith.subf %252, %257 : vector<8x32xf32>
    %259 = arith.mulf %258, %258 : vector<8x32xf32>
    %cst_220 = arith.constant dense<0.000000e+00> : vector<8xf32>
    %260 = vector.multi_reduction <add>, %259, %cst_220 [1] : vector<8x32xf32> to vector<8xf32>
    %261 = vector.shape_cast %260 : vector<8xf32> to vector<8x1xf32>
    %cst_221 = arith.constant 3.200000e+01 : f32
    %262 = vector.broadcast %cst_221 : f32 to vector<8x1xf32>
    %263 = arith.divf %261, %262 : vector<8x1xf32>
    %264 = vector.broadcast %256 : vector<8x1xf32> to vector<8x32xf32>
    %265 = arith.subf %252, %264 : vector<8x32xf32>
    %cst_222 = arith.constant 9.99999974E-6 : f32
    %266 = vector.broadcast %cst_222 : f32 to vector<8x1xf32>
    %267 = arith.addf %263, %266 : vector<8x1xf32>
    %268 = math.rsqrt %267 : vector<8x1xf32>
    %269 = vector.broadcast %268 : vector<8x1xf32> to vector<8x32xf32>
    %270 = arith.mulf %265, %269 : vector<8x32xf32>
    %271 = vector.broadcast %151 : vector<1x32xf32> to vector<8x32xf32>
    %272 = arith.mulf %270, %271 : vector<8x32xf32>
    %273 = vector.broadcast %153 : vector<1x32xf32> to vector<8x32xf32>
    %274 = arith.addf %272, %273 : vector<8x32xf32>
    %275 = arith.truncf %274 : vector<8x32xf32> to vector<8x32xbf16>
    %cst_223 = arith.constant dense<0.000000e+00> : vector<8x128xf32>
    %276 = tpu.matmul %275, %155, %cst_223 {dimension_numbers = #tpu.dot_dimension_numbers<[1], [0], [0], [1], [0, 0, 1, 1], [], []>} : vector<8x32xbf16>, vector<32x128xbf16>, vector<8x128xf32> -> vector<8x128xf32>
    %277 = vector.broadcast %157 : vector<1x128xf32> to vector<8x128xf32>
    %278 = arith.addf %276, %277 : vector<8x128xf32>
    %cst_224 = arith.constant 0.000000e+00 : f32
    %279 = vector.broadcast %cst_224 : f32 to vector<8x128xf32>
    %280 = arith.maximumf %278, %279 : vector<8x128xf32>
    %281 = arith.truncf %280 : vector<8x128xf32> to vector<8x128xbf16>
    %cst_225 = arith.constant dense<0.000000e+00> : vector<8x32xf32>
    %282 = tpu.matmul %281, %159, %cst_225 {dimension_numbers = #tpu.dot_dimension_numbers<[1], [0], [0], [1], [0, 0, 1, 1], [], []>} : vector<8x128xbf16>, vector<128x32xbf16>, vector<8x32xf32> -> vector<8x32xf32>
    %283 = vector.broadcast %161 : vector<1x32xf32> to vector<8x32xf32>
    %284 = arith.addf %282, %283 : vector<8x32xf32>
    %285 = arith.addf %284, %274 : vector<8x32xf32>
    %cst_226 = arith.constant dense<0.000000e+00> : vector<8xf32>
    %286 = vector.multi_reduction <add>, %285, %cst_226 [1] : vector<8x32xf32> to vector<8xf32>
    %287 = vector.shape_cast %286 : vector<8xf32> to vector<8x1xf32>
    %cst_227 = arith.constant 3.200000e+01 : f32
    %288 = vector.broadcast %cst_227 : f32 to vector<8x1xf32>
    %289 = arith.divf %287, %288 : vector<8x1xf32>
    %290 = vector.broadcast %289 : vector<8x1xf32> to vector<8x32xf32>
    %291 = arith.subf %285, %290 : vector<8x32xf32>
    %292 = arith.mulf %291, %291 : vector<8x32xf32>
    %cst_228 = arith.constant dense<0.000000e+00> : vector<8xf32>
    %293 = vector.multi_reduction <add>, %292, %cst_228 [1] : vector<8x32xf32> to vector<8xf32>
    %294 = vector.shape_cast %293 : vector<8xf32> to vector<8x1xf32>
    %cst_229 = arith.constant 3.200000e+01 : f32
    %295 = vector.broadcast %cst_229 : f32 to vector<8x1xf32>
    %296 = arith.divf %294, %295 : vector<8x1xf32>
    %297 = vector.broadcast %289 : vector<8x1xf32> to vector<8x32xf32>
    %298 = arith.subf %285, %297 : vector<8x32xf32>
    %cst_230 = arith.constant 9.99999974E-6 : f32
    %299 = vector.broadcast %cst_230 : f32 to vector<8x1xf32>
    %300 = arith.addf %296, %299 : vector<8x1xf32>
    %301 = math.rsqrt %300 : vector<8x1xf32>
    %302 = vector.broadcast %301 : vector<8x1xf32> to vector<8x32xf32>
    %303 = arith.mulf %298, %302 : vector<8x32xf32>
    %304 = vector.broadcast %163 : vector<1x32xf32> to vector<8x32xf32>
    %305 = arith.mulf %303, %304 : vector<8x32xf32>
    %306 = vector.broadcast %165 : vector<1x32xf32> to vector<8x32xf32>
    %307 = arith.addf %305, %306 : vector<8x32xf32>
    %c1 = arith.constant 1 : index
    %c0_231 = arith.constant 0 : index
    %c0_232 = arith.constant 0 : index
    %308 = vector.load %arg6[%c1, %c0_231, %c0_232] : memref<2x32x32xbf16, #tpu.memory_space<vmem>>, vector<1x32x32xbf16>
    %309 = vector.shape_cast %308 : vector<1x32x32xbf16> to vector<32x32xbf16>
    %310 = arith.truncf %14 : vector<8x32xf32> to vector<8x32xbf16>
    %cst_233 = arith.constant dense<0.000000e+00> : vector<8x32xf32>
    %311 = tpu.matmul %310, %309, %cst_233 {dimension_numbers = #tpu.dot_dimension_numbers<[1], [0], [0], [1], [0, 0, 1, 1], [], []>} : vector<8x32xbf16>, vector<32x32xbf16>, vector<8x32xf32> -> vector<8x32xf32>
    %c1_234 = arith.constant 1 : index
    %c0_235 = arith.constant 0 : index
    %c0_236 = arith.constant 0 : index
    %312 = vector.load %arg7[%c1_234, %c0_235, %c0_236] : memref<2x32x32xbf16, #tpu.memory_space<vmem>>, vector<1x32x32xbf16>
    %313 = vector.shape_cast %312 : vector<1x32x32xbf16> to vector<32x32xbf16>
    %314 = arith.truncf %14 : vector<8x32xf32> to vector<8x32xbf16>
    %cst_237 = arith.constant dense<0.000000e+00> : vector<8x32xf32>
    %315 = tpu.matmul %314, %313, %cst_237 {dimension_numbers = #tpu.dot_dimension_numbers<[1], [0], [0], [1], [0, 0, 1, 1], [], []>} : vector<8x32xbf16>, vector<32x32xbf16>, vector<8x32xf32> -> vector<8x32xf32>
    %c1_238 = arith.constant 1 : index
    %c0_239 = arith.constant 0 : index
    %c0_240 = arith.constant 0 : index
    %316 = vector.load %arg8[%c1_238, %c0_239, %c0_240] : memref<2x32x32xbf16, #tpu.memory_space<vmem>>, vector<1x32x32xbf16>
    %317 = vector.shape_cast %316 : vector<1x32x32xbf16> to vector<32x32xbf16>
    %318 = arith.truncf %14 : vector<8x32xf32> to vector<8x32xbf16>
    %cst_241 = arith.constant dense<0.000000e+00> : vector<8x32xf32>
    %319 = tpu.matmul %318, %317, %cst_241 {dimension_numbers = #tpu.dot_dimension_numbers<[1], [0], [0], [1], [0, 0, 1, 1], [], []>} : vector<8x32xbf16>, vector<32x32xbf16>, vector<8x32xf32> -> vector<8x32xf32>
    %320 = vector.extract_strided_slice %311 {offsets = [0, 0], sizes = [8, 4], strides = [1, 1]} : vector<8x32xf32> to vector<8x4xf32>
    %321 = vector.extract_strided_slice %315 {offsets = [0, 0], sizes = [8, 4], strides = [1, 1]} : vector<8x32xf32> to vector<8x4xf32>
    %cst_242 = arith.constant dense<0.000000e+00> : vector<8x8xf32>
    %322 = tpu.matmul %320, %321, %cst_242 {dimension_numbers = #tpu.dot_dimension_numbers<[1], [1], [0], [0], [0, 0, 1, 0], [], []>} : vector<8x4xf32>, vector<8x4xf32>, vector<8x8xf32> -> vector<8x8xf32>
    %c0_243 = arith.constant 0 : index
    %c0_244 = arith.constant 0 : index
    %323 = vector.load %arg29[%c0_243, %c0_244] : memref<64x8xf32, #tpu.memory_space<vmem>>, vector<8x8xf32>
    tpu.vector_store %arg29[%c0_243, %c0_244], %322 {strides = array<i32>} : memref<64x8xf32, #tpu.memory_space<vmem>>, vector<8x8xf32>,
    %324 = vector.extract_strided_slice %311 {offsets = [0, 4], sizes = [8, 4], strides = [1, 1]} : vector<8x32xf32> to vector<8x4xf32>
    %325 = vector.extract_strided_slice %315 {offsets = [0, 4], sizes = [8, 4], strides = [1, 1]} : vector<8x32xf32> to vector<8x4xf32>
    %cst_245 = arith.constant dense<0.000000e+00> : vector<8x8xf32>
    %326 = tpu.matmul %324, %325, %cst_245 {dimension_numbers = #tpu.dot_dimension_numbers<[1], [1], [0], [0], [0, 0, 1, 0], [], []>} : vector<8x4xf32>, vector<8x4xf32>, vector<8x8xf32> -> vector<8x8xf32>
    %c8_246 = arith.constant 8 : index
    %c0_247 = arith.constant 0 : index
    %327 = vector.load %arg29[%c8_246, %c0_247] : memref<64x8xf32, #tpu.memory_space<vmem>>, vector<8x8xf32>
    tpu.vector_store %arg29[%c8_246, %c0_247], %326 {strides = array<i32>} : memref<64x8xf32, #tpu.memory_space<vmem>>, vector<8x8xf32>,
    %328 = vector.extract_strided_slice %311 {offsets = [0, 8], sizes = [8, 4], strides = [1, 1]} : vector<8x32xf32> to vector<8x4xf32>
    %329 = vector.extract_strided_slice %315 {offsets = [0, 8], sizes = [8, 4], strides = [1, 1]} : vector<8x32xf32> to vector<8x4xf32>
    %cst_248 = arith.constant dense<0.000000e+00> : vector<8x8xf32>
    %330 = tpu.matmul %328, %329, %cst_248 {dimension_numbers = #tpu.dot_dimension_numbers<[1], [1], [0], [0], [0, 0, 1, 0], [], []>} : vector<8x4xf32>, vector<8x4xf32>, vector<8x8xf32> -> vector<8x8xf32>
    %c16_249 = arith.constant 16 : index
    %c0_250 = arith.constant 0 : index
    %331 = vector.load %arg29[%c16_249, %c0_250] : memref<64x8xf32, #tpu.memory_space<vmem>>, vector<8x8xf32>
    tpu.vector_store %arg29[%c16_249, %c0_250], %330 {strides = array<i32>} : memref<64x8xf32, #tpu.memory_space<vmem>>, vector<8x8xf32>,
    %332 = vector.extract_strided_slice %311 {offsets = [0, 12], sizes = [8, 4], strides = [1, 1]} : vector<8x32xf32> to vector<8x4xf32>
    %333 = vector.extract_strided_slice %315 {offsets = [0, 12], sizes = [8, 4], strides = [1, 1]} : vector<8x32xf32> to vector<8x4xf32>
    %cst_251 = arith.constant dense<0.000000e+00> : vector<8x8xf32>
    %334 = tpu.matmul %332, %333, %cst_251 {dimension_numbers = #tpu.dot_dimension_numbers<[1], [1], [0], [0], [0, 0, 1, 0], [], []>} : vector<8x4xf32>, vector<8x4xf32>, vector<8x8xf32> -> vector<8x8xf32>
    %c24_252 = arith.constant 24 : index
    %c0_253 = arith.constant 0 : index
    %335 = vector.load %arg29[%c24_252, %c0_253] : memref<64x8xf32, #tpu.memory_space<vmem>>, vector<8x8xf32>
    tpu.vector_store %arg29[%c24_252, %c0_253], %334 {strides = array<i32>} : memref<64x8xf32, #tpu.memory_space<vmem>>, vector<8x8xf32>,
    %336 = vector.extract_strided_slice %311 {offsets = [0, 16], sizes = [8, 4], strides = [1, 1]} : vector<8x32xf32> to vector<8x4xf32>
    %337 = vector.extract_strided_slice %315 {offsets = [0, 16], sizes = [8, 4], strides = [1, 1]} : vector<8x32xf32> to vector<8x4xf32>
    %cst_254 = arith.constant dense<0.000000e+00> : vector<8x8xf32>
    %338 = tpu.matmul %336, %337, %cst_254 {dimension_numbers = #tpu.dot_dimension_numbers<[1], [1], [0], [0], [0, 0, 1, 0], [], []>} : vector<8x4xf32>, vector<8x4xf32>, vector<8x8xf32> -> vector<8x8xf32>
    %c32_255 = arith.constant 32 : index
    %c0_256 = arith.constant 0 : index
    %339 = vector.load %arg29[%c32_255, %c0_256] : memref<64x8xf32, #tpu.memory_space<vmem>>, vector<8x8xf32>
    tpu.vector_store %arg29[%c32_255, %c0_256], %338 {strides = array<i32>} : memref<64x8xf32, #tpu.memory_space<vmem>>, vector<8x8xf32>,
    %340 = vector.extract_strided_slice %311 {offsets = [0, 20], sizes = [8, 4], strides = [1, 1]} : vector<8x32xf32> to vector<8x4xf32>
    %341 = vector.extract_strided_slice %315 {offsets = [0, 20], sizes = [8, 4], strides = [1, 1]} : vector<8x32xf32> to vector<8x4xf32>
    %cst_257 = arith.constant dense<0.000000e+00> : vector<8x8xf32>
    %342 = tpu.matmul %340, %341, %cst_257 {dimension_numbers = #tpu.dot_dimension_numbers<[1], [1], [0], [0], [0, 0, 1, 0], [], []>} : vector<8x4xf32>, vector<8x4xf32>, vector<8x8xf32> -> vector<8x8xf32>
    %c40_258 = arith.constant 40 : index
    %c0_259 = arith.constant 0 : index
    %343 = vector.load %arg29[%c40_258, %c0_259] : memref<64x8xf32, #tpu.memory_space<vmem>>, vector<8x8xf32>
    tpu.vector_store %arg29[%c40_258, %c0_259], %342 {strides = array<i32>} : memref<64x8xf32, #tpu.memory_space<vmem>>, vector<8x8xf32>,
    %344 = vector.extract_strided_slice %311 {offsets = [0, 24], sizes = [8, 4], strides = [1, 1]} : vector<8x32xf32> to vector<8x4xf32>
    %345 = vector.extract_strided_slice %315 {offsets = [0, 24], sizes = [8, 4], strides = [1, 1]} : vector<8x32xf32> to vector<8x4xf32>
    %cst_260 = arith.constant dense<0.000000e+00> : vector<8x8xf32>
    %346 = tpu.matmul %344, %345, %cst_260 {dimension_numbers = #tpu.dot_dimension_numbers<[1], [1], [0], [0], [0, 0, 1, 0], [], []>} : vector<8x4xf32>, vector<8x4xf32>, vector<8x8xf32> -> vector<8x8xf32>
    %c48_261 = arith.constant 48 : index
    %c0_262 = arith.constant 0 : index
    %347 = vector.load %arg29[%c48_261, %c0_262] : memref<64x8xf32, #tpu.memory_space<vmem>>, vector<8x8xf32>
    tpu.vector_store %arg29[%c48_261, %c0_262], %346 {strides = array<i32>} : memref<64x8xf32, #tpu.memory_space<vmem>>, vector<8x8xf32>,
    %348 = vector.extract_strided_slice %311 {offsets = [0, 28], sizes = [8, 4], strides = [1, 1]} : vector<8x32xf32> to vector<8x4xf32>
    %349 = vector.extract_strided_slice %315 {offsets = [0, 28], sizes = [8, 4], strides = [1, 1]} : vector<8x32xf32> to vector<8x4xf32>
    %cst_263 = arith.constant dense<0.000000e+00> : vector<8x8xf32>
    %350 = tpu.matmul %348, %349, %cst_263 {dimension_numbers = #tpu.dot_dimension_numbers<[1], [1], [0], [0], [0, 0, 1, 0], [], []>} : vector<8x4xf32>, vector<8x4xf32>, vector<8x8xf32> -> vector<8x8xf32>
    %c56_264 = arith.constant 56 : index
    %c0_265 = arith.constant 0 : index
    %351 = vector.load %arg29[%c56_264, %c0_265] : memref<64x8xf32, #tpu.memory_space<vmem>>, vector<8x8xf32>
    tpu.vector_store %arg29[%c56_264, %c0_265], %350 {strides = array<i32>} : memref<64x8xf32, #tpu.memory_space<vmem>>, vector<8x8xf32>,
    %c0_266 = arith.constant 0 : index
    %c0_267 = arith.constant 0 : index
    %352 = vector.load %arg29[%c0_266, %c0_267] : memref<64x8xf32, #tpu.memory_space<vmem>>, vector<64x8xf32>
    %353 = arith.addf %352, %15 : vector<64x8xf32>
    %cst_268 = arith.constant dense<0xFF800000> : vector<64xf32>
    %354 = vector.multi_reduction <maximumf>, %353, %cst_268 [1] : vector<64x8xf32> to vector<64xf32>
    %355 = vector.shape_cast %354 : vector<64xf32> to vector<64x1xf32>
    %356 = vector.broadcast %355 : vector<64x1xf32> to vector<64x8xf32>
    %357 = arith.subf %353, %356 : vector<64x8xf32>
    %358 = math.exp %357 : vector<64x8xf32>
    %cst_269 = arith.constant dense<0.000000e+00> : vector<64xf32>
    %359 = vector.multi_reduction <add>, %358, %cst_269 [1] : vector<64x8xf32> to vector<64xf32>
    %360 = vector.shape_cast %359 : vector<64xf32> to vector<64x1xf32>
    %361 = vector.broadcast %360 : vector<64x1xf32> to vector<64x8xf32>
    %362 = arith.divf %358, %361 : vector<64x8xf32>
    %c0_270 = arith.constant 0 : index
    %c0_271 = arith.constant 0 : index
    %363 = vector.load %arg29[%c0_270, %c0_271] : memref<64x8xf32, #tpu.memory_space<vmem>>, vector<64x8xf32>
    tpu.vector_store %arg29[%c0_270, %c0_271], %362 {strides = array<i32>} : memref<64x8xf32, #tpu.memory_space<vmem>>, vector<64x8xf32>,
    %c0_272 = arith.constant 0 : index
    %c0_273 = arith.constant 0 : index
    %364 = vector.load %arg29[%c0_272, %c0_273] : memref<64x8xf32, #tpu.memory_space<vmem>>, vector<8x8xf32>
    %365 = vector.extract_strided_slice %319 {offsets = [0, 0], sizes = [8, 4], strides = [1, 1]} : vector<8x32xf32> to vector<8x4xf32>
    %cst_274 = arith.constant dense<0.000000e+00> : vector<8x4xf32>
    %366 = tpu.matmul %364, %365, %cst_274 {dimension_numbers = #tpu.dot_dimension_numbers<[1], [0], [0], [1], [0, 0, 1, 1], [], []>} : vector<8x8xf32>, vector<8x4xf32>, vector<8x4xf32> -> vector<8x4xf32>
    %c0_275 = arith.constant 0 : index
    %c0_276 = arith.constant 0 : index
    %367 = vector.load %arg30[%c0_275, %c0_276] : memref<8x32xf32, #tpu.memory_space<vmem>>, vector<8x4xf32>
    tpu.vector_store %arg30[%c0_275, %c0_276], %366 {strides = array<i32>} : memref<8x32xf32, #tpu.memory_space<vmem>>, vector<8x4xf32>,
    %c8_277 = arith.constant 8 : index
    %c0_278 = arith.constant 0 : index
    %368 = vector.load %arg29[%c8_277, %c0_278] : memref<64x8xf32, #tpu.memory_space<vmem>>, vector<8x8xf32>
    %369 = vector.extract_strided_slice %319 {offsets = [0, 4], sizes = [8, 4], strides = [1, 1]} : vector<8x32xf32> to vector<8x4xf32>
    %cst_279 = arith.constant dense<0.000000e+00> : vector<8x4xf32>
    %370 = tpu.matmul %368, %369, %cst_279 {dimension_numbers = #tpu.dot_dimension_numbers<[1], [0], [0], [1], [0, 0, 1, 1], [], []>} : vector<8x8xf32>, vector<8x4xf32>, vector<8x4xf32> -> vector<8x4xf32>
    %c0_280 = arith.constant 0 : index
    %c4_281 = arith.constant 4 : index
    %371 = vector.load %arg30[%c0_280, %c4_281] : memref<8x32xf32, #tpu.memory_space<vmem>>, vector<8x4xf32>
    tpu.vector_store %arg30[%c0_280, %c4_281], %370 {strides = array<i32>} : memref<8x32xf32, #tpu.memory_space<vmem>>, vector<8x4xf32>,
    %c16_282 = arith.constant 16 : index
    %c0_283 = arith.constant 0 : index
    %372 = vector.load %arg29[%c16_282, %c0_283] : memref<64x8xf32, #tpu.memory_space<vmem>>, vector<8x8xf32>
    %373 = vector.extract_strided_slice %319 {offsets = [0, 8], sizes = [8, 4], strides = [1, 1]} : vector<8x32xf32> to vector<8x4xf32>
    %cst_284 = arith.constant dense<0.000000e+00> : vector<8x4xf32>
    %374 = tpu.matmul %372, %373, %cst_284 {dimension_numbers = #tpu.dot_dimension_numbers<[1], [0], [0], [1], [0, 0, 1, 1], [], []>} : vector<8x8xf32>, vector<8x4xf32>, vector<8x4xf32> -> vector<8x4xf32>
    %c0_285 = arith.constant 0 : index
    %c8_286 = arith.constant 8 : index
    %375 = vector.load %arg30[%c0_285, %c8_286] : memref<8x32xf32, #tpu.memory_space<vmem>>, vector<8x4xf32>
    tpu.vector_store %arg30[%c0_285, %c8_286], %374 {strides = array<i32>} : memref<8x32xf32, #tpu.memory_space<vmem>>, vector<8x4xf32>,
    %c24_287 = arith.constant 24 : index
    %c0_288 = arith.constant 0 : index
    %376 = vector.load %arg29[%c24_287, %c0_288] : memref<64x8xf32, #tpu.memory_space<vmem>>, vector<8x8xf32>
    %377 = vector.extract_strided_slice %319 {offsets = [0, 12], sizes = [8, 4], strides = [1, 1]} : vector<8x32xf32> to vector<8x4xf32>
    %cst_289 = arith.constant dense<0.000000e+00> : vector<8x4xf32>
    %378 = tpu.matmul %376, %377, %cst_289 {dimension_numbers = #tpu.dot_dimension_numbers<[1], [0], [0], [1], [0, 0, 1, 1], [], []>} : vector<8x8xf32>, vector<8x4xf32>, vector<8x4xf32> -> vector<8x4xf32>
    %c0_290 = arith.constant 0 : index
    %c12_291 = arith.constant 12 : index
    %379 = vector.load %arg30[%c0_290, %c12_291] : memref<8x32xf32, #tpu.memory_space<vmem>>, vector<8x4xf32>
    tpu.vector_store %arg30[%c0_290, %c12_291], %378 {strides = array<i32>} : memref<8x32xf32, #tpu.memory_space<vmem>>, vector<8x4xf32>,
    %c32_292 = arith.constant 32 : index
    %c0_293 = arith.constant 0 : index
    %380 = vector.load %arg29[%c32_292, %c0_293] : memref<64x8xf32, #tpu.memory_space<vmem>>, vector<8x8xf32>
    %381 = vector.extract_strided_slice %319 {offsets = [0, 16], sizes = [8, 4], strides = [1, 1]} : vector<8x32xf32> to vector<8x4xf32>
    %cst_294 = arith.constant dense<0.000000e+00> : vector<8x4xf32>
    %382 = tpu.matmul %380, %381, %cst_294 {dimension_numbers = #tpu.dot_dimension_numbers<[1], [0], [0], [1], [0, 0, 1, 1], [], []>} : vector<8x8xf32>, vector<8x4xf32>, vector<8x4xf32> -> vector<8x4xf32>
    %c0_295 = arith.constant 0 : index
    %c16_296 = arith.constant 16 : index
    %383 = vector.load %arg30[%c0_295, %c16_296] : memref<8x32xf32, #tpu.memory_space<vmem>>, vector<8x4xf32>
    tpu.vector_store %arg30[%c0_295, %c16_296], %382 {strides = array<i32>} : memref<8x32xf32, #tpu.memory_space<vmem>>, vector<8x4xf32>,
    %c40_297 = arith.constant 40 : index
    %c0_298 = arith.constant 0 : index
    %384 = vector.load %arg29[%c40_297, %c0_298] : memref<64x8xf32, #tpu.memory_space<vmem>>, vector<8x8xf32>
    %385 = vector.extract_strided_slice %319 {offsets = [0, 20], sizes = [8, 4], strides = [1, 1]} : vector<8x32xf32> to vector<8x4xf32>
    %cst_299 = arith.constant dense<0.000000e+00> : vector<8x4xf32>
    %386 = tpu.matmul %384, %385, %cst_299 {dimension_numbers = #tpu.dot_dimension_numbers<[1], [0], [0], [1], [0, 0, 1, 1], [], []>} : vector<8x8xf32>, vector<8x4xf32>, vector<8x4xf32> -> vector<8x4xf32>
    %c0_300 = arith.constant 0 : index
    %c20_301 = arith.constant 20 : index
    %387 = vector.load %arg30[%c0_300, %c20_301] : memref<8x32xf32, #tpu.memory_space<vmem>>, vector<8x4xf32>
    tpu.vector_store %arg30[%c0_300, %c20_301], %386 {strides = array<i32>} : memref<8x32xf32, #tpu.memory_space<vmem>>, vector<8x4xf32>,
    %c48_302 = arith.constant 48 : index
    %c0_303 = arith.constant 0 : index
    %388 = vector.load %arg29[%c48_302, %c0_303] : memref<64x8xf32, #tpu.memory_space<vmem>>, vector<8x8xf32>
    %389 = vector.extract_strided_slice %319 {offsets = [0, 24], sizes = [8, 4], strides = [1, 1]} : vector<8x32xf32> to vector<8x4xf32>
    %cst_304 = arith.constant dense<0.000000e+00> : vector<8x4xf32>
    %390 = tpu.matmul %388, %389, %cst_304 {dimension_numbers = #tpu.dot_dimension_numbers<[1], [0], [0], [1], [0, 0, 1, 1], [], []>} : vector<8x8xf32>, vector<8x4xf32>, vector<8x4xf32> -> vector<8x4xf32>
    %c0_305 = arith.constant 0 : index
    %c24_306 = arith.constant 24 : index
    %391 = vector.load %arg30[%c0_305, %c24_306] : memref<8x32xf32, #tpu.memory_space<vmem>>, vector<8x4xf32>
    tpu.vector_store %arg30[%c0_305, %c24_306], %390 {strides = array<i32>} : memref<8x32xf32, #tpu.memory_space<vmem>>, vector<8x4xf32>,
    %c56_307 = arith.constant 56 : index
    %c0_308 = arith.constant 0 : index
    %392 = vector.load %arg29[%c56_307, %c0_308] : memref<64x8xf32, #tpu.memory_space<vmem>>, vector<8x8xf32>
    %393 = vector.extract_strided_slice %319 {offsets = [0, 28], sizes = [8, 4], strides = [1, 1]} : vector<8x32xf32> to vector<8x4xf32>
    %cst_309 = arith.constant dense<0.000000e+00> : vector<8x4xf32>
    %394 = tpu.matmul %392, %393, %cst_309 {dimension_numbers = #tpu.dot_dimension_numbers<[1], [0], [0], [1], [0, 0, 1, 1], [], []>} : vector<8x8xf32>, vector<8x4xf32>, vector<8x4xf32> -> vector<8x4xf32>
    %c0_310 = arith.constant 0 : index
    %c28_311 = arith.constant 28 : index
    %395 = vector.load %arg30[%c0_310, %c28_311] : memref<8x32xf32, #tpu.memory_space<vmem>>, vector<8x4xf32>
    tpu.vector_store %arg30[%c0_310, %c28_311], %394 {strides = array<i32>} : memref<8x32xf32, #tpu.memory_space<vmem>>, vector<8x4xf32>,
    %c0_312 = arith.constant 0 : index
    %c0_313 = arith.constant 0 : index
    %396 = vector.load %arg30[%c0_312, %c0_313] : memref<8x32xf32, #tpu.memory_space<vmem>>, vector<8x32xf32>
    %c1_314 = arith.constant 1 : index
    %c0_315 = arith.constant 0 : index
    %c0_316 = arith.constant 0 : index
    %397 = vector.load %arg9[%c1_314, %c0_315, %c0_316] : memref<2x32x32xbf16, #tpu.memory_space<vmem>>, vector<1x32x32xbf16>
    %398 = vector.shape_cast %397 : vector<1x32x32xbf16> to vector<32x32xbf16>
    %399 = arith.truncf %396 : vector<8x32xf32> to vector<8x32xbf16>
    %cst_317 = arith.constant dense<0.000000e+00> : vector<8x32xf32>
    %400 = tpu.matmul %399, %398, %cst_317 {dimension_numbers = #tpu.dot_dimension_numbers<[1], [0], [0], [1], [0, 0, 1, 1], [], []>} : vector<8x32xbf16>, vector<32x32xbf16>, vector<8x32xf32> -> vector<8x32xf32>
    %c1_318 = arith.constant 1 : index
    %c0_319 = arith.constant 0 : index
    %c0_320 = arith.constant 0 : index
    %401 = vector.load %arg10[%c1_318, %c0_319, %c0_320] : memref<2x1x32xf32, #tpu.memory_space<vmem>>, vector<1x1x32xf32>
    %402 = vector.shape_cast %401 : vector<1x1x32xf32> to vector<1x32xf32>
    %403 = vector.broadcast %402 : vector<1x32xf32> to vector<8x32xf32>
    %404 = arith.addf %400, %403 : vector<8x32xf32>
    %405 = arith.addf %404, %14 : vector<8x32xf32>
    %c1_321 = arith.constant 1 : index
    %c0_322 = arith.constant 0 : index
    %c0_323 = arith.constant 0 : index
    %406 = vector.load %arg11[%c1_321, %c0_322, %c0_323] : memref<2x1x32xf32, #tpu.memory_space<vmem>>, vector<1x1x32xf32>
    %407 = vector.shape_cast %406 : vector<1x1x32xf32> to vector<1x32xf32>
    %c1_324 = arith.constant 1 : index
    %c0_325 = arith.constant 0 : index
    %c0_326 = arith.constant 0 : index
    %408 = vector.load %arg12[%c1_324, %c0_325, %c0_326] : memref<2x1x32xf32, #tpu.memory_space<vmem>>, vector<1x1x32xf32>
    %409 = vector.shape_cast %408 : vector<1x1x32xf32> to vector<1x32xf32>
    %cst_327 = arith.constant dense<0.000000e+00> : vector<8xf32>
    %410 = vector.multi_reduction <add>, %405, %cst_327 [1] : vector<8x32xf32> to vector<8xf32>
    %411 = vector.shape_cast %410 : vector<8xf32> to vector<8x1xf32>
    %cst_328 = arith.constant 3.200000e+01 : f32
    %412 = vector.broadcast %cst_328 : f32 to vector<8x1xf32>
    %413 = arith.divf %411, %412 : vector<8x1xf32>
    %414 = vector.broadcast %413 : vector<8x1xf32> to vector<8x32xf32>
    %415 = arith.subf %405, %414 : vector<8x32xf32>
    %416 = arith.mulf %415, %415 : vector<8x32xf32>
    %cst_329 = arith.constant dense<0.000000e+00> : vector<8xf32>
    %417 = vector.multi_reduction <add>, %416, %cst_329 [1] : vector<8x32xf32> to vector<8xf32>
    %418 = vector.shape_cast %417 : vector<8xf32> to vector<8x1xf32>
    %cst_330 = arith.constant 3.200000e+01 : f32
    %419 = vector.broadcast %cst_330 : f32 to vector<8x1xf32>
    %420 = arith.divf %418, %419 : vector<8x1xf32>
    %421 = vector.broadcast %413 : vector<8x1xf32> to vector<8x32xf32>
    %422 = arith.subf %405, %421 : vector<8x32xf32>
    %cst_331 = arith.constant 9.99999974E-6 : f32
    %423 = vector.broadcast %cst_331 : f32 to vector<8x1xf32>
    %424 = arith.addf %420, %423 : vector<8x1xf32>
    %425 = math.rsqrt %424 : vector<8x1xf32>
    %426 = vector.broadcast %425 : vector<8x1xf32> to vector<8x32xf32>
    %427 = arith.mulf %422, %426 : vector<8x32xf32>
    %428 = vector.broadcast %407 : vector<1x32xf32> to vector<8x32xf32>
    %429 = arith.mulf %427, %428 : vector<8x32xf32>
    %430 = vector.broadcast %409 : vector<1x32xf32> to vector<8x32xf32>
    %431 = arith.addf %429, %430 : vector<8x32xf32>
    %c1_332 = arith.constant 1 : index
    %c0_333 = arith.constant 0 : index
    %c0_334 = arith.constant 0 : index
    %432 = vector.load %arg13[%c1_332, %c0_333, %c0_334] : memref<2x32x32xbf16, #tpu.memory_space<vmem>>, vector<1x32x32xbf16>
    %433 = vector.shape_cast %432 : vector<1x32x32xbf16> to vector<32x32xbf16>
    %c1_335 = arith.constant 1 : index
    %c0_336 = arith.constant 0 : index
    %c0_337 = arith.constant 0 : index
    %434 = vector.load %arg14[%c1_335, %c0_336, %c0_337] : memref<2x32x32xbf16, #tpu.memory_space<vmem>>, vector<1x32x32xbf16>
    %435 = vector.shape_cast %434 : vector<1x32x32xbf16> to vector<32x32xbf16>
    %c1_338 = arith.constant 1 : index
    %c0_339 = arith.constant 0 : index
    %c0_340 = arith.constant 0 : index
    %436 = vector.load %arg15[%c1_338, %c0_339, %c0_340] : memref<2x32x32xbf16, #tpu.memory_space<vmem>>, vector<1x32x32xbf16>
    %437 = vector.shape_cast %436 : vector<1x32x32xbf16> to vector<32x32xbf16>
    %c1_341 = arith.constant 1 : index
    %c0_342 = arith.constant 0 : index
    %c0_343 = arith.constant 0 : index
    %438 = vector.load %arg16[%c1_341, %c0_342, %c0_343] : memref<2x32x32xbf16, #tpu.memory_space<vmem>>, vector<1x32x32xbf16>
    %439 = vector.shape_cast %438 : vector<1x32x32xbf16> to vector<32x32xbf16>
    %c1_344 = arith.constant 1 : index
    %c0_345 = arith.constant 0 : index
    %c0_346 = arith.constant 0 : index
    %440 = vector.load %arg17[%c1_344, %c0_345, %c0_346] : memref<2x1x32xf32, #tpu.memory_space<vmem>>, vector<1x1x32xf32>
    %441 = vector.shape_cast %440 : vector<1x1x32xf32> to vector<1x32xf32>
    %c1_347 = arith.constant 1 : index
    %c0_348 = arith.constant 0 : index
    %c0_349 = arith.constant 0 : index
    %442 = vector.load %arg18[%c1_347, %c0_348, %c0_349] : memref<2x1x32xf32, #tpu.memory_space<vmem>>, vector<1x1x32xf32>
    %443 = vector.shape_cast %442 : vector<1x1x32xf32> to vector<1x32xf32>
    %c1_350 = arith.constant 1 : index
    %c0_351 = arith.constant 0 : index
    %c0_352 = arith.constant 0 : index
    %444 = vector.load %arg19[%c1_350, %c0_351, %c0_352] : memref<2x1x32xf32, #tpu.memory_space<vmem>>, vector<1x1x32xf32>
    %445 = vector.shape_cast %444 : vector<1x1x32xf32> to vector<1x32xf32>
    %c1_353 = arith.constant 1 : index
    %c0_354 = arith.constant 0 : index
    %c0_355 = arith.constant 0 : index
    %446 = vector.load %arg20[%c1_353, %c0_354, %c0_355] : memref<2x32x128xbf16, #tpu.memory_space<vmem>>, vector<1x32x128xbf16>
    %447 = vector.shape_cast %446 : vector<1x32x128xbf16> to vector<32x128xbf16>
    %c1_356 = arith.constant 1 : index
    %c0_357 = arith.constant 0 : index
    %c0_358 = arith.constant 0 : index
    %448 = vector.load %arg21[%c1_356, %c0_357, %c0_358] : memref<2x1x128xf32, #tpu.memory_space<vmem>>, vector<1x1x128xf32>
    %449 = vector.shape_cast %448 : vector<1x1x128xf32> to vector<1x128xf32>
    %c1_359 = arith.constant 1 : index
    %c0_360 = arith.constant 0 : index
    %c0_361 = arith.constant 0 : index
    %450 = vector.load %arg22[%c1_359, %c0_360, %c0_361] : memref<2x128x32xbf16, #tpu.memory_space<vmem>>, vector<1x128x32xbf16>
    %451 = vector.shape_cast %450 : vector<1x128x32xbf16> to vector<128x32xbf16>
    %c1_362 = arith.constant 1 : index
    %c0_363 = arith.constant 0 : index
    %c0_364 = arith.constant 0 : index
    %452 = vector.load %arg23[%c1_362, %c0_363, %c0_364] : memref<2x1x32xf32, #tpu.memory_space<vmem>>, vector<1x1x32xf32>
    %453 = vector.shape_cast %452 : vector<1x1x32xf32> to vector<1x32xf32>
    %c1_365 = arith.constant 1 : index
    %c0_366 = arith.constant 0 : index
    %c0_367 = arith.constant 0 : index
    %454 = vector.load %arg24[%c1_365, %c0_366, %c0_367] : memref<2x1x32xf32, #tpu.memory_space<vmem>>, vector<1x1x32xf32>
    %455 = vector.shape_cast %454 : vector<1x1x32xf32> to vector<1x32xf32>
    %c1_368 = arith.constant 1 : index
    %c0_369 = arith.constant 0 : index
    %c0_370 = arith.constant 0 : index
    %456 = vector.load %arg25[%c1_368, %c0_369, %c0_370] : memref<2x1x32xf32, #tpu.memory_space<vmem>>, vector<1x1x32xf32>
    %457 = vector.shape_cast %456 : vector<1x1x32xf32> to vector<1x32xf32>
    %458 = arith.truncf %307 : vector<8x32xf32> to vector<8x32xbf16>
    %cst_371 = arith.constant dense<0.000000e+00> : vector<8x32xf32>
    %459 = tpu.matmul %458, %433, %cst_371 {dimension_numbers = #tpu.dot_dimension_numbers<[1], [0], [0], [1], [0, 0, 1, 1], [], []>} : vector<8x32xbf16>, vector<32x32xbf16>, vector<8x32xf32> -> vector<8x32xf32>
    %460 = arith.truncf %14 : vector<8x32xf32> to vector<8x32xbf16>
    %cst_372 = arith.constant dense<0.000000e+00> : vector<8x32xf32>
    %461 = tpu.matmul %460, %435, %cst_372 {dimension_numbers = #tpu.dot_dimension_numbers<[1], [0], [0], [1], [0, 0, 1, 1], [], []>} : vector<8x32xbf16>, vector<32x32xbf16>, vector<8x32xf32> -> vector<8x32xf32>
    %462 = arith.truncf %431 : vector<8x32xf32> to vector<8x32xbf16>
    %cst_373 = arith.constant dense<0.000000e+00> : vector<8x32xf32>
    %463 = tpu.matmul %462, %437, %cst_373 {dimension_numbers = #tpu.dot_dimension_numbers<[1], [0], [0], [1], [0, 0, 1, 1], [], []>} : vector<8x32xbf16>, vector<32x32xbf16>, vector<8x32xf32> -> vector<8x32xf32>
    %464 = vector.extract_strided_slice %459 {offsets = [0, 0], sizes = [8, 4], strides = [1, 1]} : vector<8x32xf32> to vector<8x4xf32>
    %465 = vector.extract_strided_slice %461 {offsets = [0, 0], sizes = [8, 4], strides = [1, 1]} : vector<8x32xf32> to vector<8x4xf32>
    %cst_374 = arith.constant dense<0.000000e+00> : vector<8x8xf32>
    %466 = tpu.matmul %464, %465, %cst_374 {dimension_numbers = #tpu.dot_dimension_numbers<[1], [1], [0], [0], [0, 0, 1, 0], [], []>} : vector<8x4xf32>, vector<8x4xf32>, vector<8x8xf32> -> vector<8x8xf32>
    %c0_375 = arith.constant 0 : index
    %c0_376 = arith.constant 0 : index
    %467 = vector.load %arg29[%c0_375, %c0_376] : memref<64x8xf32, #tpu.memory_space<vmem>>, vector<8x8xf32>
    tpu.vector_store %arg29[%c0_375, %c0_376], %466 {strides = array<i32>} : memref<64x8xf32, #tpu.memory_space<vmem>>, vector<8x8xf32>,
    %468 = vector.extract_strided_slice %459 {offsets = [0, 4], sizes = [8, 4], strides = [1, 1]} : vector<8x32xf32> to vector<8x4xf32>
    %469 = vector.extract_strided_slice %461 {offsets = [0, 4], sizes = [8, 4], strides = [1, 1]} : vector<8x32xf32> to vector<8x4xf32>
    %cst_377 = arith.constant dense<0.000000e+00> : vector<8x8xf32>
    %470 = tpu.matmul %468, %469, %cst_377 {dimension_numbers = #tpu.dot_dimension_numbers<[1], [1], [0], [0], [0, 0, 1, 0], [], []>} : vector<8x4xf32>, vector<8x4xf32>, vector<8x8xf32> -> vector<8x8xf32>
    %c8_378 = arith.constant 8 : index
    %c0_379 = arith.constant 0 : index
    %471 = vector.load %arg29[%c8_378, %c0_379] : memref<64x8xf32, #tpu.memory_space<vmem>>, vector<8x8xf32>
    tpu.vector_store %arg29[%c8_378, %c0_379], %470 {strides = array<i32>} : memref<64x8xf32, #tpu.memory_space<vmem>>, vector<8x8xf32>,
    %472 = vector.extract_strided_slice %459 {offsets = [0, 8], sizes = [8, 4], strides = [1, 1]} : vector<8x32xf32> to vector<8x4xf32>
    %473 = vector.extract_strided_slice %461 {offsets = [0, 8], sizes = [8, 4], strides = [1, 1]} : vector<8x32xf32> to vector<8x4xf32>
    %cst_380 = arith.constant dense<0.000000e+00> : vector<8x8xf32>
    %474 = tpu.matmul %472, %473, %cst_380 {dimension_numbers = #tpu.dot_dimension_numbers<[1], [1], [0], [0], [0, 0, 1, 0], [], []>} : vector<8x4xf32>, vector<8x4xf32>, vector<8x8xf32> -> vector<8x8xf32>
    %c16_381 = arith.constant 16 : index
    %c0_382 = arith.constant 0 : index
    %475 = vector.load %arg29[%c16_381, %c0_382] : memref<64x8xf32, #tpu.memory_space<vmem>>, vector<8x8xf32>
    tpu.vector_store %arg29[%c16_381, %c0_382], %474 {strides = array<i32>} : memref<64x8xf32, #tpu.memory_space<vmem>>, vector<8x8xf32>,
    %476 = vector.extract_strided_slice %459 {offsets = [0, 12], sizes = [8, 4], strides = [1, 1]} : vector<8x32xf32> to vector<8x4xf32>
    %477 = vector.extract_strided_slice %461 {offsets = [0, 12], sizes = [8, 4], strides = [1, 1]} : vector<8x32xf32> to vector<8x4xf32>
    %cst_383 = arith.constant dense<0.000000e+00> : vector<8x8xf32>
    %478 = tpu.matmul %476, %477, %cst_383 {dimension_numbers = #tpu.dot_dimension_numbers<[1], [1], [0], [0], [0, 0, 1, 0], [], []>} : vector<8x4xf32>, vector<8x4xf32>, vector<8x8xf32> -> vector<8x8xf32>
    %c24_384 = arith.constant 24 : index
    %c0_385 = arith.constant 0 : index
    %479 = vector.load %arg29[%c24_384, %c0_385] : memref<64x8xf32, #tpu.memory_space<vmem>>, vector<8x8xf32>
    tpu.vector_store %arg29[%c24_384, %c0_385], %478 {strides = array<i32>} : memref<64x8xf32, #tpu.memory_space<vmem>>, vector<8x8xf32>,
    %480 = vector.extract_strided_slice %459 {offsets = [0, 16], sizes = [8, 4], strides = [1, 1]} : vector<8x32xf32> to vector<8x4xf32>
    %481 = vector.extract_strided_slice %461 {offsets = [0, 16], sizes = [8, 4], strides = [1, 1]} : vector<8x32xf32> to vector<8x4xf32>
    %cst_386 = arith.constant dense<0.000000e+00> : vector<8x8xf32>
    %482 = tpu.matmul %480, %481, %cst_386 {dimension_numbers = #tpu.dot_dimension_numbers<[1], [1], [0], [0], [0, 0, 1, 0], [], []>} : vector<8x4xf32>, vector<8x4xf32>, vector<8x8xf32> -> vector<8x8xf32>
    %c32_387 = arith.constant 32 : index
    %c0_388 = arith.constant 0 : index
    %483 = vector.load %arg29[%c32_387, %c0_388] : memref<64x8xf32, #tpu.memory_space<vmem>>, vector<8x8xf32>
    tpu.vector_store %arg29[%c32_387, %c0_388], %482 {strides = array<i32>} : memref<64x8xf32, #tpu.memory_space<vmem>>, vector<8x8xf32>,
    %484 = vector.extract_strided_slice %459 {offsets = [0, 20], sizes = [8, 4], strides = [1, 1]} : vector<8x32xf32> to vector<8x4xf32>
    %485 = vector.extract_strided_slice %461 {offsets = [0, 20], sizes = [8, 4], strides = [1, 1]} : vector<8x32xf32> to vector<8x4xf32>
    %cst_389 = arith.constant dense<0.000000e+00> : vector<8x8xf32>
    %486 = tpu.matmul %484, %485, %cst_389 {dimension_numbers = #tpu.dot_dimension_numbers<[1], [1], [0], [0], [0, 0, 1, 0], [], []>} : vector<8x4xf32>, vector<8x4xf32>, vector<8x8xf32> -> vector<8x8xf32>
    %c40_390 = arith.constant 40 : index
    %c0_391 = arith.constant 0 : index
    %487 = vector.load %arg29[%c40_390, %c0_391] : memref<64x8xf32, #tpu.memory_space<vmem>>, vector<8x8xf32>
    tpu.vector_store %arg29[%c40_390, %c0_391], %486 {strides = array<i32>} : memref<64x8xf32, #tpu.memory_space<vmem>>, vector<8x8xf32>,
    %488 = vector.extract_strided_slice %459 {offsets = [0, 24], sizes = [8, 4], strides = [1, 1]} : vector<8x32xf32> to vector<8x4xf32>
    %489 = vector.extract_strided_slice %461 {offsets = [0, 24], sizes = [8, 4], strides = [1, 1]} : vector<8x32xf32> to vector<8x4xf32>
    %cst_392 = arith.constant dense<0.000000e+00> : vector<8x8xf32>
    %490 = tpu.matmul %488, %489, %cst_392 {dimension_numbers = #tpu.dot_dimension_numbers<[1], [1], [0], [0], [0, 0, 1, 0], [], []>} : vector<8x4xf32>, vector<8x4xf32>, vector<8x8xf32> -> vector<8x8xf32>
    %c48_393 = arith.constant 48 : index
    %c0_394 = arith.constant 0 : index
    %491 = vector.load %arg29[%c48_393, %c0_394] : memref<64x8xf32, #tpu.memory_space<vmem>>, vector<8x8xf32>
    tpu.vector_store %arg29[%c48_393, %c0_394], %490 {strides = array<i32>} : memref<64x8xf32, #tpu.memory_space<vmem>>, vector<8x8xf32>,
    %492 = vector.extract_strided_slice %459 {offsets = [0, 28], sizes = [8, 4], strides = [1, 1]} : vector<8x32xf32> to vector<8x4xf32>
    %493 = vector.extract_strided_slice %461 {offsets = [0, 28], sizes = [8, 4], strides = [1, 1]} : vector<8x32xf32> to vector<8x4xf32>
    %cst_395 = arith.constant dense<0.000000e+00> : vector<8x8xf32>
    %494 = tpu.matmul %492, %493, %cst_395 {dimension_numbers = #tpu.dot_dimension_numbers<[1], [1], [0], [0], [0, 0, 1, 0], [], []>} : vector<8x4xf32>, vector<8x4xf32>, vector<8x8xf32> -> vector<8x8xf32>
    %c56_396 = arith.constant 56 : index
    %c0_397 = arith.constant 0 : index
    %495 = vector.load %arg29[%c56_396, %c0_397] : memref<64x8xf32, #tpu.memory_space<vmem>>, vector<8x8xf32>
    tpu.vector_store %arg29[%c56_396, %c0_397], %494 {strides = array<i32>} : memref<64x8xf32, #tpu.memory_space<vmem>>, vector<8x8xf32>,
    %c0_398 = arith.constant 0 : index
    %c0_399 = arith.constant 0 : index
    %496 = vector.load %arg29[%c0_398, %c0_399] : memref<64x8xf32, #tpu.memory_space<vmem>>, vector<64x8xf32>
    %cst_400 = arith.constant dense<0xFF800000> : vector<64xf32>
    %497 = vector.multi_reduction <maximumf>, %496, %cst_400 [1] : vector<64x8xf32> to vector<64xf32>
    %498 = vector.shape_cast %497 : vector<64xf32> to vector<64x1xf32>
    %499 = vector.broadcast %498 : vector<64x1xf32> to vector<64x8xf32>
    %500 = arith.subf %496, %499 : vector<64x8xf32>
    %501 = math.exp %500 : vector<64x8xf32>
    %cst_401 = arith.constant dense<0.000000e+00> : vector<64xf32>
    %502 = vector.multi_reduction <add>, %501, %cst_401 [1] : vector<64x8xf32> to vector<64xf32>
    %503 = vector.shape_cast %502 : vector<64xf32> to vector<64x1xf32>
    %504 = vector.broadcast %503 : vector<64x1xf32> to vector<64x8xf32>
    %505 = arith.divf %501, %504 : vector<64x8xf32>
    %c0_402 = arith.constant 0 : index
    %c0_403 = arith.constant 0 : index
    %506 = vector.load %arg29[%c0_402, %c0_403] : memref<64x8xf32, #tpu.memory_space<vmem>>, vector<64x8xf32>
    tpu.vector_store %arg29[%c0_402, %c0_403], %505 {strides = array<i32>} : memref<64x8xf32, #tpu.memory_space<vmem>>, vector<64x8xf32>,
    %c0_404 = arith.constant 0 : index
    %c0_405 = arith.constant 0 : index
    %507 = vector.load %arg29[%c0_404, %c0_405] : memref<64x8xf32, #tpu.memory_space<vmem>>, vector<8x8xf32>
    %508 = vector.extract_strided_slice %463 {offsets = [0, 0], sizes = [8, 4], strides = [1, 1]} : vector<8x32xf32> to vector<8x4xf32>
    %cst_406 = arith.constant dense<0.000000e+00> : vector<8x4xf32>
    %509 = tpu.matmul %507, %508, %cst_406 {dimension_numbers = #tpu.dot_dimension_numbers<[1], [0], [0], [1], [0, 0, 1, 1], [], []>} : vector<8x8xf32>, vector<8x4xf32>, vector<8x4xf32> -> vector<8x4xf32>
    %c0_407 = arith.constant 0 : index
    %c0_408 = arith.constant 0 : index
    %510 = vector.load %arg30[%c0_407, %c0_408] : memref<8x32xf32, #tpu.memory_space<vmem>>, vector<8x4xf32>
    tpu.vector_store %arg30[%c0_407, %c0_408], %509 {strides = array<i32>} : memref<8x32xf32, #tpu.memory_space<vmem>>, vector<8x4xf32>,
    %c8_409 = arith.constant 8 : index
    %c0_410 = arith.constant 0 : index
    %511 = vector.load %arg29[%c8_409, %c0_410] : memref<64x8xf32, #tpu.memory_space<vmem>>, vector<8x8xf32>
    %512 = vector.extract_strided_slice %463 {offsets = [0, 4], sizes = [8, 4], strides = [1, 1]} : vector<8x32xf32> to vector<8x4xf32>
    %cst_411 = arith.constant dense<0.000000e+00> : vector<8x4xf32>
    %513 = tpu.matmul %511, %512, %cst_411 {dimension_numbers = #tpu.dot_dimension_numbers<[1], [0], [0], [1], [0, 0, 1, 1], [], []>} : vector<8x8xf32>, vector<8x4xf32>, vector<8x4xf32> -> vector<8x4xf32>
    %c0_412 = arith.constant 0 : index
    %c4_413 = arith.constant 4 : index
    %514 = vector.load %arg30[%c0_412, %c4_413] : memref<8x32xf32, #tpu.memory_space<vmem>>, vector<8x4xf32>
    tpu.vector_store %arg30[%c0_412, %c4_413], %513 {strides = array<i32>} : memref<8x32xf32, #tpu.memory_space<vmem>>, vector<8x4xf32>,
    %c16_414 = arith.constant 16 : index
    %c0_415 = arith.constant 0 : index
    %515 = vector.load %arg29[%c16_414, %c0_415] : memref<64x8xf32, #tpu.memory_space<vmem>>, vector<8x8xf32>
    %516 = vector.extract_strided_slice %463 {offsets = [0, 8], sizes = [8, 4], strides = [1, 1]} : vector<8x32xf32> to vector<8x4xf32>
    %cst_416 = arith.constant dense<0.000000e+00> : vector<8x4xf32>
    %517 = tpu.matmul %515, %516, %cst_416 {dimension_numbers = #tpu.dot_dimension_numbers<[1], [0], [0], [1], [0, 0, 1, 1], [], []>} : vector<8x8xf32>, vector<8x4xf32>, vector<8x4xf32> -> vector<8x4xf32>
    %c0_417 = arith.constant 0 : index
    %c8_418 = arith.constant 8 : index
    %518 = vector.load %arg30[%c0_417, %c8_418] : memref<8x32xf32, #tpu.memory_space<vmem>>, vector<8x4xf32>
    tpu.vector_store %arg30[%c0_417, %c8_418], %517 {strides = array<i32>} : memref<8x32xf32, #tpu.memory_space<vmem>>, vector<8x4xf32>,
    %c24_419 = arith.constant 24 : index
    %c0_420 = arith.constant 0 : index
    %519 = vector.load %arg29[%c24_419, %c0_420] : memref<64x8xf32, #tpu.memory_space<vmem>>, vector<8x8xf32>
    %520 = vector.extract_strided_slice %463 {offsets = [0, 12], sizes = [8, 4], strides = [1, 1]} : vector<8x32xf32> to vector<8x4xf32>
    %cst_421 = arith.constant dense<0.000000e+00> : vector<8x4xf32>
    %521 = tpu.matmul %519, %520, %cst_421 {dimension_numbers = #tpu.dot_dimension_numbers<[1], [0], [0], [1], [0, 0, 1, 1], [], []>} : vector<8x8xf32>, vector<8x4xf32>, vector<8x4xf32> -> vector<8x4xf32>
    %c0_422 = arith.constant 0 : index
    %c12_423 = arith.constant 12 : index
    %522 = vector.load %arg30[%c0_422, %c12_423] : memref<8x32xf32, #tpu.memory_space<vmem>>, vector<8x4xf32>
    tpu.vector_store %arg30[%c0_422, %c12_423], %521 {strides = array<i32>} : memref<8x32xf32, #tpu.memory_space<vmem>>, vector<8x4xf32>,
    %c32_424 = arith.constant 32 : index
    %c0_425 = arith.constant 0 : index
    %523 = vector.load %arg29[%c32_424, %c0_425] : memref<64x8xf32, #tpu.memory_space<vmem>>, vector<8x8xf32>
    %524 = vector.extract_strided_slice %463 {offsets = [0, 16], sizes = [8, 4], strides = [1, 1]} : vector<8x32xf32> to vector<8x4xf32>
    %cst_426 = arith.constant dense<0.000000e+00> : vector<8x4xf32>
    %525 = tpu.matmul %523, %524, %cst_426 {dimension_numbers = #tpu.dot_dimension_numbers<[1], [0], [0], [1], [0, 0, 1, 1], [], []>} : vector<8x8xf32>, vector<8x4xf32>, vector<8x4xf32> -> vector<8x4xf32>
    %c0_427 = arith.constant 0 : index
    %c16_428 = arith.constant 16 : index
    %526 = vector.load %arg30[%c0_427, %c16_428] : memref<8x32xf32, #tpu.memory_space<vmem>>, vector<8x4xf32>
    tpu.vector_store %arg30[%c0_427, %c16_428], %525 {strides = array<i32>} : memref<8x32xf32, #tpu.memory_space<vmem>>, vector<8x4xf32>,
    %c40_429 = arith.constant 40 : index
    %c0_430 = arith.constant 0 : index
    %527 = vector.load %arg29[%c40_429, %c0_430] : memref<64x8xf32, #tpu.memory_space<vmem>>, vector<8x8xf32>
    %528 = vector.extract_strided_slice %463 {offsets = [0, 20], sizes = [8, 4], strides = [1, 1]} : vector<8x32xf32> to vector<8x4xf32>
    %cst_431 = arith.constant dense<0.000000e+00> : vector<8x4xf32>
    %529 = tpu.matmul %527, %528, %cst_431 {dimension_numbers = #tpu.dot_dimension_numbers<[1], [0], [0], [1], [0, 0, 1, 1], [], []>} : vector<8x8xf32>, vector<8x4xf32>, vector<8x4xf32> -> vector<8x4xf32>
    %c0_432 = arith.constant 0 : index
    %c20_433 = arith.constant 20 : index
    %530 = vector.load %arg30[%c0_432, %c20_433] : memref<8x32xf32, #tpu.memory_space<vmem>>, vector<8x4xf32>
    tpu.vector_store %arg30[%c0_432, %c20_433], %529 {strides = array<i32>} : memref<8x32xf32, #tpu.memory_space<vmem>>, vector<8x4xf32>,
    %c48_434 = arith.constant 48 : index
    %c0_435 = arith.constant 0 : index
    %531 = vector.load %arg29[%c48_434, %c0_435] : memref<64x8xf32, #tpu.memory_space<vmem>>, vector<8x8xf32>
    %532 = vector.extract_strided_slice %463 {offsets = [0, 24], sizes = [8, 4], strides = [1, 1]} : vector<8x32xf32> to vector<8x4xf32>
    %cst_436 = arith.constant dense<0.000000e+00> : vector<8x4xf32>
    %533 = tpu.matmul %531, %532, %cst_436 {dimension_numbers = #tpu.dot_dimension_numbers<[1], [0], [0], [1], [0, 0, 1, 1], [], []>} : vector<8x8xf32>, vector<8x4xf32>, vector<8x4xf32> -> vector<8x4xf32>
    %c0_437 = arith.constant 0 : index
    %c24_438 = arith.constant 24 : index
    %534 = vector.load %arg30[%c0_437, %c24_438] : memref<8x32xf32, #tpu.memory_space<vmem>>, vector<8x4xf32>
    tpu.vector_store %arg30[%c0_437, %c24_438], %533 {strides = array<i32>} : memref<8x32xf32, #tpu.memory_space<vmem>>, vector<8x4xf32>,
    %c56_439 = arith.constant 56 : index
    %c0_440 = arith.constant 0 : index
    %535 = vector.load %arg29[%c56_439, %c0_440] : memref<64x8xf32, #tpu.memory_space<vmem>>, vector<8x8xf32>
    %536 = vector.extract_strided_slice %463 {offsets = [0, 28], sizes = [8, 4], strides = [1, 1]} : vector<8x32xf32> to vector<8x4xf32>
    %cst_441 = arith.constant dense<0.000000e+00> : vector<8x4xf32>
    %537 = tpu.matmul %535, %536, %cst_441 {dimension_numbers = #tpu.dot_dimension_numbers<[1], [0], [0], [1], [0, 0, 1, 1], [], []>} : vector<8x8xf32>, vector<8x4xf32>, vector<8x4xf32> -> vector<8x4xf32>
    %c0_442 = arith.constant 0 : index
    %c28_443 = arith.constant 28 : index
    %538 = vector.load %arg30[%c0_442, %c28_443] : memref<8x32xf32, #tpu.memory_space<vmem>>, vector<8x4xf32>
    tpu.vector_store %arg30[%c0_442, %c28_443], %537 {strides = array<i32>} : memref<8x32xf32, #tpu.memory_space<vmem>>, vector<8x4xf32>,
    %c0_444 = arith.constant 0 : index
    %c0_445 = arith.constant 0 : index
    %539 = vector.load %arg30[%c0_444, %c0_445] : memref<8x32xf32, #tpu.memory_space<vmem>>, vector<8x32xf32>
    %540 = arith.truncf %539 : vector<8x32xf32> to vector<8x32xbf16>
    %cst_446 = arith.constant dense<0.000000e+00> : vector<8x32xf32>
    %541 = tpu.matmul %540, %439, %cst_446 {dimension_numbers = #tpu.dot_dimension_numbers<[1], [0], [0], [1], [0, 0, 1, 1], [], []>} : vector<8x32xbf16>, vector<32x32xbf16>, vector<8x32xf32> -> vector<8x32xf32>
    %542 = vector.broadcast %441 : vector<1x32xf32> to vector<8x32xf32>
    %543 = arith.addf %541, %542 : vector<8x32xf32>
    %544 = arith.addf %543, %431 : vector<8x32xf32>
    %cst_447 = arith.constant dense<0.000000e+00> : vector<8xf32>
    %545 = vector.multi_reduction <add>, %544, %cst_447 [1] : vector<8x32xf32> to vector<8xf32>
    %546 = vector.shape_cast %545 : vector<8xf32> to vector<8x1xf32>
    %cst_448 = arith.constant 3.200000e+01 : f32
    %547 = vector.broadcast %cst_448 : f32 to vector<8x1xf32>
    %548 = arith.divf %546, %547 : vector<8x1xf32>
    %549 = vector.broadcast %548 : vector<8x1xf32> to vector<8x32xf32>
    %550 = arith.subf %544, %549 : vector<8x32xf32>
    %551 = arith.mulf %550, %550 : vector<8x32xf32>
    %cst_449 = arith.constant dense<0.000000e+00> : vector<8xf32>
    %552 = vector.multi_reduction <add>, %551, %cst_449 [1] : vector<8x32xf32> to vector<8xf32>
    %553 = vector.shape_cast %552 : vector<8xf32> to vector<8x1xf32>
    %cst_450 = arith.constant 3.200000e+01 : f32
    %554 = vector.broadcast %cst_450 : f32 to vector<8x1xf32>
    %555 = arith.divf %553, %554 : vector<8x1xf32>
    %556 = vector.broadcast %548 : vector<8x1xf32> to vector<8x32xf32>
    %557 = arith.subf %544, %556 : vector<8x32xf32>
    %cst_451 = arith.constant 9.99999974E-6 : f32
    %558 = vector.broadcast %cst_451 : f32 to vector<8x1xf32>
    %559 = arith.addf %555, %558 : vector<8x1xf32>
    %560 = math.rsqrt %559 : vector<8x1xf32>
    %561 = vector.broadcast %560 : vector<8x1xf32> to vector<8x32xf32>
    %562 = arith.mulf %557, %561 : vector<8x32xf32>
    %563 = vector.broadcast %443 : vector<1x32xf32> to vector<8x32xf32>
    %564 = arith.mulf %562, %563 : vector<8x32xf32>
    %565 = vector.broadcast %445 : vector<1x32xf32> to vector<8x32xf32>
    %566 = arith.addf %564, %565 : vector<8x32xf32>
    %567 = arith.truncf %566 : vector<8x32xf32> to vector<8x32xbf16>
    %cst_452 = arith.constant dense<0.000000e+00> : vector<8x128xf32>
    %568 = tpu.matmul %567, %447, %cst_452 {dimension_numbers = #tpu.dot_dimension_numbers<[1], [0], [0], [1], [0, 0, 1, 1], [], []>} : vector<8x32xbf16>, vector<32x128xbf16>, vector<8x128xf32> -> vector<8x128xf32>
    %569 = vector.broadcast %449 : vector<1x128xf32> to vector<8x128xf32>
    %570 = arith.addf %568, %569 : vector<8x128xf32>
    %cst_453 = arith.constant 0.000000e+00 : f32
    %571 = vector.broadcast %cst_453 : f32 to vector<8x128xf32>
    %572 = arith.maximumf %570, %571 : vector<8x128xf32>
    %573 = arith.truncf %572 : vector<8x128xf32> to vector<8x128xbf16>
    %cst_454 = arith.constant dense<0.000000e+00> : vector<8x32xf32>
    %574 = tpu.matmul %573, %451, %cst_454 {dimension_numbers = #tpu.dot_dimension_numbers<[1], [0], [0], [1], [0, 0, 1, 1], [], []>} : vector<8x128xbf16>, vector<128x32xbf16>, vector<8x32xf32> -> vector<8x32xf32>
    %575 = vector.broadcast %453 : vector<1x32xf32> to vector<8x32xf32>
    %576 = arith.addf %574, %575 : vector<8x32xf32>
    %577 = arith.addf %576, %566 : vector<8x32xf32>
    %cst_455 = arith.constant dense<0.000000e+00> : vector<8xf32>
    %578 = vector.multi_reduction <add>, %577, %cst_455 [1] : vector<8x32xf32> to vector<8xf32>
    %579 = vector.shape_cast %578 : vector<8xf32> to vector<8x1xf32>
    %cst_456 = arith.constant 3.200000e+01 : f32
    %580 = vector.broadcast %cst_456 : f32 to vector<8x1xf32>
    %581 = arith.divf %579, %580 : vector<8x1xf32>
    %582 = vector.broadcast %581 : vector<8x1xf32> to vector<8x32xf32>
    %583 = arith.subf %577, %582 : vector<8x32xf32>
    %584 = arith.mulf %583, %583 : vector<8x32xf32>
    %cst_457 = arith.constant dense<0.000000e+00> : vector<8xf32>
    %585 = vector.multi_reduction <add>, %584, %cst_457 [1] : vector<8x32xf32> to vector<8xf32>
    %586 = vector.shape_cast %585 : vector<8xf32> to vector<8x1xf32>
    %cst_458 = arith.constant 3.200000e+01 : f32
    %587 = vector.broadcast %cst_458 : f32 to vector<8x1xf32>
    %588 = arith.divf %586, %587 : vector<8x1xf32>
    %589 = vector.broadcast %581 : vector<8x1xf32> to vector<8x32xf32>
    %590 = arith.subf %577, %589 : vector<8x32xf32>
    %cst_459 = arith.constant 9.99999974E-6 : f32
    %591 = vector.broadcast %cst_459 : f32 to vector<8x1xf32>
    %592 = arith.addf %588, %591 : vector<8x1xf32>
    %593 = math.rsqrt %592 : vector<8x1xf32>
    %594 = vector.broadcast %593 : vector<8x1xf32> to vector<8x32xf32>
    %595 = arith.mulf %590, %594 : vector<8x32xf32>
    %596 = vector.broadcast %455 : vector<1x32xf32> to vector<8x32xf32>
    %597 = arith.mulf %595, %596 : vector<8x32xf32>
    %598 = vector.broadcast %457 : vector<1x32xf32> to vector<8x32xf32>
    %599 = arith.addf %597, %598 : vector<8x32xf32>
    %c0_460 = arith.constant 0 : index
    %c0_461 = arith.constant 0 : index
    %600 = vector.load %arg26[%c0_460, %c0_461] : memref<32x128xbf16, #tpu.memory_space<vmem>>, vector<32x128xbf16>
    %601 = arith.truncf %599 : vector<8x32xf32> to vector<8x32xbf16>
    %cst_462 = arith.constant dense<0.000000e+00> : vector<8x128xf32>
    %602 = tpu.matmul %601, %600, %cst_462 {dimension_numbers = #tpu.dot_dimension_numbers<[1], [0], [0], [1], [0, 0, 1, 1], [], []>} : vector<8x32xbf16>, vector<32x128xbf16>, vector<8x128xf32> -> vector<8x128xf32>
    %c0_463 = arith.constant 0 : index
    %c0_464 = arith.constant 0 : index
    %603 = vector.load %arg27[%c0_463, %c0_464] : memref<1x128xf32, #tpu.memory_space<vmem>>, vector<1x128xf32>
    %604 = vector.broadcast %603 : vector<1x128xf32> to vector<8x128xf32>
    %605 = arith.addf %602, %604 : vector<8x128xf32>
    %cst_465 = arith.constant dense<0xFF800000> : vector<8xf32>
    %606 = vector.multi_reduction <maximumf>, %605, %cst_465 [1] : vector<8x128xf32> to vector<8xf32>
    %607 = vector.shape_cast %606 : vector<8xf32> to vector<8x1xf32>
    %608 = vector.broadcast %607 : vector<8x1xf32> to vector<8x128xf32>
    %609 = arith.subf %605, %608 : vector<8x128xf32>
    %610 = math.exp %609 : vector<8x128xf32>
    %cst_466 = arith.constant dense<0.000000e+00> : vector<8xf32>
    %611 = vector.multi_reduction <add>, %610, %cst_466 [1] : vector<8x128xf32> to vector<8xf32>
    %612 = vector.shape_cast %611 : vector<8xf32> to vector<8x1xf32>
    %613 = vector.broadcast %612 : vector<8x1xf32> to vector<8x128xf32>
    %614 = arith.divf %610, %613 : vector<8x128xf32>
    %c0_467 = arith.constant 0 : index
    %c0_468 = arith.constant 0 : index
    %c0_469 = arith.constant 0 : index
    %615 = vector.load %arg28[%c0_467, %c0_468, %c0_469] : memref<1x8x128xf32, #tpu.memory_space<vmem>>, vector<1x8x128xf32>
    %616 = vector.shape_cast %615 : vector<1x8x128xf32> to vector<8x128xf32>
    %617 = vector.shape_cast %614 : vector<8x128xf32> to vector<1x8x128xf32>
    tpu.vector_store %arg28[%c0_467, %c0_468, %c0_469], %617 {strides = array<i32>} : memref<1x8x128xf32, #tpu.memory_space<vmem>>, vector<1x8x128xf32>,
    return
  }
  func.func @transform_0(%arg0: i32) -> (i32, i32, i32) {
    %c0_i32 = arith.constant 0 : i32
    %c0_i32_0 = arith.constant 0 : i32
    %c0_i32_1 = arith.constant 0 : i32
    return %arg0, %c0_i32, %c0_i32_0 : i32, i32, i32
  }
  func.func @transform_1(%arg0: i32) -> (i32, i32, i32) {
    %c0_i32 = arith.constant 0 : i32
    %c0_i32_0 = arith.constant 0 : i32
    %c0_i32_1 = arith.constant 0 : i32
    return %arg0, %c0_i32, %c0_i32_0 : i32, i32, i32
  }
  func.func @transform_2(%arg0: i32) -> (i32, i32) {
    %c0_i32 = arith.constant 0 : i32
    %c0_i32_0 = arith.constant 0 : i32
    %c0_i32_1 = arith.constant 0 : i32
    return %c0_i32, %c0_i32_0 : i32, i32
  }
  func.func @transform_3(%arg0: i32) -> (i32, i32) {
    %c0_i32 = arith.constant 0 : i32
    %c0_i32_0 = arith.constant 0 : i32
    %c0_i32_1 = arith.constant 0 : i32
    return %c0_i32, %c0_i32_0 : i32, i32
  }
  func.func @transform_4(%arg0: i32) -> (i32, i32) {
    %c0_i32 = arith.constant 0 : i32
    %c0_i32_0 = arith.constant 0 : i32
    %c0_i32_1 = arith.constant 0 : i32
    return %c0_i32, %c0_i32_0 : i32, i32
  }
  func.func @transform_5(%arg0: i32) -> (i32, i32, i32) {
    %c0_i32 = arith.constant 0 : i32
    %c0_i32_0 = arith.constant 0 : i32
    %c0_i32_1 = arith.constant 0 : i32
    %c0_i32_2 = arith.constant 0 : i32
    return %c0_i32, %c0_i32_0, %c0_i32_1 : i32, i32, i32
  }
  func.func @transform_6(%arg0: i32) -> (i32, i32, i32) {
    %c0_i32 = arith.constant 0 : i32
    %c0_i32_0 = arith.constant 0 : i32
    %c0_i32_1 = arith.constant 0 : i32
    %c0_i32_2 = arith.constant 0 : i32
    return %c0_i32, %c0_i32_0, %c0_i32_1 : i32, i32, i32
  }
  func.func @transform_7(%arg0: i32) -> (i32, i32, i32) {
    %c0_i32 = arith.constant 0 : i32
    %c0_i32_0 = arith.constant 0 : i32
    %c0_i32_1 = arith.constant 0 : i32
    %c0_i32_2 = arith.constant 0 : i32
    return %c0_i32, %c0_i32_0, %c0_i32_1 : i32, i32, i32
  }
  func.func @transform_8(%arg0: i32) -> (i32, i32, i32) {
    %c0_i32 = arith.constant 0 : i32
    %c0_i32_0 = arith.constant 0 : i32
    %c0_i32_1 = arith.constant 0 : i32
    %c0_i32_2 = arith.constant 0 : i32
    return %c0_i32, %c0_i32_0, %c0_i32_1 : i32, i32, i32
  }
  func.func @transform_9(%arg0: i32) -> (i32, i32, i32) {
    %c0_i32 = arith.constant 0 : i32
    %c0_i32_0 = arith.constant 0 : i32
    %c0_i32_1 = arith.constant 0 : i32
    %c0_i32_2 = arith.constant 0 : i32
    return %c0_i32, %c0_i32_0, %c0_i32_1 : i32, i32, i32
  }
  func.func @transform_10(%arg0: i32) -> (i32, i32, i32) {
    %c0_i32 = arith.constant 0 : i32
    %c0_i32_0 = arith.constant 0 : i32
    %c0_i32_1 = arith.constant 0 : i32
    %c0_i32_2 = arith.constant 0 : i32
    return %c0_i32, %c0_i32_0, %c0_i32_1 : i32, i32, i32
  }
  func.func @transform_11(%arg0: i32) -> (i32, i32, i32) {
    %c0_i32 = arith.constant 0 : i32
    %c0_i32_0 = arith.constant 0 : i32
    %c0_i32_1 = arith.constant 0 : i32
    %c0_i32_2 = arith.constant 0 : i32
    return %c0_i32, %c0_i32_0, %c0_i32_1 : i32, i32, i32
  }
  func.func @transform_12(%arg0: i32) -> (i32, i32, i32) {
    %c0_i32 = arith.constant 0 : i32
    %c0_i32_0 = arith.constant 0 : i32
    %c0_i32_1 = arith.constant 0 : i32
    %c0_i32_2 = arith.constant 0 : i32
    return %c0_i32, %c0_i32_0, %c0_i32_1 : i32, i32, i32
  }
  func.func @transform_13(%arg0: i32) -> (i32, i32, i32) {
    %c0_i32 = arith.constant 0 : i32
    %c0_i32_0 = arith.constant 0 : i32
    %c0_i32_1 = arith.constant 0 : i32
    %c0_i32_2 = arith.constant 0 : i32
    return %c0_i32, %c0_i32_0, %c0_i32_1 : i32, i32, i32
  }
  func.func @transform_14(%arg0: i32) -> (i32, i32, i32) {
    %c0_i32 = arith.constant 0 : i32
    %c0_i32_0 = arith.constant 0 : i32
    %c0_i32_1 = arith.constant 0 : i32
    %c0_i32_2 = arith.constant 0 : i32
    return %c0_i32, %c0_i32_0, %c0_i32_1 : i32, i32, i32
  }
  func.func @transform_15(%arg0: i32) -> (i32, i32, i32) {
    %c0_i32 = arith.constant 0 : i32
    %c0_i32_0 = arith.constant 0 : i32
    %c0_i32_1 = arith.constant 0 : i32
    %c0_i32_2 = arith.constant 0 : i32
    return %c0_i32, %c0_i32_0, %c0_i32_1 : i32, i32, i32
  }
  func.func @transform_16(%arg0: i32) -> (i32, i32, i32) {
    %c0_i32 = arith.constant 0 : i32
    %c0_i32_0 = arith.constant 0 : i32
    %c0_i32_1 = arith.constant 0 : i32
    %c0_i32_2 = arith.constant 0 : i32
    return %c0_i32, %c0_i32_0, %c0_i32_1 : i32, i32, i32
  }
  func.func @transform_17(%arg0: i32) -> (i32, i32, i32) {
    %c0_i32 = arith.constant 0 : i32
    %c0_i32_0 = arith.constant 0 : i32
    %c0_i32_1 = arith.constant 0 : i32
    %c0_i32_2 = arith.constant 0 : i32
    return %c0_i32, %c0_i32_0, %c0_i32_1 : i32, i32, i32
  }
  func.func @transform_18(%arg0: i32) -> (i32, i32, i32) {
    %c0_i32 = arith.constant 0 : i32
    %c0_i32_0 = arith.constant 0 : i32
    %c0_i32_1 = arith.constant 0 : i32
    %c0_i32_2 = arith.constant 0 : i32
    return %c0_i32, %c0_i32_0, %c0_i32_1 : i32, i32, i32
  }
  func.func @transform_19(%arg0: i32) -> (i32, i32, i32) {
    %c0_i32 = arith.constant 0 : i32
    %c0_i32_0 = arith.constant 0 : i32
    %c0_i32_1 = arith.constant 0 : i32
    %c0_i32_2 = arith.constant 0 : i32
    return %c0_i32, %c0_i32_0, %c0_i32_1 : i32, i32, i32
  }
  func.func @transform_20(%arg0: i32) -> (i32, i32, i32) {
    %c0_i32 = arith.constant 0 : i32
    %c0_i32_0 = arith.constant 0 : i32
    %c0_i32_1 = arith.constant 0 : i32
    %c0_i32_2 = arith.constant 0 : i32
    return %c0_i32, %c0_i32_0, %c0_i32_1 : i32, i32, i32
  }
  func.func @transform_21(%arg0: i32) -> (i32, i32, i32) {
    %c0_i32 = arith.constant 0 : i32
    %c0_i32_0 = arith.constant 0 : i32
    %c0_i32_1 = arith.constant 0 : i32
    %c0_i32_2 = arith.constant 0 : i32
    return %c0_i32, %c0_i32_0, %c0_i32_1 : i32, i32, i32
  }
  func.func @transform_22(%arg0: i32) -> (i32, i32, i32) {
    %c0_i32 = arith.constant 0 : i32
    %c0_i32_0 = arith.constant 0 : i32
    %c0_i32_1 = arith.constant 0 : i32
    %c0_i32_2 = arith.constant 0 : i32
    return %c0_i32, %c0_i32_0, %c0_i32_1 : i32, i32, i32
  }
  func.func @transform_23(%arg0: i32) -> (i32, i32, i32) {
    %c0_i32 = arith.constant 0 : i32
    %c0_i32_0 = arith.constant 0 : i32
    %c0_i32_1 = arith.constant 0 : i32
    %c0_i32_2 = arith.constant 0 : i32
    return %c0_i32, %c0_i32_0, %c0_i32_1 : i32, i32, i32
  }
  func.func @transform_24(%arg0: i32) -> (i32, i32, i32) {
    %c0_i32 = arith.constant 0 : i32
    %c0_i32_0 = arith.constant 0 : i32
    %c0_i32_1 = arith.constant 0 : i32
    %c0_i32_2 = arith.constant 0 : i32
    return %c0_i32, %c0_i32_0, %c0_i32_1 : i32, i32, i32
  }
  func.func @transform_25(%arg0: i32) -> (i32, i32) {
    %c0_i32 = arith.constant 0 : i32
    %c0_i32_0 = arith.constant 0 : i32
    %c0_i32_1 = arith.constant 0 : i32
    return %c0_i32, %c0_i32_0 : i32, i32
  }
  func.func @transform_26(%arg0: i32) -> (i32, i32) {
    %c0_i32 = arith.constant 0 : i32
    %c0_i32_0 = arith.constant 0 : i32
    %c0_i32_1 = arith.constant 0 : i32
    return %c0_i32, %c0_i32_0 : i32, i32
  }
  func.func @transform_27(%arg0: i32) -> (i32, i32, i32) {
    %c0_i32 = arith.constant 0 : i32
    %c0_i32_0 = arith.constant 0 : i32
    %c0_i32_1 = arith.constant 0 : i32
    return %arg0, %c0_i32, %c0_i32_0 : i32, i32, i32
  }
}

</mosaic_0001>

<bundles_post_ra>
// kernel: transformer_forward.2
= control target key start
LH: loop header
LB: loop body
LE: loop exit
PB: predicated region body
PF: predicated region fallthrough
CT: control target
= control target key end

     0   :  { %s5220_s21 = smov 0   ;;  %s5813_s0 = inlined_call_operand.vmem [shape: s32[2,8,1], index: 0, kind: input, shape index: {}]   ;;  %s5814_s1 = inlined_call_operand.vmem [shape: f32[16,32], index: 1, kind: input, shape index: {}]   ;;  %s5815_s2 = inlined_call_operand.vmem [shape: f32[8,32], index: 2, kind: input, shape index: {}]   ;;  %s5816_s3 = inlined_call_operand.vmem [shape: bf16[2,32,32], index: 3, kind: input, shape index: {}]   ;;  %s5817_s4 = inlined_call_operand.vmem [shape: bf16[2,32,32], index: 4, kind: input, shape index: {}]   ;;  %s5818_s5 = inlined_call_operand.vmem [shape: bf16[2,32,32], index: 5, kind: input, shape index: {}]   ;;  %s5819_s6 = inlined_call_operand.vmem [shape: bf16[2,32,32], index: 6, kind: input, shape index: {}]   ;;  %s5820_s7 = inlined_call_operand.vmem [shape: f32[2,1,32], index: 7, kind: input, shape index: {}]   ;;  %s5821_s8 = inlined_call_operand.vmem [shape: f32[2,1,32], index: 8, kind: input, shape index: {}]   ;;  %s5822_s9 = inlined_call_operand.vmem [shape: f32[2,1,32], index: 9, kind: input, shape index: {}]   ;;  %s5823_s10 = inlined_call_operand.vmem [shape: bf16[2,32,128], index: 10, kind: input, shape index: {}]   ;;  %s5824_s11 = inlined_call_operand.vmem [shape: f32[2,1,128], index: 11, kind: input, shape index: {}]   ;;  %s5825_s12 = inlined_call_operand.vmem [shape: bf16[2,128,32], index: 12, kind: input, shape index: {}]   ;;  %s5826_s13 = inlined_call_operand.vmem [shape: f32[2,1,32], index: 13, kind: input, shape index: {}]   ;;  %s5827_s14 = inlined_call_operand.vmem [shape: f32[2,1,32], index: 14, kind: input, shape index: {}]   ;;  %s5828_s15 = inlined_call_operand.vmem [shape: f32[2,1,32], index: 15, kind: input, shape index: {}]   ;;  %s5829_s16 = inlined_call_operand.vmem [shape: f32[2,8,32], index: 16, kind: output, shape index: {}]  }
   0x1   :  { %5842 = sst [smem:[#allocation4_spill]] %s5813_s0 }
   0x2 LB: > { %s4412_s22 = sadd.s32 4294967295, %s5116_s21   ;;  %p4416_p0 = scmp.ge.s32.totalorder %s5116_s21, 1  ;;  %s5116_s21 = sphi %s5220_s21, %s26_s21  }
   0x3   : > { %p461_p1 = scmp.lt.s32.totalorder %s5116_s21, 3 }
   0x5   : > { %p462_p2 = pnand %p4416_p0, %p461_p1 }
   0x6   : > { %p509_p3 = scmp.lt.s32.totalorder (!%p462_p2), %s4412_s22, 1  ;;  %s5843_s30 = sld [smem:[#allocation4_spill]] (!%p462_p2) }
   0x7   : > { %465 = sbr.rel (%p462_p2) target bundleno = 5207 (0x1457), region = 84  ;;  %s5121_s19 = smov (!%p462_p2), 116  }
   0x8   : > { %s5122_s20 = smov (!%p462_p2), 124   ;;  %s5123_s23 = smov (!%p462_p2), 108  }
   0x9   : > { %s5124_s24 = smov (!%p462_p2), 120   ;;  %s5125_s25 = smov (!%p462_p2), 112  }
   0xa   : > { %s5840_s26 = smov (!%p462_p2), 104   ;;  %s5834_s28 = smov (!%p462_p2), 100  }
   0xb   : > { %s5832_s29 = smov (!%p462_p2), 4   ;;  %s5839_s17 = smov (!%p462_p2), 16  }
   0xc   : > { %v520_v0 = vld [vmem:[%s5814_s1 + $0x8] sm:$0xff]  ;;  %v5118_v1 = vmov 0   ;;  %v5119_v2 = vmov 0.0   ;;  %s5855_s22 = smov (!%p509_p3, %s4412_s22), 1  ;;  %v519_v3 = vld [vmem:[%s5814_s1] sm:$0xff]  ;;  %vm5120_vm0 = vmmov 0   ;;  %v522_v5 = vlaneseq }
   0xd   : > { %5001 = vset.pattern.permute.xlu0 %v5118_v1  ;;  %4689 = vmatprep.subr.mxu1 %v5119_v2  ;;  %s5830_s27 = sshll.u32 %s5855_s22, 3  ;;  %vm530_vm1 = vcmask 130048   ;;  %v5002_v9 = vld [vmem:[%s5816_s3 + $0x8] sm:$0xff]   ;;  %v5003_v10 = vld [vmem:[%s5816_s3] sm:$0xff]   ;;  %vm662_vm3 = vcmask 261120   ;;  %vm810_vm4 = vcmask 31744  }
   0xe   : > { %4690 = vmatpush3.msra.mxu1 %v520_v0  ;;  %4696 = vmatprep.subr.bf16.mxu0 %v5119_v2  ;;  %s512_s0 = scalar_lea.vmem %s5843_s30, %s5830_s27  ;;  %v523_v6 = vand.u32 127, %v522_v5  ;;  %v521_v11 = vld [vmem:[%s5815_s2] sm:$0xff]  ;;  %v5004_v16 = vld [vmem:[%s5817_s4 + $0x8] sm:$0xff]   ;;  %vm887_vm5 = vcmask 64512   ;;  %s5831_s30 = smov 8   ;;  %vm1703_vm6 = vcmask 64544  }
   0xf   : > { %4691 = vmatprep.subr.mxu1 %v5119_v2  ;;  %4693 = vmatprep.mubr.msk.f32.mxu1 %vm5120_vm0, %v5119_v2  ;;  %v518_v4 = vld [vmem:[%s512_s0] sm:$0xff]  ;;  %v5006_v19 = vld [vmem:[%s5818_s5 + $0x8] sm:$0xff]   ;;  %s5833_s0 = smov 12   ;;  %s5836_s18 = smov 20   ;;  %vm1786_vm7 = vcmask 97344   ;;  %vm1869_vm8 = vcmask 130144  }
  0x10   : > { %4692 = vmatpush3.msra.mxu1 %v519_v3  ;;  %4700 = vmatprep.mubr.msk.bf16.mxu0 %vm5120_vm0, %v5119_v2  ;;  %v5005_v18 = vld [vmem:[%s5817_s4] sm:$0xff]   ;;  %s5838_s27 = smov 24   ;;  %vm1952_vm9 = vcmask 162944   ;;  %vm2035_vm10 = vcmask 195744   ;;  %vm2118_vm11 = vcmask 228544   ;;  %vm2201_vm12 = vcmask 261344  }
  0x11   : > { %4730 = vmatprep.subr.mxu1 %v5119_v2  ;;  %525 = vperm.xlu0 %5001, %v518_v4   ;;  %v5007_v20 = vld [vmem:[%s5818_s5] sm:$0xff]  }
  0x12   : > { %4697 = vmatpush3.bf16.msra.mxu0 %v5002_v9 }
  0x13   : > { %4698 = vmatprep.subr.bf16.mxu0 %v5119_v2 }
  0x16   : > { %4699 = vmatpush3.bf16.msra.mxu0 %v5003_v10 }
  0x17   : > { %4704 = vmatprep.subr.bf16.mxu0 %v5119_v2 }
  0x8c   : > { %v526_v7 = vpop.permute.xlu0 %525 }
  0x8d   : > { %vm527_vm2 = vcmp.eq.s32.totalorder %v526_v7, %v523_v6 }
  0x8e   : > { %v4419_v8 = vsel %vm527_vm2, 1.0, %v5119_v2 }
  0x8f   : > { %4694 = vmatmul.mubr.msk.f32.vlgmr.msra.gmra.mxu1 %vm530_vm1, %v4419_v8 }
  0x90   : > { %4732 = vmatprep.mubr.msk.f32.mxu1 %vm5120_vm0, %v5119_v2 }
 0x14f   : > { %v600_v12 = vpop.f32.mrf.mxu1 }
 0x150   : > { %v604_v13 = vmul.f32 5.656854, %v600_v12 }
 0x151   : > { %v4695_v14 = vpop.f32.mrf.mxu1 }
 0x152   : > { %v5264_v15 = vadd.f32 %v604_v13, %v521_v11 }
 0x154   : > { %v649_v17 = vpack.c.bf16 %v5264_v15, %v5264_v15 }
 0x156   : > { %4701 = vmatmul.mubr.msk.bf16.vlgmr.msra.gmra.mxu0 %vm662_vm3, %v649_v17 }
 0x157   : > { %4705 = vmatpush3.bf16.msra.mxu0 %v5004_v16  ;;  %4708 = vmatprep.mubr.msk.bf16.mxu0 %vm5120_vm0, %v5119_v2 }
 0x158   : > { %4706 = vmatprep.subr.bf16.mxu0 %v5119_v2 }
 0x15b   : > { %4707 = vmatpush3.bf16.msra.mxu0 %v5005_v18 }
 0x15c   : > { %4712 = vmatprep.subr.bf16.mxu0 %v5119_v2 }
 0x15e   : > { %4709 = vmatmul.mubr.msk.bf16.vlgmr.msra.gmra.mxu0 %vm662_vm3, %v649_v17 }
 0x15f   : > { %4713 = vmatpush3.bf16.msra.mxu0 %v5006_v19  ;;  %4716 = vmatprep.mubr.msk.bf16.mxu0 %vm5120_vm0, %v5119_v2 }
 0x160   : > { %4714 = vmatprep.subr.bf16.mxu0 %v5119_v2 }
 0x163   : > { %4715 = vmatpush3.bf16.msra.mxu0 %v5007_v20 }
 0x164   : > { %4720 = vmatprep.subr.mxu0 %v5119_v2 }
 0x166   : > { %4717 = vmatmul.mubr.msk.bf16.vlgmr.msra.gmra.mxu0 %vm662_vm3, %v649_v17 }
 0x167   : > { %4722 = vmatprep.mubr.msk.f32.mxu0 %vm5120_vm0, %v5119_v2 }
 0x216   : > { %v700_v21 = vpop.f32.mrf.mxu0 }
 0x217   : > { %1047 = vrot.lane.b32.xlu0 %v700_v21, %s5121_s19  ;;  %889 = vrot.lane.b32.xlu1 %v700_v21, %s5122_s20 }
 0x218   : > { %v4702_v22 = vpop.f32.mrf.mxu0 }
 0x21a   : > { %v703_v23 = vpop.f32.mrf.mxu0 }
 0x21b   : > { %1205 = vrot.lane.b32.xlu0 %v700_v21, %s5123_s23  ;;  %968 = vrot.lane.b32.xlu1 %v700_v21, %s5124_s24 }
 0x21c   : > { %v4703_v24 = vpop.f32.mrf.mxu0 }
 0x21e   : > { %v752_v25 = vpop.f32.mrf.mxu0 }
 0x21f   : > { %1126 = vrot.lane.b32.xlu1 %v700_v21, %s5125_s25  ;;  %891 = vrot.lane.b32.xlu0 %v752_v25, %s5122_s20 }
 0x220   : > { %4721 = vmatpush3.xpose.msk.msra.mxu0 %vm810_vm4, %v752_v25  ;;  %v4710_v26 = vpop.f32.mrf.mxu0 }
 0x221   : > { %4725 = vmatprep.subr.mxu0 %v5119_v2 }
 0x222   : > { %v755_v27 = vpop.f32.mrf.mxu0 }
 0x223   : > { %4723 = vmatmul.mubr.msk.f32.vlgmr.msra.gmra.mxu0 %vm810_vm4, %v700_v21  ;;  %970 = vrot.lane.b32.xlu1 %v752_v25, %s5124_s24 }
 0x224   : > { %1049 = vrot.lane.b32.xlu0 %v752_v25, %s5121_s19  ;;  %v4711_v28 = vpop.f32.mrf.mxu0  ;;  %4727 = vmatprep.mubr.msk.f32.mxu0 %vm5120_vm0, %v5119_v2 }
 0x226   : > { %v5306_v29 = vpop.f32.mrf.mxu0 }
 0x227   : > { %1128 = vrot.lane.b32.xlu1 %v752_v25, %s5125_s25 }
 0x228   : > { %1207 = vrot.lane.b32.xlu0 %v752_v25, %s5123_s23  ;;  %v4718_v30 = vpop.f32.mrf.mxu0 }
 0x22a   : > { %v807_v31 = vpop.f32.mrf.mxu0 }
 0x22b   : > { %1286 = vrot.lane.b32.xlu1 %v752_v25, %s5840_s26 }
 0x22c   : > { %1365 = vrot.lane.b32.xlu0 %v752_v25, %s5834_s28  ;;  %v4719_v32 = vpop.f32.mrf.mxu0 }
 0x22f   : > { %1284 = vrot.lane.b32.xlu1 %v700_v21, %s5840_s26 }
 0x230   : > { %1363 = vrot.lane.b32.xlu0 %v700_v21, %s5834_s28 }
 0x289   : > { %v1048_v33 = vpop.permute.xlu0 %1047  ;;  %v890_v34 = vpop.permute.xlu1 %889 }
 0x28d   : > { %v1206_v35 = vpop.permute.xlu0 %1205  ;;  %v969_v36 = vpop.permute.xlu1 %968 }
 0x291   : > { %v1127_v37 = vpop.permute.xlu1 %1126  ;;  %v892_v38 = vpop.permute.xlu0 %891 }
 0x292   : > { %4726 = vmatpush3.xpose.msk.msra.mxu0 %vm810_vm4, %v892_v38 }
 0x293   : > { %4735 = vmatprep.subr.mxu0 %v5119_v2 }
 0x295   : > { %v971_v39 = vpop.permute.xlu1 %970  ;;  %4728 = vmatmul.mubr.msk.f32.vlgmr.msra.gmra.mxu0 %vm810_vm4, %v890_v34 }
 0x296   : > { %v1050_v40 = vpop.permute.xlu0 %1049  ;;  %4731 = vmatpush3.xpose.msk.msra.mxu1 %vm810_vm4, %v971_v39  ;;  %4737 = vmatprep.mubr.msk.f32.mxu0 %vm5120_vm0, %v5119_v2 }
 0x297   : > { %4736 = vmatpush3.xpose.msk.msra.mxu0 %vm810_vm4, %v1050_v40  ;;  %4740 = vmatprep.subr.mxu1 %v5119_v2 }
 0x298   : > { %4745 = vmatprep.subr.mxu0 %v5119_v2 }
 0x299   : > { %4733 = vmatmul.mubr.msk.f32.vlgmr.msra.gmra.mxu1 %vm810_vm4, %v969_v36  ;;  %v1129_v41 = vpop.permute.xlu1 %1128 }
 0x29a   : > { %v1208_v42 = vpop.permute.xlu0 %1207  ;;  %4738 = vmatmul.mubr.msk.f32.vlgmr.msra.gmra.mxu0 %vm810_vm4, %v1048_v33  ;;  %4741 = vmatpush3.xpose.msk.msra.mxu1 %vm810_vm4, %v1129_v41 }
 0x29b   : > { %4746 = vmatpush3.xpose.msk.msra.mxu0 %vm810_vm4, %v1208_v42  ;;  %4742 = vmatprep.mubr.msk.f32.mxu1 %vm5120_vm0, %v5119_v2 }
 0x29c   : > { %4747 = vmatprep.mubr.msk.f32.mxu0 %vm5120_vm0, %v5119_v2  ;;  %4750 = vmatprep.subr.mxu1 %v5119_v2 }
 0x29d   : > { %4743 = vmatmul.mubr.msk.f32.vlgmr.msra.gmra.mxu1 %vm810_vm4, %v1127_v37  ;;  %v1287_v43 = vpop.permute.xlu1 %1286  ;;  %4755 = vmatprep.subr.mxu0 %v5119_v2 }
 0x29e   : > { %v1366_v44 = vpop.permute.xlu0 %1365  ;;  %4748 = vmatmul.mubr.msk.f32.vlgmr.msra.gmra.mxu0 %vm810_vm4, %v1206_v35  ;;  %4751 = vmatpush3.xpose.msk.msra.mxu1 %vm810_vm4, %v1287_v43 }
 0x29f   : > { %4756 = vmatpush3.xpose.msk.msra.mxu0 %vm810_vm4, %v1366_v44  ;;  %4752 = vmatprep.mubr.msk.f32.mxu1 %vm5120_vm0, %v5119_v2 }
 0x2a0   : > { %4760 = vmatprep.subr.mxu1 %v5119_v2  ;;  %4757 = vmatprep.mubr.msk.f32.mxu0 %vm5120_vm0, %v5119_v2 }
 0x2a1   : > { %v1285_v45 = vpop.permute.xlu1 %1284  ;;  %4765 = vmatprep.subr.mxu0 %v5119_v2 }
 0x2a2   : > { %v1364_v46 = vpop.permute.xlu0 %1363  ;;  %4753 = vmatmul.mubr.msk.f32.vlgmr.msra.gmra.mxu1 %vm810_vm4, %v1285_v45 }
 0x2a3   : > { %4758 = vmatmul.mubr.msk.f32.vlgmr.msra.gmra.mxu0 %vm810_vm4, %v1364_v46  ;;  %4761 = vmatpush3.msra.mxu1 %v5306_v29 }
 0x2a4   : > { %4762 = vmatprep.mubr.msk.f32.mxu1 %vm5120_vm0, %v5119_v2  ;;  %4770 = vmatprep.subr.mxu1 %v5119_v2 }
 0x2a5   : > { %4767 = vmatprep.mubr.msk.f32.mxu0 %vm5120_vm0, %v5119_v2 }
 0x2e3   : > { %v883_v47 = vpop.f32.mrf.mxu0 }
 0x2e4   : > { %888 = vst.msk [vmem:[#allocation2] sm:$0xff] %vm887_vm5, %v883_v47 }
 0x2e5   : > { %v4724_v48 = vpop.f32.mrf.mxu0 }
 0x2eb   : > { %v1442_v49 = vld [vmem:[#allocation2] sm:$0xff] }
 0x2ec   : > { %v1450_v50 = vsel %vm887_vm5, %v1442_v49, -inf }
 0x2ed   : > { %1451 = vmax.xlane.f32.xlu1 %v1450_v50 }
 0x355   : > { %v963_v51 = vpop.f32.mrf.mxu0 }
 0x356   : > { %967 = vst.msk [vmem:[#allocation2 + $0x8] sm:$0xff] %vm887_vm5, %v963_v51 }
 0x357   : > { %v4729_v52 = vpop.f32.mrf.mxu0 }
 0x359   : > { %v1042_v53 = vpop.f32.mrf.mxu1 }
 0x35a   : > { %1046 = vst.msk [vmem:[#allocation2 + $0x10] sm:$0xff] %vm887_vm5, %v1042_v53  ;;  %v1121_v54 = vpop.f32.mrf.mxu0 }
 0x35b   : > { %1125 = vst.msk [vmem:[#allocation2 + $0x18] sm:$0xff] %vm887_vm5, %v1121_v54  ;;  %v4734_v55 = vpop.f32.mrf.mxu1 }
 0x35c   : > { %v4739_v56 = vpop.f32.mrf.mxu0 }
 0x35d   : > { %v1200_v57 = vpop.f32.mrf.mxu1  ;;  %v1443_v58 = vld [vmem:[#allocation2 + $0x8] sm:$0xff] }
 0x35e   : > { %1204 = vst.msk [vmem:[#allocation2 + $0x20] sm:$0xff] %vm887_vm5, %v1200_v57  ;;  %v1279_v59 = vpop.f32.mrf.mxu0  ;;  %v1453_v60 = vsel %vm887_vm5, %v1443_v58, -inf }
 0x35f   : > { %1283 = vst.msk [vmem:[#allocation2 + $0x28] sm:$0xff] %vm887_vm5, %v1279_v59  ;;  %1454 = vmax.xlane.f32.xlu0 %v1453_v60  ;;  %v4744_v61 = vpop.f32.mrf.mxu1 }
 0x360   : > { %v4749_v62 = vpop.f32.mrf.mxu0 }
 0x361   : > { %v1444_v63 = vld [vmem:[#allocation2 + $0x10] sm:$0xff] }
 0x362   : > { %v1358_v0 = vpop.f32.mrf.mxu1  ;;  %v1445_v1 = vld [vmem:[#allocation2 + $0x18] sm:$0xff]  ;;  %v1456_v3 = vsel %vm887_vm5, %v1444_v63, -inf }
 0x363   : > { %1362 = vst.msk [vmem:[#allocation2 + $0x30] sm:$0xff] %vm887_vm5, %v1358_v0  ;;  %v1437_v4 = vpop.f32.mrf.mxu0  ;;  %v1459_v5 = vsel %vm887_vm5, %v1445_v1, -inf  ;;  %1457 = vmax.xlane.f32.xlu0 %v1456_v3 }
 0x364   : > { %1441 = vst.msk [vmem:[#allocation2 + $0x38] sm:$0xff] %vm887_vm5, %v1437_v4  ;;  %1460 = vmax.xlane.f32.xlu1 %v1459_v5  ;;  %v4754_v6 = vpop.f32.mrf.mxu1 }
 0x365   : > { %v4759_v7 = vpop.f32.mrf.mxu0  ;;  %v1446_v8 = vld [vmem:[#allocation2 + $0x20] sm:$0xff] }
 0x366   : > { %v1447_v9 = vld [vmem:[#allocation2 + $0x28] sm:$0xff]  ;;  %v1462_v10 = vsel %vm887_vm5, %v1446_v8, -inf }
 0x367   : > { %v1465_v11 = vsel %vm887_vm5, %v1447_v9, -inf  ;;  %1463 = vmax.xlane.f32.xlu0 %v1462_v10 }
 0x368   : > { %1466 = vmax.xlane.f32.xlu1 %v1465_v11 }
 0x36a   : > { %v1448_v12 = vld [vmem:[#allocation2 + $0x30] sm:$0xff] }
 0x36b   : > { %v1468_v13 = vsel %vm887_vm5, %v1448_v12, -inf  ;;  %v1449_v18 = vld [vmem:[#allocation2 + $0x38] sm:$0xff] }
 0x36c   : > { %1469 = vmax.xlane.f32.xlu0 %v1468_v13  ;;  %v1471_v19 = vsel %vm887_vm5, %v1449_v18, -inf }
 0x376   : > { %v1452_v14 = vpop.xlane.xlu1 %1451 }
 0x377   : > { %v1474_v16 = vsub.f32 %v1442_v49, %v1452_v14 }
 0x379   : > { %1706 = vrot.lane.b32.xlu1 %v5306_v29, %s5124_s24  ;;  %v1482_v17 = vmul.f32 1.442695, %v1474_v16 }
 0x37b   : > { %5038 = vpow2.f32 %v1482_v17 }
 0x382   : > { %1623 = vrot.lane.b32.xlu0 %v5306_v29, %s5122_s20 }
 0x388   : > { %v5371_v20 = vpop.eup %5038 }
 0x389   : > { %v1498_v21 = vsel %vm887_vm5, %v5371_v20, 0.0 }
 0x39d   : > { %1472 = vmax.xlane.f32.xlu1 %v1471_v19 }
 0x3a1   : > { %1499 = vadd.xlane.f32.xlu0 %v1498_v21 }
 0x3ae   : > { %1789 = vrot.lane.b32.xlu1 %v5306_v29, %s5121_s19 }
 0x3e8   : > { %v1455_v22 = vpop.xlane.xlu0 %1454 }
 0x3e9   : > { %v1475_v23 = vsub.f32 %v1443_v58, %v1455_v22 }
 0x3eb   : > { %v1484_v24 = vmul.f32 1.442695, %v1475_v23 }
 0x3ec   : > { %v1458_v25 = vpop.xlane.xlu0 %1457 }
 0x3ed   : > { %5040 = vpow2.f32 %v1484_v24  ;;  %v1461_v26 = vpop.xlane.xlu1 %1460  ;;  %v1476_v27 = vsub.f32 %v1444_v63, %v1458_v25 }
 0x3ee   : > { %v1477_v28 = vsub.f32 %v1445_v1, %v1461_v26 }
 0x3ef   : > { %v1486_v30 = vmul.f32 1.442695, %v1476_v27 }
 0x3f0   : > { %v1488_v31 = vmul.f32 1.442695, %v1477_v28  ;;  %v1464_v32 = vpop.xlane.xlu0 %1463 }
 0x3f1   : > { %5042 = vpow2.f32 %v1486_v30  ;;  %v1467_v33 = vpop.xlane.xlu1 %1466  ;;  %v1478_v34 = vsub.f32 %v1446_v8, %v1464_v32 }
 0x3f2   : > { %5044 = vpow2.f32 %v1488_v31  ;;  %v1479_v35 = vsub.f32 %v1447_v9, %v1467_v33 }
 0x3f3   : > { %v1490_v36 = vmul.f32 1.442695, %v1478_v34 }
 0x3f4   : > { %v1492_v37 = vmul.f32 1.442695, %v1479_v35 }
 0x3f5   : > { %5046 = vpow2.f32 %v1490_v36  ;;  %v1470_v38 = vpop.xlane.xlu0 %1469  ;;  %v1707_v54 = vpop.permute.xlu1 %1706 }
 0x3f6   : > { %5048 = vpow2.f32 %v1492_v37  ;;  %v1480_v39 = vsub.f32 %v1448_v12, %v1470_v38 }
 0x3f8   : > { %v1494_v40 = vmul.f32 1.442695, %v1480_v39 }
 0x3f9   : > { %v1624_v41 = vpop.permute.xlu0 %1623 }
 0x3fa   : > { %v5041_v42 = vpop.eup %5040  ;;  %5050 = vpow2.f32 %v1494_v40  ;;  %4766 = vmatpush3.msra.mxu0 %v1624_v41 }
 0x3fb   : > { %v1501_v43 = vsel %vm887_vm5, %v5041_v42, 0.0  ;;  %4775 = vmatprep.subr.mxu0 %v5119_v2 }
 0x3fc   : > { %1502 = vadd.xlane.f32.xlu1 %v1501_v43 }
 0x3fe   : > { %v5043_v44 = vpop.eup %5042 }
 0x3ff   : > { %v5045_v45 = vpop.eup %5044  ;;  %v1504_v46 = vsel %vm887_vm5, %v5043_v44, 0.0 }
 0x400   : > { %v1507_v47 = vsel %vm887_vm5, %v5045_v45, 0.0  ;;  %1505 = vadd.xlane.f32.xlu0 %v1504_v46 }
 0x401   : > { %1508 = vadd.xlane.f32.xlu1 %v1507_v47 }
 0x402   : > { %v5047_v48 = vpop.eup %5046 }
 0x403   : > { %v5049_v49 = vpop.eup %5048  ;;  %v1510_v50 = vsel %vm887_vm5, %v5047_v48, 0.0 }
 0x404   : > { %v1513_v51 = vsel %vm887_vm5, %v5049_v49, 0.0  ;;  %1511 = vadd.xlane.f32.xlu0 %v1510_v50  ;;  %v5009_v50 = vld [vmem:[%s5819_s6] sm:$0xff]  }
 0x405   : > { %1514 = vadd.xlane.f32.xlu1 %v1513_v51 }
 0x407   : > { %v5051_v52 = vpop.eup %5050 }
 0x408   : > { %v1516_v53 = vsel %vm887_vm5, %v5051_v52, 0.0 }
 0x409   : > { %1517 = vadd.xlane.f32.xlu0 %v1516_v53 }
 0x416   : > { %1955 = vrot.lane.b32.xlu1 %v5306_v29, %s5123_s23 }
 0x41f   : > { %1872 = vrot.lane.b32.xlu0 %v5306_v29, %s5125_s25 }
 0x423   : > { %2038 = vrot.lane.b32.xlu0 %v5306_v29, %s5840_s26  ;;  %s5845_s26 = smov 100  }
 0x426   : > { %v1473_v55 = vpop.xlane.xlu1 %1472 }
 0x427   : > { %v1481_v56 = vsub.f32 %v1449_v18, %v1473_v55 }
 0x429   : > { %v1496_v57 = vmul.f32 1.442695, %v1481_v56 }
 0x42a   : > { %v1500_v58 = vpop.xlane.xlu0 %1499  ;;  %v1790_v0 = vpop.permute.xlu1 %1789 }
 0x42b   : > { %5052 = vpow2.f32 %v1496_v57 }
 0x42c   : > { %5054 = vrcp.f32 %v1500_v58 }
 0x438   : > { %v5390_v59 = vpop.eup %5052 }
 0x439   : > { %v5055_v60 = vpop.eup %5054  ;;  %v1519_v61 = vsel %vm887_vm5, %v5390_v59, 0.0 }
 0x43a   : > { %v1523_v62 = vmul.f32 %v5055_v60, %v5371_v20  ;;  %1520 = vadd.xlane.f32.xlu1 %v1519_v61 }
 0x43c   : > { %1538 = vst.msk [vmem:[#allocation2] sm:$0xff] %vm887_vm5, %v1523_v62  ;;  %v4454_v62 = vld [vmem:[%s5820_s7] ss:$0 sm:$0xff] }
 0x443   : > { %v1546_v63 = vld [vmem:[#allocation2] sm:$0xff] }
 0x444   : > { %4763 = vmatmul.mubr.msk.f32.vlgmr.msra.gmra.mxu1 %vm887_vm5, %v1546_v63 }
 0x445   : > { %4771 = vmatpush3.msra.mxu1 %v1707_v54  ;;  %4772 = vmatprep.mubr.msk.f32.mxu1 %vm5120_vm0, %v5119_v2 }
 0x446   : > { %4780 = vmatprep.subr.mxu1 %v5119_v2 }
 0x44b   : > { %2121 = vrot.lane.b32.xlu1 %v5306_v29, %s5834_s28 }
 0x485   : > { %v1503_v1 = vpop.xlane.xlu1 %1502 }
 0x486   : > { %5056 = vrcp.f32 %v1503_v1 }
 0x489   : > { %v1506_v3 = vpop.xlane.xlu0 %1505 }
 0x48a   : > { %v1509_v4 = vpop.xlane.xlu1 %1508  ;;  %5058 = vrcp.f32 %v1506_v3 }
 0x48b   : > { %5060 = vrcp.f32 %v1509_v4 }
 0x48d   : > { %v1512_v5 = vpop.xlane.xlu0 %1511 }
 0x48e   : > { %v1515_v6 = vpop.xlane.xlu1 %1514  ;;  %5062 = vrcp.f32 %v1512_v5 }
 0x48f   : > { %5064 = vrcp.f32 %v1515_v6 }
 0x492   : > { %v1518_v7 = vpop.xlane.xlu0 %1517  ;;  %v1956_v24 = vpop.permute.xlu1 %1955 }
 0x493   : > { %v5057_v8 = vpop.eup %5056  ;;  %5066 = vrcp.f32 %v1518_v7 }
 0x494   : > { %v1525_v9 = vmul.f32 %v5057_v8, %v5041_v42 }
 0x496   : > { %1539 = vst.msk [vmem:[#allocation2 + $0x8] sm:$0xff] %vm887_vm5, %v1525_v9  ;;  %v1873_v20 = vpop.permute.xlu0 %1872 }
 0x497   : > { %v5059_v10 = vpop.eup %5058 }
 0x498   : > { %v5061_v11 = vpop.eup %5060  ;;  %v1527_v29 = vmul.f32 %v5059_v10, %v5043_v44 }
 0x499   : > { %v1529_v12 = vmul.f32 %v5061_v11, %v5045_v45 }
 0x49a   : > { %1540 = vst.msk [vmem:[#allocation2 + $0x10] sm:$0xff] %vm887_vm5, %v1527_v29  ;;  %v2039_v26 = vpop.permute.xlu0 %2038  ;;  %v5010_v29 = vld [vmem:[%s5823_s10 + $0x8] sm:$0xff]  }
 0x49b   : > { %v5063_v13 = vpop.eup %5062  ;;  %1541 = vst.msk [vmem:[#allocation2 + $0x18] sm:$0xff] %vm887_vm5, %v1529_v12  ;;  %v5012_v12 = vld [vmem:[%s5825_s12 + $0x38] sm:$0xff]  }
 0x49c   : > { %v5065_v14 = vpop.eup %5064  ;;  %v1531_v16 = vmul.f32 %v5063_v13, %v5047_v48  ;;  %v5013_v13 = vld [vmem:[%s5825_s12 + $0x30] sm:$0xff]  }
 0x49d   : > { %v1533_v17 = vmul.f32 %v5065_v14, %v5049_v49  ;;  %v1621_v18 = vld [vmem:[#allocation2 + $0x8] sm:$0xff] }
 0x49e   : > { %1542 = vst.msk [vmem:[#allocation2 + $0x20] sm:$0xff] %vm887_vm5, %v1531_v16  ;;  %4768 = vmatmul.mubr.msk.f32.vlgmr.msra.gmra.mxu0 %vm887_vm5, %v1621_v18  ;;  %v5008_v49 = vld [vmem:[%s5819_s6 + $0x8] sm:$0xff]   ;;  %v5015_v16 = vld [vmem:[%s5825_s12 + $0x20] sm:$0xff]   ;;  %v5017_v18 = vld [vmem:[%s5825_s12 + $0x10] sm:$0xff]  }
 0x49f   : > { %1543 = vst.msk [vmem:[#allocation2 + $0x28] sm:$0xff] %vm887_vm5, %v1533_v17  ;;  %4776 = vmatpush3.msra.mxu0 %v1790_v0  ;;  %4777 = vmatprep.mubr.msk.f32.mxu0 %vm5120_vm0, %v5119_v2  ;;  %v5014_v14 = vld [vmem:[%s5825_s12 + $0x28] sm:$0xff]   ;;  %v5016_v17 = vld [vmem:[%s5825_s12 + $0x18] sm:$0xff]  }
 0x4a0   : > { %v5067_v19 = vpop.eup %5066  ;;  %4785 = vmatprep.subr.mxu0 %v5119_v2 }
 0x4a1   : > { %v1535_v21 = vmul.f32 %v5067_v19, %v5051_v52  ;;  %v1705_v22 = vld [vmem:[#allocation2 + $0x10] sm:$0xff] }
 0x4a2   : > { %4773 = vmatmul.mubr.msk.f32.vlgmr.msra.gmra.mxu1 %vm887_vm5, %v1705_v22  ;;  %v1788_v23 = vld [vmem:[#allocation2 + $0x18] sm:$0xff] }
 0x4a3   : > { %1544 = vst.msk [vmem:[#allocation2 + $0x30] sm:$0xff] %vm887_vm5, %v1535_v21  ;;  %4778 = vmatmul.mubr.msk.f32.vlgmr.msra.gmra.mxu0 %vm887_vm5, %v1788_v23  ;;  %4781 = vmatpush3.msra.mxu1 %v1873_v20  ;;  %v4458_v23 = vld [vmem:[%s5821_s8] ss:$0 sm:$0xff] }
 0x4a4   : > { %4786 = vmatpush3.msra.mxu0 %v1956_v24  ;;  %4782 = vmatprep.mubr.msk.f32.mxu1 %vm5120_vm0, %v5119_v2 }
 0x4a5   : > { %4787 = vmatprep.mubr.msk.f32.mxu0 %vm5120_vm0, %v5119_v2  ;;  %4790 = vmatprep.subr.mxu1 %v5119_v2  ;;  %v1871_v25 = vld [vmem:[#allocation2 + $0x20] sm:$0xff] }
 0x4a6   : > { %4783 = vmatmul.mubr.msk.f32.vlgmr.msra.gmra.mxu1 %vm887_vm5, %v1871_v25  ;;  %v1954_v27 = vld [vmem:[#allocation2 + $0x28] sm:$0xff]  ;;  %4795 = vmatprep.subr.mxu0 %v5119_v2  ;;  %v4459_v25 = vld [vmem:[%s5822_s9] ss:$0 sm:$0xff] }
 0x4a7   : > { %4788 = vmatmul.mubr.msk.f32.vlgmr.msra.gmra.mxu0 %vm887_vm5, %v1954_v27  ;;  %4791 = vmatpush3.msra.mxu1 %v2039_v26 }
 0x4a8   : > { %4792 = vmatprep.mubr.msk.f32.mxu1 %vm5120_vm0, %v5119_v2  ;;  %4797 = vmatprep.mubr.msk.f32.mxu0 %vm5120_vm0, %v5119_v2 }
 0x4a9   : > { %4800 = vmatprep.subr.bf16.mxu1 %v5119_v2 }
 0x4aa   : > { %v2037_v28 = vld [vmem:[#allocation2 + $0x30] sm:$0xff] }
 0x4ab   : > { %4793 = vmatmul.mubr.msk.f32.vlgmr.msra.gmra.mxu1 %vm887_vm5, %v2037_v28 }
 0x4ac   : > { %4804 = vmatprep.mubr.msk.bf16.mxu1 %vm5120_vm0, %v5119_v2  ;;  %4801 = vmatpush3.bf16.msra.mxu1 %v5008_v49 }
 0x4ad   : > { %4802 = vmatprep.subr.bf16.mxu1 %v5119_v2 }
 0x4b0   : > { %4803 = vmatpush3.bf16.msra.mxu1 %v5009_v50 }
 0x4b1   : > { %4816 = vmatprep.subr.bf16.mxu1 %v5119_v2 }
 0x4c3   : > { %v1521_v30 = vpop.xlane.xlu1 %1520 }
 0x4c4   : > { %5068 = vrcp.f32 %v1521_v30  ;;  %v5018_v30 = vld [vmem:[%s5825_s12 + $0x8] sm:$0xff]  }
 0x4c7   : > { %v2122_v31 = vpop.permute.xlu1 %2121 }
 0x4c8   : > { %4796 = vmatpush3.msra.mxu0 %v2122_v31  ;;  %v5019_v31 = vld [vmem:[%s5825_s12] sm:$0xff]  }
 0x4c9   : > { %4808 = vmatprep.subr.bf16.mxu0 %v5119_v2 }
 0x4d1   : > { %v5069_v32 = vpop.eup %5068 }
 0x4d2   : > { %v1537_v33 = vmul.f32 %v5069_v32, %v5390_v59  ;;  %v4460_v32 = vld [vmem:[%s5824_s11] ss:$0 sm:$0xff] }
 0x4d4   : > { %1545 = vst.msk [vmem:[#allocation2 + $0x38] sm:$0xff] %vm887_vm5, %v1537_v33 }
 0x4db   : > { %v2120_v34 = vld [vmem:[#allocation2 + $0x38] sm:$0xff] }
 0x4dc   : > { %4798 = vmatmul.mubr.msk.f32.vlgmr.msra.gmra.mxu0 %vm887_vm5, %v2120_v34 }
 0x4dd   : > { %4812 = vmatprep.mubr.msk.bf16.mxu0 %vm5120_vm0, %v5119_v2  ;;  %4809 = vmatpush3.bf16.msra.mxu0 %v5010_v29 }
 0x4de   : > { %4810 = vmatprep.subr.bf16.mxu0 %v5119_v2 }
 0x504   : > { %v1616_v35 = vpop.f32.mrf.mxu1 }
 0x505   : > { %1620 = vst.msk [vmem:[#allocation3] sm:$0xff] %vm810_vm4, %v1616_v35 }
 0x506   : > { %v4764_v36 = vpop.f32.mrf.mxu1 }
 0x55e   : > { %v1695_v37 = vpop.f32.mrf.mxu0 }
 0x55f   : > { %1700 = vrot.lane.b32.xlu0 %v1695_v37, %s5832_s29  ;;  %s5852_s29 = smov 28  }
 0x560   : > { %v4769_v38 = vpop.f32.mrf.mxu0 }
 0x562   : > { %v1778_v39 = vpop.f32.mrf.mxu1 }
 0x563   : > { %v1861_v40 = vpop.f32.mrf.mxu0  ;;  %1783 = vrot.lane.b32.xlu1 %v1778_v39, %s5831_s30 }
 0x564   : > { %1866 = vrot.lane.b32.xlu0 %v1861_v40, %s5833_s0  ;;  %v4774_v41 = vpop.f32.mrf.mxu1  ;;  %v4464_v40 = vld [vmem:[%s5826_s13] ss:$0 sm:$0xff] }
 0x565   : > { %v4779_v42 = vpop.f32.mrf.mxu0 }
 0x566   : > { %v1944_v43 = vpop.f32.mrf.mxu1 }
 0x567   : > { %v2027_v44 = vpop.f32.mrf.mxu0  ;;  %1949 = vrot.lane.b32.xlu1 %v1944_v43, %s5839_s17  ;;  %s5851_s17 = smov 24  }
 0x568   : > { %2032 = vrot.lane.b32.xlu0 %v2027_v44, %s5836_s18  ;;  %v4784_v45 = vpop.f32.mrf.mxu1  ;;  %s5837_s18 = smov 28  }
 0x569   : > { %v4789_v46 = vpop.f32.mrf.mxu0 }
 0x56b   : > { %v2110_v47 = vpop.f32.mrf.mxu1 }
 0x56c   : > { %2115 = vrot.lane.b32.xlu1 %v2110_v47, %s5838_s27  ;;  %s5844_s27 = smov 104  }
 0x56d   : > { %v4794_v48 = vpop.f32.mrf.mxu1 }
 0x59c   : > { %v2193_v51 = vpop.f32.mrf.mxu0 }
 0x59d   : > { %2198 = vrot.lane.b32.xlu0 %v2193_v51, %s5837_s18  ;;  %s5853_s18 = sshll.u32 %s5855_s22, 3 }
 0x59e   : > { %v4799_v52 = vpop.f32.mrf.mxu0  ;;  %s516_s28 = scalar_lea.vmem %s5829_s16, %s5853_s18 }
 0x5d1   : > { %v1701_v53 = vpop.permute.xlu0 %1700 }
 0x5d2   : > { %1704 = vst.msk [vmem:[#allocation3] sm:$0xff] %vm1703_vm6, %v1701_v53  ;;  %v5020_v53 = vld [vmem:[%s5816_s3 + $0x18] sm:$0xff]  }
 0x5d5   : > { %v1784_v54 = vpop.permute.xlu1 %1783 }
 0x5d6   : > { %v1867_v55 = vpop.permute.xlu0 %1866  ;;  %1787 = vst.msk [vmem:[#allocation3] sm:$0xff] %vm1786_vm7, %v1784_v54  ;;  %v5021_v54 = vld [vmem:[%s5816_s3 + $0x10] sm:$0xff]  }
 0x5d7   : > { %1870 = vst.msk [vmem:[#allocation3] sm:$0xff] %vm1869_vm8, %v1867_v55 }
 0x5d9   : > { %v1950_v56 = vpop.permute.xlu1 %1949 }
 0x5da   : > { %v2033_v57 = vpop.permute.xlu0 %2032  ;;  %1953 = vst.msk [vmem:[#allocation3] sm:$0xff] %vm1952_vm9, %v1950_v56 }
 0x5db   : > { %2036 = vst.msk [vmem:[#allocation3] sm:$0xff] %vm2035_vm10, %v2033_v57 }
 0x5de   : > { %v2116_v58 = vpop.permute.xlu1 %2115 }
 0x5df   : > { %2119 = vst.msk [vmem:[#allocation3] sm:$0xff] %vm2118_vm11, %v2116_v58 }
 0x60f   : > { %v2199_v59 = vpop.permute.xlu0 %2198 }
 0x610   : > { %2202 = vst.msk [vmem:[#allocation3] sm:$0xff] %vm2201_vm12, %v2199_v59  ;;  %v4473_v59 = vld [vmem:[%s5827_s14] ss:$0 sm:$0xff] }
 0x617   : > { %v2203_v60 = vld [vmem:[#allocation3] sm:$0xff] }
 0x618   : > { %v2204_v61 = vpack.c.bf16 %v2203_v60, %v2203_v60 }
 0x61a   : > { %4805 = vmatmul.mubr.msk.bf16.vlgmr.msra.gmra.mxu1 %vm662_vm3, %v2204_v61  ;;  %v4474_v61 = vld [vmem:[%s5828_s15] ss:$0 sm:$0xff] }
 0x61b   : > { %4832 = vmatprep.mubr.msk.bf16.mxu1 %vm5120_vm0, %v5119_v2  ;;  %4817 = vmatpush3.bf16.msra.mxu1 %v5012_v12 }
 0x61c   : > { %4818 = vmatprep.subr.bf16.mxu1 %v5119_v2 }
 0x61f   : > { %4819 = vmatpush3.bf16.msra.mxu1 %v5013_v13 }
 0x620   : > { %4820 = vmatprep.subr.bf16.mxu1 %v5119_v2 }
 0x623   : > { %4821 = vmatpush3.bf16.msra.mxu1 %v5014_v14 }
 0x624   : > { %4822 = vmatprep.subr.bf16.mxu1 %v5119_v2 }
 0x627   : > { %4823 = vmatpush3.bf16.msra.mxu1 %v5015_v16 }
 0x628   : > { %4824 = vmatprep.subr.bf16.mxu1 %v5119_v2 }
 0x62b   : > { %4825 = vmatpush3.bf16.msra.mxu1 %v5016_v17 }
 0x62c   : > { %4826 = vmatprep.subr.bf16.mxu1 %v5119_v2 }
 0x62f   : > { %4827 = vmatpush3.bf16.msra.mxu1 %v5017_v18 }
 0x630   : > { %4828 = vmatprep.subr.bf16.mxu1 %v5119_v2 }
 0x633   : > { %4829 = vmatpush3.bf16.msra.mxu1 %v5018_v30 }
 0x634   : > { %4830 = vmatprep.subr.bf16.mxu1 %v5119_v2 }
 0x637   : > { %4831 = vmatpush3.bf16.msra.mxu1 %v5019_v31 }
 0x638   : > { %4870 = vmatprep.subr.mxu1 %v5119_v2 }
 0x6da   : > { %v2260_v63 = vpop.f32.mrf.mxu1 }
 0x6db   : > { %v2261_v0 = vadd.f32 %v4454_v62, %v2260_v63 }
 0x6dc   : > { %v4806_v1 = vpop.f32.mrf.mxu1 }
 0x6dd   : > { %v2266_v3 = vadd.f32 %v2261_v0, %v5264_v15  ;;  %v5011_v15 = vld [vmem:[%s5823_s10] sm:$0xff]   ;;  %v5022_v0 = vld [vmem:[%s5817_s4 + $0x18] sm:$0xff]  }
 0x6de   : > { %v2263_v4 = vpop.f32.mrf.mxu1  ;;  %4811 = vmatpush3.bf16.msra.mxu0 %v5011_v15 }
 0x6df   : > { %v2267_v5 = vsel %vm662_vm3, %v2266_v3, 0.0  ;;  %4836 = vmatprep.subr.bf16.mxu0 %v5119_v2  ;;  %v5024_v4 = vld [vmem:[%s5818_s5 + $0x18] sm:$0xff]  }
 0x6e0   : > { %2268 = vadd.xlane.f32.xlu1 %v2267_v5  ;;  %v4807_v6 = vpop.f32.mrf.mxu1  ;;  %v5025_v5 = vld [vmem:[%s5818_s5 + $0x10] sm:$0xff]  }
 0x769   : > { %v2269_v7 = vpop.xlane.xlu1 %2268 }
 0x76a   : > { %v2271_v8 = vmul.f32 0.03125, %v2269_v7 }
 0x76c   : > { %v2272_v9 = vsub.f32 %v2266_v3, %v2271_v8  ;;  %v5023_v3 = vld [vmem:[%s5817_s4 + $0x10] sm:$0xff]  }
 0x76e   : > { %v2273_v10 = vmul.f32 %v2272_v9, %v2272_v9 }
 0x770   : > { %v2274_v11 = vsel %vm662_vm3, %v2273_v10, 0.0 }
 0x771   : > { %2275 = vadd.xlane.f32.xlu0 %v2274_v11 }
 0x7fa   : > { %v2276_v19 = vpop.xlane.xlu0 %2275 }
 0x7fb   : > { %v2277_v20 = vmul.f32 0.03125, %v2276_v19 }
 0x7fd   : > { %v2278_v21 = vadd.f32 1e-05, %v2277_v20 }
 0x7ff   : > { %5070 = vrsqrt.f32 %v2278_v21 }
 0x80c   : > { %v5071_v22 = vpop.eup %5070 }
 0x80d   : > { %v2280_v24 = vmul.f32 %v5071_v22, %v2272_v9 }
 0x80f   : > { %v2287_v26 = vmul.f32 %v4458_v23, %v2280_v24 }
 0x811   : > { %v2294_v27 = vadd.f32 %v4459_v25, %v2287_v26 }
 0x813   : > { %v2295_v28 = vpack.c.bf16 %v2294_v27, %v2294_v27 }
 0x815   : > { %4813 = vmatmul.mubr.msk.bf16.vlgmr.msra.gmra.mxu0 %vm662_vm3, %v2295_v28 }
 0x816   : > { %4840 = vmatprep.mubr.msk.bf16.mxu0 %vm5120_vm0, %v5119_v2  ;;  %4837 = vmatpush3.bf16.msra.mxu0 %v5020_v53 }
 0x817   : > { %4838 = vmatprep.subr.bf16.mxu0 %v5119_v2 }
 0x81a   : > { %4839 = vmatpush3.bf16.msra.mxu0 %v5021_v54 }
 0x81b   : > { %4844 = vmatprep.subr.bf16.mxu0 %v5119_v2 }
 0x8d5   : > { %v2351_v33 = vpop.f32.mrf.mxu0 }
 0x8d6   : > { %v2352_v34 = vadd.f32 %v4460_v32, %v2351_v33 }
 0x8d7   : > { %v4814_v35 = vpop.f32.mrf.mxu0 }
 0x8d8   : > { %v2357_v36 = vmax.f32 %v2352_v34, 0.0 }
 0x8d9   : > { %v2354_v37 = vpop.f32.mrf.mxu0 }
 0x8da   : > { %v2358_v38 = vpack.c.bf16 %v2357_v36, %v2357_v36 }
 0x8db   : > { %v4815_v39 = vpop.f32.mrf.mxu0 }
 0x8dc   : > { %4833 = vmatmul.mubr.bf16.vlgmr.msra.gmra.mxu1 %v2358_v38 }
 0x8dd   : > { %4872 = vmatprep.mubr.msk.f32.mxu1 %vm5120_vm0, %v5119_v2 }
 0x99c   : > { %v2447_v41 = vpop.f32.mrf.mxu1 }
 0x99d   : > { %v2448_v42 = vadd.f32 %v4464_v40, %v2447_v41 }
 0x99e   : > { %v4834_v43 = vpop.f32.mrf.mxu1 }
 0x99f   : > { %v2453_v44 = vadd.f32 %v2448_v42, %v2294_v27 }
 0x9a0   : > { %v2450_v45 = vpop.f32.mrf.mxu1 }
 0x9a1   : > { %v2454_v46 = vsel %vm662_vm3, %v2453_v44, 0.0 }
 0x9a2   : > { %2455 = vadd.xlane.f32.xlu0 %v2454_v46  ;;  %v4835_v47 = vpop.f32.mrf.mxu1 }
 0xa2b   : > { %v2456_v48 = vpop.xlane.xlu0 %2455 }
 0xa2c   : > { %v2457_v49 = vmul.f32 0.03125, %v2456_v48 }
 0xa2e   : > { %v2458_v50 = vsub.f32 %v2453_v44, %v2457_v49 }
 0xa30   : > { %v2459_v51 = vmul.f32 %v2458_v50, %v2458_v50 }
 0xa32   : > { %v2460_v52 = vsel %vm662_vm3, %v2459_v51, 0.0 }
 0xa33   : > { %2461 = vadd.xlane.f32.xlu1 %v2460_v52 }
 0xabc   : > { %v2462_v55 = vpop.xlane.xlu1 %2461 }
 0xabd   : > { %v2463_v56 = vmul.f32 0.03125, %v2462_v55 }
 0xabf   : > { %v2464_v57 = vadd.f32 1e-05, %v2463_v56 }
 0xac1   : > { %5072 = vrsqrt.f32 %v2464_v57 }
 0xace   : > { %v5073_v58 = vpop.eup %5072 }
 0xacf   : > { %v2466_v60 = vmul.f32 %v5073_v58, %v2458_v50 }
 0xad1   : > { %v2473_v62 = vmul.f32 %v4473_v59, %v2466_v60 }
 0xad3   : > { %v5541_v63 = vadd.f32 %v4474_v61, %v2473_v62 }
 0xad5   : > { %v2537_v1 = vpack.c.bf16 %v5541_v63, %v5541_v63 }
 0xad7   : > { %4841 = vmatmul.mubr.msk.bf16.vlgmr.msra.gmra.mxu0 %vm662_vm3, %v2537_v1 }
 0xad8   : > { %4845 = vmatpush3.bf16.msra.mxu0 %v5022_v0  ;;  %4848 = vmatprep.mubr.msk.bf16.mxu0 %vm5120_vm0, %v5119_v2 }
 0xad9   : > { %4846 = vmatprep.subr.bf16.mxu0 %v5119_v2 }
 0xadc   : > { %4847 = vmatpush3.bf16.msra.mxu0 %v5023_v3 }
 0xadd   : > { %4852 = vmatprep.subr.bf16.mxu0 %v5119_v2 }
 0xadf   : > { %4849 = vmatmul.mubr.msk.bf16.vlgmr.msra.gmra.mxu0 %vm662_vm3, %v2537_v1 }
 0xae0   : > { %4853 = vmatpush3.bf16.msra.mxu0 %v5024_v4  ;;  %4856 = vmatprep.mubr.msk.bf16.mxu0 %vm5120_vm0, %v5119_v2 }
 0xae1   : > { %4854 = vmatprep.subr.bf16.mxu0 %v5119_v2 }
 0xae4   : > { %4855 = vmatpush3.bf16.msra.mxu0 %v5025_v5 }
 0xae5   : > { %4860 = vmatprep.subr.mxu0 %v5119_v2 }
 0xae7   : > { %4857 = vmatmul.mubr.msk.bf16.vlgmr.msra.gmra.mxu0 %vm662_vm3, %v2537_v1 }
 0xae8   : > { %4862 = vmatprep.mubr.msk.f32.mxu0 %vm5120_vm0, %v5119_v2 }
 0xb97   : > { %v2587_v6 = vpop.f32.mrf.mxu0 }
 0xb98   : > { %2932 = vrot.lane.b32.xlu0 %v2587_v6, %s5121_s19  ;;  %2774 = vrot.lane.b32.xlu1 %v2587_v6, %s5122_s20 }
 0xb99   : > { %v4842_v7 = vpop.f32.mrf.mxu0 }
 0xb9b   : > { %v2590_v8 = vpop.f32.mrf.mxu0 }
 0xb9c   : > { %3090 = vrot.lane.b32.xlu0 %v2587_v6, %s5123_s23  ;;  %2853 = vrot.lane.b32.xlu1 %v2587_v6, %s5124_s24 }
 0xb9d   : > { %v4843_v9 = vpop.f32.mrf.mxu0 }
 0xb9f   : > { %v2639_v10 = vpop.f32.mrf.mxu0 }
 0xba0   : > { %3011 = vrot.lane.b32.xlu1 %v2587_v6, %s5125_s25  ;;  %2776 = vrot.lane.b32.xlu0 %v2639_v10, %s5122_s20 }
 0xba1   : > { %4861 = vmatpush3.xpose.msk.msra.mxu0 %vm810_vm4, %v2639_v10  ;;  %v4850_v11 = vpop.f32.mrf.mxu0 }
 0xba2   : > { %4865 = vmatprep.subr.mxu0 %v5119_v2 }
 0xba3   : > { %v2642_v29 = vpop.f32.mrf.mxu0 }
 0xba4   : > { %4863 = vmatmul.mubr.msk.f32.vlgmr.msra.gmra.mxu0 %vm810_vm4, %v2587_v6  ;;  %2855 = vrot.lane.b32.xlu1 %v2639_v10, %s5124_s24 }
 0xba5   : > { %2934 = vrot.lane.b32.xlu0 %v2639_v10, %s5121_s19  ;;  %v4851_v15 = vpop.f32.mrf.mxu0  ;;  %4867 = vmatprep.mubr.msk.f32.mxu0 %vm5120_vm0, %v5119_v2 }
 0xba7   : > { %v5583_v12 = vpop.f32.mrf.mxu0 }
 0xba8   : > { %3013 = vrot.lane.b32.xlu1 %v2639_v10, %s5125_s25 }
 0xba9   : > { %3092 = vrot.lane.b32.xlu0 %v2639_v10, %s5123_s23  ;;  %v4858_v13 = vpop.f32.mrf.mxu0 }
 0xbab   : > { %v2694_v14 = vpop.f32.mrf.mxu0 }
 0xbac   : > { %3171 = vrot.lane.b32.xlu1 %v2639_v10, %s5844_s27 }
 0xbad   : > { %3250 = vrot.lane.b32.xlu0 %v2639_v10, %s5845_s26  ;;  %v4859_v16 = vpop.f32.mrf.mxu0 }
 0xbb0   : > { %3169 = vrot.lane.b32.xlu1 %v2587_v6, %s5844_s27 }
 0xbb1   : > { %3248 = vrot.lane.b32.xlu0 %v2587_v6, %s5845_s26 }
 0xc0a   : > { %v2933_v17 = vpop.permute.xlu0 %2932  ;;  %v2775_v18 = vpop.permute.xlu1 %2774 }
 0xc0e   : > { %v3091_v19 = vpop.permute.xlu0 %3090  ;;  %v2854_v20 = vpop.permute.xlu1 %2853 }
 0xc12   : > { %v3012_v21 = vpop.permute.xlu1 %3011  ;;  %v2777_v22 = vpop.permute.xlu0 %2776 }
 0xc13   : > { %4866 = vmatpush3.xpose.msk.msra.mxu0 %vm810_vm4, %v2777_v22 }
 0xc14   : > { %4875 = vmatprep.subr.mxu0 %v5119_v2 }
 0xc16   : > { %v2856_v23 = vpop.permute.xlu1 %2855  ;;  %4868 = vmatmul.mubr.msk.f32.vlgmr.msra.gmra.mxu0 %vm810_vm4, %v2775_v18 }
 0xc17   : > { %v2935_v24 = vpop.permute.xlu0 %2934  ;;  %4871 = vmatpush3.xpose.msk.msra.mxu1 %vm810_vm4, %v2856_v23  ;;  %4877 = vmatprep.mubr.msk.f32.mxu0 %vm5120_vm0, %v5119_v2 }
 0xc18   : > { %4876 = vmatpush3.xpose.msk.msra.mxu0 %vm810_vm4, %v2935_v24  ;;  %4880 = vmatprep.subr.mxu1 %v5119_v2 }
 0xc19   : > { %4885 = vmatprep.subr.mxu0 %v5119_v2 }
 0xc1a   : > { %4873 = vmatmul.mubr.msk.f32.vlgmr.msra.gmra.mxu1 %vm810_vm4, %v2854_v20  ;;  %v3014_v25 = vpop.permute.xlu1 %3013 }
 0xc1b   : > { %v3093_v26 = vpop.permute.xlu0 %3092  ;;  %4878 = vmatmul.mubr.msk.f32.vlgmr.msra.gmra.mxu0 %vm810_vm4, %v2933_v17  ;;  %4881 = vmatpush3.xpose.msk.msra.mxu1 %vm810_vm4, %v3014_v25 }
 0xc1c   : > { %4886 = vmatpush3.xpose.msk.msra.mxu0 %vm810_vm4, %v3093_v26  ;;  %4882 = vmatprep.mubr.msk.f32.mxu1 %vm5120_vm0, %v5119_v2 }
 0xc1d   : > { %4887 = vmatprep.mubr.msk.f32.mxu0 %vm5120_vm0, %v5119_v2  ;;  %4890 = vmatprep.subr.mxu1 %v5119_v2 }
 0xc1e   : > { %4883 = vmatmul.mubr.msk.f32.vlgmr.msra.gmra.mxu1 %vm810_vm4, %v3012_v21  ;;  %v3172_v27 = vpop.permute.xlu1 %3171  ;;  %4895 = vmatprep.subr.mxu0 %v5119_v2 }
 0xc1f   : > { %v3251_v28 = vpop.permute.xlu0 %3250  ;;  %4888 = vmatmul.mubr.msk.f32.vlgmr.msra.gmra.mxu0 %vm810_vm4, %v3091_v19  ;;  %4891 = vmatpush3.xpose.msk.msra.mxu1 %vm810_vm4, %v3172_v27 }
 0xc20   : > { %4896 = vmatpush3.xpose.msk.msra.mxu0 %vm810_vm4, %v3251_v28  ;;  %4892 = vmatprep.mubr.msk.f32.mxu1 %vm5120_vm0, %v5119_v2 }
 0xc21   : > { %4900 = vmatprep.subr.mxu1 %v5119_v2  ;;  %4897 = vmatprep.mubr.msk.f32.mxu0 %vm5120_vm0, %v5119_v2 }
 0xc22   : > { %v3170_v30 = vpop.permute.xlu1 %3169  ;;  %4905 = vmatprep.subr.mxu0 %v5119_v2 }
 0xc23   : > { %v3249_v31 = vpop.permute.xlu0 %3248  ;;  %4893 = vmatmul.mubr.msk.f32.vlgmr.msra.gmra.mxu1 %vm810_vm4, %v3170_v30 }
 0xc24   : > { %4898 = vmatmul.mubr.msk.f32.vlgmr.msra.gmra.mxu0 %vm810_vm4, %v3249_v31  ;;  %4901 = vmatpush3.msra.mxu1 %v5583_v12 }
 0xc25   : > { %4902 = vmatprep.mubr.msk.f32.mxu1 %vm5120_vm0, %v5119_v2  ;;  %4910 = vmatprep.subr.mxu1 %v5119_v2 }
 0xc26   : > { %4907 = vmatprep.mubr.msk.f32.mxu0 %vm5120_vm0, %v5119_v2 }
 0xc64   : > { %v2769_v32 = vpop.f32.mrf.mxu0 }
 0xc65   : > { %2773 = vst.msk [vmem:[#allocation2] sm:$0xff] %vm887_vm5, %v2769_v32 }
 0xc66   : > { %v4864_v33 = vpop.f32.mrf.mxu0 }
 0xc6c   : > { %v3327_v34 = vld [vmem:[#allocation2] sm:$0xff] }
 0xc6d   : > { %v3335_v35 = vsel %vm887_vm5, %v3327_v34, -inf }
 0xc6e   : > { %3336 = vmax.xlane.f32.xlu1 %v3335_v35 }
 0xcd6   : > { %v2848_v36 = vpop.f32.mrf.mxu0 }
 0xcd7   : > { %2852 = vst.msk [vmem:[#allocation2 + $0x8] sm:$0xff] %vm887_vm5, %v2848_v36 }
 0xcd8   : > { %v4869_v37 = vpop.f32.mrf.mxu0 }
 0xcda   : > { %v2927_v38 = vpop.f32.mrf.mxu1 }
 0xcdb   : > { %2931 = vst.msk [vmem:[#allocation2 + $0x10] sm:$0xff] %vm887_vm5, %v2927_v38  ;;  %v3006_v39 = vpop.f32.mrf.mxu0 }
 0xcdc   : > { %3010 = vst.msk [vmem:[#allocation2 + $0x18] sm:$0xff] %vm887_vm5, %v3006_v39  ;;  %v4874_v40 = vpop.f32.mrf.mxu1 }
 0xcdd   : > { %v4879_v41 = vpop.f32.mrf.mxu0 }
 0xcde   : > { %v3085_v42 = vpop.f32.mrf.mxu1  ;;  %v3328_v43 = vld [vmem:[#allocation2 + $0x8] sm:$0xff] }
 0xcdf   : > { %3089 = vst.msk [vmem:[#allocation2 + $0x20] sm:$0xff] %vm887_vm5, %v3085_v42  ;;  %v3164_v44 = vpop.f32.mrf.mxu0  ;;  %v3338_v45 = vsel %vm887_vm5, %v3328_v43, -inf }
 0xce0   : > { %3168 = vst.msk [vmem:[#allocation2 + $0x28] sm:$0xff] %vm887_vm5, %v3164_v44  ;;  %3339 = vmax.xlane.f32.xlu0 %v3338_v45  ;;  %v4884_v46 = vpop.f32.mrf.mxu1 }
 0xce1   : > { %v4889_v47 = vpop.f32.mrf.mxu0 }
 0xce2   : > { %v3329_v48 = vld [vmem:[#allocation2 + $0x10] sm:$0xff] }
 0xce3   : > { %v3243_v49 = vpop.f32.mrf.mxu1  ;;  %v3330_v50 = vld [vmem:[#allocation2 + $0x18] sm:$0xff]  ;;  %v3341_v51 = vsel %vm887_vm5, %v3329_v48, -inf }
 0xce4   : > { %3247 = vst.msk [vmem:[#allocation2 + $0x30] sm:$0xff] %vm887_vm5, %v3243_v49  ;;  %v3322_v52 = vpop.f32.mrf.mxu0  ;;  %v3344_v53 = vsel %vm887_vm5, %v3330_v50, -inf  ;;  %3342 = vmax.xlane.f32.xlu0 %v3341_v51 }
 0xce5   : > { %3326 = vst.msk [vmem:[#allocation2 + $0x38] sm:$0xff] %vm887_vm5, %v3322_v52  ;;  %3345 = vmax.xlane.f32.xlu1 %v3344_v53  ;;  %v4894_v54 = vpop.f32.mrf.mxu1 }
 0xce6   : > { %v4899_v55 = vpop.f32.mrf.mxu0  ;;  %v3331_v56 = vld [vmem:[#allocation2 + $0x20] sm:$0xff] }
 0xce7   : > { %v3332_v57 = vld [vmem:[#allocation2 + $0x28] sm:$0xff]  ;;  %v3347_v58 = vsel %vm887_vm5, %v3331_v56, -inf }
 0xce8   : > { %v3350_v59 = vsel %vm887_vm5, %v3332_v57, -inf  ;;  %3348 = vmax.xlane.f32.xlu0 %v3347_v58 }
 0xce9   : > { %3351 = vmax.xlane.f32.xlu1 %v3350_v59 }
 0xceb   : > { %v3333_v60 = vld [vmem:[#allocation2 + $0x30] sm:$0xff] }
 0xcec   : > { %v3353_v61 = vsel %vm887_vm5, %v3333_v60, -inf  ;;  %v3334_v3 = vld [vmem:[#allocation2 + $0x38] sm:$0xff] }
 0xced   : > { %3354 = vmax.xlane.f32.xlu0 %v3353_v61  ;;  %v3356_v4 = vsel %vm887_vm5, %v3334_v3, -inf }
 0xcf7   : > { %v3337_v62 = vpop.xlane.xlu1 %3336 }
 0xcf8   : > { %v3359_v0 = vsub.f32 %v3327_v34, %v3337_v62 }
 0xcfa   : > { %3590 = vrot.lane.b32.xlu1 %v5583_v12, %s5124_s24  ;;  %v3367_v1 = vmul.f32 1.442695, %v3359_v0  ;;  %s5849_s24 = smov 16  }
 0xcfc   : > { %5074 = vpow2.f32 %v3367_v1 }
 0xd03   : > { %3508 = vrot.lane.b32.xlu0 %v5583_v12, %s5122_s20  ;;  %s5847_s20 = smov 8  }
 0xd09   : > { %v5648_v5 = vpop.eup %5074 }
 0xd0a   : > { %v3383_v6 = vsel %vm887_vm5, %v5648_v5, 0.0 }
 0xd1e   : > { %3357 = vmax.xlane.f32.xlu1 %v3356_v4 }
 0xd22   : > { %3384 = vadd.xlane.f32.xlu0 %v3383_v6 }
 0xd2f   : > { %3672 = vrot.lane.b32.xlu1 %v5583_v12, %s5121_s19  ;;  %s5846_s19 = smov 4  }
 0xd69   : > { %v3340_v7 = vpop.xlane.xlu0 %3339 }
 0xd6a   : > { %v3360_v8 = vsub.f32 %v3328_v43, %v3340_v7 }
 0xd6c   : > { %v3369_v9 = vmul.f32 1.442695, %v3360_v8 }
 0xd6d   : > { %v3343_v10 = vpop.xlane.xlu0 %3342 }
 0xd6e   : > { %5076 = vpow2.f32 %v3369_v9  ;;  %v3346_v11 = vpop.xlane.xlu1 %3345  ;;  %v3361_v29 = vsub.f32 %v3329_v48, %v3343_v10 }
 0xd6f   : > { %v3362_v15 = vsub.f32 %v3330_v50, %v3346_v11 }
 0xd70   : > { %v3371_v13 = vmul.f32 1.442695, %v3361_v29 }
 0xd71   : > { %v3373_v14 = vmul.f32 1.442695, %v3362_v15  ;;  %v3349_v16 = vpop.xlane.xlu0 %3348 }
 0xd72   : > { %5078 = vpow2.f32 %v3371_v13  ;;  %v3352_v17 = vpop.xlane.xlu1 %3351  ;;  %v3363_v18 = vsub.f32 %v3331_v56, %v3349_v16 }
 0xd73   : > { %5080 = vpow2.f32 %v3373_v14  ;;  %v3364_v19 = vsub.f32 %v3332_v57, %v3352_v17 }
 0xd74   : > { %v3375_v20 = vmul.f32 1.442695, %v3363_v18 }
 0xd75   : > { %v3377_v21 = vmul.f32 1.442695, %v3364_v19 }
 0xd76   : > { %5082 = vpow2.f32 %v3375_v20  ;;  %v3355_v22 = vpop.xlane.xlu0 %3354  ;;  %v3591_v39 = vpop.permute.xlu1 %3590 }
 0xd77   : > { %5084 = vpow2.f32 %v3377_v21  ;;  %v3365_v23 = vsub.f32 %v3333_v60, %v3355_v22 }
 0xd79   : > { %v3379_v24 = vmul.f32 1.442695, %v3365_v23 }
 0xd7a   : > { %v3509_v25 = vpop.permute.xlu0 %3508 }
 0xd7b   : > { %v5077_v26 = vpop.eup %5076  ;;  %5086 = vpow2.f32 %v3379_v24  ;;  %4906 = vmatpush3.msra.mxu0 %v3509_v25 }
 0xd7c   : > { %v3386_v27 = vsel %vm887_vm5, %v5077_v26, 0.0  ;;  %4915 = vmatprep.subr.mxu0 %v5119_v2 }
 0xd7d   : > { %3387 = vadd.xlane.f32.xlu1 %v3386_v27 }
 0xd7f   : > { %v5079_v28 = vpop.eup %5078 }
 0xd80   : > { %v5081_v30 = vpop.eup %5080  ;;  %v3389_v31 = vsel %vm887_vm5, %v5079_v28, 0.0 }
 0xd81   : > { %v3392_v32 = vsel %vm887_vm5, %v5081_v30, 0.0  ;;  %3390 = vadd.xlane.f32.xlu0 %v3389_v31 }
 0xd82   : > { %3393 = vadd.xlane.f32.xlu1 %v3392_v32 }
 0xd83   : > { %v5083_v33 = vpop.eup %5082 }
 0xd84   : > { %v5085_v34 = vpop.eup %5084  ;;  %v3395_v35 = vsel %vm887_vm5, %v5083_v33, 0.0 }
 0xd85   : > { %v3398_v36 = vsel %vm887_vm5, %v5085_v34, 0.0  ;;  %3396 = vadd.xlane.f32.xlu0 %v3395_v35  ;;  %v5027_v35 = vld [vmem:[%s5819_s6 + $0x10] sm:$0xff]  }
 0xd86   : > { %3399 = vadd.xlane.f32.xlu1 %v3398_v36 }
 0xd88   : > { %v5087_v37 = vpop.eup %5086 }
 0xd89   : > { %v3401_v38 = vsel %vm887_vm5, %v5087_v37, 0.0 }
 0xd8a   : > { %3402 = vadd.xlane.f32.xlu0 %v3401_v38 }
 0xd97   : > { %3836 = vrot.lane.b32.xlu1 %v5583_v12, %s5123_s23  ;;  %s5848_s23 = smov 12  }
 0xda0   : > { %3754 = vrot.lane.b32.xlu0 %v5583_v12, %s5125_s25  ;;  %s5850_s25 = smov 20  }
 0xda4   : > { %3918 = vrot.lane.b32.xlu0 %v5583_v12, %s5844_s27 }
 0xda7   : > { %v3358_v40 = vpop.xlane.xlu1 %3357 }
 0xda8   : > { %v3366_v41 = vsub.f32 %v3334_v3, %v3358_v40 }
 0xdaa   : > { %v3381_v42 = vmul.f32 1.442695, %v3366_v41 }
 0xdab   : > { %v3385_v43 = vpop.xlane.xlu0 %3384  ;;  %v3673_v49 = vpop.permute.xlu1 %3672 }
 0xdac   : > { %5088 = vpow2.f32 %v3381_v42 }
 0xdad   : > { %5090 = vrcp.f32 %v3385_v43 }
 0xdb9   : > { %v5667_v44 = vpop.eup %5088 }
 0xdba   : > { %v5091_v45 = vpop.eup %5090  ;;  %v3404_v46 = vsel %vm887_vm5, %v5667_v44, 0.0 }
 0xdbb   : > { %v3408_v47 = vmul.f32 %v5091_v45, %v5648_v5  ;;  %3405 = vadd.xlane.f32.xlu1 %v3404_v46 }
 0xdbd   : > { %3423 = vst.msk [vmem:[#allocation2] sm:$0xff] %vm887_vm5, %v3408_v47  ;;  %v4551_v47 = vld [vmem:[%s5820_s7 + $0x1] ss:$0 sm:$0xff] }
 0xdc4   : > { %v3431_v48 = vld [vmem:[#allocation2] sm:$0xff] }
 0xdc5   : > { %4903 = vmatmul.mubr.msk.f32.vlgmr.msra.gmra.mxu1 %vm887_vm5, %v3431_v48 }
 0xdc6   : > { %4911 = vmatpush3.msra.mxu1 %v3591_v39  ;;  %4912 = vmatprep.mubr.msk.f32.mxu1 %vm5120_vm0, %v5119_v2 }
 0xdc7   : > { %4920 = vmatprep.subr.mxu1 %v5119_v2 }
 0xdcc   : > { %4000 = vrot.lane.b32.xlu1 %v5583_v12, %s5845_s26 }
 0xe06   : > { %v3388_v50 = vpop.xlane.xlu1 %3387 }
 0xe07   : > { %5092 = vrcp.f32 %v3388_v50 }
 0xe0a   : > { %v3391_v51 = vpop.xlane.xlu0 %3390 }
 0xe0b   : > { %v3394_v52 = vpop.xlane.xlu1 %3393  ;;  %5094 = vrcp.f32 %v3391_v51 }
 0xe0c   : > { %5096 = vrcp.f32 %v3394_v52 }
 0xe0e   : > { %v3397_v53 = vpop.xlane.xlu0 %3396 }
 0xe0f   : > { %v3400_v54 = vpop.xlane.xlu1 %3399  ;;  %5098 = vrcp.f32 %v3397_v53 }
 0xe10   : > { %5100 = vrcp.f32 %v3400_v54 }
 0xe13   : > { %v3403_v55 = vpop.xlane.xlu0 %3402  ;;  %v3837_v9 = vpop.permute.xlu1 %3836 }
 0xe14   : > { %v5093_v56 = vpop.eup %5092  ;;  %5102 = vrcp.f32 %v3403_v55 }
 0xe15   : > { %v3410_v57 = vmul.f32 %v5093_v56, %v5077_v26 }
 0xe17   : > { %3424 = vst.msk [vmem:[#allocation2 + $0x8] sm:$0xff] %vm887_vm5, %v3410_v57  ;;  %v3755_v5 = vpop.permute.xlu0 %3754 }
 0xe18   : > { %v5095_v58 = vpop.eup %5094 }
 0xe19   : > { %v5097_v59 = vpop.eup %5096  ;;  %v3412_v12 = vmul.f32 %v5095_v58, %v5079_v28 }
 0xe1a   : > { %v3414_v60 = vmul.f32 %v5097_v59, %v5081_v30 }
 0xe1b   : > { %3425 = vst.msk [vmem:[#allocation2 + $0x10] sm:$0xff] %vm887_vm5, %v3412_v12  ;;  %v3919_v11 = vpop.permute.xlu0 %3918  ;;  %v5028_v12 = vld [vmem:[%s5823_s10 + $0x18] sm:$0xff]  }
 0xe1c   : > { %v5099_v61 = vpop.eup %5098  ;;  %3426 = vst.msk [vmem:[#allocation2 + $0x18] sm:$0xff] %vm887_vm5, %v3414_v60  ;;  %v5030_v60 = vld [vmem:[%s5825_s12 + $0x78] sm:$0xff]  }
 0xe1d   : > { %v5101_v62 = vpop.eup %5100  ;;  %v3416_v0 = vmul.f32 %v5099_v61, %v5083_v33  ;;  %v5031_v61 = vld [vmem:[%s5825_s12 + $0x70] sm:$0xff]  }
 0xe1e   : > { %v3418_v1 = vmul.f32 %v5101_v62, %v5085_v34  ;;  %v3506_v3 = vld [vmem:[#allocation2 + $0x8] sm:$0xff]  ;;  %v5026_v34 = vld [vmem:[%s5819_s6 + $0x18] sm:$0xff]  }
 0xe1f   : > { %3427 = vst.msk [vmem:[#allocation2 + $0x20] sm:$0xff] %vm887_vm5, %v3416_v0  ;;  %4908 = vmatmul.mubr.msk.f32.vlgmr.msra.gmra.mxu0 %vm887_vm5, %v3506_v3  ;;  %v5032_v62 = vld [vmem:[%s5825_s12 + $0x68] sm:$0xff]   ;;  %v5033_v0 = vld [vmem:[%s5825_s12 + $0x60] sm:$0xff]   ;;  %v5035_v3 = vld [vmem:[%s5825_s12 + $0x50] sm:$0xff]  }
 0xe20   : > { %3428 = vst.msk [vmem:[#allocation2 + $0x28] sm:$0xff] %vm887_vm5, %v3418_v1  ;;  %4916 = vmatpush3.msra.mxu0 %v3673_v49  ;;  %4917 = vmatprep.mubr.msk.f32.mxu0 %vm5120_vm0, %v5119_v2  ;;  %v5034_v1 = vld [vmem:[%s5825_s12 + $0x58] sm:$0xff]  }
 0xe21   : > { %v5103_v4 = vpop.eup %5102  ;;  %4925 = vmatprep.subr.mxu0 %v5119_v2 }
 0xe22   : > { %v3420_v6 = vmul.f32 %v5103_v4, %v5087_v37  ;;  %v3589_v7 = vld [vmem:[#allocation2 + $0x10] sm:$0xff] }
 0xe23   : > { %4913 = vmatmul.mubr.msk.f32.vlgmr.msra.gmra.mxu1 %vm887_vm5, %v3589_v7  ;;  %v3671_v8 = vld [vmem:[#allocation2 + $0x18] sm:$0xff] }
 0xe24   : > { %3429 = vst.msk [vmem:[#allocation2 + $0x30] sm:$0xff] %vm887_vm5, %v3420_v6  ;;  %4918 = vmatmul.mubr.msk.f32.vlgmr.msra.gmra.mxu0 %vm887_vm5, %v3671_v8  ;;  %4921 = vmatpush3.msra.mxu1 %v3755_v5  ;;  %v4555_v8 = vld [vmem:[%s5821_s8 + $0x1] ss:$0 sm:$0xff] }
 0xe25   : > { %4926 = vmatpush3.msra.mxu0 %v3837_v9  ;;  %4922 = vmatprep.mubr.msk.f32.mxu1 %vm5120_vm0, %v5119_v2 }
 0xe26   : > { %4927 = vmatprep.mubr.msk.f32.mxu0 %vm5120_vm0, %v5119_v2  ;;  %4930 = vmatprep.subr.mxu1 %v5119_v2  ;;  %v3753_v10 = vld [vmem:[#allocation2 + $0x20] sm:$0xff] }
 0xe27   : > { %4923 = vmatmul.mubr.msk.f32.vlgmr.msra.gmra.mxu1 %vm887_vm5, %v3753_v10  ;;  %v3835_v29 = vld [vmem:[#allocation2 + $0x28] sm:$0xff]  ;;  %4935 = vmatprep.subr.mxu0 %v5119_v2  ;;  %v4556_v10 = vld [vmem:[%s5822_s9 + $0x1] ss:$0 sm:$0xff] }
 0xe28   : > { %4928 = vmatmul.mubr.msk.f32.vlgmr.msra.gmra.mxu0 %vm887_vm5, %v3835_v29  ;;  %4931 = vmatpush3.msra.mxu1 %v3919_v11 }
 0xe29   : > { %4932 = vmatprep.mubr.msk.f32.mxu1 %vm5120_vm0, %v5119_v2  ;;  %4937 = vmatprep.mubr.msk.f32.mxu0 %vm5120_vm0, %v5119_v2 }
 0xe2a   : > { %4940 = vmatprep.subr.bf16.mxu1 %v5119_v2 }
 0xe2b   : > { %v3917_v15 = vld [vmem:[#allocation2 + $0x30] sm:$0xff] }
 0xe2c   : > { %4933 = vmatmul.mubr.msk.f32.vlgmr.msra.gmra.mxu1 %vm887_vm5, %v3917_v15 }
 0xe2d   : > { %4944 = vmatprep.mubr.msk.bf16.mxu1 %vm5120_vm0, %v5119_v2  ;;  %4941 = vmatpush3.bf16.msra.mxu1 %v5026_v34 }
 0xe2e   : > { %4942 = vmatprep.subr.bf16.mxu1 %v5119_v2 }
 0xe31   : > { %4943 = vmatpush3.bf16.msra.mxu1 %v5027_v35 }
 0xe32   : > { %4956 = vmatprep.subr.bf16.mxu1 %v5119_v2 }
 0xe44   : > { %v3406_v13 = vpop.xlane.xlu1 %3405 }
 0xe45   : > { %5104 = vrcp.f32 %v3406_v13  ;;  %v5036_v13 = vld [vmem:[%s5825_s12 + $0x48] sm:$0xff]  }
 0xe48   : > { %v4001_v14 = vpop.permute.xlu1 %4000 }
 0xe49   : > { %4936 = vmatpush3.msra.mxu0 %v4001_v14  ;;  %v5037_v14 = vld [vmem:[%s5825_s12 + $0x40] sm:$0xff]  }
 0xe4a   : > { %4948 = vmatprep.subr.bf16.mxu0 %v5119_v2 }
 0xe52   : > { %v5105_v16 = vpop.eup %5104 }
 0xe53   : > { %v3422_v17 = vmul.f32 %v5105_v16, %v5667_v44  ;;  %v4557_v16 = vld [vmem:[%s5824_s11 + $0x1] ss:$0 sm:$0xff] }
 0xe55   : > { %3430 = vst.msk [vmem:[#allocation2 + $0x38] sm:$0xff] %vm887_vm5, %v3422_v17 }
 0xe5c   : > { %v3999_v18 = vld [vmem:[#allocation2 + $0x38] sm:$0xff] }
 0xe5d   : > { %4938 = vmatmul.mubr.msk.f32.vlgmr.msra.gmra.mxu0 %vm887_vm5, %v3999_v18 }
 0xe5e   : > { %4952 = vmatprep.mubr.msk.bf16.mxu0 %vm5120_vm0, %v5119_v2  ;;  %4949 = vmatpush3.bf16.msra.mxu0 %v5028_v12 }
 0xe5f   : > { %4950 = vmatprep.subr.bf16.mxu0 %v5119_v2 }
 0xe85   : > { %v3501_v19 = vpop.f32.mrf.mxu1 }
 0xe86   : > { %3505 = vst.msk [vmem:[#allocation3] sm:$0xff] %vm810_vm4, %v3501_v19 }
 0xe87   : > { %v4904_v20 = vpop.f32.mrf.mxu1 }
 0xedf   : > { %v3580_v21 = vpop.f32.mrf.mxu0 }
 0xee0   : > { %3585 = vrot.lane.b32.xlu0 %v3580_v21, %s5846_s19 }
 0xee1   : > { %v4909_v22 = vpop.f32.mrf.mxu0 }
 0xee3   : > { %v3662_v23 = vpop.f32.mrf.mxu1 }
 0xee4   : > { %v3744_v24 = vpop.f32.mrf.mxu0  ;;  %3667 = vrot.lane.b32.xlu1 %v3662_v23, %s5847_s20 }
 0xee5   : > { %3749 = vrot.lane.b32.xlu0 %v3744_v24, %s5848_s23  ;;  %v4914_v25 = vpop.f32.mrf.mxu1 }
 0xee6   : > { %v4919_v26 = vpop.f32.mrf.mxu0 }
 0xee7   : > { %v3826_v27 = vpop.f32.mrf.mxu1 }
 0xee8   : > { %v3908_v28 = vpop.f32.mrf.mxu0  ;;  %3831 = vrot.lane.b32.xlu1 %v3826_v27, %s5849_s24 }
 0xee9   : > { %3913 = vrot.lane.b32.xlu0 %v3908_v28, %s5850_s25  ;;  %v4924_v30 = vpop.f32.mrf.mxu1 }
 0xeea   : > { %v4929_v31 = vpop.f32.mrf.mxu0 }
 0xeec   : > { %v3990_v32 = vpop.f32.mrf.mxu1 }
 0xeed   : > { %3995 = vrot.lane.b32.xlu1 %v3990_v32, %s5851_s17 }
 0xeee   : > { %v4934_v33 = vpop.f32.mrf.mxu1 }
 0xf1d   : > { %v4072_v36 = vpop.f32.mrf.mxu0 }
 0xf1e   : > { %4077 = vrot.lane.b32.xlu0 %v4072_v36, %s5852_s29 }
 0xf1f   : > { %v4939_v37 = vpop.f32.mrf.mxu0 }
 0xf52   : > { %v3586_v38 = vpop.permute.xlu0 %3585 }
 0xf53   : > { %3588 = vst.msk [vmem:[#allocation3] sm:$0xff] %vm1703_vm6, %v3586_v38 }
 0xf56   : > { %v3668_v39 = vpop.permute.xlu1 %3667 }
 0xf57   : > { %v3750_v40 = vpop.permute.xlu0 %3749  ;;  %3670 = vst.msk [vmem:[#allocation3] sm:$0xff] %vm1786_vm7, %v3668_v39 }
 0xf58   : > { %3752 = vst.msk [vmem:[#allocation3] sm:$0xff] %vm1869_vm8, %v3750_v40 }
 0xf5a   : > { %v3832_v41 = vpop.permute.xlu1 %3831 }
 0xf5b   : > { %v3914_v42 = vpop.permute.xlu0 %3913  ;;  %3834 = vst.msk [vmem:[#allocation3] sm:$0xff] %vm1952_vm9, %v3832_v41  ;;  %v4570_v41 = vld [vmem:[%s5827_s14 + $0x1] ss:$0 sm:$0xff] }
 0xf5c   : > { %3916 = vst.msk [vmem:[#allocation3] sm:$0xff] %vm2035_vm10, %v3914_v42 }
 0xf5f   : > { %v3996_v43 = vpop.permute.xlu1 %3995 }
 0xf60   : > { %3998 = vst.msk [vmem:[#allocation3] sm:$0xff] %vm2118_vm11, %v3996_v43  ;;  %v4571_v43 = vld [vmem:[%s5828_s15 + $0x1] ss:$0 sm:$0xff] }
 0xf90   : > { %v4078_v44 = vpop.permute.xlu0 %4077 }
 0xf91   : > { %4080 = vst.msk [vmem:[#allocation3] sm:$0xff] %vm2201_vm12, %v4078_v44 }
 0xf98   : > { %v4081_v45 = vld [vmem:[#allocation3] sm:$0xff] }
 0xf99   : > { %v4082_v46 = vpack.c.bf16 %v4081_v45, %v4081_v45 }
 0xf9b   : > { %4945 = vmatmul.mubr.msk.bf16.vlgmr.msra.gmra.mxu1 %vm662_vm3, %v4082_v46 }
 0xf9c   : > { %4972 = vmatprep.mubr.msk.bf16.mxu1 %vm5120_vm0, %v5119_v2  ;;  %4957 = vmatpush3.bf16.msra.mxu1 %v5030_v60 }
 0xf9d   : > { %4958 = vmatprep.subr.bf16.mxu1 %v5119_v2 }
 0xfa0   : > { %4959 = vmatpush3.bf16.msra.mxu1 %v5031_v61 }
 0xfa1   : > { %4960 = vmatprep.subr.bf16.mxu1 %v5119_v2 }
 0xfa4   : > { %4961 = vmatpush3.bf16.msra.mxu1 %v5032_v62 }
 0xfa5   : > { %4962 = vmatprep.subr.bf16.mxu1 %v5119_v2 }
 0xfa8   : > { %4963 = vmatpush3.bf16.msra.mxu1 %v5033_v0 }
 0xfa9   : > { %4964 = vmatprep.subr.bf16.mxu1 %v5119_v2 }
 0xfac   : > { %4965 = vmatpush3.bf16.msra.mxu1 %v5034_v1 }
 0xfad   : > { %4966 = vmatprep.subr.bf16.mxu1 %v5119_v2 }
 0xfb0   : > { %4967 = vmatpush3.bf16.msra.mxu1 %v5035_v3 }
 0xfb1   : > { %4968 = vmatprep.subr.bf16.mxu1 %v5119_v2 }
 0xfb4   : > { %4969 = vmatpush3.bf16.msra.mxu1 %v5036_v13 }
 0xfb5   : > { %4970 = vmatprep.subr.bf16.mxu1 %v5119_v2  ;;  %v4561_v2 = vld [vmem:[%s5826_s13 + $0x1] ss:$0 sm:$0xff] }
 0xfb8   : > { %4971 = vmatpush3.bf16.msra.mxu1 %v5037_v14 }
0x105b   : > { %v4138_v48 = vpop.f32.mrf.mxu1 }
0x105c   : > { %v4139_v49 = vadd.f32 %v4551_v47, %v4138_v48 }
0x105d   : > { %v4946_v50 = vpop.f32.mrf.mxu1 }
0x105e   : > { %v4144_v51 = vadd.f32 %v4139_v49, %v5541_v63  ;;  %v5029_v63 = vld [vmem:[%s5823_s10 + $0x10] sm:$0xff]  }
0x105f   : > { %v4141_v52 = vpop.f32.mrf.mxu1  ;;  %4951 = vmatpush3.bf16.msra.mxu0 %v5029_v63 }
0x1060   : > { %v4145_v53 = vsel %vm662_vm3, %v4144_v51, 0.0 }
0x1061   : > { %4146 = vadd.xlane.f32.xlu1 %v4145_v53  ;;  %v4947_v54 = vpop.f32.mrf.mxu1 }
0x10ea   : > { %v4147_v55 = vpop.xlane.xlu1 %4146 }
0x10eb   : > { %v4148_v56 = vmul.f32 0.03125, %v4147_v55 }
0x10ed   : > { %v4149_v57 = vsub.f32 %v4144_v51, %v4148_v56 }
0x10ef   : > { %v4150_v58 = vmul.f32 %v4149_v57, %v4149_v57 }
0x10f1   : > { %v4151_v59 = vsel %vm662_vm3, %v4150_v58, 0.0 }
0x10f2   : > { %4152 = vadd.xlane.f32.xlu0 %v4151_v59 }
0x117b   : > { %v4153_v4 = vpop.xlane.xlu0 %4152 }
0x117c   : > { %v4154_v5 = vmul.f32 0.03125, %v4153_v4 }
0x117e   : > { %v4155_v6 = vadd.f32 1e-05, %v4154_v5 }
0x1180   : > { %5106 = vrsqrt.f32 %v4155_v6 }
0x118d   : > { %v5107_v7 = vpop.eup %5106 }
0x118e   : > { %v4157_v9 = vmul.f32 %v5107_v7, %v4149_v57 }
0x1190   : > { %v4164_v11 = vmul.f32 %v4555_v8, %v4157_v9 }
0x1192   : > { %v4171_v29 = vadd.f32 %v4556_v10, %v4164_v11 }
0x1194   : > { %v4172_v15 = vpack.c.bf16 %v4171_v29, %v4171_v29 }
0x1196   : > { %4953 = vmatmul.mubr.msk.bf16.vlgmr.msra.gmra.mxu0 %vm662_vm3, %v4172_v15 }
0x1256   : > { %v4228_v17 = vpop.f32.mrf.mxu0 }
0x1257   : > { %v4229_v18 = vadd.f32 %v4557_v16, %v4228_v17 }
0x1258   : > { %v4954_v19 = vpop.f32.mrf.mxu0 }
0x1259   : > { %v4234_v20 = vmax.f32 %v4229_v18, 0.0 }
0x125a   : > { %v4231_v21 = vpop.f32.mrf.mxu0 }
0x125b   : > { %v4235_v22 = vpack.c.bf16 %v4234_v20, %v4234_v20 }
0x125c   : > { %v4955_v23 = vpop.f32.mrf.mxu0 }
0x125d   : > { %4973 = vmatmul.mubr.bf16.vlgmr.msra.gmra.mxu1 %v4235_v22 }
0x131d   : > { %v4324_v24 = vpop.f32.mrf.mxu1 }
0x131e   : > { %v4325_v25 = vadd.f32 %v4561_v2, %v4324_v24 }
0x131f   : > { %v4974_v26 = vpop.f32.mrf.mxu1 }
0x1320   : > { %v4330_v27 = vadd.f32 %v4325_v25, %v4171_v29 }
0x1321   : > { %v4327_v28 = vpop.f32.mrf.mxu1 }
0x1322   : > { %v4331_v30 = vsel %vm662_vm3, %v4330_v27, 0.0 }
0x1323   : > { %4332 = vadd.xlane.f32.xlu0 %v4331_v30  ;;  %v4975_v31 = vpop.f32.mrf.mxu1 }
0x13ac   : > { %v4333_v32 = vpop.xlane.xlu0 %4332 }
0x13ad   : > { %v4334_v33 = vmul.f32 0.03125, %v4333_v32 }
0x13af   : > { %v4335_v34 = vsub.f32 %v4330_v27, %v4334_v33 }
0x13b1   : > { %v4336_v35 = vmul.f32 %v4335_v34, %v4335_v34 }
0x13b3   : > { %v4337_v36 = vsel %vm662_vm3, %v4336_v35, 0.0 }
0x13b4   : > { %4338 = vadd.xlane.f32.xlu1 %v4337_v36 }
0x143d   : > { %v4339_v37 = vpop.xlane.xlu1 %4338 }
0x143e   : > { %v4340_v38 = vmul.f32 0.03125, %v4339_v37 }
0x1440   : > { %v4341_v39 = vadd.f32 1e-05, %v4340_v38 }
0x1442   : > { %5108 = vrsqrt.f32 %v4341_v39 }
0x144f   : > { %v5109_v40 = vpop.eup %5108 }
0x1450   : > { %v4343_v42 = vmul.f32 %v5109_v40, %v4335_v34 }
0x1452   : > { %v4350_v44 = vmul.f32 %v4570_v41, %v4343_v42 }
0x1454   : > { %v4357_v45 = vadd.f32 %v4571_v43, %v4350_v44 }
0x1456   : > { %4358 = vst.msk [vmem:[%s516_s28] sm:$0xff] %vm662_vm3, %v4357_v45 }
0x1457 PF: > { %s26_s21 = sadd.s32 1, %s5116_s21  }
0x1458   : > { %p23_p4 = scmp.ge.s32.totalorder %s26_s21, 4  }
0x145a   :  { %25 = sbr.rel (!%p23_p4) target bundleno = 2 (0x2), region = 127 }

// kernel: transformer_forward.3
= control target key start
LH: loop header
LB: loop body
LE: loop exit
PB: predicated region body
PF: predicated region fallthrough
CT: control target
= control target key end

     0   :  { %s10822_s0 = inlined_call_operand.vmem [shape: s32[2,8,1], index: 0, kind: input, shape index: {}]   ;;  %s10823_s1 = inlined_call_operand.vmem [shape: f32[2,8,32], index: 1, kind: input, shape index: {}]   ;;  %s10824_s2 = inlined_call_operand.vmem [shape: f32[16,32], index: 2, kind: input, shape index: {}]   ;;  %s10825_s3 = inlined_call_operand.vmem [shape: f32[8,32], index: 3, kind: input, shape index: {}]   ;;  %s10826_s4 = inlined_call_operand.vmem [shape: f32[64,8], index: 4, kind: input, shape index: {}]   ;;  %s10827_s5 = inlined_call_operand.vmem [shape: bf16[2,32,32], index: 5, kind: input, shape index: {}]   ;;  %s10828_s6 = inlined_call_operand.vmem [shape: bf16[2,32,32], index: 6, kind: input, shape index: {}]   ;;  %s10829_s7 = inlined_call_operand.vmem [shape: bf16[2,32,32], index: 7, kind: input, shape index: {}]   ;;  %s10830_s8 = inlined_call_operand.vmem [shape: bf16[2,32,32], index: 8, kind: input, shape index: {}]   ;;  %s10831_s9 = inlined_call_operand.vmem [shape: f32[2,1,32], index: 9, kind: input, shape index: {}]   ;;  %s10832_s10 = inlined_call_operand.vmem [shape: f32[2,1,32], index: 10, kind: input, shape index: {}]   ;;  %s10833_s11 = inlined_call_operand.vmem [shape: f32[2,1,32], index: 11, kind: input, shape index: {}]   ;;  %s10834_s12 = inlined_call_operand.vmem [shape: bf16[2,32,32], index: 12, kind: input, shape index: {}]   ;;  %s10835_s13 = inlined_call_operand.vmem [shape: bf16[2,32,32], index: 13, kind: input, shape index: {}]   ;;  %s10836_s14 = inlined_call_operand.vmem [shape: bf16[2,32,32], index: 14, kind: input, shape index: {}]   ;;  %s10837_s15 = inlined_call_operand.vmem [shape: bf16[2,32,32], index: 15, kind: input, shape index: {}]   ;;  %s10838_s16 = inlined_call_operand.vmem [shape: f32[2,1,32], index: 16, kind: input, shape index: {}]   ;;  %s10839_s17 = inlined_call_operand.vmem [shape: f32[2,1,32], index: 17, kind: input, shape index: {}]   ;;  %s10840_s18 = inlined_call_operand.vmem [shape: f32[2,1,32], index: 18, kind: input, shape index: {}]   ;;  %s10841_s19 = inlined_call_operand.vmem [shape: bf16[2,32,128], index: 19, kind: input, shape index: {}]   ;;  %s10842_s20 = inlined_call_operand.vmem [shape: f32[2,1,128], index: 20, kind: input, shape index: {}]   ;;  %s10843_s21 = inlined_call_operand.vmem [shape: bf16[2,128,32], index: 21, kind: input, shape index: {}]   ;;  %s10844_s22 = inlined_call_operand.vmem [shape: f32[2,1,32], index: 22, kind: input, shape index: {}]   ;;  %s10845_s23 = inlined_call_operand.vmem [shape: f32[2,1,32], index: 23, kind: input, shape index: {}]   ;;  %s10846_s24 = inlined_call_operand.vmem [shape: f32[2,1,32], index: 24, kind: input, shape index: {}]   ;;  %s10847_s25 = inlined_call_operand.vmem [shape: bf16[32,128], index: 25, kind: input, shape index: {}]   ;;  %s10848_s26 = inlined_call_operand.vmem [shape: f32[1,128], index: 26, kind: input, shape index: {}]   ;;  %s10849_s27 = inlined_call_operand.hbm [shape: f32[2,8,128], index: 27, kind: output, shape index: {}]  }
   0x1   :  { %10912 = sst [smem:[#allocation17_spill]] %s10822_s0 }
   0x2   :  { %10913 = sst [smem:[#allocation18_spill]] %s10823_s1 }
   0x3   :  { %10914 = sst [smem:[#allocation19_spill]] %s10824_s2 }
   0x4   :  { %10915 = sst [smem:[#allocation20_spill]] %s10825_s3 }
   0x5   :  { %10916 = sst [smem:[#allocation21_spill]] %s10826_s4 }
   0x6   :  { %10917 = sst [smem:[#allocation22_spill]] %s10827_s5 }
   0x7   :  { %10918 = sst [smem:[#allocation23_spill]] %s10828_s6 }
   0x8   :  { %10919 = sst [smem:[#allocation24_spill]] %s10829_s7 }
   0x9   :  { %10920 = sst [smem:[#allocation25_spill]] %s10830_s8 }
   0xa   :  { %10921 = sst [smem:[#allocation26_spill]] %s10831_s9 }
   0xb   :  { %10922 = sst [smem:[#allocation27_spill]] %s10832_s10 }
   0xc   :  { %10923 = sst [smem:[#allocation28_spill]] %s10833_s11 }
   0xd   :  { %10924 = sst [smem:[#allocation29_spill]] %s10834_s12 }
   0xe   :  { %10925 = sst [smem:[#allocation30_spill]] %s10835_s13 }
   0xf   :  { %10926 = sst [smem:[#allocation31_spill]] %s10836_s14 }
  0x10   :  { %10927 = sst [smem:[#allocation32_spill]] %s10837_s15 }
  0x11   :  { %10928 = sst [smem:[#allocation33_spill]] %s10838_s16 }
  0x12   :  { %10929 = sst [smem:[#allocation34_spill]] %s10845_s23 }
  0x13   :  { %10930 = sst [smem:[#allocation35_spill]] %s10846_s24 }
  0x14   :  { %10931 = sst [smem:[#allocation36_spill]] %s10847_s25 }
  0x15   :  { %10932 = sst [smem:[#allocation37_spill]] %s10848_s26 }
  0x16   :  { %10933 = sst [smem:[#allocation38_spill]] %s10849_s27 }
  0x17   :  { %32 = vsyncpa [#allocation5], 0 }
  0x18   :  { %34 = vsyncpa [#allocation5 + $0x1], 0  ;;  %s9652_s7 = smov 0   ;;  %s9654_s4 = smov 0  }
  0x19   :  { %s9656_s8 = smov 0   ;;  %s9658_s30 = smov 0  }
  0x1a LB: > { %10934 = sst [smem:[#allocation7_spill]] %s9480_s7  ;;  %s9673_s9 = sadd.s32 4294967295, %s9492_s30   ;;  %s9492_s30 = sphi %s9658_s30, %s11001_s30   ;;  %s9488_s8 = sphi %s9656_s8, %s11004_s8   ;;  %s9484_s4 = sphi %s9654_s4, %s11003_s4   ;;  %s9480_s7 = sphi %s9652_s7, %s11002_s7  }
  0x1b   : > { %10935 = sst [smem:[#allocation8_spill]] %s9484_s4  ;;  %s8178_s5 = sadd.s32 4294967294, %s9492_s30  }
  0x1c   : > { %10936 = sst [smem:[#allocation9_spill]] %s9488_s8  ;;  %s9677_s28 = sadd.s32 1, %s9492_s30  }
  0x1d   : > { %10937 = sst [smem:[#allocation10_spill]] %s9492_s30  ;;  %s624_s0 = sadd.s32 1, %s9488_s8 }
  0x1e   : > { %10938 = sst [smem:[#allocation11_spill]] %s9673_s9  ;;  %s621_s10 = ssub.s32 %s9492_s30, %s9677_s28 }
  0x1f   : > { %10939 = sst [smem:[#allocation12_spill]] %s9677_s28  ;;  %p634_p0 = scmp.ne.s32.totalorder %s9488_s8, %s9484_s4 }
  0x20   : > { %p622_p1 = scmp.eq.s32.totalorder %s621_s10, 0  ;;  %p635_p2 = scmp.eq.s32.totalorder %s9673_s9, 1 }
  0x21   : > { %p640_p3 = scmp.ne.s32.totalorder %s9484_s4, %s9480_s7  ;;  %p641_p4 = scmp.eq.s32.totalorder %s8178_s5, 1 }
  0x22   : > { %s9688_s29 = scalar_select %p622_p1, %s9488_s8, %s624_s0  }
  0x23   : > { %p9690_p5 = por %p635_p2, %p634_p0  ;;  %p9694_p6 = por %p641_p4, %p640_p3 }
  0x24   : > { %10940 = sst [smem:[#allocation13_spill]] %s9688_s29  ;;  %p8181_p7 = scmp.ge.s32.totalorder %s9492_s30, 1 }
  0x25   : > { %s10941_s1 = scalar_select %p9690_p5, 1, 0 }
  0x26   : > { %s10943_s6 = scalar_select %p9694_p6, 1, 0 }
  0x27   : > { %10942 = sst [smem:[#allocation14_spill]] %s10941_s1  ;;  %p748_p8 = scmp.lt.s32.totalorder %s9492_s30, 3 }
  0x28   : > { %10944 = sst [smem:[#allocation15_spill]] %s10943_s6 }
  0x29   : > { %p749_p9 = pnand %p8181_p7, %p748_p8 }
  0x2b   : > { %752 = sbr.rel (%p749_p9) target bundleno = 7615 (0x1dbf), region = 128 }
  0x30   : > { %p823_p10 = scmp.lt.s32.totalorder %s9673_s9, 1  ;;  %s10945_s3 = sld [smem:[#allocation19_spill]]  ;;  %v9494_v1 = vmov 0   ;;  %v9495_v2 = vmov 0.0   ;;  %vm9496_vm0 = vmmov 0   ;;  %v836_v5 = vlaneseq }
  0x31   : > { %9224 = vset.pattern.permute.xlu0 %v9494_v1  ;;  %8649 = vmatprep.subr.mxu0 %v9495_v2  ;;  %s10946_s8 = sld [smem:[#allocation17_spill]]  ;;  %vm844_vm1 = vcmask 130048   ;;  %vm946_vm3 = vcmask 261120   ;;  %s10875_s2 = smov 124   ;;  %vm1102_vm4 = vcmask 31744   ;;  %vm1179_vm5 = vcmask 64512  }
  0x32   : > { %s824_s5 = scalar_select %p823_p10, %s9673_s9, 1  ;;  %8672 = vmatprep.subr.bf16.mxu1 %v9495_v2  ;;  %8653 = vmatprep.mubr.msk.f32.mxu0 %vm9496_vm0, %v9495_v2  ;;  %v837_v6 = vand.u32 127, %v836_v5  ;;  %vm2003_vm6 = vcmask 64544   ;;  %vm2086_vm7 = vcmask 97344   ;;  %vm2169_vm8 = vcmask 130144  }
  0x33   : > { %8676 = vmatprep.mubr.msk.bf16.mxu1 %vm9496_vm0, %v9495_v2  ;;  %s10947_s10 = sld [smem:[#allocation22_spill]]  ;;  %s10877_s0 = smov 120   ;;  %vm2252_vm9 = vcmask 162944   ;;  %vm2335_vm10 = vcmask 195744   ;;  %vm2418_vm11 = vcmask 228544   ;;  %vm2501_vm12 = vcmask 261344  }
  0x34   : > { %s8183_s29 = sshll.u32 %s824_s5, 3  ;;  %s10948_s7 = sld [smem:[#allocation18_spill]] }
  0x35   : > { %s10950_s6 = sld [smem:[#allocation23_spill]]  ;;  %s10871_s5 = smov 108  }
  0x36   : > { %v834_v0 = vld [vmem:[%s10945_s3 + $0x8] sm:$0xff]  ;;  %v833_v3 = vld [vmem:[%s10945_s3] sm:$0xff]  ;;  %s10873_s3 = smov 116   ;;  %s10961_s30 = smov 100  }
  0x37   : > { %8650 = vmatpush3.msra.mxu0 %v834_v0  ;;  %s826_s28 = scalar_lea.vmem %s10946_s8, %s8183_s29  ;;  %s10951_s8 = sld [smem:[#allocation24_spill]] }
  0x38   : > { %8651 = vmatprep.subr.mxu0 %v9495_v2  ;;  %v832_v4 = vld [vmem:[%s826_s28] sm:$0xff]  ;;  %s10962_s12 = sld [smem:[#allocation29_spill]]  ;;  %s10891_s24 = smov 4  }
  0x39   : > { %8652 = vmatpush3.msra.mxu0 %v833_v3  ;;  %839 = vperm.xlu0 %9224, %v832_v4   ;;  %v9225_v8 = vld [vmem:[%s10947_s10 + $0x8] sm:$0xff]   ;;  %v9226_v11 = vld [vmem:[%s10947_s10] sm:$0xff]   ;;  %s10963_s26 = sld [smem:[#allocation20_spill]]  ;;  %s10887_s25 = smov 8  }
  0x3a   : > { %8656 = vmatprep.subr.bf16.mxu0 %v9495_v2  ;;  %s9725_s11 = scalar_lea.vmem %s10948_s7, %s8183_s29  ;;  %s10867_s7 = smov 104  }
  0x3b   : > { %10949 = sst [smem:[#allocation16_spill]] %s9725_s11  ;;  %v9729_v10 = vld [vmem:[%s9725_s11] sm:$0xff]  ;;  %v9227_v13 = vld [vmem:[%s10950_s6 + $0x8] sm:$0xff]   ;;  %s10865_s29 = smov 100  }
  0x3c   : > { %v9739_v12 = vpack.c.bf16 %v9729_v10, %v9729_v10  ;;  %v9228_v14 = vld [vmem:[%s10950_s6] sm:$0xff]   ;;  %s10900_s27 = smov 16   ;;  %s10894_s4 = smov 20  }
  0x3d   : > { %s10952_s28 = smov %s10951_s8  ;;  %v9229_v15 = vld [vmem:[%s10951_s8 + $0x8] sm:$0xff]   ;;  %s10869_s8 = smov 112  }
  0x3e   : > { %8673 = vmatpush3.bf16.msra.mxu1 %v9229_v15  ;;  %v9230_v16 = vld [vmem:[%s10952_s28] sm:$0xff]   ;;  %s10898_s9 = smov 24   ;;  %s10965_s13 = sld [smem:[#allocation30_spill]] }
  0x3f   : > { %8674 = vmatprep.subr.bf16.mxu1 %v9495_v2  ;;  %s10967_s14 = sld [smem:[#allocation31_spill]]  ;;  %s10975_s1 = smov 20  }
  0x40   : > { %s10971_s15 = sld [smem:[#allocation32_spill]]  ;;  %s10977_s23 = smov 28  }
  0x41   : > { %s10978_s16 = sld [smem:[#allocation33_spill]] }
  0x42   : > { %8675 = vmatpush3.bf16.msra.mxu1 %v9230_v16  ;;  %s10981_s11 = sld [smem:[#allocation30_spill]] }
  0x43   : > { %8690 = vmatprep.subr.mxu1 %v9495_v2 }
  0x45   : > { %8677 = vmatmul.mubr.msk.bf16.vlgmr.msra.gmra.mxu1 %vm946_vm3, %v9739_v12 }
  0x46   : > { %8692 = vmatprep.mubr.msk.f32.mxu1 %vm9496_vm0, %v9495_v2 }
  0xb4   : > { %v840_v7 = vpop.permute.xlu0 %839 }
  0xb5   : > { %vm841_vm2 = vcmp.eq.s32.totalorder %v840_v7, %v837_v6 }
  0xb6   : > { %v8185_v9 = vsel %vm841_vm2, 1.0, %v9495_v2 }
  0xb7   : > { %8654 = vmatmul.mubr.msk.f32.vlgmr.msra.gmra.mxu0 %vm844_vm1, %v8185_v9 }
  0xb8   : > { %8657 = vmatpush3.bf16.msra.mxu0 %v9225_v8  ;;  %8660 = vmatprep.mubr.msk.bf16.mxu0 %vm9496_vm0, %v9495_v2 }
  0xb9   : > { %8658 = vmatprep.subr.bf16.mxu0 %v9495_v2 }
  0xbc   : > { %8659 = vmatpush3.bf16.msra.mxu0 %v9226_v11 }
  0xbd   : > { %8664 = vmatprep.subr.bf16.mxu0 %v9495_v2 }
  0xbf   : > { %8661 = vmatmul.mubr.msk.bf16.vlgmr.msra.gmra.mxu0 %vm946_vm3, %v9739_v12 }
  0xc0   : > { %8665 = vmatpush3.bf16.msra.mxu0 %v9227_v13  ;;  %8668 = vmatprep.mubr.msk.bf16.mxu0 %vm9496_vm0, %v9495_v2 }
  0xc1   : > { %8666 = vmatprep.subr.bf16.mxu0 %v9495_v2 }
  0xc4   : > { %8667 = vmatpush3.bf16.msra.mxu0 %v9228_v14 }
  0xc5   : > { %8680 = vmatprep.subr.mxu0 %v9495_v2 }
  0xc7   : > { %8669 = vmatmul.mubr.msk.bf16.vlgmr.msra.gmra.mxu0 %vm946_vm3, %v9739_v12 }
  0xc8   : > { %8682 = vmatprep.mubr.msk.f32.mxu0 %vm9496_vm0, %v9495_v2 }
 0x105   : > { %v9826_v41 = vpop.f32.mrf.mxu1 }
 0x107   : > { %v8678_v42 = vpop.f32.mrf.mxu1 }
 0x109   : > { %v1099_v43 = vpop.f32.mrf.mxu1 }
 0x10b   : > { %v8679_v44 = vpop.f32.mrf.mxu1 }
 0x177   : > { %v9765_v17 = vpop.f32.mrf.mxu0 }
 0x179   : > { %v8655_v18 = vpop.f32.mrf.mxu0 }
 0x17f   : > { %v984_v19 = vpop.f32.mrf.mxu0 }
 0x180   : > { %1339 = vrot.lane.b32.xlu0 %v984_v19, %s10873_s3  ;;  %1181 = vrot.lane.b32.xlu1 %v984_v19, %s10875_s2 }
 0x181   : > { %v8662_v20 = vpop.f32.mrf.mxu0 }
 0x183   : > { %v987_v21 = vpop.f32.mrf.mxu0 }
 0x184   : > { %1497 = vrot.lane.b32.xlu0 %v984_v19, %s10871_s5  ;;  %1260 = vrot.lane.b32.xlu1 %v984_v19, %s10877_s0 }
 0x185   : > { %v8663_v22 = vpop.f32.mrf.mxu0 }
 0x187   : > { %v1040_v23 = vpop.f32.mrf.mxu0 }
 0x188   : > { %1418 = vrot.lane.b32.xlu1 %v984_v19, %s10869_s8  ;;  %1183 = vrot.lane.b32.xlu0 %v1040_v23, %s10875_s2  ;;  %s10956_s2 = smov 124  }
 0x189   : > { %8681 = vmatpush3.xpose.msk.msra.mxu0 %vm1102_vm4, %v1040_v23  ;;  %v8670_v24 = vpop.f32.mrf.mxu0 }
 0x18a   : > { %8685 = vmatprep.subr.mxu0 %v9495_v2 }
 0x18b   : > { %v1043_v25 = vpop.f32.mrf.mxu0 }
 0x18c   : > { %8683 = vmatmul.mubr.msk.f32.vlgmr.msra.gmra.mxu0 %vm1102_vm4, %v984_v19  ;;  %1262 = vrot.lane.b32.xlu1 %v1040_v23, %s10877_s0  ;;  %s10957_s0 = smov 116  }
 0x18d   : > { %1341 = vrot.lane.b32.xlu0 %v1040_v23, %s10873_s3  ;;  %v8671_v26 = vpop.f32.mrf.mxu0  ;;  %8687 = vmatprep.mubr.msk.f32.mxu0 %vm9496_vm0, %v9495_v2  ;;  %s10955_s3 = smov 120  }
 0x190   : > { %1420 = vrot.lane.b32.xlu1 %v1040_v23, %s10869_s8  ;;  %s10953_s8 = sld [smem:[#allocation21_spill]] }
 0x191   : > { %1499 = vrot.lane.b32.xlu0 %v1040_v23, %s10871_s5 }
 0x194   : > { %1578 = vrot.lane.b32.xlu1 %v1040_v23, %s10867_s7 }
 0x195   : > { %1657 = vrot.lane.b32.xlu0 %v1040_v23, %s10865_s29 }
 0x196   : > { %s10954_s5 = smov %s10953_s8  ;;  %v921_v47 = vld [vmem:[%s10953_s8] sm:$0xff]  ;;  %s10959_s8 = smov 112  }
 0x197   : > { %v922_v56 = vld [vmem:[%s10954_s5 + $0x8] sm:$0xff]  ;;  %v923_v63 = vld [vmem:[%s10954_s5 + $0x10] sm:$0xff]  ;;  %v924_v3 = vld [vmem:[%s10954_s5 + $0x18] sm:$0xff] }
 0x198   : > { %1576 = vrot.lane.b32.xlu1 %v984_v19, %s10867_s7  ;;  %v925_v11 = vld [vmem:[%s10954_s5 + $0x20] sm:$0xff]  ;;  %v926_v15 = vld [vmem:[%s10954_s5 + $0x28] sm:$0xff]  ;;  %v927_v24 = vld [vmem:[%s10954_s5 + $0x30] sm:$0xff]  ;;  %s10960_s7 = smov 104  }
 0x199   : > { %1655 = vrot.lane.b32.xlu0 %v984_v19, %s10865_s29  ;;  %s10958_s29 = smov 108  }
 0x1f2   : > { %v1340_v27 = vpop.permute.xlu0 %1339  ;;  %v1182_v28 = vpop.permute.xlu1 %1181 }
 0x1f6   : > { %v1498_v29 = vpop.permute.xlu0 %1497  ;;  %v1261_v30 = vpop.permute.xlu1 %1260 }
 0x1fa   : > { %v1419_v31 = vpop.permute.xlu1 %1418  ;;  %v1184_v32 = vpop.permute.xlu0 %1183 }
 0x1fb   : > { %8686 = vmatpush3.xpose.msk.msra.mxu0 %vm1102_vm4, %v1184_v32  ;;  %v928_v32 = vld [vmem:[%s10954_s5 + $0x38] sm:$0xff] }
 0x1fc   : > { %8695 = vmatprep.subr.mxu0 %v9495_v2 }
 0x1fe   : > { %v1263_v33 = vpop.permute.xlu1 %1262  ;;  %8688 = vmatmul.mubr.msk.f32.vlgmr.msra.gmra.mxu0 %vm1102_vm4, %v1182_v28 }
 0x1ff   : > { %v1342_v34 = vpop.permute.xlu0 %1341  ;;  %8691 = vmatpush3.xpose.msk.msra.mxu1 %vm1102_vm4, %v1263_v33  ;;  %8697 = vmatprep.mubr.msk.f32.mxu0 %vm9496_vm0, %v9495_v2 }
 0x200   : > { %8696 = vmatpush3.xpose.msk.msra.mxu0 %vm1102_vm4, %v1342_v34  ;;  %8700 = vmatprep.subr.mxu1 %v9495_v2 }
 0x201   : > { %8705 = vmatprep.subr.mxu0 %v9495_v2 }
 0x202   : > { %8693 = vmatmul.mubr.msk.f32.vlgmr.msra.gmra.mxu1 %vm1102_vm4, %v1261_v30  ;;  %v1421_v35 = vpop.permute.xlu1 %1420 }
 0x203   : > { %v1500_v36 = vpop.permute.xlu0 %1499  ;;  %8698 = vmatmul.mubr.msk.f32.vlgmr.msra.gmra.mxu0 %vm1102_vm4, %v1340_v27  ;;  %8701 = vmatpush3.xpose.msk.msra.mxu1 %vm1102_vm4, %v1421_v35 }
 0x204   : > { %8706 = vmatpush3.xpose.msk.msra.mxu0 %vm1102_vm4, %v1500_v36  ;;  %8702 = vmatprep.mubr.msk.f32.mxu1 %vm9496_vm0, %v9495_v2 }
 0x205   : > { %8707 = vmatprep.mubr.msk.f32.mxu0 %vm9496_vm0, %v9495_v2  ;;  %8710 = vmatprep.subr.mxu1 %v9495_v2 }
 0x206   : > { %8703 = vmatmul.mubr.msk.f32.vlgmr.msra.gmra.mxu1 %vm1102_vm4, %v1419_v31  ;;  %v1579_v37 = vpop.permute.xlu1 %1578  ;;  %8715 = vmatprep.subr.mxu0 %v9495_v2 }
 0x207   : > { %v1658_v38 = vpop.permute.xlu0 %1657  ;;  %8708 = vmatmul.mubr.msk.f32.vlgmr.msra.gmra.mxu0 %vm1102_vm4, %v1498_v29  ;;  %8711 = vmatpush3.xpose.msk.msra.mxu1 %vm1102_vm4, %v1579_v37 }
 0x208   : > { %8716 = vmatpush3.xpose.msk.msra.mxu0 %vm1102_vm4, %v1658_v38  ;;  %8712 = vmatprep.mubr.msk.f32.mxu1 %vm9496_vm0, %v9495_v2 }
 0x209   : > { %8717 = vmatprep.mubr.msk.f32.mxu0 %vm9496_vm0, %v9495_v2  ;;  %8720 = vmatprep.subr.mxu1 %v9495_v2 }
 0x20a   : > { %v1577_v39 = vpop.permute.xlu1 %1576  ;;  %8725 = vmatprep.subr.mxu0 %v9495_v2 }
 0x20b   : > { %v1656_v40 = vpop.permute.xlu0 %1655  ;;  %8713 = vmatmul.mubr.msk.f32.vlgmr.msra.gmra.mxu1 %vm1102_vm4, %v1577_v39 }
 0x20c   : > { %8718 = vmatmul.mubr.msk.f32.vlgmr.msra.gmra.mxu0 %vm1102_vm4, %v1656_v40  ;;  %8722 = vmatprep.mubr.msk.f32.mxu1 %vm9496_vm0, %v9495_v2 }
 0x20d   : > { %8727 = vmatprep.mubr.msk.f32.mxu0 %vm9496_vm0, %v9495_v2  ;;  %8721 = vmatpush3.msra.mxu1 %v9826_v41 }
 0x20e   : > { %8730 = vmatprep.subr.mxu1 %v9495_v2 }
 0x24c   : > { %v1175_v45 = vpop.f32.mrf.mxu0 }
 0x24d   : > { %1180 = vst.msk [vmem:[#allocation2] sm:$0xff] %vm1179_vm5, %v1175_v45 }
 0x24e   : > { %v8684_v46 = vpop.f32.mrf.mxu0 }
 0x254   : > { %v1734_v48 = vld [vmem:[#allocation2] sm:$0xff] }
 0x255   : > { %v1742_v49 = vadd.f32 %v1734_v48, %v921_v47 }
 0x257   : > { %v1750_v50 = vsel %vm1179_vm5, %v1742_v49, -inf }
 0x258   : > { %1751 = vmax.xlane.f32.xlu1 %v1750_v50 }
 0x2be   : > { %v1255_v51 = vpop.f32.mrf.mxu0 }
 0x2bf   : > { %1259 = vst.msk [vmem:[#allocation2 + $0x8] sm:$0xff] %vm1179_vm5, %v1255_v51 }
 0x2c0   : > { %v8689_v52 = vpop.f32.mrf.mxu0 }
 0x2c2   : > { %v1334_v53 = vpop.f32.mrf.mxu1 }
 0x2c3   : > { %1338 = vst.msk [vmem:[#allocation2 + $0x10] sm:$0xff] %vm1179_vm5, %v1334_v53  ;;  %v1413_v54 = vpop.f32.mrf.mxu0 }
 0x2c4   : > { %1417 = vst.msk [vmem:[#allocation2 + $0x18] sm:$0xff] %vm1179_vm5, %v1413_v54  ;;  %v8694_v55 = vpop.f32.mrf.mxu1 }
 0x2c5   : > { %v8699_v57 = vpop.f32.mrf.mxu0 }
 0x2c6   : > { %v1492_v58 = vpop.f32.mrf.mxu1  ;;  %v1735_v59 = vld [vmem:[#allocation2 + $0x8] sm:$0xff] }
 0x2c7   : > { %1496 = vst.msk [vmem:[#allocation2 + $0x20] sm:$0xff] %vm1179_vm5, %v1492_v58  ;;  %v1571_v60 = vpop.f32.mrf.mxu0  ;;  %v1743_v61 = vadd.f32 %v1735_v59, %v922_v56 }
 0x2c8   : > { %1575 = vst.msk [vmem:[#allocation2 + $0x28] sm:$0xff] %vm1179_vm5, %v1571_v60  ;;  %v8704_v62 = vpop.f32.mrf.mxu1 }
 0x2c9   : > { %v8709_v0 = vpop.f32.mrf.mxu0  ;;  %v1753_v1 = vsel %vm1179_vm5, %v1743_v61, -inf }
 0x2ca   : > { %1754 = vmax.xlane.f32.xlu0 %v1753_v1  ;;  %v1736_v4 = vld [vmem:[#allocation2 + $0x10] sm:$0xff] }
 0x2cb   : > { %v1650_v5 = vpop.f32.mrf.mxu1  ;;  %v1744_v6 = vadd.f32 %v1736_v4, %v923_v63  ;;  %v1737_v7 = vld [vmem:[#allocation2 + $0x18] sm:$0xff] }
 0x2cc   : > { %1654 = vst.msk [vmem:[#allocation2 + $0x30] sm:$0xff] %vm1179_vm5, %v1650_v5  ;;  %v1729_v8 = vpop.f32.mrf.mxu0  ;;  %v1745_v9 = vadd.f32 %v1737_v7, %v924_v3 }
 0x2cd   : > { %1733 = vst.msk [vmem:[#allocation2 + $0x38] sm:$0xff] %vm1179_vm5, %v1729_v8  ;;  %v8714_v13 = vpop.f32.mrf.mxu1  ;;  %v1756_v14 = vsel %vm1179_vm5, %v1744_v6, -inf }
 0x2ce   : > { %v8719_v16 = vpop.f32.mrf.mxu0  ;;  %1757 = vmax.xlane.f32.xlu0 %v1756_v14  ;;  %v1759_v18 = vsel %vm1179_vm5, %v1745_v9, -inf  ;;  %v1738_v19 = vld [vmem:[#allocation2 + $0x20] sm:$0xff] }
 0x2cf   : > { %1760 = vmax.xlane.f32.xlu1 %v1759_v18  ;;  %v1746_v20 = vadd.f32 %v1738_v19, %v925_v11  ;;  %v1739_v21 = vld [vmem:[#allocation2 + $0x28] sm:$0xff] }
 0x2d0   : > { %v1747_v22 = vadd.f32 %v1739_v21, %v926_v15 }
 0x2d1   : > { %v1762_v23 = vsel %vm1179_vm5, %v1746_v20, -inf }
 0x2d2   : > { %1763 = vmax.xlane.f32.xlu0 %v1762_v23  ;;  %v1765_v25 = vsel %vm1179_vm5, %v1747_v22, -inf }
 0x2d3   : > { %1766 = vmax.xlane.f32.xlu1 %v1765_v25  ;;  %v1740_v26 = vld [vmem:[#allocation2 + $0x30] sm:$0xff] }
 0x2d4   : > { %v1748_v27 = vadd.f32 %v1740_v26, %v927_v24  ;;  %v1741_v33 = vld [vmem:[#allocation2 + $0x38] sm:$0xff] }
 0x2d5   : > { %v1749_v34 = vadd.f32 %v1741_v33, %v928_v32 }
 0x2d6   : > { %v1768_v28 = vsel %vm1179_vm5, %v1748_v27, -inf }
 0x2d7   : > { %1769 = vmax.xlane.f32.xlu0 %v1768_v28  ;;  %v1771_v35 = vsel %vm1179_vm5, %v1749_v34, -inf }
 0x2e1   : > { %v1752_v29 = vpop.xlane.xlu1 %1751 }
 0x2e2   : > { %v1774_v30 = vsub.f32 %v1742_v49, %v1752_v29 }
 0x2e4   : > { %2006 = vrot.lane.b32.xlu1 %v9826_v41, %s10955_s3  ;;  %v1782_v31 = vmul.f32 1.442695, %v1774_v30 }
 0x2e6   : > { %9279 = vpow2.f32 %v1782_v31 }
 0x2ed   : > { %1923 = vrot.lane.b32.xlu0 %v9826_v41, %s10956_s2 }
 0x2f3   : > { %v9874_v36 = vpop.eup %9279 }
 0x2f4   : > { %v1798_v37 = vsel %vm1179_vm5, %v9874_v36, 0.0 }
 0x308   : > { %1772 = vmax.xlane.f32.xlu1 %v1771_v35 }
 0x30c   : > { %1799 = vadd.xlane.f32.xlu0 %v1798_v37 }
 0x319   : > { %2089 = vrot.lane.b32.xlu1 %v9826_v41, %s10957_s0 }
 0x353   : > { %v1755_v38 = vpop.xlane.xlu0 %1754 }
 0x354   : > { %v1775_v39 = vsub.f32 %v1743_v61, %v1755_v38 }
 0x356   : > { %v1784_v40 = vmul.f32 1.442695, %v1775_v39 }
 0x357   : > { %v1758_v42 = vpop.xlane.xlu0 %1757 }
 0x358   : > { %9281 = vpow2.f32 %v1784_v40  ;;  %v1776_v43 = vsub.f32 %v1744_v6, %v1758_v42  ;;  %v1761_v44 = vpop.xlane.xlu1 %1760 }
 0x359   : > { %v1777_v45 = vsub.f32 %v1745_v9, %v1761_v44 }
 0x35a   : > { %v1786_v46 = vmul.f32 1.442695, %v1776_v43 }
 0x35b   : > { %v1788_v47 = vmul.f32 1.442695, %v1777_v45  ;;  %v1764_v48 = vpop.xlane.xlu0 %1763 }
 0x35c   : > { %9283 = vpow2.f32 %v1786_v46  ;;  %v1778_v49 = vsub.f32 %v1746_v20, %v1764_v48  ;;  %v1767_v50 = vpop.xlane.xlu1 %1766 }
 0x35d   : > { %9285 = vpow2.f32 %v1788_v47  ;;  %v1779_v51 = vsub.f32 %v1747_v22, %v1767_v50 }
 0x35e   : > { %v1790_v52 = vmul.f32 1.442695, %v1778_v49 }
 0x35f   : > { %v1792_v53 = vmul.f32 1.442695, %v1779_v51 }
 0x360   : > { %9287 = vpow2.f32 %v1790_v52  ;;  %v1770_v54 = vpop.xlane.xlu0 %1769  ;;  %v2007_v7 = vpop.permute.xlu1 %2006  ;;  %v9231_v52 = vld [vmem:[%s10962_s12 + $0x8] sm:$0xff]  }
 0x361   : > { %9289 = vpow2.f32 %v1792_v53  ;;  %v1780_v55 = vsub.f32 %v1748_v27, %v1770_v54  ;;  %v918_v53 = vmul.f32 5.656854, %v9765_v17  ;;  %v835_v54 = vld [vmem:[%s10963_s26] sm:$0xff]  ;;  %s10889_s26 = smov 12  }
 0x363   : > { %v1794_v56 = vmul.f32 1.442695, %v1780_v55 }
 0x364   : > { %v1924_v57 = vpop.permute.xlu0 %1923 }
 0x365   : > { %v9282_v58 = vpop.eup %9281  ;;  %9291 = vpow2.f32 %v1794_v56  ;;  %8726 = vmatpush3.msra.mxu0 %v1924_v57  ;;  %v9232_v56 = vld [vmem:[%s10962_s12] sm:$0xff]   ;;  %v919_v57 = vadd.f32 %v918_v53, %v835_v54  ;;  %v9237_v54 = vld [vmem:[%s10967_s14 + $0x8] sm:$0xff]   ;;  %s10986_s12 = sld [smem:[#allocation26_spill]] }
 0x366   : > { %v1801_v59 = vsel %vm1179_vm5, %v9282_v58, 0.0  ;;  %8735 = vmatprep.subr.mxu0 %v9495_v2 }
 0x367   : > { %1802 = vadd.xlane.f32.xlu1 %v1801_v59  ;;  %v2645_v17 = vpack.c.bf16 %v919_v57, %v919_v57 }
 0x369   : > { %v9284_v60 = vpop.eup %9283 }
 0x36a   : > { %v9286_v61 = vpop.eup %9285  ;;  %v1804_v62 = vsel %vm1179_vm5, %v9284_v60, 0.0 }
 0x36b   : > { %1805 = vadd.xlane.f32.xlu0 %v1804_v62  ;;  %v1807_v63 = vsel %vm1179_vm5, %v9286_v61, 0.0 }
 0x36c   : > { %1808 = vadd.xlane.f32.xlu1 %v1807_v63 }
 0x36d   : > { %v9288_v0 = vpop.eup %9287 }
 0x36e   : > { %v9290_v1 = vpop.eup %9289  ;;  %v1810_v3 = vsel %vm1179_vm5, %v9288_v0, 0.0 }
 0x36f   : > { %1811 = vadd.xlane.f32.xlu0 %v1810_v3  ;;  %v1813_v4 = vsel %vm1179_vm5, %v9290_v1, 0.0 }
 0x370   : > { %1814 = vadd.xlane.f32.xlu1 %v1813_v4 }
 0x372   : > { %v9292_v5 = vpop.eup %9291 }
 0x373   : > { %v1816_v6 = vsel %vm1179_vm5, %v9292_v5, 0.0 }
 0x374   : > { %1817 = vadd.xlane.f32.xlu0 %v1816_v6 }
 0x381   : > { %2255 = vrot.lane.b32.xlu1 %v9826_v41, %s10958_s29 }
 0x38a   : > { %2172 = vrot.lane.b32.xlu0 %v9826_v41, %s10959_s8 }
 0x38e   : > { %2338 = vrot.lane.b32.xlu0 %v9826_v41, %s10960_s7 }
 0x391   : > { %v1773_v8 = vpop.xlane.xlu1 %1772 }
 0x392   : > { %v1781_v9 = vsub.f32 %v1749_v34, %v1773_v8 }
 0x394   : > { %v1796_v11 = vmul.f32 1.442695, %v1781_v9 }
 0x395   : > { %v1800_v13 = vpop.xlane.xlu0 %1799  ;;  %v2090_v20 = vpop.permute.xlu1 %2089 }
 0x396   : > { %9293 = vpow2.f32 %v1796_v11 }
 0x397   : > { %9295 = vrcp.f32 %v1800_v13 }
 0x3a3   : > { %v9893_v14 = vpop.eup %9293 }
 0x3a4   : > { %v9296_v15 = vpop.eup %9295  ;;  %v1819_v16 = vsel %vm1179_vm5, %v9893_v14, 0.0 }
 0x3a5   : > { %v1823_v18 = vmul.f32 %v9296_v15, %v9874_v36  ;;  %1820 = vadd.xlane.f32.xlu1 %v1819_v16 }
 0x3a7   : > { %1838 = vst.msk [vmem:[#allocation2] sm:$0xff] %vm1179_vm5, %v1823_v18 }
 0x3ae   : > { %v1846_v19 = vld [vmem:[#allocation2] sm:$0xff] }
 0x3af   : > { %8723 = vmatmul.mubr.msk.f32.vlgmr.msra.gmra.mxu1 %vm1179_vm5, %v1846_v19 }
 0x3b0   : > { %8731 = vmatpush3.msra.mxu1 %v2007_v7  ;;  %8732 = vmatprep.mubr.msk.f32.mxu1 %vm9496_vm0, %v9495_v2 }
 0x3b1   : > { %8740 = vmatprep.subr.mxu1 %v9495_v2 }
 0x3b6   : > { %2421 = vrot.lane.b32.xlu1 %v9826_v41, %s10961_s30 }
 0x3f0   : > { %v1803_v21 = vpop.xlane.xlu1 %1802 }
 0x3f1   : > { %9297 = vrcp.f32 %v1803_v21 }
 0x3f4   : > { %v1806_v22 = vpop.xlane.xlu0 %1805 }
 0x3f5   : > { %9299 = vrcp.f32 %v1806_v22  ;;  %v1809_v23 = vpop.xlane.xlu1 %1808 }
 0x3f6   : > { %9301 = vrcp.f32 %v1809_v23 }
 0x3f8   : > { %v1812_v24 = vpop.xlane.xlu0 %1811 }
 0x3f9   : > { %9303 = vrcp.f32 %v1812_v24  ;;  %v1815_v25 = vpop.xlane.xlu1 %1814 }
 0x3fa   : > { %9305 = vrcp.f32 %v1815_v25 }
 0x3fd   : > { %v1818_v26 = vpop.xlane.xlu0 %1817  ;;  %v2256_v43 = vpop.permute.xlu1 %2255 }
 0x3fe   : > { %v9298_v27 = vpop.eup %9297  ;;  %9307 = vrcp.f32 %v1818_v26 }
 0x3ff   : > { %v1825_v28 = vmul.f32 %v9298_v27, %v9282_v58 }
 0x401   : > { %1839 = vst.msk [vmem:[#allocation2 + $0x8] sm:$0xff] %vm1179_vm5, %v1825_v28  ;;  %v2173_v38 = vpop.permute.xlu0 %2172  ;;  %v9235_v28 = vld [vmem:[%s10965_s13 + $0x8] sm:$0xff]  }
 0x402   : > { %v9300_v29 = vpop.eup %9299 }
 0x403   : > { %v9302_v30 = vpop.eup %9301  ;;  %v1827_v41 = vmul.f32 %v9300_v29, %v9284_v60 }
 0x404   : > { %v1829_v31 = vmul.f32 %v9302_v30, %v9286_v61  ;;  %v9236_v30 = vld [vmem:[%s10965_s13] sm:$0xff]   ;;  %s10980_s13 = smov 28  }
 0x405   : > { %1840 = vst.msk [vmem:[#allocation2 + $0x10] sm:$0xff] %vm1179_vm5, %v1827_v41  ;;  %v2339_v45 = vpop.permute.xlu0 %2338 }
 0x406   : > { %v9304_v32 = vpop.eup %9303  ;;  %1841 = vst.msk [vmem:[#allocation2 + $0x18] sm:$0xff] %vm1179_vm5, %v1829_v31 }
 0x407   : > { %v9306_v33 = vpop.eup %9305  ;;  %v1831_v34 = vmul.f32 %v9304_v32, %v9288_v0 }
 0x408   : > { %v1833_v35 = vmul.f32 %v9306_v33, %v9290_v1  ;;  %v1921_v36 = vld [vmem:[#allocation2 + $0x8] sm:$0xff] }
 0x409   : > { %1842 = vst.msk [vmem:[#allocation2 + $0x20] sm:$0xff] %vm1179_vm5, %v1831_v34  ;;  %8728 = vmatmul.mubr.msk.f32.vlgmr.msra.gmra.mxu0 %vm1179_vm5, %v1921_v36 }
 0x40a   : > { %1843 = vst.msk [vmem:[#allocation2 + $0x28] sm:$0xff] %vm1179_vm5, %v1833_v35  ;;  %8736 = vmatpush3.msra.mxu0 %v2090_v20  ;;  %8737 = vmatprep.mubr.msk.f32.mxu0 %vm9496_vm0, %v9495_v2 }
 0x40b   : > { %v9308_v37 = vpop.eup %9307  ;;  %8745 = vmatprep.subr.mxu0 %v9495_v2 }
 0x40c   : > { %v1835_v39 = vmul.f32 %v9308_v37, %v9292_v5  ;;  %v2005_v40 = vld [vmem:[#allocation2 + $0x10] sm:$0xff] }
 0x40d   : > { %8733 = vmatmul.mubr.msk.f32.vlgmr.msra.gmra.mxu1 %vm1179_vm5, %v2005_v40  ;;  %v2088_v42 = vld [vmem:[#allocation2 + $0x18] sm:$0xff] }
 0x40e   : > { %1844 = vst.msk [vmem:[#allocation2 + $0x30] sm:$0xff] %vm1179_vm5, %v1835_v39  ;;  %8738 = vmatmul.mubr.msk.f32.vlgmr.msra.gmra.mxu0 %vm1179_vm5, %v2088_v42  ;;  %8741 = vmatpush3.msra.mxu1 %v2173_v38 }
 0x40f   : > { %8746 = vmatpush3.msra.mxu0 %v2256_v43  ;;  %8742 = vmatprep.mubr.msk.f32.mxu1 %vm9496_vm0, %v9495_v2 }
 0x410   : > { %8747 = vmatprep.mubr.msk.f32.mxu0 %vm9496_vm0, %v9495_v2  ;;  %8750 = vmatprep.subr.mxu1 %v9495_v2  ;;  %v2171_v44 = vld [vmem:[#allocation2 + $0x20] sm:$0xff] }
 0x411   : > { %8743 = vmatmul.mubr.msk.f32.vlgmr.msra.gmra.mxu1 %vm1179_vm5, %v2171_v44  ;;  %v2254_v46 = vld [vmem:[#allocation2 + $0x28] sm:$0xff]  ;;  %8755 = vmatprep.subr.mxu0 %v9495_v2 }
 0x412   : > { %8748 = vmatmul.mubr.msk.f32.vlgmr.msra.gmra.mxu0 %vm1179_vm5, %v2254_v46  ;;  %8751 = vmatpush3.msra.mxu1 %v2339_v45 }
 0x413   : > { %8752 = vmatprep.mubr.msk.f32.mxu1 %vm9496_vm0, %v9495_v2  ;;  %8757 = vmatprep.mubr.msk.f32.mxu0 %vm9496_vm0, %v9495_v2 }
 0x414   : > { %8760 = vmatprep.subr.bf16.mxu1 %v9495_v2 }
 0x415   : > { %v2337_v47 = vld [vmem:[#allocation2 + $0x30] sm:$0xff] }
 0x416   : > { %8753 = vmatmul.mubr.msk.f32.vlgmr.msra.gmra.mxu1 %vm1179_vm5, %v2337_v47 }
 0x417   : > { %8764 = vmatprep.mubr.msk.bf16.mxu1 %vm9496_vm0, %v9495_v2 }
 0x42e   : > { %v1821_v48 = vpop.xlane.xlu1 %1820 }
 0x42f   : > { %9309 = vrcp.f32 %v1821_v48 }
 0x432   : > { %v2422_v49 = vpop.permute.xlu1 %2421 }
 0x433   : > { %8756 = vmatpush3.msra.mxu0 %v2422_v49 }
 0x434   : > { %8768 = vmatprep.subr.bf16.mxu0 %v9495_v2 }
 0x43c   : > { %v9310_v50 = vpop.eup %9309 }
 0x43d   : > { %v1837_v51 = vmul.f32 %v9310_v50, %v9893_v14 }
 0x43f   : > { %1845 = vst.msk [vmem:[#allocation2 + $0x38] sm:$0xff] %vm1179_vm5, %v1837_v51 }
 0x446   : > { %v2420_v55 = vld [vmem:[#allocation2 + $0x38] sm:$0xff] }
 0x447   : > { %8758 = vmatmul.mubr.msk.f32.vlgmr.msra.gmra.mxu0 %vm1179_vm5, %v2420_v55  ;;  %v9238_v55 = vld [vmem:[%s10967_s14] sm:$0xff]   ;;  %s10973_s14 = smov 12  }
 0x448   : > { %8769 = vmatpush3.bf16.msra.mxu0 %v9231_v52  ;;  %8772 = vmatprep.mubr.msk.bf16.mxu0 %vm9496_vm0, %v9495_v2 }
 0x449   : > { %8770 = vmatprep.subr.bf16.mxu0 %v9495_v2 }
 0x44c   : > { %8771 = vmatpush3.bf16.msra.mxu0 %v9232_v56 }
 0x44d   : > { %8784 = vmatprep.subr.bf16.mxu0 %v9495_v2 }
 0x44f   : > { %8773 = vmatmul.mubr.msk.bf16.vlgmr.msra.gmra.mxu0 %vm946_vm3, %v2645_v17 }
 0x450   : > { %8788 = vmatprep.mubr.msk.bf16.mxu0 %vm9496_vm0, %v9495_v2  ;;  %8785 = vmatpush3.bf16.msra.mxu0 %v9237_v54 }
 0x451   : > { %8786 = vmatprep.subr.bf16.mxu0 %v9495_v2 }
 0x454   : > { %8787 = vmatpush3.bf16.msra.mxu0 %v9238_v55 }
 0x455   : > { %8797 = vmatprep.subr.mxu0 %v9495_v2 }
 0x46f   : > { %v1916_v58 = vpop.f32.mrf.mxu1 }
 0x470   : > { %1920 = vst.msk [vmem:[#allocation3] sm:$0xff] %vm1102_vm4, %v1916_v58 }
 0x471   : > { %v8724_v59 = vpop.f32.mrf.mxu1 }
 0x4c9   : > { %v1995_v60 = vpop.f32.mrf.mxu0 }
 0x4ca   : > { %2000 = vrot.lane.b32.xlu0 %v1995_v60, %s10891_s24  ;;  %s10970_s24 = smov 4  }
 0x4cb   : > { %v8729_v61 = vpop.f32.mrf.mxu0 }
 0x4cd   : > { %v2078_v62 = vpop.f32.mrf.mxu1 }
 0x4ce   : > { %v2161_v63 = vpop.f32.mrf.mxu0  ;;  %2083 = vrot.lane.b32.xlu1 %v2078_v62, %s10887_s25  ;;  %s10968_s25 = sld [smem:[#allocation27_spill]] }
 0x4cf   : > { %2166 = vrot.lane.b32.xlu0 %v2161_v63, %s10889_s26  ;;  %v8734_v0 = vpop.f32.mrf.mxu1  ;;  %s10964_s26 = sld [smem:[#allocation25_spill]] }
 0x4d0   : > { %v8739_v1 = vpop.f32.mrf.mxu0 }
 0x4d1   : > { %v2244_v3 = vpop.f32.mrf.mxu1 }
 0x4d2   : > { %v2327_v4 = vpop.f32.mrf.mxu0  ;;  %2249 = vrot.lane.b32.xlu1 %v2244_v3, %s10900_s27  ;;  %s10969_s27 = sld [smem:[#allocation28_spill]] }
 0x4d3   : > { %2332 = vrot.lane.b32.xlu0 %v2327_v4, %s10894_s4  ;;  %v8744_v5 = vpop.f32.mrf.mxu1  ;;  %s10896_s4 = smov 28  }
 0x4d4   : > { %v8749_v6 = vpop.f32.mrf.mxu0  ;;  %v8224_v1 = vld [vmem:[%s10968_s25] ss:$0 sm:$0xff]  ;;  %s10972_s25 = smov 8  }
 0x4d5   : > { %v9233_v9 = vld [vmem:[%s10964_s26 + $0x8] sm:$0xff]   ;;  %v9234_v11 = vld [vmem:[%s10964_s26] sm:$0xff]  }
 0x4d6   : > { %v2410_v7 = vpop.f32.mrf.mxu1  ;;  %8761 = vmatpush3.bf16.msra.mxu1 %v9233_v9 }
 0x4d7   : > { %2415 = vrot.lane.b32.xlu1 %v2410_v7, %s10898_s9  ;;  %8762 = vmatprep.subr.bf16.mxu1 %v9495_v2 }
 0x4d8   : > { %v8754_v8 = vpop.f32.mrf.mxu1  ;;  %v8225_v4 = vld [vmem:[%s10969_s27] ss:$0 sm:$0xff]  ;;  %s10976_s27 = smov 24  }
 0x4da   : > { %8763 = vmatpush3.bf16.msra.mxu1 %v9234_v11 }
 0x4db   : > { %8776 = vmatprep.subr.bf16.mxu1 %v9495_v2 }
 0x507   : > { %v2493_v13 = vpop.f32.mrf.mxu0 }
 0x508   : > { %2498 = vrot.lane.b32.xlu0 %v2493_v13, %s10896_s4  ;;  %s10966_s4 = sld [smem:[#allocation26_spill]] }
 0x509   : > { %v8759_v14 = vpop.f32.mrf.mxu0 }
 0x50e   : > { %v8220_v41 = vld [vmem:[%s10966_s4] ss:$0 sm:$0xff]  ;;  %s10974_s4 = smov 16  }
 0x50f   : > { %v9970_v15 = vpop.f32.mrf.mxu0 }
 0x511   : > { %v8774_v16 = vpop.f32.mrf.mxu0 }
 0x513   : > { %v2698_v18 = vpop.f32.mrf.mxu0 }
 0x515   : > { %v8775_v19 = vpop.f32.mrf.mxu0 }
 0x53c   : > { %v2001_v20 = vpop.permute.xlu0 %2000 }
 0x53d   : > { %2004 = vst.msk [vmem:[#allocation3] sm:$0xff] %vm2003_vm6, %v2001_v20 }
 0x540   : > { %v2084_v21 = vpop.permute.xlu1 %2083 }
 0x541   : > { %2087 = vst.msk [vmem:[#allocation3] sm:$0xff] %vm2086_vm7, %v2084_v21  ;;  %v2167_v22 = vpop.permute.xlu0 %2166 }
 0x542   : > { %2170 = vst.msk [vmem:[#allocation3] sm:$0xff] %vm2169_vm8, %v2167_v22 }
 0x544   : > { %v2250_v23 = vpop.permute.xlu1 %2249 }
 0x545   : > { %2253 = vst.msk [vmem:[#allocation3] sm:$0xff] %vm2252_vm9, %v2250_v23  ;;  %v2333_v24 = vpop.permute.xlu0 %2332 }
 0x546   : > { %2336 = vst.msk [vmem:[#allocation3] sm:$0xff] %vm2335_vm10, %v2333_v24 }
 0x549   : > { %v2416_v25 = vpop.permute.xlu1 %2415 }
 0x54a   : > { %2419 = vst.msk [vmem:[#allocation3] sm:$0xff] %vm2418_vm11, %v2416_v25 }
 0x57a   : > { %v2499_v26 = vpop.permute.xlu0 %2498 }
 0x57b   : > { %2502 = vst.msk [vmem:[#allocation3] sm:$0xff] %vm2501_vm12, %v2499_v26 }
 0x582   : > { %v2503_v27 = vld [vmem:[#allocation3] sm:$0xff] }
 0x583   : > { %v2508_v29 = vpack.c.bf16 %v2503_v27, %v2503_v27 }
 0x585   : > { %8765 = vmatmul.mubr.msk.bf16.vlgmr.msra.gmra.mxu1 %vm946_vm3, %v2508_v29 }
 0x586   : > { %8777 = vmatpush3.bf16.msra.mxu1 %v9235_v28  ;;  %8780 = vmatprep.mubr.msk.bf16.mxu1 %vm9496_vm0, %v9495_v2 }
 0x587   : > { %8778 = vmatprep.subr.bf16.mxu1 %v9495_v2 }
 0x58a   : > { %8779 = vmatpush3.bf16.msra.mxu1 %v9236_v30 }
 0x58b   : > { %8792 = vmatprep.subr.mxu1 %v9495_v2 }
 0x58d   : > { %8781 = vmatmul.mubr.msk.bf16.vlgmr.msra.gmra.mxu1 %vm946_vm3, %v9739_v12 }
 0x58e   : > { %8794 = vmatprep.mubr.msk.f32.mxu1 %vm9496_vm0, %v9495_v2 }
 0x645   : > { %v2565_v31 = vpop.f32.mrf.mxu1 }
 0x646   : > { %v2566_v32 = vadd.f32 %v8220_v41, %v2565_v31 }
 0x647   : > { %v8766_v33 = vpop.f32.mrf.mxu1 }
 0x648   : > { %v2571_v34 = vadd.f32 %v2566_v32, %v9729_v10 }
 0x649   : > { %v2568_v35 = vpop.f32.mrf.mxu1 }
 0x64a   : > { %v2574_v36 = vsel %vm946_vm3, %v2571_v34, 0.0 }
 0x64b   : > { %2575 = vadd.xlane.f32.xlu1 %v2574_v36  ;;  %v8767_v37 = vpop.f32.mrf.mxu1 }
 0x64d   : > { %v2747_v38 = vpop.f32.mrf.mxu1 }
 0x64e   : > { %8793 = vmatpush3.xpose.msk.msra.mxu1 %vm1102_vm4, %v2747_v38 }
 0x64f   : > { %8802 = vmatprep.subr.mxu1 %v9495_v2  ;;  %v8782_v39 = vpop.f32.mrf.mxu1 }
 0x651   : > { %8795 = vmatmul.mubr.msk.f32.vlgmr.msra.gmra.mxu1 %vm1102_vm4, %v9970_v15  ;;  %v2750_v40 = vpop.f32.mrf.mxu1 }
 0x652   : > { %8804 = vmatprep.mubr.msk.f32.mxu1 %vm9496_vm0, %v9495_v2 }
 0x653   : > { %v8783_v42 = vpop.f32.mrf.mxu1 }
 0x65c   : > { %2886 = vrot.lane.b32.xlu1 %v9970_v15, %s10956_s2 }
 0x660   : > { %2967 = vrot.lane.b32.xlu1 %v2747_v38, %s10955_s3 }
 0x664   : > { %2965 = vrot.lane.b32.xlu1 %v9970_v15, %s10955_s3 }
 0x668   : > { %3125 = vrot.lane.b32.xlu1 %v2747_v38, %s10959_s8 }
 0x66c   : > { %3123 = vrot.lane.b32.xlu1 %v9970_v15, %s10959_s8 }
 0x670   : > { %3283 = vrot.lane.b32.xlu1 %v2747_v38, %s10960_s7 }
 0x674   : > { %3281 = vrot.lane.b32.xlu1 %v9970_v15, %s10960_s7 }
 0x6d4   : > { %v2576_v10 = vpop.xlane.xlu1 %2575 }
 0x6d5   : > { %v2578_v43 = vmul.f32 0.03125, %v2576_v10 }
 0x6d7   : > { %v2579_v44 = vsub.f32 %v2571_v34, %v2578_v43 }
 0x6d8   : > { %v2887_v45 = vpop.permute.xlu1 %2886 }
 0x6d9   : > { %v2580_v46 = vmul.f32 %v2579_v44, %v2579_v44 }
 0x6db   : > { %v2581_v47 = vsel %vm946_vm3, %v2580_v46, 0.0 }
 0x6dc   : > { %2582 = vadd.xlane.f32.xlu0 %v2581_v47  ;;  %v2968_v48 = vpop.permute.xlu1 %2967 }
 0x6dd   : > { %8803 = vmatpush3.xpose.msk.msra.mxu1 %vm1102_vm4, %v2968_v48 }
 0x6de   : > { %8812 = vmatprep.subr.mxu1 %v9495_v2 }
 0x6e0   : > { %v2966_v49 = vpop.permute.xlu1 %2965 }
 0x6e1   : > { %8805 = vmatmul.mubr.msk.f32.vlgmr.msra.gmra.mxu1 %vm1102_vm4, %v2966_v49 }
 0x6e2   : > { %8814 = vmatprep.mubr.msk.f32.mxu1 %vm9496_vm0, %v9495_v2 }
 0x6e4   : > { %v3126_v50 = vpop.permute.xlu1 %3125 }
 0x6e5   : > { %8813 = vmatpush3.xpose.msk.msra.mxu1 %vm1102_vm4, %v3126_v50 }
 0x6e6   : > { %8822 = vmatprep.subr.mxu1 %v9495_v2 }
 0x6e8   : > { %v3124_v51 = vpop.permute.xlu1 %3123 }
 0x6e9   : > { %8815 = vmatmul.mubr.msk.f32.vlgmr.msra.gmra.mxu1 %vm1102_vm4, %v3124_v51 }
 0x6ea   : > { %8824 = vmatprep.mubr.msk.f32.mxu1 %vm9496_vm0, %v9495_v2 }
 0x6ec   : > { %v3284_v52 = vpop.permute.xlu1 %3283 }
 0x6ed   : > { %8823 = vmatpush3.xpose.msk.msra.mxu1 %vm1102_vm4, %v3284_v52 }
 0x6ee   : > { %8832 = vmatprep.subr.mxu1 %v9495_v2 }
 0x6f0   : > { %v3282_v53 = vpop.permute.xlu1 %3281 }
 0x6f1   : > { %8825 = vmatmul.mubr.msk.f32.vlgmr.msra.gmra.mxu1 %vm1102_vm4, %v3282_v53 }
 0x6f2   : > { %2888 = vrot.lane.b32.xlu0 %v2747_v38, %s10956_s2  ;;  %8834 = vmatprep.mubr.msk.f32.mxu1 %vm9496_vm0, %v9495_v2 }
 0x6f6   : > { %3046 = vrot.lane.b32.xlu0 %v2747_v38, %s10957_s0 }
 0x6fa   : > { %3044 = vrot.lane.b32.xlu0 %v9970_v15, %s10957_s0 }
 0x6fe   : > { %3204 = vrot.lane.b32.xlu0 %v2747_v38, %s10958_s29 }
 0x702   : > { %3202 = vrot.lane.b32.xlu0 %v9970_v15, %s10958_s29 }
 0x706   : > { %3362 = vrot.lane.b32.xlu0 %v2747_v38, %s10961_s30 }
 0x70a   : > { %3360 = vrot.lane.b32.xlu0 %v9970_v15, %s10961_s30 }
 0x711   : > { %v2881_v56 = vpop.f32.mrf.mxu1 }
 0x712   : > { %2885 = vst.msk [vmem:[#allocation2] sm:$0xff] %vm1179_vm5, %v2881_v56 }
 0x713   : > { %v8796_v57 = vpop.f32.mrf.mxu1 }
 0x719   : > { %v3439_v17 = vld [vmem:[#allocation2] sm:$0xff] }
 0x71a   : > { %v3447_v58 = vsel %vm1179_vm5, %v3439_v17, -inf }
 0x71b   : > { %3448 = vmax.xlane.f32.xlu1 %v3447_v58 }
 0x765   : > { %v2583_v59 = vpop.xlane.xlu0 %2582 }
 0x766   : > { %v2584_v60 = vmul.f32 0.03125, %v2583_v59 }
 0x768   : > { %v2585_v61 = vadd.f32 1e-05, %v2584_v60 }
 0x769   : > { %v2889_v62 = vpop.permute.xlu0 %2888 }
 0x76a   : > { %9311 = vrsqrt.f32 %v2585_v61 }
 0x76d   : > { %v3047_v63 = vpop.permute.xlu0 %3046 }
 0x771   : > { %v3045_v6 = vpop.permute.xlu0 %3044 }
 0x775   : > { %v3205_v9 = vpop.permute.xlu0 %3204 }
 0x777   : > { %v9312_v0 = vpop.eup %9311 }
 0x778   : > { %v2587_v3 = vmul.f32 %v9312_v0, %v2579_v44 }
 0x779   : > { %v3203_v11 = vpop.permute.xlu0 %3202 }
 0x77a   : > { %v2594_v5 = vmul.f32 %v8224_v1, %v2587_v3 }
 0x77c   : > { %v10058_v7 = vadd.f32 %v8225_v4, %v2594_v5 }
 0x77d   : > { %v3363_v13 = vpop.permute.xlu0 %3362 }
 0x77e   : > { %v2753_v8 = vpack.c.bf16 %v10058_v7, %v10058_v7 }
 0x780   : > { %8789 = vmatmul.mubr.msk.bf16.vlgmr.msra.gmra.mxu0 %vm946_vm3, %v2753_v8 }
 0x781   : > { %8798 = vmatpush3.xpose.msk.msra.mxu0 %vm1102_vm4, %v2889_v62  ;;  %8799 = vmatprep.mubr.msk.f32.mxu0 %vm9496_vm0, %v9495_v2  ;;  %v3361_v14 = vpop.permute.xlu0 %3360 }
 0x782   : > { %8807 = vmatprep.subr.mxu0 %v9495_v2 }
 0x788   : > { %8800 = vmatmul.mubr.msk.f32.vlgmr.msra.gmra.mxu0 %vm1102_vm4, %v2887_v45 }
 0x789   : > { %8808 = vmatpush3.xpose.msk.msra.mxu0 %vm1102_vm4, %v3047_v63  ;;  %8809 = vmatprep.mubr.msk.f32.mxu0 %vm9496_vm0, %v9495_v2 }
 0x78a   : > { %8817 = vmatprep.subr.mxu0 %v9495_v2 }
 0x78c   : > { %8810 = vmatmul.mubr.msk.f32.vlgmr.msra.gmra.mxu0 %vm1102_vm4, %v3045_v6 }
 0x78d   : > { %8818 = vmatpush3.xpose.msk.msra.mxu0 %vm1102_vm4, %v3205_v9  ;;  %8819 = vmatprep.mubr.msk.f32.mxu0 %vm9496_vm0, %v9495_v2 }
 0x78e   : > { %8827 = vmatprep.subr.mxu0 %v9495_v2 }
 0x790   : > { %8820 = vmatmul.mubr.msk.f32.vlgmr.msra.gmra.mxu0 %vm1102_vm4, %v3203_v11 }
 0x791   : > { %8828 = vmatpush3.xpose.msk.msra.mxu0 %vm1102_vm4, %v3363_v13  ;;  %8829 = vmatprep.mubr.msk.f32.mxu0 %vm9496_vm0, %v9495_v2 }
 0x792   : > { %8837 = vmatprep.subr.mxu0 %v9495_v2 }
 0x794   : > { %8830 = vmatmul.mubr.msk.f32.vlgmr.msra.gmra.mxu0 %vm1102_vm4, %v3361_v14 }
 0x795   : > { %8839 = vmatprep.mubr.msk.f32.mxu0 %vm9496_vm0, %v9495_v2 }
 0x7a1   : > { %v3039_v15 = vpop.f32.mrf.mxu1 }
 0x7a2   : > { %3043 = vst.msk [vmem:[#allocation2 + $0x10] sm:$0xff] %vm1179_vm5, %v3039_v15 }
 0x7a3   : > { %v8806_v16 = vpop.f32.mrf.mxu1 }
 0x7a4   : > { %v3449_v25 = vpop.xlane.xlu1 %3448 }
 0x7a5   : > { %v3471_v28 = vsub.f32 %v3439_v17, %v3449_v25 }
 0x7a7   : > { %v3479_v41 = vmul.f32 1.442695, %v3471_v28 }
 0x7a9   : > { %v3197_v18 = vpop.f32.mrf.mxu1  ;;  %9313 = vpow2.f32 %v3479_v41  ;;  %v3441_v36 = vld [vmem:[#allocation2 + $0x10] sm:$0xff] }
 0x7aa   : > { %3201 = vst.msk [vmem:[#allocation2 + $0x20] sm:$0xff] %vm1179_vm5, %v3197_v18  ;;  %v3453_v39 = vsel %vm1179_vm5, %v3441_v36, -inf }
 0x7ab   : > { %v8816_v19 = vpop.f32.mrf.mxu1 }
 0x7b1   : > { %v3355_v20 = vpop.f32.mrf.mxu1  ;;  %v3443_v10 = vld [vmem:[#allocation2 + $0x20] sm:$0xff] }
 0x7b2   : > { %3359 = vst.msk [vmem:[#allocation2 + $0x30] sm:$0xff] %vm1179_vm5, %v3355_v20  ;;  %v3459_v44 = vsel %vm1179_vm5, %v3443_v10, -inf }
 0x7b3   : > { %v8826_v21 = vpop.f32.mrf.mxu1 }
 0x7b6   : > { %v9314_v50 = vpop.eup %9313 }
 0x7b7   : > { %v3495_v51 = vsel %vm1179_vm5, %v9314_v50, 0.0 }
 0x7b9   : > { %v3445_v46 = vld [vmem:[#allocation2 + $0x30] sm:$0xff] }
 0x7ba   : > { %v3465_v48 = vsel %vm1179_vm5, %v3445_v46, -inf }
 0x840   : > { %v10088_v22 = vpop.f32.mrf.mxu0 }
 0x841   : > { %8833 = vmatpush3.msra.mxu1 %v10088_v22 }
 0x842   : > { %v8790_v23 = vpop.f32.mrf.mxu0  ;;  %8842 = vmatprep.subr.mxu1 %v9495_v2 }
 0x844   : > { %v2806_v24 = vpop.f32.mrf.mxu0 }
 0x846   : > { %v8791_v26 = vpop.f32.mrf.mxu0 }
 0x848   : > { %v2960_v27 = vpop.f32.mrf.mxu0 }
 0x849   : > { %2964 = vst.msk [vmem:[#allocation2 + $0x8] sm:$0xff] %vm1179_vm5, %v2960_v27 }
 0x84a   : > { %v8801_v29 = vpop.f32.mrf.mxu0 }
 0x84c   : > { %v3118_v30 = vpop.f32.mrf.mxu0 }
 0x84d   : > { %3122 = vst.msk [vmem:[#allocation2 + $0x18] sm:$0xff] %vm1179_vm5, %v3118_v30 }
 0x84e   : > { %v8811_v31 = vpop.f32.mrf.mxu0 }
 0x850   : > { %v3276_v32 = vpop.f32.mrf.mxu0  ;;  %v3440_v33 = vld [vmem:[#allocation2 + $0x8] sm:$0xff] }
 0x851   : > { %3280 = vst.msk [vmem:[#allocation2 + $0x28] sm:$0xff] %vm1179_vm5, %v3276_v32  ;;  %v3450_v34 = vsel %vm1179_vm5, %v3440_v33, -inf }
 0x852   : > { %3451 = vmax.xlane.f32.xlu0 %v3450_v34  ;;  %v8821_v35 = vpop.f32.mrf.mxu0 }
 0x854   : > { %v3434_v37 = vpop.f32.mrf.mxu0  ;;  %v3442_v38 = vld [vmem:[#allocation2 + $0x18] sm:$0xff] }
 0x855   : > { %3438 = vst.msk [vmem:[#allocation2 + $0x38] sm:$0xff] %vm1179_vm5, %v3434_v37  ;;  %v3456_v40 = vsel %vm1179_vm5, %v3442_v38, -inf }
 0x856   : > { %3454 = vmax.xlane.f32.xlu0 %v3453_v39  ;;  %3457 = vmax.xlane.f32.xlu1 %v3456_v40  ;;  %v8831_v42 = vpop.f32.mrf.mxu0 }
 0x858   : > { %v3444_v43 = vld [vmem:[#allocation2 + $0x28] sm:$0xff] }
 0x859   : > { %v3462_v45 = vsel %vm1179_vm5, %v3444_v43, -inf }
 0x85a   : > { %3460 = vmax.xlane.f32.xlu0 %v3459_v44  ;;  %3463 = vmax.xlane.f32.xlu1 %v3462_v45 }
 0x85c   : > { %v3446_v47 = vld [vmem:[#allocation2 + $0x38] sm:$0xff] }
 0x85d   : > { %v3468_v49 = vsel %vm1179_vm5, %v3446_v47, -inf }
 0x85e   : > { %3466 = vmax.xlane.f32.xlu0 %v3465_v48  ;;  %3469 = vmax.xlane.f32.xlu1 %v3468_v49 }
 0x862   : > { %3496 = vadd.xlane.f32.xlu0 %v3495_v51 }
 0x86f   : > { %3702 = vrot.lane.b32.xlu1 %v10088_v22, %s10955_s3 }
 0x873   : > { %3784 = vrot.lane.b32.xlu1 %v10088_v22, %s10957_s0 }
 0x877   : > { %3948 = vrot.lane.b32.xlu1 %v10088_v22, %s10958_s29 }
 0x8db   : > { %v3452_v52 = vpop.xlane.xlu0 %3451 }
 0x8dc   : > { %v3472_v53 = vsub.f32 %v3440_v33, %v3452_v52 }
 0x8de   : > { %v3481_v54 = vmul.f32 1.442695, %v3472_v53 }
 0x8df   : > { %v3455_v55 = vpop.xlane.xlu0 %3454  ;;  %v3458_v56 = vpop.xlane.xlu1 %3457 }
 0x8e0   : > { %9315 = vpow2.f32 %v3481_v54  ;;  %v3473_v57 = vsub.f32 %v3441_v36, %v3455_v55  ;;  %v3474_v17 = vsub.f32 %v3442_v38, %v3458_v56 }
 0x8e2   : > { %v3483_v58 = vmul.f32 1.442695, %v3473_v57  ;;  %v3485_v59 = vmul.f32 1.442695, %v3474_v17 }
 0x8e3   : > { %v3461_v60 = vpop.xlane.xlu0 %3460  ;;  %v3464_v61 = vpop.xlane.xlu1 %3463 }
 0x8e4   : > { %9317 = vpow2.f32 %v3483_v58  ;;  %v3475_v62 = vsub.f32 %v3443_v10, %v3461_v60  ;;  %v3476_v63 = vsub.f32 %v3444_v43, %v3464_v61 }
 0x8e5   : > { %9319 = vpow2.f32 %v3485_v59 }
 0x8e6   : > { %v3487_v0 = vmul.f32 1.442695, %v3475_v62  ;;  %v3489_v1 = vmul.f32 1.442695, %v3476_v63 }
 0x8e7   : > { %v3467_v3 = vpop.xlane.xlu0 %3466  ;;  %v3470_v4 = vpop.xlane.xlu1 %3469 }
 0x8e8   : > { %9321 = vpow2.f32 %v3487_v0  ;;  %v3477_v5 = vsub.f32 %v3445_v46, %v3467_v3  ;;  %v3478_v6 = vsub.f32 %v3446_v47, %v3470_v4  ;;  %v9239_v4 = vld [vmem:[%s10971_s15 + $0x8] sm:$0xff]  }
 0x8e9   : > { %9323 = vpow2.f32 %v3489_v1 }
 0x8ea   : > { %v3491_v8 = vmul.f32 1.442695, %v3477_v5  ;;  %v3493_v9 = vmul.f32 1.442695, %v3478_v6  ;;  %v9240_v6 = vld [vmem:[%s10971_s15] sm:$0xff]   ;;  %s10979_s15 = sld [smem:[#allocation25_spill]] }
 0x8eb   : > { %v3497_v11 = vpop.xlane.xlu0 %3496  ;;  %v3703_v31 = vpop.permute.xlu1 %3702 }
 0x8ec   : > { %9325 = vpow2.f32 %v3491_v8 }
 0x8ed   : > { %v9316_v13 = vpop.eup %9315  ;;  %9327 = vpow2.f32 %v3493_v9 }
 0x8ee   : > { %9329 = vrcp.f32 %v3497_v11  ;;  %v3498_v14 = vsel %vm1179_vm5, %v9316_v13, 0.0 }
 0x8ef   : > { %3499 = vadd.xlane.f32.xlu1 %v3498_v14  ;;  %v3785_v32 = vpop.permute.xlu1 %3784 }
 0x8f1   : > { %v9318_v15 = vpop.eup %9317 }
 0x8f2   : > { %v9320_v16 = vpop.eup %9319  ;;  %v3501_v18 = vsel %vm1179_vm5, %v9318_v15, 0.0 }
 0x8f3   : > { %3502 = vadd.xlane.f32.xlu0 %v3501_v18  ;;  %v3504_v19 = vsel %vm1179_vm5, %v9320_v16, 0.0  ;;  %v3949_v33 = vpop.permute.xlu1 %3948 }
 0x8f4   : > { %3505 = vadd.xlane.f32.xlu1 %v3504_v19 }
 0x8f5   : > { %v9322_v20 = vpop.eup %9321 }
 0x8f6   : > { %v9324_v21 = vpop.eup %9323  ;;  %v3507_v23 = vsel %vm1179_vm5, %v9322_v20, 0.0 }
 0x8f7   : > { %3508 = vadd.xlane.f32.xlu0 %v3507_v23  ;;  %v3510_v24 = vsel %vm1179_vm5, %v9324_v21, 0.0 }
 0x8f8   : > { %3511 = vadd.xlane.f32.xlu1 %v3510_v24 }
 0x8f9   : > { %v9326_v25 = vpop.eup %9325 }
 0x8fa   : > { %v9328_v26 = vpop.eup %9327  ;;  %v3513_v27 = vsel %vm1179_vm5, %v9326_v25, 0.0 }
 0x8fb   : > { %v9330_v28 = vpop.eup %9329  ;;  %3514 = vadd.xlane.f32.xlu0 %v3513_v27  ;;  %v3516_v29 = vsel %vm1179_vm5, %v9328_v26, 0.0 }
 0x8fc   : > { %v3520_v30 = vmul.f32 %v9330_v28, %v9314_v50  ;;  %3517 = vadd.xlane.f32.xlu1 %v3516_v29 }
 0x8fe   : > { %3535 = vst.msk [vmem:[#allocation2] sm:$0xff] %vm1179_vm5, %v3520_v30 }
 0x905   : > { %v3543_v41 = vld [vmem:[#allocation2] sm:$0xff] }
 0x906   : > { %8835 = vmatmul.mubr.msk.f32.vlgmr.msra.gmra.mxu1 %vm1179_vm5, %v3543_v41 }
 0x907   : > { %8843 = vmatpush3.msra.mxu1 %v3703_v31  ;;  %8844 = vmatprep.mubr.msk.f32.mxu1 %vm9496_vm0, %v9495_v2 }
 0x908   : > { %8852 = vmatprep.subr.mxu1 %v9495_v2 }
 0x90d   : > { %4112 = vrot.lane.b32.xlu1 %v10088_v22, %s10961_s30 }
 0x911   : > { %3620 = vrot.lane.b32.xlu0 %v10088_v22, %s10956_s2 }
 0x915   : > { %3866 = vrot.lane.b32.xlu0 %v10088_v22, %s10959_s8 }
 0x919   : > { %4030 = vrot.lane.b32.xlu0 %v10088_v22, %s10960_s7 }
 0x978   : > { %v3500_v34 = vpop.xlane.xlu1 %3499 }
 0x979   : > { %9331 = vrcp.f32 %v3500_v34 }
 0x97c   : > { %v3503_v35 = vpop.xlane.xlu0 %3502 }
 0x97d   : > { %9333 = vrcp.f32 %v3503_v35  ;;  %v3506_v36 = vpop.xlane.xlu1 %3505 }
 0x97e   : > { %9335 = vrcp.f32 %v3506_v36 }
 0x980   : > { %v3509_v37 = vpop.xlane.xlu0 %3508 }
 0x981   : > { %9337 = vrcp.f32 %v3509_v37  ;;  %v3512_v38 = vpop.xlane.xlu1 %3511 }
 0x982   : > { %9339 = vrcp.f32 %v3512_v38 }
 0x984   : > { %v3515_v39 = vpop.xlane.xlu0 %3514 }
 0x985   : > { %9341 = vrcp.f32 %v3515_v39  ;;  %v3518_v40 = vpop.xlane.xlu1 %3517 }
 0x986   : > { %v9332_v42 = vpop.eup %9331  ;;  %9343 = vrcp.f32 %v3518_v40 }
 0x987   : > { %v3522_v10 = vmul.f32 %v9332_v42, %v9316_v13 }
 0x988   : > { %v3621_v43 = vpop.permute.xlu0 %3620 }
 0x989   : > { %3536 = vst.msk [vmem:[#allocation2 + $0x8] sm:$0xff] %vm1179_vm5, %v3522_v10  ;;  %8838 = vmatpush3.msra.mxu0 %v3621_v43  ;;  %v4113_v61 = vpop.permute.xlu1 %4112 }
 0x98a   : > { %v9334_v22 = vpop.eup %9333  ;;  %8847 = vmatprep.subr.mxu0 %v9495_v2 }
 0x98b   : > { %v9336_v44 = vpop.eup %9335  ;;  %v3524_v45 = vmul.f32 %v9334_v22, %v9318_v15 }
 0x98c   : > { %v3526_v46 = vmul.f32 %v9336_v44, %v9320_v16  ;;  %v3867_v55 = vpop.permute.xlu0 %3866  ;;  %v9241_v44 = vld [vmem:[%s10841_s19 + $0x8] sm:$0xff]  }
 0x98d   : > { %3537 = vst.msk [vmem:[#allocation2 + $0x10] sm:$0xff] %vm1179_vm5, %v3524_v45  ;;  %v9247_v45 = vld [vmem:[%s10843_s21 + $0x38] sm:$0xff]  }
 0x98e   : > { %v9338_v47 = vpop.eup %9337  ;;  %3538 = vst.msk [vmem:[#allocation2 + $0x18] sm:$0xff] %vm1179_vm5, %v3526_v46  ;;  %v9248_v46 = vld [vmem:[%s10843_s21 + $0x30] sm:$0xff]  }
 0x98f   : > { %v9340_v48 = vpop.eup %9339  ;;  %v3528_v49 = vmul.f32 %v9338_v47, %v9322_v20  ;;  %v9249_v47 = vld [vmem:[%s10843_s21 + $0x28] sm:$0xff]  }
 0x990   : > { %v3530_v50 = vmul.f32 %v9340_v48, %v9324_v21  ;;  %v3618_v51 = vld [vmem:[#allocation2 + $0x8] sm:$0xff]  ;;  %v4031_v59 = vpop.permute.xlu0 %4030  ;;  %v9250_v48 = vld [vmem:[%s10843_s21 + $0x20] sm:$0xff]  }
 0x991   : > { %3539 = vst.msk [vmem:[#allocation2 + $0x20] sm:$0xff] %vm1179_vm5, %v3528_v49  ;;  %8840 = vmatmul.mubr.msk.f32.vlgmr.msra.gmra.mxu0 %vm1179_vm5, %v3618_v51  ;;  %v9251_v49 = vld [vmem:[%s10843_s21 + $0x18] sm:$0xff]  }
 0x992   : > { %v9342_v52 = vpop.eup %9341  ;;  %3540 = vst.msk [vmem:[#allocation2 + $0x28] sm:$0xff] %vm1179_vm5, %v3530_v50  ;;  %8848 = vmatpush3.msra.mxu0 %v3785_v32  ;;  %8849 = vmatprep.mubr.msk.f32.mxu0 %vm9496_vm0, %v9495_v2  ;;  %v8259_v32 = vld [vmem:[%s10978_s16] ss:$0 sm:$0xff]  ;;  %v9252_v50 = vld [vmem:[%s10843_s21 + $0x10] sm:$0xff]   ;;  %s10992_s16 = sld [smem:[#allocation36_spill]] }
 0x993   : > { %v9344_v53 = vpop.eup %9343  ;;  %v3532_v54 = vmul.f32 %v9342_v52, %v9326_v25  ;;  %8857 = vmatprep.subr.mxu0 %v9495_v2 }
 0x994   : > { %v3534_v56 = vmul.f32 %v9344_v53, %v9328_v26  ;;  %v3701_v57 = vld [vmem:[#allocation2 + $0x10] sm:$0xff] }
 0x995   : > { %3541 = vst.msk [vmem:[#allocation2 + $0x30] sm:$0xff] %vm1179_vm5, %v3532_v54  ;;  %8845 = vmatmul.mubr.msk.f32.vlgmr.msra.gmra.mxu1 %vm1179_vm5, %v3701_v57  ;;  %v3783_v17 = vld [vmem:[#allocation2 + $0x18] sm:$0xff]  ;;  %v8264_v57 = vld [vmem:[%s10840_s18] ss:$0 sm:$0xff] }
 0x996   : > { %3542 = vst.msk [vmem:[#allocation2 + $0x38] sm:$0xff] %vm1179_vm5, %v3534_v56  ;;  %8850 = vmatmul.mubr.msk.f32.vlgmr.msra.gmra.mxu0 %vm1179_vm5, %v3783_v17  ;;  %8853 = vmatpush3.msra.mxu1 %v3867_v55  ;;  %v8263_v55 = vld [vmem:[%s10839_s17] ss:$0 sm:$0xff] }
 0x997   : > { %8858 = vmatpush3.msra.mxu0 %v3949_v33  ;;  %8854 = vmatprep.mubr.msk.f32.mxu1 %vm9496_vm0, %v9495_v2 }
 0x998   : > { %8859 = vmatprep.mubr.msk.f32.mxu0 %vm9496_vm0, %v9495_v2  ;;  %8862 = vmatprep.subr.mxu1 %v9495_v2  ;;  %v3865_v58 = vld [vmem:[#allocation2 + $0x20] sm:$0xff] }
 0x999   : > { %8867 = vmatprep.subr.mxu0 %v9495_v2  ;;  %8855 = vmatmul.mubr.msk.f32.vlgmr.msra.gmra.mxu1 %vm1179_vm5, %v3865_v58  ;;  %v3947_v60 = vld [vmem:[#allocation2 + $0x28] sm:$0xff] }
 0x99a   : > { %8860 = vmatmul.mubr.msk.f32.vlgmr.msra.gmra.mxu0 %vm1179_vm5, %v3947_v60  ;;  %8863 = vmatpush3.msra.mxu1 %v4031_v59  ;;  %v9243_v59 = vld [vmem:[%s10947_s10 + $0x18] sm:$0xff]  }
 0x99b   : > { %8868 = vmatpush3.msra.mxu0 %v4113_v61  ;;  %8864 = vmatprep.mubr.msk.f32.mxu1 %vm9496_vm0, %v9495_v2  ;;  %v9244_v61 = vld [vmem:[%s10947_s10 + $0x10] sm:$0xff]   ;;  %s10987_s10 = sld [smem:[#allocation31_spill]] }
 0x99c   : > { %8869 = vmatprep.mubr.msk.f32.mxu0 %vm9496_vm0, %v9495_v2  ;;  %v4029_v62 = vld [vmem:[#allocation2 + $0x30] sm:$0xff]  ;;  %8872 = vmatprep.subr.bf16.mxu1 %v9495_v2 }
 0x99d   : > { %8865 = vmatmul.mubr.msk.f32.vlgmr.msra.gmra.mxu1 %vm1179_vm5, %v4029_v62  ;;  %v4111_v63 = vld [vmem:[#allocation2 + $0x38] sm:$0xff]  ;;  %8880 = vmatprep.subr.bf16.mxu0 %v9495_v2 }
 0x99e   : > { %8870 = vmatmul.mubr.msk.f32.vlgmr.msra.gmra.mxu0 %vm1179_vm5, %v4111_v63  ;;  %8876 = vmatprep.mubr.msk.bf16.mxu1 %vm9496_vm0, %v9495_v2  ;;  %v9245_v62 = vld [vmem:[%s10950_s6 + $0x18] sm:$0xff]   ;;  %v9246_v63 = vld [vmem:[%s10950_s6 + $0x10] sm:$0xff]   ;;  %s10982_s6 = sld [smem:[#allocation29_spill]] }
 0x99f   : > { %8884 = vmatprep.mubr.msk.bf16.mxu0 %vm9496_vm0, %v9495_v2  ;;  %8873 = vmatpush3.bf16.msra.mxu1 %v9239_v4  ;;  %v9256_v4 = vld [vmem:[%s10952_s28 + $0x10] sm:$0xff]  }
 0x9a0   : > { %8874 = vmatprep.subr.bf16.mxu1 %v9495_v2  ;;  %8881 = vmatpush3.bf16.msra.mxu0 %v9241_v44 }
 0x9a1   : > { %8882 = vmatprep.subr.bf16.mxu0 %v9495_v2 }
 0x9a3   : > { %8875 = vmatpush3.bf16.msra.mxu1 %v9240_v6 }
 0x9a4   : > { %8888 = vmatprep.subr.bf16.mxu1 %v9495_v2 }
 0x9c6   : > { %v3613_v0 = vpop.f32.mrf.mxu1 }
 0x9c7   : > { %3617 = vst.msk [vmem:[#allocation3] sm:$0xff] %vm1102_vm4, %v3613_v0  ;;  %v9253_v0 = vld [vmem:[%s10843_s21 + $0x8] sm:$0xff]  }
 0x9c8   : > { %v8836_v1 = vpop.f32.mrf.mxu1 }
 0x9c9   : > { %v9254_v1 = vld [vmem:[%s10843_s21] sm:$0xff]  }
 0xa51   : > { %v3692_v3 = vpop.f32.mrf.mxu0 }
 0xa52   : > { %3697 = vrot.lane.b32.xlu0 %v3692_v3, %s10970_s24  ;;  %v9255_v3 = vld [vmem:[%s10952_s28 + $0x18] sm:$0xff]  }
 0xa53   : > { %v8841_v5 = vpop.f32.mrf.mxu0 }
 0xa54   : > { %v8265_v5 = vld [vmem:[%s10842_s20] ss:$0 sm:$0xff] }
 0xa55   : > { %v3774_v8 = vpop.f32.mrf.mxu1 }
 0xa56   : > { %v3856_v9 = vpop.f32.mrf.mxu0  ;;  %3779 = vrot.lane.b32.xlu1 %v3774_v8, %s10972_s25 }
 0xa57   : > { %3861 = vrot.lane.b32.xlu0 %v3856_v9, %s10973_s14  ;;  %v8846_v11 = vpop.f32.mrf.mxu1 }
 0xa58   : > { %v8851_v13 = vpop.f32.mrf.mxu0 }
 0xa59   : > { %v3938_v14 = vpop.f32.mrf.mxu1 }
 0xa5a   : > { %v4020_v15 = vpop.f32.mrf.mxu0  ;;  %3943 = vrot.lane.b32.xlu1 %v3938_v14, %s10974_s4 }
 0xa5b   : > { %4025 = vrot.lane.b32.xlu0 %v4020_v15, %s10975_s1  ;;  %v8856_v16 = vpop.f32.mrf.mxu1 }
 0xa5c   : > { %v8861_v18 = vpop.f32.mrf.mxu0 }
 0xa5d   : > { %v4102_v19 = vpop.f32.mrf.mxu1 }
 0xa5e   : > { %v4184_v20 = vpop.f32.mrf.mxu0  ;;  %4107 = vrot.lane.b32.xlu1 %v4102_v19, %s10976_s27 }
 0xa5f   : > { %4189 = vrot.lane.b32.xlu0 %v4184_v20, %s10977_s23  ;;  %v8866_v21 = vpop.f32.mrf.mxu1 }
 0xa60   : > { %v8871_v23 = vpop.f32.mrf.mxu0 }
 0xac4   : > { %v3698_v24 = vpop.permute.xlu0 %3697 }
 0xac5   : > { %3700 = vst.msk [vmem:[#allocation3] sm:$0xff] %vm2003_vm6, %v3698_v24 }
 0xac8   : > { %v3780_v25 = vpop.permute.xlu1 %3779 }
 0xac9   : > { %3782 = vst.msk [vmem:[#allocation3] sm:$0xff] %vm2086_vm7, %v3780_v25  ;;  %v3862_v26 = vpop.permute.xlu0 %3861 }
 0xaca   : > { %3864 = vst.msk [vmem:[#allocation3] sm:$0xff] %vm2169_vm8, %v3862_v26 }
 0xacc   : > { %v3944_v27 = vpop.permute.xlu1 %3943 }
 0xacd   : > { %3946 = vst.msk [vmem:[#allocation3] sm:$0xff] %vm2252_vm9, %v3944_v27  ;;  %v4026_v28 = vpop.permute.xlu0 %4025 }
 0xace   : > { %4028 = vst.msk [vmem:[#allocation3] sm:$0xff] %vm2335_vm10, %v4026_v28 }
 0xad0   : > { %v4108_v29 = vpop.permute.xlu1 %4107 }
 0xad1   : > { %4110 = vst.msk [vmem:[#allocation3] sm:$0xff] %vm2418_vm11, %v4108_v29  ;;  %v4190_v30 = vpop.permute.xlu0 %4189 }
 0xad2   : > { %4192 = vst.msk [vmem:[#allocation3] sm:$0xff] %vm2501_vm12, %v4190_v30 }
 0xad9   : > { %v4193_v41 = vld [vmem:[#allocation3] sm:$0xff] }
 0xada   : > { %v4194_v31 = vpack.c.bf16 %v4193_v41, %v4193_v41 }
 0xadc   : > { %8877 = vmatmul.mubr.msk.bf16.vlgmr.msra.gmra.mxu1 %vm946_vm3, %v4194_v31 }
 0xadd   : > { %8904 = vmatprep.mubr.msk.bf16.mxu1 %vm9496_vm0, %v9495_v2  ;;  %8889 = vmatpush3.bf16.msra.mxu1 %v9247_v45 }
 0xade   : > { %8890 = vmatprep.subr.bf16.mxu1 %v9495_v2 }
 0xae1   : > { %8891 = vmatpush3.bf16.msra.mxu1 %v9248_v46 }
 0xae2   : > { %8892 = vmatprep.subr.bf16.mxu1 %v9495_v2 }
 0xae5   : > { %8893 = vmatpush3.bf16.msra.mxu1 %v9249_v47 }
 0xae6   : > { %8894 = vmatprep.subr.bf16.mxu1 %v9495_v2 }
 0xae9   : > { %8895 = vmatpush3.bf16.msra.mxu1 %v9250_v48  ;;  %v9423_v48 = vld [vmem:[%s10954_s5] sm:$0xff] }
 0xaea   : > { %8896 = vmatprep.subr.bf16.mxu1 %v9495_v2 }
 0xaed   : > { %8897 = vmatpush3.bf16.msra.mxu1 %v9251_v49 }
 0xaee   : > { %8898 = vmatprep.subr.bf16.mxu1 %v9495_v2 }
 0xaf1   : > { %8899 = vmatpush3.bf16.msra.mxu1 %v9252_v50 }
 0xaf2   : > { %8900 = vmatprep.subr.bf16.mxu1 %v9495_v2 }
 0xaf5   : > { %8901 = vmatpush3.bf16.msra.mxu1 %v9253_v0 }
 0xaf6   : > { %8902 = vmatprep.subr.bf16.mxu1 %v9495_v2 }
 0xaf9   : > { %8903 = vmatpush3.bf16.msra.mxu1 %v9254_v1 }
 0xafa   : > { %8942 = vmatprep.subr.mxu1 %v9495_v2 }
 0xb9c   : > { %v4250_v33 = vpop.f32.mrf.mxu1 }
 0xb9d   : > { %v4251_v34 = vadd.f32 %v8259_v32, %v4250_v33 }
 0xb9e   : > { %v8878_v35 = vpop.f32.mrf.mxu1 }
 0xb9f   : > { %v4256_v36 = vadd.f32 %v4251_v34, %v10058_v7  ;;  %v9242_v7 = vld [vmem:[%s10841_s19] sm:$0xff]  }
 0xba0   : > { %v4253_v37 = vpop.f32.mrf.mxu1  ;;  %8883 = vmatpush3.bf16.msra.mxu0 %v9242_v7 }
 0xba1   : > { %v4257_v38 = vsel %vm946_vm3, %v4256_v36, 0.0  ;;  %8908 = vmatprep.subr.bf16.mxu0 %v9495_v2 }
 0xba2   : > { %4258 = vadd.xlane.f32.xlu1 %v4257_v38  ;;  %v8879_v39 = vpop.f32.mrf.mxu1 }
 0xc2b   : > { %v4259_v40 = vpop.xlane.xlu1 %4258 }
 0xc2c   : > { %v4260_v42 = vmul.f32 0.03125, %v4259_v40 }
 0xc2e   : > { %v4261_v10 = vsub.f32 %v4256_v36, %v4260_v42 }
 0xc30   : > { %v4262_v43 = vmul.f32 %v4261_v10, %v4261_v10 }
 0xc32   : > { %v4263_v22 = vsel %vm946_vm3, %v4262_v43, 0.0 }
 0xc33   : > { %4264 = vadd.xlane.f32.xlu0 %v4263_v22 }
 0xcbc   : > { %v4265_v51 = vpop.xlane.xlu0 %4264 }
 0xcbd   : > { %v4266_v52 = vmul.f32 0.03125, %v4265_v51 }
 0xcbf   : > { %v4267_v53 = vadd.f32 1e-05, %v4266_v52 }
 0xcc1   : > { %9345 = vrsqrt.f32 %v4267_v53 }
 0xcce   : > { %v9346_v54 = vpop.eup %9345 }
 0xccf   : > { %v4269_v56 = vmul.f32 %v9346_v54, %v4261_v10 }
 0xcd1   : > { %v4276_v17 = vmul.f32 %v8263_v55, %v4269_v56 }
 0xcd3   : > { %v10234_v58 = vadd.f32 %v8264_v57, %v4276_v17 }
 0xcd5   : > { %v4284_v60 = vpack.c.bf16 %v10234_v58, %v10234_v58 }
 0xcd7   : > { %8885 = vmatmul.mubr.msk.bf16.vlgmr.msra.gmra.mxu0 %vm946_vm3, %v4284_v60  ;;  %v9424_v60 = vld [vmem:[%s10954_s5 + $0x8] sm:$0xff] }
 0xcd8   : > { %8909 = vmatpush3.bf16.msra.mxu0 %v9243_v59  ;;  %8912 = vmatprep.mubr.msk.bf16.mxu0 %vm9496_vm0, %v9495_v2 }
 0xcd9   : > { %8910 = vmatprep.subr.bf16.mxu0 %v9495_v2 }
 0xcdc   : > { %8911 = vmatpush3.bf16.msra.mxu0 %v9244_v61 }
 0xcdd   : > { %8916 = vmatprep.subr.bf16.mxu0 %v9495_v2 }
 0xcdf   : > { %8913 = vmatmul.mubr.msk.bf16.vlgmr.msra.gmra.mxu0 %vm946_vm3, %v9739_v12 }
 0xce0   : > { %8917 = vmatpush3.bf16.msra.mxu0 %v9245_v62  ;;  %8920 = vmatprep.mubr.msk.bf16.mxu0 %vm9496_vm0, %v9495_v2 }
 0xce1   : > { %8918 = vmatprep.subr.bf16.mxu0 %v9495_v2 }
 0xce4   : > { %8919 = vmatpush3.bf16.msra.mxu0 %v9246_v63 }
 0xce5   : > { %8924 = vmatprep.subr.bf16.mxu0 %v9495_v2 }
 0xce7   : > { %8921 = vmatmul.mubr.msk.bf16.vlgmr.msra.gmra.mxu0 %vm946_vm3, %v9739_v12 }
 0xce8   : > { %8928 = vmatprep.mubr.msk.bf16.mxu0 %vm9496_vm0, %v9495_v2  ;;  %8925 = vmatpush3.bf16.msra.mxu0 %v9255_v3 }
 0xce9   : > { %8926 = vmatprep.subr.bf16.mxu0 %v9495_v2 }
 0xcec   : > { %8927 = vmatpush3.bf16.msra.mxu0 %v9256_v4  ;;  %v9425_v4 = vld [vmem:[%s10954_s5 + $0x10] sm:$0xff] }
 0xced   : > { %8932 = vmatprep.subr.mxu0 %v9495_v2 }
 0xcef   : > { %8929 = vmatmul.mubr.msk.bf16.vlgmr.msra.gmra.mxu0 %vm946_vm3, %v9739_v12 }
 0xcf0   : > { %8934 = vmatprep.mubr.msk.f32.mxu0 %vm9496_vm0, %v9495_v2 }
 0xd97   : > { %v4340_v6 = vpop.f32.mrf.mxu0 }
 0xd98   : > { %v4341_v8 = vadd.f32 %v8265_v5, %v4340_v6 }
 0xd99   : > { %v8886_v9 = vpop.f32.mrf.mxu0 }
 0xd9a   : > { %v4346_v11 = vmax.f32 %v4341_v8, 0.0  ;;  %v9426_v9 = vld [vmem:[%s10954_s5 + $0x18] sm:$0xff] }
 0xd9b   : > { %v4343_v13 = vpop.f32.mrf.mxu0 }
 0xd9c   : > { %v4347_v14 = vpack.c.bf16 %v4346_v11, %v4346_v11 }
 0xd9d   : > { %v8887_v15 = vpop.f32.mrf.mxu0 }
 0xd9e   : > { %8905 = vmatmul.mubr.bf16.vlgmr.msra.gmra.mxu1 %v4347_v14 }
 0xd9f   : > { %v4521_v16 = vpop.f32.mrf.mxu0  ;;  %8944 = vmatprep.mubr.msk.f32.mxu1 %vm9496_vm0, %v9495_v2 }
 0xda0   : > { %4876 = vrot.lane.b32.xlu0 %v4521_v16, %s10957_s0  ;;  %4718 = vrot.lane.b32.xlu1 %v4521_v16, %s10956_s2 }
 0xda1   : > { %v8914_v18 = vpop.f32.mrf.mxu0 }
 0xda3   : > { %v4524_v19 = vpop.f32.mrf.mxu0 }
 0xda4   : > { %5034 = vrot.lane.b32.xlu0 %v4521_v16, %s10958_s29  ;;  %4797 = vrot.lane.b32.xlu1 %v4521_v16, %s10955_s3  ;;  %v9427_v19 = vld [vmem:[%s10954_s5 + $0x20] sm:$0xff] }
 0xda5   : > { %v8915_v20 = vpop.f32.mrf.mxu0 }
 0xda7   : > { %v4578_v21 = vpop.f32.mrf.mxu0 }
 0xda8   : > { %4955 = vrot.lane.b32.xlu1 %v4521_v16, %s10959_s8  ;;  %4720 = vrot.lane.b32.xlu0 %v4578_v21, %s10956_s2 }
 0xda9   : > { %8933 = vmatpush3.xpose.msk.msra.mxu0 %vm1102_vm4, %v4578_v21  ;;  %v8922_v23 = vpop.f32.mrf.mxu0 }
 0xdaa   : > { %8937 = vmatprep.subr.mxu0 %v9495_v2  ;;  %v9428_v23 = vld [vmem:[%s10954_s5 + $0x28] sm:$0xff] }
 0xdab   : > { %v4581_v24 = vpop.f32.mrf.mxu0 }
 0xdac   : > { %8935 = vmatmul.mubr.msk.f32.vlgmr.msra.gmra.mxu0 %vm1102_vm4, %v4521_v16  ;;  %4799 = vrot.lane.b32.xlu1 %v4578_v21, %s10955_s3 }
 0xdad   : > { %4878 = vrot.lane.b32.xlu0 %v4578_v21, %s10957_s0  ;;  %v8923_v25 = vpop.f32.mrf.mxu0  ;;  %8939 = vmatprep.mubr.msk.f32.mxu0 %vm9496_vm0, %v9495_v2 }
 0xdaf   : > { %v10309_v26 = vpop.f32.mrf.mxu0 }
 0xdb0   : > { %4957 = vrot.lane.b32.xlu1 %v4578_v21, %s10959_s8 }
 0xdb1   : > { %5036 = vrot.lane.b32.xlu0 %v4578_v21, %s10958_s29  ;;  %v8930_v27 = vpop.f32.mrf.mxu0 }
 0xdb3   : > { %v4638_v28 = vpop.f32.mrf.mxu0 }
 0xdb4   : > { %5115 = vrot.lane.b32.xlu1 %v4578_v21, %s10960_s7 }
 0xdb5   : > { %5194 = vrot.lane.b32.xlu0 %v4578_v21, %s10961_s30  ;;  %v8931_v29 = vpop.f32.mrf.mxu0 }
 0xdb6   : > { %v9429_v29 = vld [vmem:[%s10954_s5 + $0x30] sm:$0xff] }
 0xdb8   : > { %5113 = vrot.lane.b32.xlu1 %v4521_v16, %s10960_s7 }
 0xdb9   : > { %5192 = vrot.lane.b32.xlu0 %v4521_v16, %s10961_s30 }
 0xe12   : > { %v4877_v30 = vpop.permute.xlu0 %4876  ;;  %v4719_v41 = vpop.permute.xlu1 %4718 }
 0xe16   : > { %v5035_v31 = vpop.permute.xlu0 %5034  ;;  %v4798_v32 = vpop.permute.xlu1 %4797 }
 0xe1a   : > { %v4956_v33 = vpop.permute.xlu1 %4955  ;;  %v4721_v34 = vpop.permute.xlu0 %4720 }
 0xe1b   : > { %8938 = vmatpush3.xpose.msk.msra.mxu0 %vm1102_vm4, %v4721_v34 }
 0xe1c   : > { %8947 = vmatprep.subr.mxu0 %v9495_v2 }
 0xe1e   : > { %v4800_v35 = vpop.permute.xlu1 %4799  ;;  %8940 = vmatmul.mubr.msk.f32.vlgmr.msra.gmra.mxu0 %vm1102_vm4, %v4719_v41 }
 0xe1f   : > { %v4879_v36 = vpop.permute.xlu0 %4878  ;;  %8943 = vmatpush3.xpose.msk.msra.mxu1 %vm1102_vm4, %v4800_v35  ;;  %8949 = vmatprep.mubr.msk.f32.mxu0 %vm9496_vm0, %v9495_v2  ;;  %v9430_v35 = vld [vmem:[%s10954_s5 + $0x38] sm:$0xff]  ;;  %s10983_s5 = sld [smem:[#allocation16_spill]] }
 0xe20   : > { %8948 = vmatpush3.xpose.msk.msra.mxu0 %vm1102_vm4, %v4879_v36  ;;  %8952 = vmatprep.subr.mxu1 %v9495_v2 }
 0xe21   : > { %8957 = vmatprep.subr.mxu0 %v9495_v2 }
 0xe22   : > { %8945 = vmatmul.mubr.msk.f32.vlgmr.msra.gmra.mxu1 %vm1102_vm4, %v4798_v32  ;;  %v4958_v37 = vpop.permute.xlu1 %4957 }
 0xe23   : > { %v5037_v38 = vpop.permute.xlu0 %5036  ;;  %8950 = vmatmul.mubr.msk.f32.vlgmr.msra.gmra.mxu0 %vm1102_vm4, %v4877_v30  ;;  %8953 = vmatpush3.xpose.msk.msra.mxu1 %vm1102_vm4, %v4958_v37 }
 0xe24   : > { %8958 = vmatpush3.xpose.msk.msra.mxu0 %vm1102_vm4, %v5037_v38  ;;  %8954 = vmatprep.mubr.msk.f32.mxu1 %vm9496_vm0, %v9495_v2 }
 0xe25   : > { %8959 = vmatprep.mubr.msk.f32.mxu0 %vm9496_vm0, %v9495_v2  ;;  %8962 = vmatprep.subr.mxu1 %v9495_v2 }
 0xe26   : > { %8955 = vmatmul.mubr.msk.f32.vlgmr.msra.gmra.mxu1 %vm1102_vm4, %v4956_v33  ;;  %v5116_v39 = vpop.permute.xlu1 %5115  ;;  %8967 = vmatprep.subr.mxu0 %v9495_v2 }
 0xe27   : > { %v5195_v40 = vpop.permute.xlu0 %5194  ;;  %8960 = vmatmul.mubr.msk.f32.vlgmr.msra.gmra.mxu0 %vm1102_vm4, %v5035_v31  ;;  %8963 = vmatpush3.xpose.msk.msra.mxu1 %vm1102_vm4, %v5116_v39 }
 0xe28   : > { %8968 = vmatpush3.xpose.msk.msra.mxu0 %vm1102_vm4, %v5195_v40  ;;  %8964 = vmatprep.mubr.msk.f32.mxu1 %vm9496_vm0, %v9495_v2 }
 0xe29   : > { %8969 = vmatprep.mubr.msk.f32.mxu0 %vm9496_vm0, %v9495_v2  ;;  %8972 = vmatprep.subr.mxu1 %v9495_v2 }
 0xe2a   : > { %v5114_v42 = vpop.permute.xlu1 %5113  ;;  %8977 = vmatprep.subr.mxu0 %v9495_v2 }
 0xe2b   : > { %v5193_v10 = vpop.permute.xlu0 %5192  ;;  %8965 = vmatmul.mubr.msk.f32.vlgmr.msra.gmra.mxu1 %vm1102_vm4, %v5114_v42 }
 0xe2c   : > { %8970 = vmatmul.mubr.msk.f32.vlgmr.msra.gmra.mxu0 %vm1102_vm4, %v5193_v10  ;;  %8973 = vmatpush3.msra.mxu1 %v10309_v26 }
 0xe2d   : > { %8974 = vmatprep.mubr.msk.f32.mxu1 %vm9496_vm0, %v9495_v2  ;;  %8982 = vmatprep.subr.mxu1 %v9495_v2 }
 0xe2e   : > { %8979 = vmatprep.mubr.msk.f32.mxu0 %vm9496_vm0, %v9495_v2 }
 0xe5e   : > { %v10348_v43 = vpop.f32.mrf.mxu1 }
 0xe60   : > { %v8906_v22 = vpop.f32.mrf.mxu1 }
 0xe62   : > { %v4439_v44 = vpop.f32.mrf.mxu1 }
 0xe64   : > { %v8907_v7 = vpop.f32.mrf.mxu1 }
 0xe6c   : > { %v4713_v45 = vpop.f32.mrf.mxu0 }
 0xe6d   : > { %4717 = vst.msk [vmem:[#allocation2] sm:$0xff] %vm1179_vm5, %v4713_v45 }
 0xe6e   : > { %v8936_v46 = vpop.f32.mrf.mxu0 }
 0xe74   : > { %v5271_v47 = vld [vmem:[#allocation2] sm:$0xff] }
 0xe75   : > { %v5279_v49 = vadd.f32 %v9423_v48, %v5271_v47 }
 0xe77   : > { %v5287_v50 = vsel %vm1179_vm5, %v5279_v49, -inf }
 0xe78   : > { %5288 = vmax.xlane.f32.xlu1 %v5287_v50 }
 0xede   : > { %v4792_v51 = vpop.f32.mrf.mxu0 }
 0xedf   : > { %4796 = vst.msk [vmem:[#allocation2 + $0x8] sm:$0xff] %vm1179_vm5, %v4792_v51 }
 0xee0   : > { %v8941_v52 = vpop.f32.mrf.mxu0 }
 0xee2   : > { %v4871_v53 = vpop.f32.mrf.mxu1 }
 0xee3   : > { %4875 = vst.msk [vmem:[#allocation2 + $0x10] sm:$0xff] %vm1179_vm5, %v4871_v53  ;;  %v4950_v54 = vpop.f32.mrf.mxu0 }
 0xee4   : > { %4954 = vst.msk [vmem:[#allocation2 + $0x18] sm:$0xff] %vm1179_vm5, %v4950_v54  ;;  %v8946_v55 = vpop.f32.mrf.mxu1 }
 0xee5   : > { %v8951_v56 = vpop.f32.mrf.mxu0 }
 0xee6   : > { %v5029_v57 = vpop.f32.mrf.mxu1  ;;  %v5272_v17 = vld [vmem:[#allocation2 + $0x8] sm:$0xff] }
 0xee7   : > { %5033 = vst.msk [vmem:[#allocation2 + $0x20] sm:$0xff] %vm1179_vm5, %v5029_v57  ;;  %v5108_v59 = vpop.f32.mrf.mxu0  ;;  %v5280_v61 = vadd.f32 %v9424_v60, %v5272_v17 }
 0xee8   : > { %5112 = vst.msk [vmem:[#allocation2 + $0x28] sm:$0xff] %vm1179_vm5, %v5108_v59  ;;  %v8956_v62 = vpop.f32.mrf.mxu1 }
 0xee9   : > { %v8961_v63 = vpop.f32.mrf.mxu0  ;;  %v5290_v0 = vsel %vm1179_vm5, %v5280_v61, -inf }
 0xeea   : > { %5291 = vmax.xlane.f32.xlu0 %v5290_v0  ;;  %v5273_v1 = vld [vmem:[#allocation2 + $0x10] sm:$0xff] }
 0xeeb   : > { %v5187_v3 = vpop.f32.mrf.mxu1  ;;  %v5281_v5 = vadd.f32 %v9425_v4, %v5273_v1  ;;  %v5274_v6 = vld [vmem:[#allocation2 + $0x18] sm:$0xff] }
 0xeec   : > { %5191 = vst.msk [vmem:[#allocation2 + $0x30] sm:$0xff] %vm1179_vm5, %v5187_v3  ;;  %v5266_v8 = vpop.f32.mrf.mxu0  ;;  %v5282_v11 = vadd.f32 %v9426_v9, %v5274_v6 }
 0xeed   : > { %5270 = vst.msk [vmem:[#allocation2 + $0x38] sm:$0xff] %vm1179_vm5, %v5266_v8  ;;  %v8966_v13 = vpop.f32.mrf.mxu1  ;;  %v5293_v14 = vsel %vm1179_vm5, %v5281_v5, -inf }
 0xeee   : > { %v8971_v15 = vpop.f32.mrf.mxu0  ;;  %5294 = vmax.xlane.f32.xlu0 %v5293_v14  ;;  %v5296_v16 = vsel %vm1179_vm5, %v5282_v11, -inf  ;;  %v5275_v18 = vld [vmem:[#allocation2 + $0x20] sm:$0xff] }
 0xeef   : > { %5297 = vmax.xlane.f32.xlu1 %v5296_v16  ;;  %v5283_v20 = vadd.f32 %v9427_v19, %v5275_v18  ;;  %v5276_v21 = vld [vmem:[#allocation2 + $0x28] sm:$0xff] }
 0xef0   : > { %v5284_v24 = vadd.f32 %v9428_v23, %v5276_v21 }
 0xef1   : > { %v5299_v25 = vsel %vm1179_vm5, %v5283_v20, -inf }
 0xef2   : > { %5300 = vmax.xlane.f32.xlu0 %v5299_v25  ;;  %v5302_v27 = vsel %vm1179_vm5, %v5284_v24, -inf }
 0xef3   : > { %5303 = vmax.xlane.f32.xlu1 %v5302_v27  ;;  %v5277_v28 = vld [vmem:[#allocation2 + $0x30] sm:$0xff] }
 0xef4   : > { %v5285_v30 = vadd.f32 %v9429_v29, %v5277_v28  ;;  %v5278_v34 = vld [vmem:[#allocation2 + $0x38] sm:$0xff] }
 0xef5   : > { %v5286_v36 = vadd.f32 %v9430_v35, %v5278_v34 }
 0xef6   : > { %v5305_v41 = vsel %vm1179_vm5, %v5285_v30, -inf }
 0xef7   : > { %5306 = vmax.xlane.f32.xlu0 %v5305_v41  ;;  %v5308_v37 = vsel %vm1179_vm5, %v5286_v36, -inf }
 0xf01   : > { %v5289_v31 = vpop.xlane.xlu1 %5288 }
 0xf02   : > { %v5311_v32 = vsub.f32 %v5279_v49, %v5289_v31 }
 0xf04   : > { %5542 = vrot.lane.b32.xlu1 %v10309_v26, %s10955_s3  ;;  %v5319_v33 = vmul.f32 1.442695, %v5311_v32 }
 0xf06   : > { %9347 = vpow2.f32 %v5319_v33 }
 0xf0d   : > { %5460 = vrot.lane.b32.xlu0 %v10309_v26, %s10956_s2 }
 0xf13   : > { %v10394_v38 = vpop.eup %9347 }
 0xf14   : > { %v5335_v39 = vsel %vm1179_vm5, %v10394_v38, 0.0 }
 0xf28   : > { %5309 = vmax.xlane.f32.xlu1 %v5308_v37 }
 0xf2c   : > { %5336 = vadd.xlane.f32.xlu0 %v5335_v39 }
 0xf39   : > { %5624 = vrot.lane.b32.xlu1 %v10309_v26, %s10957_s0 }
 0xf73   : > { %v5292_v40 = vpop.xlane.xlu0 %5291 }
 0xf74   : > { %v5312_v42 = vsub.f32 %v5280_v61, %v5292_v40 }
 0xf76   : > { %v5321_v10 = vmul.f32 1.442695, %v5312_v42 }
 0xf77   : > { %v5295_v22 = vpop.xlane.xlu0 %5294 }
 0xf78   : > { %9349 = vpow2.f32 %v5321_v10  ;;  %v5313_v44 = vsub.f32 %v5281_v5, %v5295_v22  ;;  %v5298_v7 = vpop.xlane.xlu1 %5297 }
 0xf79   : > { %v5314_v45 = vsub.f32 %v5282_v11, %v5298_v7 }
 0xf7a   : > { %v5323_v46 = vmul.f32 1.442695, %v5313_v44 }
 0xf7b   : > { %v5325_v47 = vmul.f32 1.442695, %v5314_v45  ;;  %v5301_v48 = vpop.xlane.xlu0 %5300 }
 0xf7c   : > { %9351 = vpow2.f32 %v5323_v46  ;;  %v5315_v49 = vsub.f32 %v5283_v20, %v5301_v48  ;;  %v5304_v50 = vpop.xlane.xlu1 %5303 }
 0xf7d   : > { %9353 = vpow2.f32 %v5325_v47  ;;  %v5316_v51 = vsub.f32 %v5284_v24, %v5304_v50 }
 0xf7e   : > { %v5327_v52 = vmul.f32 1.442695, %v5315_v49 }
 0xf7f   : > { %v5329_v53 = vmul.f32 1.442695, %v5316_v51 }
 0xf80   : > { %9355 = vpow2.f32 %v5327_v52  ;;  %v5307_v54 = vpop.xlane.xlu0 %5306  ;;  %v5543_v8 = vpop.permute.xlu1 %5542 }
 0xf81   : > { %9357 = vpow2.f32 %v5329_v53  ;;  %v5317_v55 = vsub.f32 %v5285_v30, %v5307_v54 }
 0xf83   : > { %v5331_v56 = vmul.f32 1.442695, %v5317_v55 }
 0xf84   : > { %v5461_v57 = vpop.permute.xlu0 %5460 }
 0xf85   : > { %v9350_v17 = vpop.eup %9349  ;;  %9359 = vpow2.f32 %v5331_v56  ;;  %8978 = vmatpush3.msra.mxu0 %v5461_v57 }
 0xf86   : > { %v5338_v59 = vsel %vm1179_vm5, %v9350_v17, 0.0  ;;  %8987 = vmatprep.subr.mxu0 %v9495_v2 }
 0xf87   : > { %5339 = vadd.xlane.f32.xlu1 %v5338_v59 }
 0xf89   : > { %v9352_v60 = vpop.eup %9351 }
 0xf8a   : > { %v9354_v61 = vpop.eup %9353  ;;  %v5341_v62 = vsel %vm1179_vm5, %v9352_v60, 0.0 }
 0xf8b   : > { %5342 = vadd.xlane.f32.xlu0 %v5341_v62  ;;  %v5344_v63 = vsel %vm1179_vm5, %v9354_v61, 0.0 }
 0xf8c   : > { %5345 = vadd.xlane.f32.xlu1 %v5344_v63 }
 0xf8d   : > { %v9356_v0 = vpop.eup %9355 }
 0xf8e   : > { %v9358_v1 = vpop.eup %9357  ;;  %v5347_v3 = vsel %vm1179_vm5, %v9356_v0, 0.0 }
 0xf8f   : > { %5348 = vadd.xlane.f32.xlu0 %v5347_v3  ;;  %v5350_v4 = vsel %vm1179_vm5, %v9358_v1, 0.0 }
 0xf90   : > { %5351 = vadd.xlane.f32.xlu1 %v5350_v4  ;;  %v8269_v4 = vld [vmem:[%s10844_s22] ss:$0 sm:$0xff] }
 0xf92   : > { %v9360_v5 = vpop.eup %9359 }
 0xf93   : > { %v5353_v6 = vsel %vm1179_vm5, %v9360_v5, 0.0 }
 0xf94   : > { %5354 = vadd.xlane.f32.xlu0 %v5353_v6 }
 0xfa1   : > { %5788 = vrot.lane.b32.xlu1 %v10309_v26, %s10958_s29 }
 0xfaa   : > { %5706 = vrot.lane.b32.xlu0 %v10309_v26, %s10959_s8 }
 0xfae   : > { %5870 = vrot.lane.b32.xlu0 %v10309_v26, %s10960_s7 }
 0xfb1   : > { %v5310_v9 = vpop.xlane.xlu1 %5309 }
 0xfb2   : > { %v5318_v11 = vsub.f32 %v5286_v36, %v5310_v9  ;;  %v9257_v9 = vld [vmem:[%s10979_s15 + $0x18] sm:$0xff]  }
 0xfb4   : > { %v5333_v13 = vmul.f32 1.442695, %v5318_v11  ;;  %v9258_v11 = vld [vmem:[%s10979_s15 + $0x10] sm:$0xff]   ;;  %s10997_s15 = sld [smem:[#allocation38_spill]] }
 0xfb5   : > { %v5337_v14 = vpop.xlane.xlu0 %5336  ;;  %v5625_v21 = vpop.permute.xlu1 %5624 }
 0xfb6   : > { %9361 = vpow2.f32 %v5333_v13 }
 0xfb7   : > { %9363 = vrcp.f32 %v5337_v14 }
 0xfc3   : > { %v10413_v15 = vpop.eup %9361 }
 0xfc4   : > { %v9364_v16 = vpop.eup %9363  ;;  %v5356_v18 = vsel %vm1179_vm5, %v10413_v15, 0.0 }
 0xfc5   : > { %v5360_v19 = vmul.f32 %v9364_v16, %v10394_v38  ;;  %5357 = vadd.xlane.f32.xlu1 %v5356_v18 }
 0xfc7   : > { %5375 = vst.msk [vmem:[#allocation2] sm:$0xff] %vm1179_vm5, %v5360_v19 }
 0xfce   : > { %v5383_v20 = vld [vmem:[#allocation2] sm:$0xff] }
 0xfcf   : > { %8975 = vmatmul.mubr.msk.f32.vlgmr.msra.gmra.mxu1 %vm1179_vm5, %v5383_v20 }
 0xfd0   : > { %8983 = vmatpush3.msra.mxu1 %v5543_v8  ;;  %8984 = vmatprep.mubr.msk.f32.mxu1 %vm9496_vm0, %v9495_v2 }
 0xfd1   : > { %8992 = vmatprep.subr.mxu1 %v9495_v2 }
 0xfd6   : > { %5952 = vrot.lane.b32.xlu1 %v10309_v26, %s10961_s30 }
0x1010   : > { %v5340_v23 = vpop.xlane.xlu1 %5339 }
0x1011   : > { %9365 = vrcp.f32 %v5340_v23 }
0x1014   : > { %v5343_v24 = vpop.xlane.xlu0 %5342 }
0x1015   : > { %9367 = vrcp.f32 %v5343_v24  ;;  %v5346_v25 = vpop.xlane.xlu1 %5345 }
0x1016   : > { %9369 = vrcp.f32 %v5346_v25 }
0x1018   : > { %v5349_v27 = vpop.xlane.xlu0 %5348 }
0x1019   : > { %9371 = vrcp.f32 %v5349_v27  ;;  %v5352_v28 = vpop.xlane.xlu1 %5351 }
0x101a   : > { %9373 = vrcp.f32 %v5352_v28 }
0x101d   : > { %v5355_v29 = vpop.xlane.xlu0 %5354  ;;  %v5789_v44 = vpop.permute.xlu1 %5788 }
0x101e   : > { %v9366_v30 = vpop.eup %9365  ;;  %9375 = vrcp.f32 %v5355_v29 }
0x101f   : > { %v5362_v41 = vmul.f32 %v9366_v30, %v9350_v17  ;;  %v9259_v30 = vld [vmem:[%s10981_s11 + $0x18] sm:$0xff]  }
0x1021   : > { %5376 = vst.msk [vmem:[#allocation2 + $0x8] sm:$0xff] %vm1179_vm5, %v5362_v41  ;;  %v5707_v40 = vpop.permute.xlu0 %5706  ;;  %v9260_v41 = vld [vmem:[%s10981_s11 + $0x10] sm:$0xff]   ;;  %s10985_s11 = sld [smem:[#allocation35_spill]] }
0x1022   : > { %v9368_v31 = vpop.eup %9367 }
0x1023   : > { %v9370_v32 = vpop.eup %9369  ;;  %v5364_v26 = vmul.f32 %v9368_v31, %v9352_v60  ;;  %v9261_v31 = vld [vmem:[%s10982_s6 + $0x18] sm:$0xff]  }
0x1024   : > { %v5366_v33 = vmul.f32 %v9370_v32, %v9354_v61  ;;  %v9262_v32 = vld [vmem:[%s10982_s6 + $0x10] sm:$0xff]   ;;  %s10984_s6 = sld [smem:[#allocation34_spill]] }
0x1025   : > { %5377 = vst.msk [vmem:[#allocation2 + $0x10] sm:$0xff] %vm1179_vm5, %v5364_v26  ;;  %v5871_v45 = vpop.permute.xlu0 %5870 }
0x1026   : > { %v9372_v34 = vpop.eup %9371  ;;  %5378 = vst.msk [vmem:[#allocation2 + $0x18] sm:$0xff] %vm1179_vm5, %v5366_v33 }
0x1027   : > { %v9374_v35 = vpop.eup %9373  ;;  %v5368_v36 = vmul.f32 %v9372_v34, %v9356_v0 }
0x1028   : > { %v5370_v37 = vmul.f32 %v9374_v35, %v9358_v1  ;;  %v5458_v38 = vld [vmem:[#allocation2 + $0x8] sm:$0xff] }
0x1029   : > { %5379 = vst.msk [vmem:[#allocation2 + $0x20] sm:$0xff] %vm1179_vm5, %v5368_v36  ;;  %8980 = vmatmul.mubr.msk.f32.vlgmr.msra.gmra.mxu0 %vm1179_vm5, %v5458_v38 }
0x102a   : > { %5380 = vst.msk [vmem:[#allocation2 + $0x28] sm:$0xff] %vm1179_vm5, %v5370_v37  ;;  %8988 = vmatpush3.msra.mxu0 %v5625_v21  ;;  %8989 = vmatprep.mubr.msk.f32.mxu0 %vm9496_vm0, %v9495_v2  ;;  %v8278_v36 = vld [vmem:[%s10984_s6] ss:$0 sm:$0xff] }
0x102b   : > { %v9376_v39 = vpop.eup %9375  ;;  %8997 = vmatprep.subr.mxu0 %v9495_v2 }
0x102c   : > { %v5372_v42 = vmul.f32 %v9376_v39, %v9360_v5  ;;  %v5541_v10 = vld [vmem:[#allocation2 + $0x10] sm:$0xff]  ;;  %v4437_v5 = vadd.f32 %v8269_v4, %v10348_v43 }
0x102d   : > { %8985 = vmatmul.mubr.msk.f32.vlgmr.msra.gmra.mxu1 %vm1179_vm5, %v5541_v10  ;;  %v5623_v22 = vld [vmem:[#allocation2 + $0x18] sm:$0xff] }
0x102e   : > { %5381 = vst.msk [vmem:[#allocation2 + $0x30] sm:$0xff] %vm1179_vm5, %v5372_v42  ;;  %8990 = vmatmul.mubr.msk.f32.vlgmr.msra.gmra.mxu0 %vm1179_vm5, %v5623_v22  ;;  %8993 = vmatpush3.msra.mxu1 %v5707_v40  ;;  %v4442_v6 = vadd.f32 %v4437_v5, %v10234_v58  ;;  %v8330_v42 = vld [vmem:[%s10986_s12 + $0x1] ss:$0 sm:$0xff]  ;;  %s10988_s12 = sld [smem:[#allocation27_spill]] }
0x102f   : > { %8998 = vmatpush3.msra.mxu0 %v5789_v44  ;;  %8994 = vmatprep.mubr.msk.f32.mxu1 %vm9496_vm0, %v9495_v2 }
0x1030   : > { %8999 = vmatprep.mubr.msk.f32.mxu0 %vm9496_vm0, %v9495_v2  ;;  %9002 = vmatprep.subr.mxu1 %v9495_v2  ;;  %v5705_v7 = vld [vmem:[#allocation2 + $0x20] sm:$0xff]  ;;  %v4443_v8 = vsel %vm946_vm3, %v4442_v6, 0.0 }
0x1031   : > { %8995 = vmatmul.mubr.msk.f32.vlgmr.msra.gmra.mxu1 %vm1179_vm5, %v5705_v7  ;;  %v5787_v46 = vld [vmem:[#allocation2 + $0x28] sm:$0xff]  ;;  %9007 = vmatprep.subr.mxu0 %v9495_v2  ;;  %v9431_v7 = vld [vmem:[%s10983_s5] sm:$0xff]  ;;  %s9511_s5 = smov [#allocation4]  }
0x1032   : > { %9000 = vmatmul.mubr.msk.f32.vlgmr.msra.gmra.mxu0 %vm1179_vm5, %v5787_v46  ;;  %9003 = vmatpush3.msra.mxu1 %v5871_v45  ;;  %s9436_s26 = sshll.u32 %s9511_s5, 4  ;;  %s9437_s26 = int_to_ptr.vmem [resolvable:$false] %s9436_s26 }
0x1033   : > { %9004 = vmatprep.mubr.msk.f32.mxu1 %vm9496_vm0, %v9495_v2  ;;  %9009 = vmatprep.mubr.msk.f32.mxu0 %vm9496_vm0, %v9495_v2 }
0x1034   : > { %9012 = vmatprep.subr.bf16.mxu1 %v9495_v2 }
0x1035   : > { %v5869_v47 = vld [vmem:[#allocation2 + $0x30] sm:$0xff] }
0x1036   : > { %9005 = vmatmul.mubr.msk.f32.vlgmr.msra.gmra.mxu1 %vm1179_vm5, %v5869_v47 }
0x1037   : > { %9016 = vmatprep.mubr.msk.bf16.mxu1 %vm9496_vm0, %v9495_v2  ;;  %9013 = vmatpush3.bf16.msra.mxu1 %v9257_v9 }
0x1038   : > { %9014 = vmatprep.subr.bf16.mxu1 %v9495_v2 }
0x103b   : > { %9015 = vmatpush3.bf16.msra.mxu1 %v9258_v11 }
0x103c   : > { %9028 = vmatprep.subr.bf16.mxu1 %v9495_v2 }
0x104e   : > { %v5358_v48 = vpop.xlane.xlu1 %5357 }
0x104f   : > { %9377 = vrcp.f32 %v5358_v48 }
0x1052   : > { %v5953_v49 = vpop.permute.xlu1 %5952 }
0x1053   : > { %9008 = vmatpush3.msra.mxu0 %v5953_v49 }
0x1054   : > { %9020 = vmatprep.subr.bf16.mxu0 %v9495_v2 }
0x105c   : > { %v9378_v50 = vpop.eup %9377 }
0x105d   : > { %v5374_v51 = vmul.f32 %v9378_v50, %v10413_v15 }
0x105f   : > { %5382 = vst.msk [vmem:[#allocation2 + $0x38] sm:$0xff] %vm1179_vm5, %v5374_v51 }
0x1066   : > { %v5951_v52 = vld [vmem:[#allocation2 + $0x38] sm:$0xff] }
0x1067   : > { %9010 = vmatmul.mubr.msk.f32.vlgmr.msra.gmra.mxu0 %vm1179_vm5, %v5951_v52 }
0x1068   : > { %9024 = vmatprep.mubr.msk.bf16.mxu0 %vm9496_vm0, %v9495_v2  ;;  %9021 = vmatpush3.bf16.msra.mxu0 %v9261_v31 }
0x1069   : > { %9022 = vmatprep.subr.bf16.mxu0 %v9495_v2 }
0x106c   : > { %9023 = vmatpush3.bf16.msra.mxu0 %v9262_v32 }
0x106d   : > { %9036 = vmatprep.subr.bf16.mxu0 %v9495_v2 }
0x108f   : > { %v5453_v53 = vpop.f32.mrf.mxu1 }
0x1090   : > { %5457 = vst.msk [vmem:[#allocation3] sm:$0xff] %vm1102_vm4, %v5453_v53 }
0x1091   : > { %v8976_v54 = vpop.f32.mrf.mxu1 }
0x10e9   : > { %v5532_v55 = vpop.f32.mrf.mxu0 }
0x10ea   : > { %5537 = vrot.lane.b32.xlu0 %v5532_v55, %s10970_s24 }
0x10eb   : > { %v8981_v56 = vpop.f32.mrf.mxu0 }
0x10ed   : > { %v5614_v57 = vpop.f32.mrf.mxu1 }
0x10ee   : > { %v5696_v17 = vpop.f32.mrf.mxu0  ;;  %5619 = vrot.lane.b32.xlu1 %v5614_v57, %s10972_s25 }
0x10ef   : > { %5701 = vrot.lane.b32.xlu0 %v5696_v17, %s10973_s14  ;;  %v8986_v59 = vpop.f32.mrf.mxu1 }
0x10f0   : > { %v8991_v60 = vpop.f32.mrf.mxu0 }
0x10f1   : > { %v5778_v61 = vpop.f32.mrf.mxu1 }
0x10f2   : > { %v5860_v62 = vpop.f32.mrf.mxu0  ;;  %5783 = vrot.lane.b32.xlu1 %v5778_v61, %s10974_s4 }
0x10f3   : > { %5865 = vrot.lane.b32.xlu0 %v5860_v62, %s10975_s1  ;;  %v8996_v63 = vpop.f32.mrf.mxu1  ;;  %v9263_v62 = vld [vmem:[%s10987_s10 + $0x18] sm:$0xff]  }
0x10f4   : > { %v9001_v0 = vpop.f32.mrf.mxu0  ;;  %v9264_v63 = vld [vmem:[%s10987_s10 + $0x10] sm:$0xff]   ;;  %s10989_s10 = sld [smem:[#allocation28_spill]] }
0x10f6   : > { %v5942_v1 = vpop.f32.mrf.mxu1 }
0x10f7   : > { %5947 = vrot.lane.b32.xlu1 %v5942_v1, %s10976_s27 }
0x10f8   : > { %v9006_v3 = vpop.f32.mrf.mxu1 }
0x111b   : > { %4444 = vadd.xlane.f32.xlu1 %v4443_v8 }
0x1127   : > { %v6024_v43 = vpop.f32.mrf.mxu0 }
0x1128   : > { %6029 = vrot.lane.b32.xlu0 %v6024_v43, %s10980_s13 }
0x1129   : > { %v9011_v58 = vpop.f32.mrf.mxu0 }
0x112a   : > { %v8336_v58 = vld [vmem:[%s10988_s12 + $0x1] ss:$0 sm:$0xff] }
0x115c   : > { %v5538_v13 = vpop.permute.xlu0 %5537 }
0x115d   : > { %5540 = vst.msk [vmem:[#allocation3] sm:$0xff] %vm2003_vm6, %v5538_v13 }
0x1160   : > { %v5620_v14 = vpop.permute.xlu1 %5619 }
0x1161   : > { %5622 = vst.msk [vmem:[#allocation3] sm:$0xff] %vm2086_vm7, %v5620_v14  ;;  %v5702_v15 = vpop.permute.xlu0 %5701 }
0x1162   : > { %5704 = vst.msk [vmem:[#allocation3] sm:$0xff] %vm2169_vm8, %v5702_v15  ;;  %v8337_v15 = vld [vmem:[%s10989_s10 + $0x1] ss:$0 sm:$0xff]  ;;  %s9438_s10 = scalar_lea.vmem %s9437_s26, 256 }
0x1164   : > { %v5784_v16 = vpop.permute.xlu1 %5783 }
0x1165   : > { %5786 = vst.msk [vmem:[#allocation3] sm:$0xff] %vm2252_vm9, %v5784_v16  ;;  %v5866_v18 = vpop.permute.xlu0 %5865 }
0x1166   : > { %5868 = vst.msk [vmem:[#allocation3] sm:$0xff] %vm2335_vm10, %v5866_v18 }
0x1169   : > { %v5948_v19 = vpop.permute.xlu1 %5947 }
0x116a   : > { %5950 = vst.msk [vmem:[#allocation3] sm:$0xff] %vm2418_vm11, %v5948_v19 }
0x119a   : > { %v6030_v20 = vpop.permute.xlu0 %6029 }
0x119b   : > { %6032 = vst.msk [vmem:[#allocation3] sm:$0xff] %vm2501_vm12, %v6030_v20 }
0x11a2   : > { %v6033_v21 = vld [vmem:[#allocation3] sm:$0xff] }
0x11a3   : > { %v6039_v23 = vpack.c.bf16 %v6033_v21, %v6033_v21 }
0x11a4   : > { %v4445_v24 = vpop.xlane.xlu1 %4444 }
0x11a5   : > { %v4446_v25 = vmul.f32 0.03125, %v4445_v24  ;;  %9017 = vmatmul.mubr.msk.bf16.vlgmr.msra.gmra.mxu1 %vm946_vm3, %v6039_v23 }
0x11a6   : > { %9032 = vmatprep.mubr.msk.bf16.mxu1 %vm9496_vm0, %v9495_v2  ;;  %9029 = vmatpush3.bf16.msra.mxu1 %v9259_v30 }
0x11a7   : > { %v4447_v27 = vsub.f32 %v4442_v6, %v4446_v25  ;;  %9030 = vmatprep.subr.bf16.mxu1 %v9495_v2 }
0x11a9   : > { %v4448_v28 = vmul.f32 %v4447_v27, %v4447_v27 }
0x11aa   : > { %9031 = vmatpush3.bf16.msra.mxu1 %v9260_v41 }
0x11ab   : > { %v4449_v29 = vsel %vm946_vm3, %v4448_v28, 0.0  ;;  %9044 = vmatprep.subr.mxu1 %v9495_v2 }
0x11ac   : > { %4450 = vadd.xlane.f32.xlu0 %v4449_v29 }
0x11ad   : > { %9033 = vmatmul.mubr.msk.bf16.vlgmr.msra.gmra.mxu1 %vm946_vm3, %v9739_v12  ;;  %v8279_v12 = vld [vmem:[%s10985_s11] ss:$0 sm:$0xff] }
0x11ae   : > { %9046 = vmatprep.mubr.msk.f32.mxu1 %vm9496_vm0, %v9495_v2 }
0x1235   : > { %v4451_v26 = vpop.xlane.xlu0 %4450 }
0x1236   : > { %v4452_v33 = vmul.f32 0.03125, %v4451_v26 }
0x1238   : > { %v4453_v34 = vadd.f32 1e-05, %v4452_v33 }
0x123a   : > { %9379 = vrsqrt.f32 %v4453_v34 }
0x1247   : > { %v9380_v35 = vpop.eup %9379 }
0x1248   : > { %v4455_v37 = vmul.f32 %v9380_v35, %v4447_v27 }
0x124a   : > { %v4462_v38 = vmul.f32 %v8278_v36, %v4455_v37 }
0x124c   : > { %v4469_v39 = vadd.f32 %v8279_v12, %v4462_v38 }
0x124e   : > { %v6191_v40 = vpack.c.bf16 %v4469_v39, %v4469_v39 }
0x1250   : > { %9025 = vmatmul.mubr.msk.bf16.vlgmr.msra.gmra.mxu0 %vm946_vm3, %v6191_v40 }
0x1251   : > { %9040 = vmatprep.mubr.msk.bf16.mxu0 %vm9496_vm0, %v9495_v2  ;;  %9037 = vmatpush3.bf16.msra.mxu0 %v9263_v62 }
0x1252   : > { %9038 = vmatprep.subr.bf16.mxu0 %v9495_v2 }
0x1255   : > { %9039 = vmatpush3.bf16.msra.mxu0 %v9264_v63 }
0x1256   : > { %9049 = vmatprep.subr.mxu0 %v9495_v2 }
0x1265   : > { %v6097_v10 = vpop.f32.mrf.mxu1 }
0x1266   : > { %v6098_v22 = vadd.f32 %v8330_v42, %v6097_v10 }
0x1267   : > { %v9018_v44 = vpop.f32.mrf.mxu1 }
0x1268   : > { %v6103_v45 = vadd.f32 %v9431_v7, %v6098_v22 }
0x1269   : > { %v6100_v46 = vpop.f32.mrf.mxu1 }
0x126a   : > { %v6108_v47 = vsel %vm946_vm3, %v6103_v45, 0.0 }
0x126b   : > { %6109 = vadd.xlane.f32.xlu0 %v6108_v47  ;;  %v9019_v48 = vpop.f32.mrf.mxu1 }
0x126d   : > { %v6293_v49 = vpop.f32.mrf.mxu1 }
0x126e   : > { %9045 = vmatpush3.xpose.msk.msra.mxu1 %vm1102_vm4, %v6293_v49 }
0x126f   : > { %v9034_v50 = vpop.f32.mrf.mxu1  ;;  %9054 = vmatprep.subr.mxu1 %v9495_v2 }
0x1271   : > { %v6296_v51 = vpop.f32.mrf.mxu1 }
0x1273   : > { %v9035_v52 = vpop.f32.mrf.mxu1 }
0x1281   : > { %6434 = vrot.lane.b32.xlu0 %v6293_v49, %s10956_s2 }
0x1285   : > { %6592 = vrot.lane.b32.xlu0 %v6293_v49, %s10957_s0 }
0x12f4   : > { %v6110_v53 = vpop.xlane.xlu0 %6109 }
0x12f5   : > { %v6111_v54 = vmul.f32 0.03125, %v6110_v53 }
0x12f7   : > { %v6112_v55 = vsub.f32 %v6103_v45, %v6111_v54 }
0x12f8   : > { %v6435_v6 = vpop.permute.xlu0 %6434 }
0x12f9   : > { %v6113_v56 = vmul.f32 %v6112_v55, %v6112_v55 }
0x12fb   : > { %v6114_v57 = vsel %vm946_vm3, %v6113_v56, 0.0 }
0x12fc   : > { %6115 = vadd.xlane.f32.xlu1 %v6114_v57  ;;  %v6593_v9 = vpop.permute.xlu0 %6592 }
0x1310   : > { %v6241_v17 = vpop.f32.mrf.mxu0 }
0x1311   : > { %6590 = vrot.lane.b32.xlu0 %v6241_v17, %s10957_s0  ;;  %6432 = vrot.lane.b32.xlu1 %v6241_v17, %s10956_s2 }
0x1312   : > { %9047 = vmatmul.mubr.msk.f32.vlgmr.msra.gmra.mxu1 %vm1102_vm4, %v6241_v17  ;;  %v9026_v59 = vpop.f32.mrf.mxu0 }
0x1313   : > { %9056 = vmatprep.mubr.msk.f32.mxu1 %vm9496_vm0, %v9495_v2 }
0x1314   : > { %v6244_v60 = vpop.f32.mrf.mxu0 }
0x1315   : > { %6750 = vrot.lane.b32.xlu0 %v6293_v49, %s10958_s29  ;;  %6513 = vrot.lane.b32.xlu1 %v6293_v49, %s10955_s3 }
0x1316   : > { %v9027_v61 = vpop.f32.mrf.mxu0 }
0x1319   : > { %6748 = vrot.lane.b32.xlu0 %v6241_v17, %s10958_s29  ;;  %6511 = vrot.lane.b32.xlu1 %v6241_v17, %s10955_s3 }
0x131d   : > { %6908 = vrot.lane.b32.xlu0 %v6293_v49, %s10961_s30  ;;  %6671 = vrot.lane.b32.xlu1 %v6293_v49, %s10959_s8 }
0x1321   : > { %6906 = vrot.lane.b32.xlu0 %v6241_v17, %s10961_s30  ;;  %6669 = vrot.lane.b32.xlu1 %v6241_v17, %s10959_s8 }
0x1325   : > { %6829 = vrot.lane.b32.xlu1 %v6293_v49, %s10960_s7 }
0x1329   : > { %6827 = vrot.lane.b32.xlu1 %v6241_v17, %s10960_s7 }
0x1383   : > { %v6591_v18 = vpop.permute.xlu0 %6590 }
0x1385   : > { %v6116_v0 = vpop.xlane.xlu1 %6115 }
0x1386   : > { %v6117_v1 = vmul.f32 0.03125, %v6116_v0 }
0x1387   : > { %v6751_v23 = vpop.permute.xlu0 %6750 }
0x1388   : > { %v6118_v3 = vadd.f32 1e-05, %v6117_v1 }
0x1389   : > { %v6433_v4 = vpop.permute.xlu1 %6432 }
0x138a   : > { %9381 = vrsqrt.f32 %v6118_v3 }
0x138b   : > { %v6749_v25 = vpop.permute.xlu0 %6748 }
0x138d   : > { %v6514_v5 = vpop.permute.xlu1 %6513 }
0x138e   : > { %9055 = vmatpush3.xpose.msk.msra.mxu1 %vm1102_vm4, %v6514_v5 }
0x138f   : > { %9064 = vmatprep.subr.mxu1 %v9495_v2  ;;  %v6909_v27 = vpop.permute.xlu0 %6908 }
0x1391   : > { %v6512_v8 = vpop.permute.xlu1 %6511 }
0x1392   : > { %9057 = vmatmul.mubr.msk.f32.vlgmr.msra.gmra.mxu1 %vm1102_vm4, %v6512_v8 }
0x1393   : > { %9066 = vmatprep.mubr.msk.f32.mxu1 %vm9496_vm0, %v9495_v2  ;;  %v6907_v28 = vpop.permute.xlu0 %6906 }
0x1395   : > { %v6672_v11 = vpop.permute.xlu1 %6671 }
0x1396   : > { %9065 = vmatpush3.xpose.msk.msra.mxu1 %vm1102_vm4, %v6672_v11 }
0x1397   : > { %v9382_v43 = vpop.eup %9381  ;;  %9074 = vmatprep.subr.mxu1 %v9495_v2 }
0x1398   : > { %v6120_v13 = vmul.f32 %v9382_v43, %v6112_v55 }
0x1399   : > { %v6670_v14 = vpop.permute.xlu1 %6669 }
0x139a   : > { %9067 = vmatmul.mubr.msk.f32.vlgmr.msra.gmra.mxu1 %vm1102_vm4, %v6670_v14  ;;  %v6127_v16 = vmul.f32 %v8336_v58, %v6120_v13 }
0x139b   : > { %9076 = vmatprep.mubr.msk.f32.mxu1 %vm9496_vm0, %v9495_v2 }
0x139c   : > { %v10570_v19 = vadd.f32 %v8337_v15, %v6127_v16 }
0x139d   : > { %v6830_v20 = vpop.permute.xlu1 %6829 }
0x139e   : > { %9075 = vmatpush3.xpose.msk.msra.mxu1 %vm1102_vm4, %v6830_v20  ;;  %v6299_v21 = vpack.c.bf16 %v10570_v19, %v10570_v19 }
0x139f   : > { %9084 = vmatprep.subr.mxu1 %v9495_v2 }
0x13a0   : > { %9041 = vmatmul.mubr.msk.bf16.vlgmr.msra.gmra.mxu0 %vm946_vm3, %v6299_v21 }
0x13a1   : > { %9050 = vmatpush3.xpose.msk.msra.mxu0 %vm1102_vm4, %v6435_v6  ;;  %v6828_v24 = vpop.permute.xlu1 %6827  ;;  %9051 = vmatprep.mubr.msk.f32.mxu0 %vm9496_vm0, %v9495_v2 }
0x13a2   : > { %9077 = vmatmul.mubr.msk.f32.vlgmr.msra.gmra.mxu1 %vm1102_vm4, %v6828_v24  ;;  %9059 = vmatprep.subr.mxu0 %v9495_v2 }
0x13a3   : > { %9086 = vmatprep.mubr.msk.f32.mxu1 %vm9496_vm0, %v9495_v2 }
0x13a8   : > { %9052 = vmatmul.mubr.msk.f32.vlgmr.msra.gmra.mxu0 %vm1102_vm4, %v6433_v4 }
0x13a9   : > { %9060 = vmatpush3.xpose.msk.msra.mxu0 %vm1102_vm4, %v6593_v9  ;;  %9061 = vmatprep.mubr.msk.f32.mxu0 %vm9496_vm0, %v9495_v2 }
0x13aa   : > { %9069 = vmatprep.subr.mxu0 %v9495_v2 }
0x13ac   : > { %9062 = vmatmul.mubr.msk.f32.vlgmr.msra.gmra.mxu0 %vm1102_vm4, %v6591_v18 }
0x13ad   : > { %9070 = vmatpush3.xpose.msk.msra.mxu0 %vm1102_vm4, %v6751_v23  ;;  %9071 = vmatprep.mubr.msk.f32.mxu0 %vm9496_vm0, %v9495_v2 }
0x13ae   : > { %9079 = vmatprep.subr.mxu0 %v9495_v2 }
0x13b0   : > { %9072 = vmatmul.mubr.msk.f32.vlgmr.msra.gmra.mxu0 %vm1102_vm4, %v6749_v25 }
0x13b1   : > { %9080 = vmatpush3.xpose.msk.msra.mxu0 %vm1102_vm4, %v6909_v27  ;;  %9081 = vmatprep.mubr.msk.f32.mxu0 %vm9496_vm0, %v9495_v2 }
0x13b2   : > { %9089 = vmatprep.subr.mxu0 %v9495_v2 }
0x13b4   : > { %9082 = vmatmul.mubr.msk.f32.vlgmr.msra.gmra.mxu0 %vm1102_vm4, %v6907_v28 }
0x13b5   : > { %9091 = vmatprep.mubr.msk.f32.mxu0 %vm9496_vm0, %v9495_v2 }
0x13d2   : > { %v6427_v29 = vpop.f32.mrf.mxu1 }
0x13d3   : > { %6431 = vst.msk [vmem:[#allocation2] sm:$0xff] %vm1179_vm5, %v6427_v29 }
0x13d4   : > { %v9048_v30 = vpop.f32.mrf.mxu1 }
0x13da   : > { %v6985_v41 = vld [vmem:[#allocation2] sm:$0xff] }
0x13db   : > { %v6993_v31 = vsel %vm1179_vm5, %v6985_v41, -inf }
0x13dc   : > { %6994 = vmax.xlane.f32.xlu1 %v6993_v31 }
0x1452   : > { %v6585_v32 = vpop.f32.mrf.mxu1 }
0x1453   : > { %6589 = vst.msk [vmem:[#allocation2 + $0x10] sm:$0xff] %vm1179_vm5, %v6585_v32 }
0x1454   : > { %v9058_v26 = vpop.f32.mrf.mxu1 }
0x145a   : > { %v6743_v33 = vpop.f32.mrf.mxu1  ;;  %v6987_v50 = vld [vmem:[#allocation2 + $0x10] sm:$0xff] }
0x145b   : > { %6747 = vst.msk [vmem:[#allocation2 + $0x20] sm:$0xff] %vm1179_vm5, %v6743_v33  ;;  %v6999_v53 = vsel %vm1179_vm5, %v6987_v50, -inf }
0x145c   : > { %v9068_v34 = vpop.f32.mrf.mxu1 }
0x1460   : > { %v10606_v35 = vpop.f32.mrf.mxu0 }
0x1461   : > { %9085 = vmatpush3.msra.mxu1 %v10606_v35 }
0x1462   : > { %v9042_v36 = vpop.f32.mrf.mxu0  ;;  %v6901_v37 = vpop.f32.mrf.mxu1  ;;  %9094 = vmatprep.subr.mxu1 %v9495_v2  ;;  %v6989_v56 = vld [vmem:[#allocation2 + $0x20] sm:$0xff] }
0x1463   : > { %6905 = vst.msk [vmem:[#allocation2 + $0x30] sm:$0xff] %vm1179_vm5, %v6901_v37  ;;  %v7005_v17 = vsel %vm1179_vm5, %v6989_v56, -inf }
0x1464   : > { %v6352_v12 = vpop.f32.mrf.mxu0  ;;  %v9078_v38 = vpop.f32.mrf.mxu1 }
0x1465   : > { %v6995_v39 = vpop.xlane.xlu1 %6994 }
0x1466   : > { %v9043_v40 = vpop.f32.mrf.mxu0  ;;  %v7017_v10 = vsub.f32 %v6985_v41, %v6995_v39 }
0x1468   : > { %v6506_v42 = vpop.f32.mrf.mxu0  ;;  %v7025_v7 = vmul.f32 1.442695, %v7017_v10 }
0x1469   : > { %6510 = vst.msk [vmem:[#allocation2 + $0x8] sm:$0xff] %vm1179_vm5, %v6506_v42 }
0x146a   : > { %v9053_v22 = vpop.f32.mrf.mxu0  ;;  %9383 = vpow2.f32 %v7025_v7  ;;  %v6991_v60 = vld [vmem:[#allocation2 + $0x30] sm:$0xff] }
0x146b   : > { %v7011_v62 = vsel %vm1179_vm5, %v6991_v60, -inf }
0x146c   : > { %v6664_v44 = vpop.f32.mrf.mxu0 }
0x146d   : > { %6668 = vst.msk [vmem:[#allocation2 + $0x18] sm:$0xff] %vm1179_vm5, %v6664_v44 }
0x146e   : > { %v9063_v45 = vpop.f32.mrf.mxu0 }
0x1470   : > { %v6822_v46 = vpop.f32.mrf.mxu0  ;;  %v6986_v47 = vld [vmem:[#allocation2 + $0x8] sm:$0xff] }
0x1471   : > { %6826 = vst.msk [vmem:[#allocation2 + $0x28] sm:$0xff] %vm1179_vm5, %v6822_v46  ;;  %v6996_v48 = vsel %vm1179_vm5, %v6986_v47, -inf }
0x1472   : > { %6997 = vmax.xlane.f32.xlu0 %v6996_v48  ;;  %v9073_v49 = vpop.f32.mrf.mxu0 }
0x1474   : > { %v6980_v51 = vpop.f32.mrf.mxu0  ;;  %v6988_v52 = vld [vmem:[#allocation2 + $0x18] sm:$0xff] }
0x1475   : > { %6984 = vst.msk [vmem:[#allocation2 + $0x38] sm:$0xff] %vm1179_vm5, %v6980_v51  ;;  %v7002_v54 = vsel %vm1179_vm5, %v6988_v52, -inf }
0x1476   : > { %7000 = vmax.xlane.f32.xlu0 %v6999_v53  ;;  %7003 = vmax.xlane.f32.xlu1 %v7002_v54  ;;  %v9083_v55 = vpop.f32.mrf.mxu0 }
0x1477   : > { %v9384_v0 = vpop.eup %9383 }
0x1478   : > { %v6990_v57 = vld [vmem:[#allocation2 + $0x28] sm:$0xff]  ;;  %v7041_v1 = vsel %vm1179_vm5, %v9384_v0, 0.0 }
0x1479   : > { %v7008_v59 = vsel %vm1179_vm5, %v6990_v57, -inf }
0x147a   : > { %7006 = vmax.xlane.f32.xlu0 %v7005_v17  ;;  %7009 = vmax.xlane.f32.xlu1 %v7008_v59 }
0x147c   : > { %v6992_v61 = vld [vmem:[#allocation2 + $0x38] sm:$0xff] }
0x147d   : > { %v7014_v63 = vsel %vm1179_vm5, %v6992_v61, -inf }
0x147e   : > { %7012 = vmax.xlane.f32.xlu0 %v7011_v62  ;;  %7015 = vmax.xlane.f32.xlu1 %v7014_v63 }
0x1482   : > { %7042 = vadd.xlane.f32.xlu0 %v7041_v1 }
0x148f   : > { %7248 = vrot.lane.b32.xlu1 %v10606_v35, %s10955_s3 }
0x1493   : > { %7330 = vrot.lane.b32.xlu1 %v10606_v35, %s10957_s0  ;;  %s10993_s0 = sld [smem:[#allocation37_spill]] }
0x1497   : > { %7494 = vrot.lane.b32.xlu1 %v10606_v35, %s10958_s29  ;;  %s10994_s29 = sld [smem:[#allocation8_spill]] }
0x14fb   : > { %v6998_v3 = vpop.xlane.xlu0 %6997 }
0x14fc   : > { %v7018_v4 = vsub.f32 %v6986_v47, %v6998_v3 }
0x14fe   : > { %v7027_v5 = vmul.f32 1.442695, %v7018_v4 }
0x14ff   : > { %v7001_v6 = vpop.xlane.xlu0 %7000  ;;  %v7004_v8 = vpop.xlane.xlu1 %7003 }
0x1500   : > { %9385 = vpow2.f32 %v7027_v5  ;;  %v7019_v9 = vsub.f32 %v6987_v50, %v7001_v6  ;;  %v7020_v11 = vsub.f32 %v6988_v52, %v7004_v8 }
0x1502   : > { %v7029_v43 = vmul.f32 1.442695, %v7019_v9  ;;  %v7031_v58 = vmul.f32 1.442695, %v7020_v11 }
0x1503   : > { %v7007_v13 = vpop.xlane.xlu0 %7006  ;;  %v7010_v14 = vpop.xlane.xlu1 %7009 }
0x1504   : > { %9387 = vpow2.f32 %v7029_v43  ;;  %v7021_v15 = vsub.f32 %v6989_v56, %v7007_v13  ;;  %v7022_v16 = vsub.f32 %v6990_v57, %v7010_v14 }
0x1505   : > { %9389 = vpow2.f32 %v7031_v58 }
0x1506   : > { %v7033_v18 = vmul.f32 1.442695, %v7021_v15  ;;  %v7035_v20 = vmul.f32 1.442695, %v7022_v16 }
0x1507   : > { %v7013_v21 = vpop.xlane.xlu0 %7012  ;;  %v7016_v23 = vpop.xlane.xlu1 %7015 }
0x1508   : > { %9391 = vpow2.f32 %v7033_v18  ;;  %v7023_v24 = vsub.f32 %v6991_v60, %v7013_v21  ;;  %v7024_v25 = vsub.f32 %v6992_v61, %v7016_v23 }
0x1509   : > { %9393 = vpow2.f32 %v7035_v20 }
0x150a   : > { %v7037_v27 = vmul.f32 1.442695, %v7023_v24  ;;  %v7039_v28 = vmul.f32 1.442695, %v7024_v25 }
0x150b   : > { %v7043_v29 = vpop.xlane.xlu0 %7042  ;;  %v7249_v7 = vpop.permute.xlu1 %7248 }
0x150c   : > { %9395 = vpow2.f32 %v7037_v27 }
0x150d   : > { %v9386_v30 = vpop.eup %9385  ;;  %9397 = vpow2.f32 %v7039_v28 }
0x150e   : > { %9399 = vrcp.f32 %v7043_v29  ;;  %v7044_v41 = vsel %vm1179_vm5, %v9386_v30, 0.0 }
0x150f   : > { %7045 = vadd.xlane.f32.xlu1 %v7044_v41  ;;  %v7331_v45 = vpop.permute.xlu1 %7330 }
0x1511   : > { %v9388_v31 = vpop.eup %9387 }
0x1512   : > { %v9390_v32 = vpop.eup %9389  ;;  %v7047_v26 = vsel %vm1179_vm5, %v9388_v31, 0.0 }
0x1513   : > { %7048 = vadd.xlane.f32.xlu0 %v7047_v26  ;;  %v7050_v33 = vsel %vm1179_vm5, %v9390_v32, 0.0  ;;  %v7495_v46 = vpop.permute.xlu1 %7494 }
0x1514   : > { %7051 = vadd.xlane.f32.xlu1 %v7050_v33 }
0x1515   : > { %v9392_v34 = vpop.eup %9391 }
0x1516   : > { %v9394_v36 = vpop.eup %9393  ;;  %v7053_v37 = vsel %vm1179_vm5, %v9392_v34, 0.0 }
0x1517   : > { %7054 = vadd.xlane.f32.xlu0 %v7053_v37  ;;  %v7056_v12 = vsel %vm1179_vm5, %v9394_v36, 0.0 }
0x1518   : > { %7057 = vadd.xlane.f32.xlu1 %v7056_v12 }
0x1519   : > { %v9396_v38 = vpop.eup %9395 }
0x151a   : > { %v9398_v39 = vpop.eup %9397  ;;  %v7059_v40 = vsel %vm1179_vm5, %v9396_v38, 0.0 }
0x151b   : > { %v9400_v42 = vpop.eup %9399  ;;  %7060 = vadd.xlane.f32.xlu0 %v7059_v40  ;;  %v7062_v10 = vsel %vm1179_vm5, %v9398_v39, 0.0 }
0x151c   : > { %v7066_v22 = vmul.f32 %v9400_v42, %v9384_v0  ;;  %7063 = vadd.xlane.f32.xlu1 %v7062_v10 }
0x151e   : > { %7081 = vst.msk [vmem:[#allocation2] sm:$0xff] %vm1179_vm5, %v7066_v22 }
0x1525   : > { %v7089_v44 = vld [vmem:[#allocation2] sm:$0xff] }
0x1526   : > { %9087 = vmatmul.mubr.msk.f32.vlgmr.msra.gmra.mxu1 %vm1179_vm5, %v7089_v44 }
0x1527   : > { %9095 = vmatpush3.msra.mxu1 %v7249_v7  ;;  %9096 = vmatprep.mubr.msk.f32.mxu1 %vm9496_vm0, %v9495_v2 }
0x1528   : > { %9104 = vmatprep.subr.mxu1 %v9495_v2 }
0x152d   : > { %7658 = vrot.lane.b32.xlu1 %v10606_v35, %s10961_s30 }
0x1531   : > { %7166 = vrot.lane.b32.xlu0 %v10606_v35, %s10956_s2  ;;  %s10990_s2 = sld [smem:[#allocation32_spill]] }
0x1535   : > { %7412 = vrot.lane.b32.xlu0 %v10606_v35, %s10959_s8 }
0x1537   : > { %v9265_v21 = vld [vmem:[%s10990_s2 + $0x18] sm:$0xff]   ;;  %v9266_v24 = vld [vmem:[%s10990_s2 + $0x10] sm:$0xff]  }
0x1539   : > { %7576 = vrot.lane.b32.xlu0 %v10606_v35, %s10960_s7  ;;  %s10991_s7 = sld [smem:[#allocation33_spill]] }
0x153f   : > { %v8414_v7 = vld [vmem:[%s10991_s7 + $0x1] ss:$0 sm:$0xff]  ;;  %s820_s7 = sand.u32 1, %s10994_s29  }
0x1540   : > { %s8094_s9 = scalar_lea.sflag [#allocation5], %s820_s7 }
0x1598   : > { %v7046_v47 = vpop.xlane.xlu1 %7045 }
0x1599   : > { %9401 = vrcp.f32 %v7046_v47 }
0x159c   : > { %v7049_v48 = vpop.xlane.xlu0 %7048 }
0x159d   : > { %9403 = vrcp.f32 %v7049_v48  ;;  %v7052_v49 = vpop.xlane.xlu1 %7051 }
0x159e   : > { %9405 = vrcp.f32 %v7052_v49 }
0x15a0   : > { %v7055_v50 = vpop.xlane.xlu0 %7054 }
0x15a1   : > { %9407 = vrcp.f32 %v7055_v50  ;;  %v7058_v51 = vpop.xlane.xlu1 %7057 }
0x15a2   : > { %9409 = vrcp.f32 %v7058_v51 }
0x15a4   : > { %v7061_v52 = vpop.xlane.xlu0 %7060 }
0x15a5   : > { %9411 = vrcp.f32 %v7061_v52  ;;  %v7064_v53 = vpop.xlane.xlu1 %7063 }
0x15a6   : > { %v9402_v54 = vpop.eup %9401  ;;  %9413 = vrcp.f32 %v7064_v53 }
0x15a7   : > { %v7068_v55 = vmul.f32 %v9402_v54, %v9386_v30 }
0x15a8   : > { %v7167_v56 = vpop.permute.xlu0 %7166 }
0x15a9   : > { %7082 = vst.msk [vmem:[#allocation2 + $0x8] sm:$0xff] %vm1179_vm5, %v7068_v55  ;;  %9090 = vmatpush3.msra.mxu0 %v7167_v56  ;;  %v7659_v13 = vpop.permute.xlu1 %7658 }
0x15aa   : > { %v9404_v35 = vpop.eup %9403  ;;  %9099 = vmatprep.subr.mxu0 %v9495_v2 }
0x15ab   : > { %v9406_v57 = vpop.eup %9405  ;;  %v7070_v17 = vmul.f32 %v9404_v35, %v9388_v31  ;;  %v9267_v35 = vld [vmem:[%s10841_s19 + $0x18] sm:$0xff]  }
0x15ac   : > { %v7072_v59 = vmul.f32 %v9406_v57, %v9390_v32  ;;  %v7413_v5 = vpop.permute.xlu0 %7412  ;;  %v9269_v57 = vld [vmem:[%s10843_s21 + $0x78] sm:$0xff]  }
0x15ad   : > { %7083 = vst.msk [vmem:[#allocation2 + $0x10] sm:$0xff] %vm1179_vm5, %v7070_v17  ;;  %v9270_v17 = vld [vmem:[%s10843_s21 + $0x70] sm:$0xff]  }
0x15ae   : > { %v9408_v60 = vpop.eup %9407  ;;  %7084 = vst.msk [vmem:[#allocation2 + $0x18] sm:$0xff] %vm1179_vm5, %v7072_v59  ;;  %v9271_v59 = vld [vmem:[%s10843_s21 + $0x68] sm:$0xff]  }
0x15af   : > { %v9410_v61 = vpop.eup %9409  ;;  %v7074_v62 = vmul.f32 %v9408_v60, %v9392_v34  ;;  %v9272_v60 = vld [vmem:[%s10843_s21 + $0x60] sm:$0xff]  }
0x15b0   : > { %v7076_v63 = vmul.f32 %v9410_v61, %v9394_v36  ;;  %v7164_v0 = vld [vmem:[#allocation2 + $0x8] sm:$0xff]  ;;  %v7577_v43 = vpop.permute.xlu0 %7576  ;;  %v9273_v61 = vld [vmem:[%s10843_s21 + $0x58] sm:$0xff]  }
0x15b1   : > { %7085 = vst.msk [vmem:[#allocation2 + $0x20] sm:$0xff] %vm1179_vm5, %v7074_v62  ;;  %9092 = vmatmul.mubr.msk.f32.vlgmr.msra.gmra.mxu0 %vm1179_vm5, %v7164_v0  ;;  %v9274_v62 = vld [vmem:[%s10843_s21 + $0x50] sm:$0xff]  }
0x15b2   : > { %v9412_v1 = vpop.eup %9411  ;;  %7086 = vst.msk [vmem:[#allocation2 + $0x28] sm:$0xff] %vm1179_vm5, %v7076_v63  ;;  %9100 = vmatpush3.msra.mxu0 %v7331_v45  ;;  %9101 = vmatprep.mubr.msk.f32.mxu0 %vm9496_vm0, %v9495_v2 }
0x15b3   : > { %v9414_v3 = vpop.eup %9413  ;;  %v7078_v4 = vmul.f32 %v9412_v1, %v9396_v38  ;;  %9109 = vmatprep.subr.mxu0 %v9495_v2 }
0x15b4   : > { %v7080_v6 = vmul.f32 %v9414_v3, %v9398_v39  ;;  %v7247_v8 = vld [vmem:[#allocation2 + $0x10] sm:$0xff] }
0x15b5   : > { %7087 = vst.msk [vmem:[#allocation2 + $0x30] sm:$0xff] %vm1179_vm5, %v7078_v4  ;;  %9097 = vmatmul.mubr.msk.f32.vlgmr.msra.gmra.mxu1 %vm1179_vm5, %v7247_v8  ;;  %v7329_v9 = vld [vmem:[#allocation2 + $0x18] sm:$0xff]  ;;  %v8418_v4 = vld [vmem:[%s10839_s17 + $0x1] ss:$0 sm:$0xff] }
0x15b6   : > { %7088 = vst.msk [vmem:[#allocation2 + $0x38] sm:$0xff] %vm1179_vm5, %v7080_v6  ;;  %9102 = vmatmul.mubr.msk.f32.vlgmr.msra.gmra.mxu0 %vm1179_vm5, %v7329_v9  ;;  %9105 = vmatpush3.msra.mxu1 %v7413_v5  ;;  %v8419_v6 = vld [vmem:[%s10840_s18 + $0x1] ss:$0 sm:$0xff] }
0x15b7   : > { %9110 = vmatpush3.msra.mxu0 %v7495_v46  ;;  %9106 = vmatprep.mubr.msk.f32.mxu1 %vm9496_vm0, %v9495_v2 }
0x15b8   : > { %9111 = vmatprep.mubr.msk.f32.mxu0 %vm9496_vm0, %v9495_v2  ;;  %9114 = vmatprep.subr.mxu1 %v9495_v2  ;;  %v7411_v11 = vld [vmem:[#allocation2 + $0x20] sm:$0xff] }
0x15b9   : > { %9119 = vmatprep.subr.mxu0 %v9495_v2  ;;  %9107 = vmatmul.mubr.msk.f32.vlgmr.msra.gmra.mxu1 %vm1179_vm5, %v7411_v11  ;;  %v7493_v58 = vld [vmem:[#allocation2 + $0x28] sm:$0xff] }
0x15ba   : > { %9112 = vmatmul.mubr.msk.f32.vlgmr.msra.gmra.mxu0 %vm1179_vm5, %v7493_v58  ;;  %9115 = vmatpush3.msra.mxu1 %v7577_v43  ;;  %v9275_v43 = vld [vmem:[%s10843_s21 + $0x48] sm:$0xff]   ;;  %v9276_v58 = vld [vmem:[%s10843_s21 + $0x40] sm:$0xff]  }
0x15bb   : > { %9120 = vmatpush3.msra.mxu0 %v7659_v13  ;;  %9116 = vmatprep.mubr.msk.f32.mxu1 %vm9496_vm0, %v9495_v2  ;;  %v8420_v13 = vld [vmem:[%s10842_s20 + $0x1] ss:$0 sm:$0xff] }
0x15bc   : > { %9121 = vmatprep.mubr.msk.f32.mxu0 %vm9496_vm0, %v9495_v2  ;;  %v7575_v14 = vld [vmem:[#allocation2 + $0x30] sm:$0xff]  ;;  %9124 = vmatprep.subr.bf16.mxu1 %v9495_v2 }
0x15bd   : > { %9117 = vmatmul.mubr.msk.f32.vlgmr.msra.gmra.mxu1 %vm1179_vm5, %v7575_v14  ;;  %v7657_v15 = vld [vmem:[#allocation2 + $0x38] sm:$0xff]  ;;  %9132 = vmatprep.subr.bf16.mxu0 %v9495_v2 }
0x15be   : > { %9122 = vmatmul.mubr.msk.f32.vlgmr.msra.gmra.mxu0 %vm1179_vm5, %v7657_v15  ;;  %9128 = vmatprep.mubr.msk.bf16.mxu1 %vm9496_vm0, %v9495_v2 }
0x15bf   : > { %9136 = vmatprep.mubr.msk.bf16.mxu0 %vm9496_vm0, %v9495_v2  ;;  %9125 = vmatpush3.bf16.msra.mxu1 %v9265_v21 }
0x15c0   : > { %9126 = vmatprep.subr.bf16.mxu1 %v9495_v2  ;;  %9133 = vmatpush3.bf16.msra.mxu0 %v9267_v35 }
0x15c1   : > { %9134 = vmatprep.subr.bf16.mxu0 %v9495_v2 }
0x15c3   : > { %9127 = vmatpush3.bf16.msra.mxu1 %v9266_v24  ;;  %v8424_v24 = vld [vmem:[%s10844_s22 + $0x1] ss:$0 sm:$0xff] }
0x15c4   : > { %9140 = vmatprep.subr.bf16.mxu1 %v9495_v2 }
0x15e6   : > { %v7159_v16 = vpop.f32.mrf.mxu1 }
0x15e7   : > { %7163 = vst.msk [vmem:[#allocation3] sm:$0xff] %vm1102_vm4, %v7159_v16 }
0x15e8   : > { %v9088_v18 = vpop.f32.mrf.mxu1 }
0x1671   : > { %v7238_v20 = vpop.f32.mrf.mxu0 }
0x1672   : > { %7243 = vrot.lane.b32.xlu0 %v7238_v20, %s10970_s24 }
0x1673   : > { %v9093_v23 = vpop.f32.mrf.mxu0 }
0x1675   : > { %v7320_v25 = vpop.f32.mrf.mxu1 }
0x1676   : > { %v7402_v27 = vpop.f32.mrf.mxu0  ;;  %7325 = vrot.lane.b32.xlu1 %v7320_v25, %s10972_s25  ;;  %s8182_s25 = sshll.u32 %s820_s7, 3 }
0x1677   : > { %7407 = vrot.lane.b32.xlu0 %v7402_v27, %s10973_s14  ;;  %v9098_v28 = vpop.f32.mrf.mxu1  ;;  %s10995_s14 = sld [smem:[#allocation11_spill]] }
0x1678   : > { %v9103_v29 = vpop.f32.mrf.mxu0 }
0x1679   : > { %v7484_v30 = vpop.f32.mrf.mxu1 }
0x167a   : > { %v7566_v41 = vpop.f32.mrf.mxu0  ;;  %7489 = vrot.lane.b32.xlu1 %v7484_v30, %s10974_s4  ;;  %s822_s4 = scalar_lea.vmem [#allocation4], %s8182_s25 }
0x167b   : > { %7571 = vrot.lane.b32.xlu0 %v7566_v41, %s10975_s1  ;;  %v9108_v31 = vpop.f32.mrf.mxu1  ;;  %s8107_s1 = sshll.u32 %s822_s4, 4  ;;  %s8108_s1 = int_to_ptr.vmem [resolvable:$true] %s8107_s1 }
0x167c   : > { %v9113_v32 = vpop.f32.mrf.mxu0  ;;  %s9432_s12 = scalar_lea.vmem %s8108_s1, 128  ;;  %p9439_p0 = scmp.lt.s32.totalorder %s8108_s1, %s9437_s26 }
0x167d   : > { %v7648_v26 = vpop.f32.mrf.mxu1  ;;  %s8440_s24 = sshll.u32 %s10995_s14, 7  ;;  %p9433_p11 = scmp.ne.s32.totalorder %s8108_s1, %s9432_s12 }
0x167e   : > { %v7730_v33 = vpop.f32.mrf.mxu0  ;;  %7653 = vrot.lane.b32.xlu1 %v7648_v26, %s10976_s27  ;;  %s8105_s23 = scalar_lea.hbm %s10997_s15, %s8440_s24  ;;  %p9440_p1 = scmp.lt.s32.totalorder %s9438_s10, %s9432_s12 }
0x167f   : > { %7735 = vrot.lane.b32.xlu0 %v7730_v33, %s10980_s13  ;;  %v9118_v34 = vpop.f32.mrf.mxu1  ;;  %p9434_p12 = pnand %p9433_p11, %p9690_p5 }
0x1680   : > { %v9123_v36 = vpop.f32.mrf.mxu0  ;;  %p9441_p2 = por %p9440_p1, %p9439_p0 }
0x1681   : > { %p9435_p13 = pneg %p9434_p12 }
0x1683   : > { %p9442_p3 = pnand %p9441_p2, %p9435_p13 }
0x16e4   : > { %v7244_v37 = vpop.permute.xlu0 %7243 }
0x16e5   : > { %7246 = vst.msk [vmem:[#allocation3] sm:$0xff] %vm2003_vm6, %v7244_v37  ;;  %v9277_v37 = vld [vmem:[%s10992_s16 + $0x8] sm:$0xff]  }
0x16e8   : > { %v7326_v12 = vpop.permute.xlu1 %7325 }
0x16e9   : > { %7328 = vst.msk [vmem:[#allocation3] sm:$0xff] %vm2086_vm7, %v7326_v12  ;;  %v7408_v38 = vpop.permute.xlu0 %7407  ;;  %v9278_v12 = vld [vmem:[%s10992_s16] sm:$0xff]  }
0x16ea   : > { %7410 = vst.msk [vmem:[#allocation3] sm:$0xff] %vm2169_vm8, %v7408_v38 }
0x16ec   : > { %v7490_v39 = vpop.permute.xlu1 %7489 }
0x16ed   : > { %7492 = vst.msk [vmem:[#allocation3] sm:$0xff] %vm2252_vm9, %v7490_v39  ;;  %v7572_v40 = vpop.permute.xlu0 %7571 }
0x16ee   : > { %7574 = vst.msk [vmem:[#allocation3] sm:$0xff] %vm2335_vm10, %v7572_v40 }
0x16f0   : > { %v7654_v42 = vpop.permute.xlu1 %7653 }
0x16f1   : > { %7656 = vst.msk [vmem:[#allocation3] sm:$0xff] %vm2418_vm11, %v7654_v42  ;;  %v7736_v10 = vpop.permute.xlu0 %7735 }
0x16f2   : > { %7738 = vst.msk [vmem:[#allocation3] sm:$0xff] %vm2501_vm12, %v7736_v10  ;;  %v8433_v10 = vld [vmem:[%s10984_s6 + $0x1] ss:$0 sm:$0xff] }
0x16f9   : > { %v7739_v22 = vld [vmem:[#allocation3] sm:$0xff] }
0x16fa   : > { %v7740_v44 = vpack.c.bf16 %v7739_v22, %v7739_v22 }
0x16fc   : > { %9129 = vmatmul.mubr.msk.bf16.vlgmr.msra.gmra.mxu1 %vm946_vm3, %v7740_v44  ;;  %v8434_v44 = vld [vmem:[%s10985_s11 + $0x1] ss:$0 sm:$0xff] }
0x16fd   : > { %9156 = vmatprep.mubr.msk.bf16.mxu1 %vm9496_vm0, %v9495_v2  ;;  %9141 = vmatpush3.bf16.msra.mxu1 %v9269_v57 }
0x16fe   : > { %9142 = vmatprep.subr.bf16.mxu1 %v9495_v2 }
0x1701   : > { %9143 = vmatpush3.bf16.msra.mxu1 %v9270_v17 }
0x1702   : > { %9144 = vmatprep.subr.bf16.mxu1 %v9495_v2 }
0x1705   : > { %9145 = vmatpush3.bf16.msra.mxu1 %v9271_v59 }
0x1706   : > { %9146 = vmatprep.subr.bf16.mxu1 %v9495_v2 }
0x1709   : > { %9147 = vmatpush3.bf16.msra.mxu1 %v9272_v60 }
0x170a   : > { %9148 = vmatprep.subr.bf16.mxu1 %v9495_v2 }
0x170d   : > { %9149 = vmatpush3.bf16.msra.mxu1 %v9273_v61 }
0x170e   : > { %9150 = vmatprep.subr.bf16.mxu1 %v9495_v2 }
0x1711   : > { %9151 = vmatpush3.bf16.msra.mxu1 %v9274_v62 }
0x1712   : > { %9152 = vmatprep.subr.bf16.mxu1 %v9495_v2 }
0x1715   : > { %9153 = vmatpush3.bf16.msra.mxu1 %v9275_v43 }
0x1716   : > { %9154 = vmatprep.subr.bf16.mxu1 %v9495_v2 }
0x1719   : > { %9155 = vmatpush3.bf16.msra.mxu1 %v9276_v58 }
0x17bc   : > { %v7796_v45 = vpop.f32.mrf.mxu1 }
0x17bd   : > { %v7797_v46 = vadd.f32 %v8414_v7, %v7796_v45 }
0x17be   : > { %v9130_v47 = vpop.f32.mrf.mxu1 }
0x17bf   : > { %v7802_v48 = vadd.f32 %v7797_v46, %v10570_v19  ;;  %v9268_v19 = vld [vmem:[%s10841_s19 + $0x10] sm:$0xff]  }
0x17c0   : > { %v7799_v49 = vpop.f32.mrf.mxu1  ;;  %9135 = vmatpush3.bf16.msra.mxu0 %v9268_v19 }
0x17c1   : > { %v7803_v50 = vsel %vm946_vm3, %v7802_v48, 0.0  ;;  %9160 = vmatprep.subr.bf16.mxu0 %v9495_v2 }
0x17c2   : > { %7804 = vadd.xlane.f32.xlu1 %v7803_v50  ;;  %v9131_v51 = vpop.f32.mrf.mxu1 }
0x184b   : > { %v7805_v52 = vpop.xlane.xlu1 %7804 }
0x184c   : > { %v7806_v53 = vmul.f32 0.03125, %v7805_v52 }
0x184e   : > { %v7807_v54 = vsub.f32 %v7802_v48, %v7806_v53 }
0x1850   : > { %v7808_v55 = vmul.f32 %v7807_v54, %v7807_v54 }
0x1852   : > { %v7809_v56 = vsel %vm946_vm3, %v7808_v55, 0.0 }
0x1853   : > { %7810 = vadd.xlane.f32.xlu0 %v7809_v56 }
0x18dc   : > { %v7811_v63 = vpop.xlane.xlu0 %7810 }
0x18dd   : > { %v7812_v0 = vmul.f32 0.03125, %v7811_v63 }
0x18df   : > { %v7813_v1 = vadd.f32 1e-05, %v7812_v0 }
0x18e1   : > { %9415 = vrsqrt.f32 %v7813_v1 }
0x18ee   : > { %v9416_v3 = vpop.eup %9415 }
0x18ef   : > { %v7815_v5 = vmul.f32 %v9416_v3, %v7807_v54 }
0x18f1   : > { %v7822_v8 = vmul.f32 %v8418_v4, %v7815_v5 }
0x18f3   : > { %v7829_v9 = vadd.f32 %v8419_v6, %v7822_v8 }
0x18f5   : > { %v7830_v11 = vpack.c.bf16 %v7829_v9, %v7829_v9 }
0x18f7   : > { %9137 = vmatmul.mubr.msk.bf16.vlgmr.msra.gmra.mxu0 %vm946_vm3, %v7830_v11 }
0x18f8   : > { %9164 = vmatprep.mubr.msk.bf16.mxu0 %vm9496_vm0, %v9495_v2  ;;  %9161 = vmatpush3.bf16.msra.mxu0 %v9277_v37 }
0x18f9   : > { %9162 = vmatprep.subr.bf16.mxu0 %v9495_v2  ;;  %v8435_v2 = vld [vmem:[%s10993_s0] ss:$0 sm:$0xff] }
0x18fc   : > { %9163 = vmatpush3.bf16.msra.mxu0 %v9278_v12 }
0x19b7   : > { %v7886_v14 = vpop.f32.mrf.mxu0 }
0x19b8   : > { %v7887_v15 = vadd.f32 %v8420_v13, %v7886_v14 }
0x19b9   : > { %v9138_v16 = vpop.f32.mrf.mxu0 }
0x19ba   : > { %v7892_v18 = vmax.f32 %v7887_v15, 0.0 }
0x19bb   : > { %v7889_v20 = vpop.f32.mrf.mxu0 }
0x19bc   : > { %v7893_v21 = vpack.c.bf16 %v7892_v18, %v7892_v18 }
0x19bd   : > { %v9139_v23 = vpop.f32.mrf.mxu0 }
0x19be   : > { %9157 = vmatmul.mubr.bf16.vlgmr.msra.gmra.mxu1 %v7893_v21 }
0x1a7e   : > { %v7982_v25 = vpop.f32.mrf.mxu1 }
0x1a7f   : > { %v7983_v27 = vadd.f32 %v8424_v24, %v7982_v25 }
0x1a80   : > { %v9158_v28 = vpop.f32.mrf.mxu1 }
0x1a81   : > { %v7988_v29 = vadd.f32 %v7983_v27, %v7829_v9 }
0x1a82   : > { %v7985_v30 = vpop.f32.mrf.mxu1 }
0x1a83   : > { %v7989_v41 = vsel %vm946_vm3, %v7988_v29, 0.0 }
0x1a84   : > { %7990 = vadd.xlane.f32.xlu0 %v7989_v41  ;;  %v9159_v31 = vpop.f32.mrf.mxu1 }
0x1b0d   : > { %v7991_v32 = vpop.xlane.xlu0 %7990 }
0x1b0e   : > { %v7992_v26 = vmul.f32 0.03125, %v7991_v32 }
0x1b10   : > { %v7993_v33 = vsub.f32 %v7988_v29, %v7992_v26 }
0x1b12   : > { %v7994_v34 = vmul.f32 %v7993_v33, %v7993_v33 }
0x1b14   : > { %v7995_v36 = vsel %vm946_vm3, %v7994_v34, 0.0 }
0x1b15   : > { %7996 = vadd.xlane.f32.xlu1 %v7995_v36 }
0x1b9e   : > { %v7997_v38 = vpop.xlane.xlu1 %7996 }
0x1b9f   : > { %v7998_v39 = vmul.f32 0.03125, %v7997_v38 }
0x1ba1   : > { %v7999_v40 = vadd.f32 1e-05, %v7998_v39 }
0x1ba3   : > { %9417 = vrsqrt.f32 %v7999_v40 }
0x1bb0   : > { %v9418_v42 = vpop.eup %9417 }
0x1bb1   : > { %v8001_v22 = vmul.f32 %v9418_v42, %v7993_v33 }
0x1bb3   : > { %v8008_v7 = vmul.f32 %v8433_v10, %v8001_v22 }
0x1bb5   : > { %v8015_v45 = vadd.f32 %v8434_v44, %v8008_v7 }
0x1bb7   : > { %v8020_v46 = vpack.c.bf16 %v8015_v45, %v8015_v45 }
0x1bb9   : > { %9165 = vmatmul.mubr.msk.bf16.vlgmr.msra.gmra.mxu0 %vm946_vm3, %v8020_v46 }
0x1c79   : > { %v8077_v47 = vpop.f32.mrf.mxu0 }
0x1c7a   : > { %v8078_v48 = vadd.f32 %v8435_v2, %v8077_v47 }
0x1c7b   : > { %v9166_v49 = vpop.f32.mrf.mxu0 }
0x1c7c   : > { %8083 = vmax.xlane.f32.xlu0 %v8078_v48 }
0x1c7d   : > { %v8080_v50 = vpop.f32.mrf.mxu0 }
0x1c7f   : > { %v9167_v51 = vpop.f32.mrf.mxu0 }
0x1d05   : > { %v8084_v52 = vpop.xlane.xlu0 %8083 }
0x1d06   : > { %v8085_v53 = vsub.f32 %v8078_v48, %v8084_v52 }
0x1d08   : > { %v8086_v54 = vmul.f32 1.442695, %v8085_v53 }
0x1d0a   : > { %9419 = vpow2.f32 %v8086_v54 }
0x1d17   : > { %v9420_v55 = vpop.eup %9419 }
0x1d18   : > { %8088 = vadd.xlane.f32.xlu1 %v9420_v55 }
0x1da1   : > { %v8089_v56 = vpop.xlane.xlu1 %8088 }
0x1da2   : > { %9421 = vrcp.f32 %v8089_v56 }
0x1daf   : > { %v9422_v35 = vpop.eup %9421 }
0x1db0   : > { %v8091_v19 = vmul.f32 %v9422_v35, %v9420_v55 }
0x1db2   : > { %8092 = vst [vmem:[%s822_s4] sm:$0xff] %v8091_v19 }
0x1db3   : > { %9445 = shalt.err (!%p9442_p3)
}
0x1db4   : > { %s9446_s30 = scalar_lea.hbm %s8105_s23, 128  ;;  %s9450_s0 = scalar_lea.hbm %s10997_s15, 256 }
0x1db5   : > { %p9447_p4 = scmp.ne.s32.totalorder %s8105_s23, %s9446_s30  ;;  %p9451_p9 = scmp.lt.s32.totalorder %s8105_s23, %s10997_s15 }
0x1db6   : > { %p9452_p10 = scmp.lt.s32.totalorder %s9450_s0, %s9446_s30 }
0x1db7   : > { %p9448_p7 = pnand %p9447_p4, %p9690_p5 }
0x1db8   : > { %p9453_p11 = por %p9452_p10, %p9451_p9 }
0x1db9   : > { %p9449_p8 = pneg %p9448_p7 }
0x1dbb   : > { %p9454_p12 = pnand %p9453_p11, %p9449_p8 }
0x1dbd   : > { %9457 = shalt.err (!%p9454_p12)
}
0x1dbe   : > { %9168 = dma.vmem_to_hbm [thread:$0]  (%p9690_p5), %s8108_s1, 128, %s8105_s23, %s8094_s9  }
0x1dbf PF: > { %s10998_s7 = sld [smem:[#allocation10_spill]] }
0x1dc0   : > { %s10999_s25 = sld [smem:[#allocation7_spill]] }
0x1dc5   : > { %p9174_p13 = scmp.ge.s32.totalorder %s10998_s7, 2 }
0x1dc6   : > { %s8119_s4 = sand.u32 1, %s10999_s25  }
0x1dc7   : > { %p9171_p0 = pnand %p9174_p13, %p9694_p6  ;;  %s8120_s27 = scalar_lea.sflag [#allocation5], %s8119_s4 }
0x1dc9   : > { %p9172_p1 = pneg %p9171_p0 }
0x1dcb   : > { %9475 = dma.done.wait (%p9172_p1), %s8120_s27, 128  }
0x1dcc   : > { %9477 = vsyncadd (%p9172_p1), %s8120_s27, 4294967168  ;;  %s11001_s30 = sld [smem:[#allocation12_spill]] }
0x1dcd   : > { %s11002_s7 = sld [smem:[#allocation8_spill]] }
0x1dce   : > { %s11003_s4 = sld [smem:[#allocation9_spill]] }
0x1dcf   : > { %s11004_s8 = sld [smem:[#allocation13_spill]] }
0x1dd2   : > { %p37_p2 = scmp.ge.s32.totalorder %s11001_s30, 4  }
0x1dd4   :  { %39 = sbr.rel (!%p37_p2) target bundleno = 26 (0x1a), region = 186 }
0x1dd9   :  { %8125 = vsyncpa [#allocation5], 1 }
0x1dda   :  { %8127 = vsyncpa [#allocation5 + $0x1], 1 }

</bundles_post_ra>
